<compile_context>
chip_gen: v6e
topology: v6e:2x2x1
jax: 0.10.0
libtpu: 0.0.40
codegen_flags: <defaults>
</compile_context>

<pallas_src>
import math

import jax
import jax.numpy as jnp
import numpy as np
from jax import lax
from jax.experimental import pallas as pl
from jax.experimental.pallas import tpu as pltpu


# ---------------------------------------------------------------------------
# Kernel
# ---------------------------------------------------------------------------
def _make_resblk_kernel(H, W, C_in, C_out, *, normalize, downsample, learned_sc,
                        slope=0.2, eps=1e-5):
    Hp, Wp = (H // 2, W // 2) if downsample else (H, W)
    n1, n2 = H * W, Hp * Wp
    inv_sqrt2 = 1.0 / math.sqrt(2.0)

    def leaky(v):
        # slope in (0,1) -> LeakyReLU == max(v, slope*v)   (2 VPU ops)
        return jnp.maximum(v, slope * v)

    def inst_norm(v, g, b):
        # One-sweep stats: biased var = E[x^2] - mean^2 (InstanceNorm2d semantics).
        inv_n = 1.0 / v.shape[0]
        s1 = jnp.sum(v, axis=0, keepdims=True)
        s2 = jnp.sum(v * v, axis=0, keepdims=True)
        mean = s1 * inv_n
        var = s2 * inv_n - mean * mean
        scale = g * lax.rsqrt(var + eps)
        return v * scale + (b - mean * scale)

    def avg_pool2(v, hh, ww, c):
        # Exact 2x2/stride-2 average pool on the flattened (hh*ww, c) view:
        # a handful of VPU adds, no pooling matrix, no MXU.
        hp, wp = hh // 2, ww // 2
        a = v.reshape(hh * wp, 2, c)
        a = a[:, 0, :] + a[:, 1, :]                 # sum horizontal pairs
        bsum = a.reshape(hp, 2, wp, c)
        bsum = bsum[:, 0, :, :] + bsum[:, 1, :, :]  # sum vertical pairs
        return bsum.reshape(hp * wp, c) * 0.25

    def kernel(*refs):
        it = iter(refs)
        x_ref = next(it)
        w1_ref = next(it)
        b1_ref = next(it)
        w2_ref = next(it)
        b2_ref = next(it)
        m1_ref = next(it)
        m2_ref = next(it) if downsample else m1_ref
        wsc_ref = next(it) if learned_sc else None
        if normalize:
            g1_ref = next(it)
            be1_ref = next(it)
            g2_ref = next(it)
            be2_ref = next(it)
        out_ref = next(it)
        pad1_ref = next(it)
        pad2_ref = next(it)
        im_ref = next(it)

        def conv3x3(pad_ref, act, mask_ref, w_ref, b_ref, hh, ww, n):
            """3x3 'same' conv: H-only zero halo + im2col + one bf16 MXU matmul."""
            cin = act.shape[-1]
            base = ww + 1
            zero_rows = jnp.zeros((base, cin), jnp.float32)
            pad_ref[0:base, :] = zero_rows                      # top halo (+ guard)
            pad_ref[base + n:base + n + base, :] = zero_rows    # bottom halo (+ guard)
            pad_ref[base:base + n, :] = act
            mask_l = mask_ref[:, 0:1]   # 0 where w == 0
            mask_r = mask_ref[:, 1:2]   # 0 where w == ww - 1
            for dh in (-1, 0, 1):
                for dw in (-1, 0, 1):
                    k = (dh + 1) * 3 + (dw + 1)
                    off = base + dh * ww + dw
                    patch = pad_ref[off:off + n, :]
                    if dw == -1:
                        patch = patch * mask_l
                    elif dw == 1:
                        patch = patch * mask_r
                    im_ref[0:n, k * cin:(k + 1) * cin] = patch.astype(jnp.bfloat16)
            acc = jnp.dot(im_ref[0:n, :], w_ref[...],
                          preferred_element_type=jnp.float32)
            return acc + b_ref[...]

        x2d = x_ref[0].astype(jnp.float32)          # (H*W, C_in)

        # ------------------------- residual branch -------------------------
        h = x2d
        if normalize:
            h = inst_norm(h, g1_ref[...], be1_ref[...])
        h = leaky(h)
        h = conv3x3(pad1_ref, h, m1_ref, w1_ref, b1_ref, H, W, n1)
        if downsample:
            h = avg_pool2(h, H, W, C_in)
        if normalize:
            h = inst_norm(h, g2_ref[...], be2_ref[...])
        h = leaky(h)
        h = conv3x3(pad2_ref, h, m2_ref, w2_ref, b2_ref, Hp, Wp, n2)

        # ------------------------- shortcut branch -------------------------
        # Pool before the 1x1 conv (they commute exactly): 4x fewer MXU FLOPs.
        s = x2d
        if downsample:
            s = avg_pool2(s, H, W, C_in)
        if learned_sc:
            s = jnp.dot(s.astype(jnp.bfloat16), wsc_ref[...],
                        preferred_element_type=jnp.float32)

        out_ref[0] = ((h + s) * inv_sqrt2).astype(out_ref.dtype)

    return kernel


# ---------------------------------------------------------------------------
# Wrapper
# ---------------------------------------------------------------------------
def _edge_mask(H, W):
    """(H*W, 2) f32: col0 is 0 where w == 0, col1 is 0 where w == W-1, else 1."""
    w_idx = np.tile(np.arange(W), H)
    left = (w_idx != 0).astype(np.float32)
    right = (w_idx != W - 1).astype(np.float32)
    return jnp.asarray(np.stack([left, right], axis=1))


def _const_map(ndim):
    zero = (0,) * ndim
    return lambda n, _z=zero: _z


def resblk_forward(x, params, *, normalize=False, downsample=False):
    """x: (N, H, W, C_in) f32 NHWC.
    params: w1 (3,3,Cin,Cin), b1 (1,Cin), w2 (3,3,Cin,Cout), b2 (1,Cout),
            optional wsc (Cin,Cout), optional g1/be1/g2/be2 (1,Cin)."""
    N, H, W, C_in = x.shape
    C_out = params["w2"].shape[-1]
    learned_sc = C_in != C_out
    if downsample:
        assert H % 2 == 0 and W % 2 == 0
    Hp, Wp = (H // 2, W // 2) if downsample else (H, W)
    n1, n2 = H * W, Hp * Wp

    # bf16 MXU operands (reshaped once here); f32 accumulation happens in-kernel.
    w1r = params["w1"].reshape(9 * C_in, C_in).astype(jnp.bfloat16)
    w2r = params["w2"].reshape(9 * C_in, C_out).astype(jnp.bfloat16)
    b1 = params["b1"].reshape(1, C_in).astype(jnp.float32)
    b2 = params["b2"].reshape(1, C_out).astype(jnp.float32)

    inputs = [x.reshape(N, n1, C_in), w1r, b1, w2r, b2, _edge_mask(H, W)]
    if downsample:
        inputs.append(_edge_mask(Hp, Wp))
    if learned_sc:
        inputs.append(params["wsc"].astype(jnp.bfloat16))
    if normalize:
        inputs += [params["g1"].reshape(1, C_in).astype(jnp.float32),
                   params["be1"].reshape(1, C_in).astype(jnp.float32),
                   params["g2"].reshape(1, C_in).astype(jnp.float32),
                   params["be2"].reshape(1, C_in).astype(jnp.float32)]

    in_specs = [pl.BlockSpec((1, n1, C_in), lambda n: (n, 0, 0))]
    in_specs += [pl.BlockSpec(a.shape, _const_map(a.ndim)) for a in inputs[1:]]

    kernel = _make_resblk_kernel(H, W, C_in, C_out, normalize=normalize,
                                 downsample=downsample, learned_sc=learned_sc)

    out = pl.pallas_call(
        kernel,
        out_shape=jax.ShapeDtypeStruct((N, n2, C_out), x.dtype),
        grid=(N,),
        in_specs=in_specs,
        out_specs=pl.BlockSpec((1, n2, C_out), lambda n: (n, 0, 0)),
        scratch_shapes=[
            pltpu.VMEM(((H + 2) * W + 2, C_in), jnp.float32),     # conv1 H-padded act
            pltpu.VMEM(((Hp + 2) * Wp + 2, C_in), jnp.float32),   # conv2 H-padded act
            pltpu.VMEM((n1, 9 * C_in), jnp.bfloat16),             # shared im2col
        ],
        compiler_params=pltpu.CompilerParams(
            dimension_semantics=("parallel",),
            vmem_limit_bytes=64 * 1024 * 1024),
    )(*inputs)
    return out.reshape(N, Hp, Wp, C_out)


# ---------------------------------------------------------------------------
# Pure-JAX reference (PyTorch semantics)
# ---------------------------------------------------------------------------
def reference_resblk(x, params, *, normalize, downsample):
    C_in = x.shape[-1]
    C_out = params["w2"].shape[-1]
    learned_sc = C_in != C_out
    hi = lax.Precision.HIGHEST
    slope, eps = 0.2, 1e-5

    def leaky(v):
        return jnp.where(v >= 0.0, v, slope * v)

    def inorm(v, g, b):
        mean = jnp.mean(v, axis=(1, 2), keepdims=True)
        var = jnp.mean((v - mean) ** 2, axis=(1, 2), keepdims=True)
        return ((v - mean) * lax.rsqrt(var + eps) * g.reshape(1, 1, 1, -1)
                + b.reshape(1, 1, 1, -1))

    def conv3(v, w, b):
        out = lax.conv_general_dilated(
            v, w, window_strides=(1, 1), padding="SAME",
            dimension_numbers=("NHWC", "HWIO", "NHWC"), precision=hi)
        return out + b.reshape(1, 1, 1, -1)

    def pool(v):
        n, h, w, c = v.shape
        return v.reshape(n, h // 2, 2, w // 2, 2, c).mean(axis=(2, 4))

    h = x
    if normalize:
        h = inorm(h, params["g1"], params["be1"])
    h = leaky(h)
    h = conv3(h, params["w1"], params["b1"])
    if downsample:
        h = pool(h)
    if normalize:
        h = inorm(h, params["g2"], params["be2"])
    h = leaky(h)
    h = conv3(h, params["w2"], params["b2"])

    s = x
    if learned_sc:
        s = jnp.einsum("nhwc,cd->nhwd", s, params["wsc"], precision=hi)
    if downsample:
        s = pool(s)
    return (h + s) / math.sqrt(2.0)


# ---------------------------------------------------------------------------
# Demo / self-test
# ---------------------------------------------------------------------------
if __name__ == "__main__":
    N, H, W = 2, 16, 16
    C_in, C_out = 4, 8            # learned_sc = True

    key = jax.random.PRNGKey(0)
    keys = jax.random.split(key, 16)
    x = jax.random.normal(keys[0], (N, H, W, C_in), jnp.float32)

    def uinit(k, shape, fan_in):
        b = 1.0 / math.sqrt(fan_in)
        return jax.random.uniform(k, shape, jnp.float32, -b, b)

    # ---- config 1: normalize + downsample + learned shortcut ----
    params = {
        # conv weights stored HWIO: [kh, kw, Cin, Cout]
        "w1": uinit(keys[1], (3, 3, C_in, C_in), 9 * C_in),
        "b1": uinit(keys[2], (1, C_in), 9 * C_in),
        "w2": uinit(keys[3], (3, 3, C_in, C_out), 9 * C_in),
        "b2": uinit(keys[4], (1, C_out), 9 * C_in),
        "wsc": uinit(keys[5], (C_in, C_out), C_in),        # 1x1 conv, no bias
        "g1": 1.0 + 0.1 * jax.random.normal(keys[6], (1, C_in), jnp.float32),
        "be1": 0.1 * jax.random.normal(keys[7], (1, C_in), jnp.float32),
        "g2": 1.0 + 0.1 * jax.random.normal(keys[8], (1, C_in), jnp.float32),
        "be2": 0.1 * jax.random.normal(keys[9], (1, C_in), jnp.float32),
    }

    out = resblk_forward(x, params, normalize=True, downsample=True)
    out = jax.block_until_ready(out)
    ref = reference_resblk(x, params, normalize=True, downsample=True)
    assert out.shape == (N, H // 2, W // 2, C_out)
    err = float(jnp.max(jnp.abs(out - ref)))
    # Tolerance covers bf16 MXU operands (f32 accumulate) vs HIGHEST-precision ref.
    assert jnp.allclose(out, ref, atol=3e-2, rtol=3e-2), f"max abs err {err}"

    # ---- config 2: identity shortcut, no norm, no downsample ----
    params2 = {
        "w1": uinit(keys[10], (3, 3, C_in, C_in), 9 * C_in),
        "b1": uinit(keys[11], (1, C_in), 9 * C_in),
        "w2": uinit(keys[12], (3, 3, C_in, C_in), 9 * C_in),
        "b2": uinit(keys[13], (1, C_in), 9 * C_in),
    }
    out2 = resblk_forward(x, params2, normalize=False, downsample=False)
    out2 = jax.block_until_ready(out2)
    ref2 = reference_resblk(x, params2, normalize=False, downsample=False)
    assert out2.shape == (N, H, W, C_in)
    err2 = float(jnp.max(jnp.abs(out2 - ref2)))
    assert jnp.allclose(out2, ref2, atol=3e-2, rtol=3e-2), f"max abs err {err2}"

    print("KERNEL_OK")
</pallas_src>

<mosaic_0001>
module attributes {stable_mosaic.version = 11 : i64} {
  func.func @kernel(%arg0: i32, %arg1: memref<1x256x4xf32, #tpu.memory_space<vmem>>, %arg2: memref<36x4xbf16, #tpu.memory_space<vmem>>, %arg3: memref<1x4xf32, #tpu.memory_space<vmem>>, %arg4: memref<36x8xbf16, #tpu.memory_space<vmem>>, %arg5: memref<1x8xf32, #tpu.memory_space<vmem>>, %arg6: memref<256x2xf32, #tpu.memory_space<vmem>>, %arg7: memref<64x2xf32, #tpu.memory_space<vmem>>, %arg8: memref<4x8xbf16, #tpu.memory_space<vmem>>, %arg9: memref<1x4xf32, #tpu.memory_space<vmem>>, %arg10: memref<1x4xf32, #tpu.memory_space<vmem>>, %arg11: memref<1x4xf32, #tpu.memory_space<vmem>>, %arg12: memref<1x4xf32, #tpu.memory_space<vmem>>, %arg13: memref<1x64x8xf32, #tpu.memory_space<vmem>>, %arg14: memref<290x4xf32, #tpu.memory_space<vmem>>, %arg15: memref<82x4xf32, #tpu.memory_space<vmem>>, %arg16: memref<256x36xbf16, #tpu.memory_space<vmem>>) attributes {dimension_semantics = [#tpu.dimension_semantics<parallel>], iteration_bounds = array<i64: 2>, scalar_prefetch = 0 : i64, scratch_operands = 3 : i64, tpu.core_type = #tpu.core_type<tc>, window_params = [{transform_indices = @transform_0, window_bounds = array<i64: 1, 256, 4>}, {pipeline_mode = #tpu.pipeline_mode<synchronous>, transform_indices = @transform_1, window_bounds = array<i64: 36, 4>}, {pipeline_mode = #tpu.pipeline_mode<synchronous>, transform_indices = @transform_2, window_bounds = array<i64: 1, 4>}, {pipeline_mode = #tpu.pipeline_mode<synchronous>, transform_indices = @transform_3, window_bounds = array<i64: 36, 8>}, {pipeline_mode = #tpu.pipeline_mode<synchronous>, transform_indices = @transform_4, window_bounds = array<i64: 1, 8>}, {pipeline_mode = #tpu.pipeline_mode<synchronous>, transform_indices = @transform_5, window_bounds = array<i64: 256, 2>}, {pipeline_mode = #tpu.pipeline_mode<synchronous>, transform_indices = @transform_6, window_bounds = array<i64: 64, 2>}, {pipeline_mode = #tpu.pipeline_mode<synchronous>, transform_indices = @transform_7, window_bounds = array<i64: 4, 8>}, {pipeline_mode = #tpu.pipeline_mode<synchronous>, transform_indices = @transform_8, window_bounds = array<i64: 1, 4>}, {pipeline_mode = #tpu.pipeline_mode<synchronous>, transform_indices = @transform_9, window_bounds = array<i64: 1, 4>}, {pipeline_mode = #tpu.pipeline_mode<synchronous>, transform_indices = @transform_10, window_bounds = array<i64: 1, 4>}, {pipeline_mode = #tpu.pipeline_mode<synchronous>, transform_indices = @transform_11, window_bounds = array<i64: 1, 4>}, {transform_indices = @transform_12, window_bounds = array<i64: 1, 64, 8>}]} {
    %c0 = arith.constant 0 : index
    %c0_0 = arith.constant 0 : index
    %c0_1 = arith.constant 0 : index
    %0 = vector.load %arg1[%c0, %c0_0, %c0_1] : memref<1x256x4xf32, #tpu.memory_space<vmem>>, vector<1x256x4xf32>
    %1 = vector.shape_cast %0 : vector<1x256x4xf32> to vector<256x4xf32>
    %c0_2 = arith.constant 0 : index
    %c0_3 = arith.constant 0 : index
    %2 = vector.load %arg9[%c0_2, %c0_3] : memref<1x4xf32, #tpu.memory_space<vmem>>, vector<1x4xf32>
    %c0_4 = arith.constant 0 : index
    %c0_5 = arith.constant 0 : index
    %3 = vector.load %arg10[%c0_4, %c0_5] : memref<1x4xf32, #tpu.memory_space<vmem>>, vector<1x4xf32>
    %cst = arith.constant dense<0.000000e+00> : vector<4xf32>
    %4 = vector.multi_reduction <add>, %1, %cst [0] : vector<256x4xf32> to vector<4xf32>
    %5 = vector.shape_cast %4 : vector<4xf32> to vector<1x4xf32>
    %6 = arith.mulf %1, %1 : vector<256x4xf32>
    %cst_6 = arith.constant dense<0.000000e+00> : vector<4xf32>
    %7 = vector.multi_reduction <add>, %6, %cst_6 [0] : vector<256x4xf32> to vector<4xf32>
    %8 = vector.shape_cast %7 : vector<4xf32> to vector<1x4xf32>
    %cst_7 = arith.constant 3.906250e-03 : f32
    %9 = vector.broadcast %cst_7 : f32 to vector<1x4xf32>
    %10 = arith.mulf %5, %9 : vector<1x4xf32>
    %cst_8 = arith.constant 3.906250e-03 : f32
    %11 = vector.broadcast %cst_8 : f32 to vector<1x4xf32>
    %12 = arith.mulf %8, %11 : vector<1x4xf32>
    %13 = arith.mulf %10, %10 : vector<1x4xf32>
    %14 = arith.subf %12, %13 : vector<1x4xf32>
    %cst_9 = arith.constant 9.99999974E-6 : f32
    %15 = vector.broadcast %cst_9 : f32 to vector<1x4xf32>
    %16 = arith.addf %14, %15 : vector<1x4xf32>
    %17 = math.rsqrt %16 : vector<1x4xf32>
    %18 = arith.mulf %2, %17 : vector<1x4xf32>
    %19 = vector.broadcast %18 : vector<1x4xf32> to vector<256x4xf32>
    %20 = arith.mulf %1, %19 : vector<256x4xf32>
    %21 = arith.mulf %10, %18 : vector<1x4xf32>
    %22 = arith.subf %3, %21 : vector<1x4xf32>
    %23 = vector.broadcast %22 : vector<1x4xf32> to vector<256x4xf32>
    %24 = arith.addf %20, %23 : vector<256x4xf32>
    %cst_10 = arith.constant 2.000000e-01 : f32
    %25 = vector.broadcast %cst_10 : f32 to vector<256x4xf32>
    %26 = arith.mulf %25, %24 : vector<256x4xf32>
    %27 = arith.maximumf %24, %26 : vector<256x4xf32>
    %cst_11 = arith.constant 0.000000e+00 : f32
    %28 = vector.broadcast %cst_11 : f32 to vector<17x4xf32>
    %c0_12 = arith.constant 0 : index
    %c0_13 = arith.constant 0 : index
    %29 = vector.load %arg14[%c0_12, %c0_13] : memref<290x4xf32, #tpu.memory_space<vmem>>, vector<17x4xf32>
    tpu.vector_store %arg14[%c0_12, %c0_13], %28 {strides = array<i32>} : memref<290x4xf32, #tpu.memory_space<vmem>>, vector<17x4xf32>,
    %c273 = arith.constant 273 : index
    %c0_14 = arith.constant 0 : index
    %30 = vector.load %arg14[%c273, %c0_14] : memref<290x4xf32, #tpu.memory_space<vmem>>, vector<17x4xf32>
    tpu.vector_store %arg14[%c273, %c0_14], %28 {strides = array<i32>} : memref<290x4xf32, #tpu.memory_space<vmem>>, vector<17x4xf32>,
    %c17 = arith.constant 17 : index
    %c0_15 = arith.constant 0 : index
    %31 = vector.load %arg14[%c17, %c0_15] : memref<290x4xf32, #tpu.memory_space<vmem>>, vector<256x4xf32>
    tpu.vector_store %arg14[%c17, %c0_15], %27 {strides = array<i32>} : memref<290x4xf32, #tpu.memory_space<vmem>>, vector<256x4xf32>,
    %c0_16 = arith.constant 0 : index
    %c0_17 = arith.constant 0 : index
    %32 = vector.load %arg6[%c0_16, %c0_17] : memref<256x2xf32, #tpu.memory_space<vmem>>, vector<256x1xf32>
    %c0_18 = arith.constant 0 : index
    %c1 = arith.constant 1 : index
    %33 = vector.load %arg6[%c0_18, %c1] : memref<256x2xf32, #tpu.memory_space<vmem>>, vector<256x1xf32>
    %c0_19 = arith.constant 0 : index
    %c0_20 = arith.constant 0 : index
    %34 = vector.load %arg14[%c0_19, %c0_20] : memref<290x4xf32, #tpu.memory_space<vmem>>, vector<256x4xf32>
    %35 = vector.broadcast %32 : vector<256x1xf32> to vector<256x4xf32>
    %36 = arith.mulf %34, %35 : vector<256x4xf32>
    %37 = arith.truncf %36 : vector<256x4xf32> to vector<256x4xbf16>
    %c0_21 = arith.constant 0 : index
    %c0_22 = arith.constant 0 : index
    %38 = vector.load %arg16[%c0_21, %c0_22] : memref<256x36xbf16, #tpu.memory_space<vmem>>, vector<256x4xbf16>
    tpu.vector_store %arg16[%c0_21, %c0_22], %37 {strides = array<i32>} : memref<256x36xbf16, #tpu.memory_space<vmem>>, vector<256x4xbf16>,
    %c1_23 = arith.constant 1 : index
    %c0_24 = arith.constant 0 : index
    %39 = vector.load %arg14[%c1_23, %c0_24] : memref<290x4xf32, #tpu.memory_space<vmem>>, vector<256x4xf32>
    %40 = arith.truncf %39 : vector<256x4xf32> to vector<256x4xbf16>
    %c0_25 = arith.constant 0 : index
    %c4 = arith.constant 4 : index
    %41 = vector.load %arg16[%c0_25, %c4] : memref<256x36xbf16, #tpu.memory_space<vmem>>, vector<256x4xbf16>
    tpu.vector_store %arg16[%c0_25, %c4], %40 {strides = array<i32>} : memref<256x36xbf16, #tpu.memory_space<vmem>>, vector<256x4xbf16>,
    %c2 = arith.constant 2 : index
    %c0_26 = arith.constant 0 : index
    %42 = vector.load %arg14[%c2, %c0_26] : memref<290x4xf32, #tpu.memory_space<vmem>>, vector<256x4xf32>
    %43 = vector.broadcast %33 : vector<256x1xf32> to vector<256x4xf32>
    %44 = arith.mulf %42, %43 : vector<256x4xf32>
    %45 = arith.truncf %44 : vector<256x4xf32> to vector<256x4xbf16>
    %c0_27 = arith.constant 0 : index
    %c8 = arith.constant 8 : index
    %46 = vector.load %arg16[%c0_27, %c8] : memref<256x36xbf16, #tpu.memory_space<vmem>>, vector<256x4xbf16>
    tpu.vector_store %arg16[%c0_27, %c8], %45 {strides = array<i32>} : memref<256x36xbf16, #tpu.memory_space<vmem>>, vector<256x4xbf16>,
    %c16 = arith.constant 16 : index
    %c0_28 = arith.constant 0 : index
    %47 = vector.load %arg14[%c16, %c0_28] : memref<290x4xf32, #tpu.memory_space<vmem>>, vector<256x4xf32>
    %48 = vector.broadcast %32 : vector<256x1xf32> to vector<256x4xf32>
    %49 = arith.mulf %47, %48 : vector<256x4xf32>
    %50 = arith.truncf %49 : vector<256x4xf32> to vector<256x4xbf16>
    %c0_29 = arith.constant 0 : index
    %c12 = arith.constant 12 : index
    %51 = vector.load %arg16[%c0_29, %c12] : memref<256x36xbf16, #tpu.memory_space<vmem>>, vector<256x4xbf16>
    tpu.vector_store %arg16[%c0_29, %c12], %50 {strides = array<i32>} : memref<256x36xbf16, #tpu.memory_space<vmem>>, vector<256x4xbf16>,
    %c17_30 = arith.constant 17 : index
    %c0_31 = arith.constant 0 : index
    %52 = vector.load %arg14[%c17_30, %c0_31] : memref<290x4xf32, #tpu.memory_space<vmem>>, vector<256x4xf32>
    %53 = arith.truncf %52 : vector<256x4xf32> to vector<256x4xbf16>
    %c0_32 = arith.constant 0 : index
    %c16_33 = arith.constant 16 : index
    %54 = vector.load %arg16[%c0_32, %c16_33] : memref<256x36xbf16, #tpu.memory_space<vmem>>, vector<256x4xbf16>
    tpu.vector_store %arg16[%c0_32, %c16_33], %53 {strides = array<i32>} : memref<256x36xbf16, #tpu.memory_space<vmem>>, vector<256x4xbf16>,
    %c18 = arith.constant 18 : index
    %c0_34 = arith.constant 0 : index
    %55 = vector.load %arg14[%c18, %c0_34] : memref<290x4xf32, #tpu.memory_space<vmem>>, vector<256x4xf32>
    %56 = vector.broadcast %33 : vector<256x1xf32> to vector<256x4xf32>
    %57 = arith.mulf %55, %56 : vector<256x4xf32>
    %58 = arith.truncf %57 : vector<256x4xf32> to vector<256x4xbf16>
    %c0_35 = arith.constant 0 : index
    %c20 = arith.constant 20 : index
    %59 = vector.load %arg16[%c0_35, %c20] : memref<256x36xbf16, #tpu.memory_space<vmem>>, vector<256x4xbf16>
    tpu.vector_store %arg16[%c0_35, %c20], %58 {strides = array<i32>} : memref<256x36xbf16, #tpu.memory_space<vmem>>, vector<256x4xbf16>,
    %c32 = arith.constant 32 : index
    %c0_36 = arith.constant 0 : index
    %60 = vector.load %arg14[%c32, %c0_36] : memref<290x4xf32, #tpu.memory_space<vmem>>, vector<256x4xf32>
    %61 = vector.broadcast %32 : vector<256x1xf32> to vector<256x4xf32>
    %62 = arith.mulf %60, %61 : vector<256x4xf32>
    %63 = arith.truncf %62 : vector<256x4xf32> to vector<256x4xbf16>
    %c0_37 = arith.constant 0 : index
    %c24 = arith.constant 24 : index
    %64 = vector.load %arg16[%c0_37, %c24] : memref<256x36xbf16, #tpu.memory_space<vmem>>, vector<256x4xbf16>
    tpu.vector_store %arg16[%c0_37, %c24], %63 {strides = array<i32>} : memref<256x36xbf16, #tpu.memory_space<vmem>>, vector<256x4xbf16>,
    %c33 = arith.constant 33 : index
    %c0_38 = arith.constant 0 : index
    %65 = vector.load %arg14[%c33, %c0_38] : memref<290x4xf32, #tpu.memory_space<vmem>>, vector<256x4xf32>
    %66 = arith.truncf %65 : vector<256x4xf32> to vector<256x4xbf16>
    %c0_39 = arith.constant 0 : index
    %c28 = arith.constant 28 : index
    %67 = vector.load %arg16[%c0_39, %c28] : memref<256x36xbf16, #tpu.memory_space<vmem>>, vector<256x4xbf16>
    tpu.vector_store %arg16[%c0_39, %c28], %66 {strides = array<i32>} : memref<256x36xbf16, #tpu.memory_space<vmem>>, vector<256x4xbf16>,
    %c34 = arith.constant 34 : index
    %c0_40 = arith.constant 0 : index
    %68 = vector.load %arg14[%c34, %c0_40] : memref<290x4xf32, #tpu.memory_space<vmem>>, vector<256x4xf32>
    %69 = vector.broadcast %33 : vector<256x1xf32> to vector<256x4xf32>
    %70 = arith.mulf %68, %69 : vector<256x4xf32>
    %71 = arith.truncf %70 : vector<256x4xf32> to vector<256x4xbf16>
    %c0_41 = arith.constant 0 : index
    %c32_42 = arith.constant 32 : index
    %72 = vector.load %arg16[%c0_41, %c32_42] : memref<256x36xbf16, #tpu.memory_space<vmem>>, vector<256x4xbf16>
    tpu.vector_store %arg16[%c0_41, %c32_42], %71 {strides = array<i32>} : memref<256x36xbf16, #tpu.memory_space<vmem>>, vector<256x4xbf16>,
    %c0_43 = arith.constant 0 : index
    %c0_44 = arith.constant 0 : index
    %73 = vector.load %arg16[%c0_43, %c0_44] : memref<256x36xbf16, #tpu.memory_space<vmem>>, vector<256x36xbf16>
    %c0_45 = arith.constant 0 : index
    %c0_46 = arith.constant 0 : index
    %74 = vector.load %arg2[%c0_45, %c0_46] : memref<36x4xbf16, #tpu.memory_space<vmem>>, vector<36x4xbf16>
    %cst_47 = arith.constant dense<0.000000e+00> : vector<256x4xf32>
    %75 = tpu.matmul %73, %74, %cst_47 {dimension_numbers = #tpu.dot_dimension_numbers<[1], [0], [0], [1], [0, 0, 1, 1], [], []>} : vector<256x36xbf16>, vector<36x4xbf16>, vector<256x4xf32> -> vector<256x4xf32>
    %c0_48 = arith.constant 0 : index
    %c0_49 = arith.constant 0 : index
    %76 = vector.load %arg3[%c0_48, %c0_49] : memref<1x4xf32, #tpu.memory_space<vmem>>, vector<1x4xf32>
    %77 = vector.broadcast %76 : vector<1x4xf32> to vector<256x4xf32>
    %78 = arith.addf %75, %77 : vector<256x4xf32>
    %79 = vector.shape_cast %78 : vector<256x4xf32> to vector<128x2x4xf32>
    %80 = vector.extract_strided_slice %79 {offsets = [0, 0, 0], sizes = [128, 1, 4], strides = [1, 1, 1]} : vector<128x2x4xf32> to vector<128x1x4xf32>
    %81 = vector.shape_cast %80 : vector<128x1x4xf32> to vector<128x4xf32>
    %82 = vector.extract_strided_slice %79 {offsets = [0, 1, 0], sizes = [128, 1, 4], strides = [1, 1, 1]} : vector<128x2x4xf32> to vector<128x1x4xf32>
    %83 = vector.shape_cast %82 : vector<128x1x4xf32> to vector<128x4xf32>
    %84 = arith.addf %81, %83 : vector<128x4xf32>
    %85 = vector.shape_cast %84 : vector<128x4xf32> to vector<8x2x8x4xf32>
    %86 = vector.extract_strided_slice %85 {offsets = [0, 0, 0, 0], sizes = [8, 1, 8, 4], strides = [1, 1, 1, 1]} : vector<8x2x8x4xf32> to vector<8x1x8x4xf32>
    %87 = vector.shape_cast %86 : vector<8x1x8x4xf32> to vector<8x8x4xf32>
    %88 = vector.extract_strided_slice %85 {offsets = [0, 1, 0, 0], sizes = [8, 1, 8, 4], strides = [1, 1, 1, 1]} : vector<8x2x8x4xf32> to vector<8x1x8x4xf32>
    %89 = vector.shape_cast %88 : vector<8x1x8x4xf32> to vector<8x8x4xf32>
    %90 = arith.addf %87, %89 : vector<8x8x4xf32>
    %91 = vector.shape_cast %90 : vector<8x8x4xf32> to vector<64x4xf32>
    %cst_50 = arith.constant 2.500000e-01 : f32
    %92 = vector.broadcast %cst_50 : f32 to vector<64x4xf32>
    %93 = arith.mulf %91, %92 : vector<64x4xf32>
    %c0_51 = arith.constant 0 : index
    %c0_52 = arith.constant 0 : index
    %94 = vector.load %arg11[%c0_51, %c0_52] : memref<1x4xf32, #tpu.memory_space<vmem>>, vector<1x4xf32>
    %c0_53 = arith.constant 0 : index
    %c0_54 = arith.constant 0 : index
    %95 = vector.load %arg12[%c0_53, %c0_54] : memref<1x4xf32, #tpu.memory_space<vmem>>, vector<1x4xf32>
    %cst_55 = arith.constant dense<0.000000e+00> : vector<4xf32>
    %96 = vector.multi_reduction <add>, %93, %cst_55 [0] : vector<64x4xf32> to vector<4xf32>
    %97 = vector.shape_cast %96 : vector<4xf32> to vector<1x4xf32>
    %98 = arith.mulf %93, %93 : vector<64x4xf32>
    %cst_56 = arith.constant dense<0.000000e+00> : vector<4xf32>
    %99 = vector.multi_reduction <add>, %98, %cst_56 [0] : vector<64x4xf32> to vector<4xf32>
    %100 = vector.shape_cast %99 : vector<4xf32> to vector<1x4xf32>
    %cst_57 = arith.constant 1.562500e-02 : f32
    %101 = vector.broadcast %cst_57 : f32 to vector<1x4xf32>
    %102 = arith.mulf %97, %101 : vector<1x4xf32>
    %cst_58 = arith.constant 1.562500e-02 : f32
    %103 = vector.broadcast %cst_58 : f32 to vector<1x4xf32>
    %104 = arith.mulf %100, %103 : vector<1x4xf32>
    %105 = arith.mulf %102, %102 : vector<1x4xf32>
    %106 = arith.subf %104, %105 : vector<1x4xf32>
    %cst_59 = arith.constant 9.99999974E-6 : f32
    %107 = vector.broadcast %cst_59 : f32 to vector<1x4xf32>
    %108 = arith.addf %106, %107 : vector<1x4xf32>
    %109 = math.rsqrt %108 : vector<1x4xf32>
    %110 = arith.mulf %94, %109 : vector<1x4xf32>
    %111 = vector.broadcast %110 : vector<1x4xf32> to vector<64x4xf32>
    %112 = arith.mulf %93, %111 : vector<64x4xf32>
    %113 = arith.mulf %102, %110 : vector<1x4xf32>
    %114 = arith.subf %95, %113 : vector<1x4xf32>
    %115 = vector.broadcast %114 : vector<1x4xf32> to vector<64x4xf32>
    %116 = arith.addf %112, %115 : vector<64x4xf32>
    %cst_60 = arith.constant 2.000000e-01 : f32
    %117 = vector.broadcast %cst_60 : f32 to vector<64x4xf32>
    %118 = arith.mulf %117, %116 : vector<64x4xf32>
    %119 = arith.maximumf %116, %118 : vector<64x4xf32>
    %cst_61 = arith.constant 0.000000e+00 : f32
    %120 = vector.broadcast %cst_61 : f32 to vector<9x4xf32>
    %c0_62 = arith.constant 0 : index
    %c0_63 = arith.constant 0 : index
    %121 = vector.load %arg15[%c0_62, %c0_63] : memref<82x4xf32, #tpu.memory_space<vmem>>, vector<9x4xf32>
    tpu.vector_store %arg15[%c0_62, %c0_63], %120 {strides = array<i32>} : memref<82x4xf32, #tpu.memory_space<vmem>>, vector<9x4xf32>,
    %c73 = arith.constant 73 : index
    %c0_64 = arith.constant 0 : index
    %122 = vector.load %arg15[%c73, %c0_64] : memref<82x4xf32, #tpu.memory_space<vmem>>, vector<9x4xf32>
    tpu.vector_store %arg15[%c73, %c0_64], %120 {strides = array<i32>} : memref<82x4xf32, #tpu.memory_space<vmem>>, vector<9x4xf32>,
    %c9 = arith.constant 9 : index
    %c0_65 = arith.constant 0 : index
    %123 = vector.load %arg15[%c9, %c0_65] : memref<82x4xf32, #tpu.memory_space<vmem>>, vector<64x4xf32>
    tpu.vector_store %arg15[%c9, %c0_65], %119 {strides = array<i32>} : memref<82x4xf32, #tpu.memory_space<vmem>>, vector<64x4xf32>,
    %c0_66 = arith.constant 0 : index
    %c0_67 = arith.constant 0 : index
    %124 = vector.load %arg7[%c0_66, %c0_67] : memref<64x2xf32, #tpu.memory_space<vmem>>, vector<64x1xf32>
    %c0_68 = arith.constant 0 : index
    %c1_69 = arith.constant 1 : index
    %125 = vector.load %arg7[%c0_68, %c1_69] : memref<64x2xf32, #tpu.memory_space<vmem>>, vector<64x1xf32>
    %c0_70 = arith.constant 0 : index
    %c0_71 = arith.constant 0 : index
    %126 = vector.load %arg15[%c0_70, %c0_71] : memref<82x4xf32, #tpu.memory_space<vmem>>, vector<64x4xf32>
    %127 = vector.broadcast %124 : vector<64x1xf32> to vector<64x4xf32>
    %128 = arith.mulf %126, %127 : vector<64x4xf32>
    %129 = arith.truncf %128 : vector<64x4xf32> to vector<64x4xbf16>
    %c0_72 = arith.constant 0 : index
    %c0_73 = arith.constant 0 : index
    %130 = vector.load %arg16[%c0_72, %c0_73] : memref<256x36xbf16, #tpu.memory_space<vmem>>, vector<64x4xbf16>
    tpu.vector_store %arg16[%c0_72, %c0_73], %129 {strides = array<i32>} : memref<256x36xbf16, #tpu.memory_space<vmem>>, vector<64x4xbf16>,
    %c1_74 = arith.constant 1 : index
    %c0_75 = arith.constant 0 : index
    %131 = vector.load %arg15[%c1_74, %c0_75] : memref<82x4xf32, #tpu.memory_space<vmem>>, vector<64x4xf32>
    %132 = arith.truncf %131 : vector<64x4xf32> to vector<64x4xbf16>
    %c0_76 = arith.constant 0 : index
    %c4_77 = arith.constant 4 : index
    %133 = vector.load %arg16[%c0_76, %c4_77] : memref<256x36xbf16, #tpu.memory_space<vmem>>, vector<64x4xbf16>
    tpu.vector_store %arg16[%c0_76, %c4_77], %132 {strides = array<i32>} : memref<256x36xbf16, #tpu.memory_space<vmem>>, vector<64x4xbf16>,
    %c2_78 = arith.constant 2 : index
    %c0_79 = arith.constant 0 : index
    %134 = vector.load %arg15[%c2_78, %c0_79] : memref<82x4xf32, #tpu.memory_space<vmem>>, vector<64x4xf32>
    %135 = vector.broadcast %125 : vector<64x1xf32> to vector<64x4xf32>
    %136 = arith.mulf %134, %135 : vector<64x4xf32>
    %137 = arith.truncf %136 : vector<64x4xf32> to vector<64x4xbf16>
    %c0_80 = arith.constant 0 : index
    %c8_81 = arith.constant 8 : index
    %138 = vector.load %arg16[%c0_80, %c8_81] : memref<256x36xbf16, #tpu.memory_space<vmem>>, vector<64x4xbf16>
    tpu.vector_store %arg16[%c0_80, %c8_81], %137 {strides = array<i32>} : memref<256x36xbf16, #tpu.memory_space<vmem>>, vector<64x4xbf16>,
    %c8_82 = arith.constant 8 : index
    %c0_83 = arith.constant 0 : index
    %139 = vector.load %arg15[%c8_82, %c0_83] : memref<82x4xf32, #tpu.memory_space<vmem>>, vector<64x4xf32>
    %140 = vector.broadcast %124 : vector<64x1xf32> to vector<64x4xf32>
    %141 = arith.mulf %139, %140 : vector<64x4xf32>
    %142 = arith.truncf %141 : vector<64x4xf32> to vector<64x4xbf16>
    %c0_84 = arith.constant 0 : index
    %c12_85 = arith.constant 12 : index
    %143 = vector.load %arg16[%c0_84, %c12_85] : memref<256x36xbf16, #tpu.memory_space<vmem>>, vector<64x4xbf16>
    tpu.vector_store %arg16[%c0_84, %c12_85], %142 {strides = array<i32>} : memref<256x36xbf16, #tpu.memory_space<vmem>>, vector<64x4xbf16>,
    %c9_86 = arith.constant 9 : index
    %c0_87 = arith.constant 0 : index
    %144 = vector.load %arg15[%c9_86, %c0_87] : memref<82x4xf32, #tpu.memory_space<vmem>>, vector<64x4xf32>
    %145 = arith.truncf %144 : vector<64x4xf32> to vector<64x4xbf16>
    %c0_88 = arith.constant 0 : index
    %c16_89 = arith.constant 16 : index
    %146 = vector.load %arg16[%c0_88, %c16_89] : memref<256x36xbf16, #tpu.memory_space<vmem>>, vector<64x4xbf16>
    tpu.vector_store %arg16[%c0_88, %c16_89], %145 {strides = array<i32>} : memref<256x36xbf16, #tpu.memory_space<vmem>>, vector<64x4xbf16>,
    %c10 = arith.constant 10 : index
    %c0_90 = arith.constant 0 : index
    %147 = vector.load %arg15[%c10, %c0_90] : memref<82x4xf32, #tpu.memory_space<vmem>>, vector<64x4xf32>
    %148 = vector.broadcast %125 : vector<64x1xf32> to vector<64x4xf32>
    %149 = arith.mulf %147, %148 : vector<64x4xf32>
    %150 = arith.truncf %149 : vector<64x4xf32> to vector<64x4xbf16>
    %c0_91 = arith.constant 0 : index
    %c20_92 = arith.constant 20 : index
    %151 = vector.load %arg16[%c0_91, %c20_92] : memref<256x36xbf16, #tpu.memory_space<vmem>>, vector<64x4xbf16>
    tpu.vector_store %arg16[%c0_91, %c20_92], %150 {strides = array<i32>} : memref<256x36xbf16, #tpu.memory_space<vmem>>, vector<64x4xbf16>,
    %c16_93 = arith.constant 16 : index
    %c0_94 = arith.constant 0 : index
    %152 = vector.load %arg15[%c16_93, %c0_94] : memref<82x4xf32, #tpu.memory_space<vmem>>, vector<64x4xf32>
    %153 = vector.broadcast %124 : vector<64x1xf32> to vector<64x4xf32>
    %154 = arith.mulf %152, %153 : vector<64x4xf32>
    %155 = arith.truncf %154 : vector<64x4xf32> to vector<64x4xbf16>
    %c0_95 = arith.constant 0 : index
    %c24_96 = arith.constant 24 : index
    %156 = vector.load %arg16[%c0_95, %c24_96] : memref<256x36xbf16, #tpu.memory_space<vmem>>, vector<64x4xbf16>
    tpu.vector_store %arg16[%c0_95, %c24_96], %155 {strides = array<i32>} : memref<256x36xbf16, #tpu.memory_space<vmem>>, vector<64x4xbf16>,
    %c17_97 = arith.constant 17 : index
    %c0_98 = arith.constant 0 : index
    %157 = vector.load %arg15[%c17_97, %c0_98] : memref<82x4xf32, #tpu.memory_space<vmem>>, vector<64x4xf32>
    %158 = arith.truncf %157 : vector<64x4xf32> to vector<64x4xbf16>
    %c0_99 = arith.constant 0 : index
    %c28_100 = arith.constant 28 : index
    %159 = vector.load %arg16[%c0_99, %c28_100] : memref<256x36xbf16, #tpu.memory_space<vmem>>, vector<64x4xbf16>
    tpu.vector_store %arg16[%c0_99, %c28_100], %158 {strides = array<i32>} : memref<256x36xbf16, #tpu.memory_space<vmem>>, vector<64x4xbf16>,
    %c18_101 = arith.constant 18 : index
    %c0_102 = arith.constant 0 : index
    %160 = vector.load %arg15[%c18_101, %c0_102] : memref<82x4xf32, #tpu.memory_space<vmem>>, vector<64x4xf32>
    %161 = vector.broadcast %125 : vector<64x1xf32> to vector<64x4xf32>
    %162 = arith.mulf %160, %161 : vector<64x4xf32>
    %163 = arith.truncf %162 : vector<64x4xf32> to vector<64x4xbf16>
    %c0_103 = arith.constant 0 : index
    %c32_104 = arith.constant 32 : index
    %164 = vector.load %arg16[%c0_103, %c32_104] : memref<256x36xbf16, #tpu.memory_space<vmem>>, vector<64x4xbf16>
    tpu.vector_store %arg16[%c0_103, %c32_104], %163 {strides = array<i32>} : memref<256x36xbf16, #tpu.memory_space<vmem>>, vector<64x4xbf16>,
    %c0_105 = arith.constant 0 : index
    %c0_106 = arith.constant 0 : index
    %165 = vector.load %arg16[%c0_105, %c0_106] : memref<256x36xbf16, #tpu.memory_space<vmem>>, vector<64x36xbf16>
    %c0_107 = arith.constant 0 : index
    %c0_108 = arith.constant 0 : index
    %166 = vector.load %arg4[%c0_107, %c0_108] : memref<36x8xbf16, #tpu.memory_space<vmem>>, vector<36x8xbf16>
    %cst_109 = arith.constant dense<0.000000e+00> : vector<64x8xf32>
    %167 = tpu.matmul %165, %166, %cst_109 {dimension_numbers = #tpu.dot_dimension_numbers<[1], [0], [0], [1], [0, 0, 1, 1], [], []>} : vector<64x36xbf16>, vector<36x8xbf16>, vector<64x8xf32> -> vector<64x8xf32>
    %c0_110 = arith.constant 0 : index
    %c0_111 = arith.constant 0 : index
    %168 = vector.load %arg5[%c0_110, %c0_111] : memref<1x8xf32, #tpu.memory_space<vmem>>, vector<1x8xf32>
    %169 = vector.broadcast %168 : vector<1x8xf32> to vector<64x8xf32>
    %170 = arith.addf %167, %169 : vector<64x8xf32>
    %171 = vector.shape_cast %1 : vector<256x4xf32> to vector<128x2x4xf32>
    %172 = vector.extract_strided_slice %171 {offsets = [0, 0, 0], sizes = [128, 1, 4], strides = [1, 1, 1]} : vector<128x2x4xf32> to vector<128x1x4xf32>
    %173 = vector.shape_cast %172 : vector<128x1x4xf32> to vector<128x4xf32>
    %174 = vector.extract_strided_slice %171 {offsets = [0, 1, 0], sizes = [128, 1, 4], strides = [1, 1, 1]} : vector<128x2x4xf32> to vector<128x1x4xf32>
    %175 = vector.shape_cast %174 : vector<128x1x4xf32> to vector<128x4xf32>
    %176 = arith.addf %173, %175 : vector<128x4xf32>
    %177 = vector.shape_cast %176 : vector<128x4xf32> to vector<8x2x8x4xf32>
    %178 = vector.extract_strided_slice %177 {offsets = [0, 0, 0, 0], sizes = [8, 1, 8, 4], strides = [1, 1, 1, 1]} : vector<8x2x8x4xf32> to vector<8x1x8x4xf32>
    %179 = vector.shape_cast %178 : vector<8x1x8x4xf32> to vector<8x8x4xf32>
    %180 = vector.extract_strided_slice %177 {offsets = [0, 1, 0, 0], sizes = [8, 1, 8, 4], strides = [1, 1, 1, 1]} : vector<8x2x8x4xf32> to vector<8x1x8x4xf32>
    %181 = vector.shape_cast %180 : vector<8x1x8x4xf32> to vector<8x8x4xf32>
    %182 = arith.addf %179, %181 : vector<8x8x4xf32>
    %183 = vector.shape_cast %182 : vector<8x8x4xf32> to vector<64x4xf32>
    %cst_112 = arith.constant 2.500000e-01 : f32
    %184 = vector.broadcast %cst_112 : f32 to vector<64x4xf32>
    %185 = arith.mulf %183, %184 : vector<64x4xf32>
    %186 = arith.truncf %185 : vector<64x4xf32> to vector<64x4xbf16>
    %c0_113 = arith.constant 0 : index
    %c0_114 = arith.constant 0 : index
    %187 = vector.load %arg8[%c0_113, %c0_114] : memref<4x8xbf16, #tpu.memory_space<vmem>>, vector<4x8xbf16>
    %cst_115 = arith.constant dense<0.000000e+00> : vector<64x8xf32>
    %188 = tpu.matmul %186, %187, %cst_115 {dimension_numbers = #tpu.dot_dimension_numbers<[1], [0], [0], [1], [0, 0, 1, 1], [], []>} : vector<64x4xbf16>, vector<4x8xbf16>, vector<64x8xf32> -> vector<64x8xf32>
    %189 = arith.addf %170, %188 : vector<64x8xf32>
    %cst_116 = arith.constant 0.707106769 : f32
    %190 = vector.broadcast %cst_116 : f32 to vector<64x8xf32>
    %191 = arith.mulf %189, %190 : vector<64x8xf32>
    %c0_117 = arith.constant 0 : index
    %c0_118 = arith.constant 0 : index
    %c0_119 = arith.constant 0 : index
    %192 = vector.load %arg13[%c0_117, %c0_118, %c0_119] : memref<1x64x8xf32, #tpu.memory_space<vmem>>, vector<1x64x8xf32>
    %193 = vector.shape_cast %192 : vector<1x64x8xf32> to vector<64x8xf32>
    %194 = vector.shape_cast %191 : vector<64x8xf32> to vector<1x64x8xf32>
    tpu.vector_store %arg13[%c0_117, %c0_118, %c0_119], %194 {strides = array<i32>} : memref<1x64x8xf32, #tpu.memory_space<vmem>>, vector<1x64x8xf32>,
    return
  }
  func.func @transform_0(%arg0: i32) -> (i32, i32, i32) {
    %c0_i32 = arith.constant 0 : i32
    %c0_i32_0 = arith.constant 0 : i32
    %c0_i32_1 = arith.constant 0 : i32
    return %arg0, %c0_i32, %c0_i32_0 : i32, i32, i32
  }
  func.func @transform_1(%arg0: i32) -> (i32, i32) {
    %c0_i32 = arith.constant 0 : i32
    %c0_i32_0 = arith.constant 0 : i32
    %c0_i32_1 = arith.constant 0 : i32
    return %c0_i32, %c0_i32_0 : i32, i32
  }
  func.func @transform_2(%arg0: i32) -> (i32, i32) {
    %c0_i32 = arith.constant 0 : i32
    %c0_i32_0 = arith.constant 0 : i32
    %c0_i32_1 = arith.constant 0 : i32
    return %c0_i32, %c0_i32_0 : i32, i32
  }
  func.func @transform_3(%arg0: i32) -> (i32, i32) {
    %c0_i32 = arith.constant 0 : i32
    %c0_i32_0 = arith.constant 0 : i32
    %c0_i32_1 = arith.constant 0 : i32
    return %c0_i32, %c0_i32_0 : i32, i32
  }
  func.func @transform_4(%arg0: i32) -> (i32, i32) {
    %c0_i32 = arith.constant 0 : i32
    %c0_i32_0 = arith.constant 0 : i32
    %c0_i32_1 = arith.constant 0 : i32
    return %c0_i32, %c0_i32_0 : i32, i32
  }
  func.func @transform_5(%arg0: i32) -> (i32, i32) {
    %c0_i32 = arith.constant 0 : i32
    %c0_i32_0 = arith.constant 0 : i32
    %c0_i32_1 = arith.constant 0 : i32
    return %c0_i32, %c0_i32_0 : i32, i32
  }
  func.func @transform_6(%arg0: i32) -> (i32, i32) {
    %c0_i32 = arith.constant 0 : i32
    %c0_i32_0 = arith.constant 0 : i32
    %c0_i32_1 = arith.constant 0 : i32
    return %c0_i32, %c0_i32_0 : i32, i32
  }
  func.func @transform_7(%arg0: i32) -> (i32, i32) {
    %c0_i32 = arith.constant 0 : i32
    %c0_i32_0 = arith.constant 0 : i32
    %c0_i32_1 = arith.constant 0 : i32
    return %c0_i32, %c0_i32_0 : i32, i32
  }
  func.func @transform_8(%arg0: i32) -> (i32, i32) {
    %c0_i32 = arith.constant 0 : i32
    %c0_i32_0 = arith.constant 0 : i32
    %c0_i32_1 = arith.constant 0 : i32
    return %c0_i32, %c0_i32_0 : i32, i32
  }
  func.func @transform_9(%arg0: i32) -> (i32, i32) {
    %c0_i32 = arith.constant 0 : i32
    %c0_i32_0 = arith.constant 0 : i32
    %c0_i32_1 = arith.constant 0 : i32
    return %c0_i32, %c0_i32_0 : i32, i32
  }
  func.func @transform_10(%arg0: i32) -> (i32, i32) {
    %c0_i32 = arith.constant 0 : i32
    %c0_i32_0 = arith.constant 0 : i32
    %c0_i32_1 = arith.constant 0 : i32
    return %c0_i32, %c0_i32_0 : i32, i32
  }
  func.func @transform_11(%arg0: i32) -> (i32, i32) {
    %c0_i32 = arith.constant 0 : i32
    %c0_i32_0 = arith.constant 0 : i32
    %c0_i32_1 = arith.constant 0 : i32
    return %c0_i32, %c0_i32_0 : i32, i32
  }
  func.func @transform_12(%arg0: i32) -> (i32, i32, i32) {
    %c0_i32 = arith.constant 0 : i32
    %c0_i32_0 = arith.constant 0 : i32
    %c0_i32_1 = arith.constant 0 : i32
    return %arg0, %c0_i32, %c0_i32_0 : i32, i32, i32
  }
}

</mosaic_0001>

<bundles_post_ra>
// kernel: tpu_custom_call.1
= control target key start
LH: loop header
LB: loop body
LE: loop exit
PB: predicated region body
PF: predicated region fallthrough
CT: control target
= control target key end

     0   :  { %s10878_s21 = smov 0   ;;  %s15316_s0 = inlined_call_operand.vmem [shape: f32[2,256,4], index: 0, kind: input, shape index: {}]   ;;  %s15317_s1 = inlined_call_operand.vmem [shape: bf16[36,4], index: 1, kind: input, shape index: {}]   ;;  %s15318_s2 = inlined_call_operand.vmem [shape: f32[1,4], index: 2, kind: input, shape index: {}]   ;;  %s15319_s3 = inlined_call_operand.vmem [shape: bf16[36,8], index: 3, kind: input, shape index: {}]   ;;  %s15320_s4 = inlined_call_operand.vmem [shape: f32[1,8], index: 4, kind: input, shape index: {}]   ;;  %s15321_s5 = inlined_call_operand.vmem [shape: f32[256,2], index: 5, kind: input, shape index: {}]   ;;  %s15322_s6 = inlined_call_operand.vmem [shape: f32[64,2], index: 6, kind: input, shape index: {}]   ;;  %s15323_s7 = inlined_call_operand.vmem [shape: bf16[4,8], index: 7, kind: input, shape index: {}]   ;;  %s15324_s8 = inlined_call_operand.vmem [shape: f32[1,4], index: 8, kind: input, shape index: {}]   ;;  %s15325_s9 = inlined_call_operand.vmem [shape: f32[1,4], index: 9, kind: input, shape index: {}]   ;;  %s15326_s10 = inlined_call_operand.vmem [shape: f32[1,4], index: 10, kind: input, shape index: {}]   ;;  %s15327_s11 = inlined_call_operand.vmem [shape: f32[1,4], index: 11, kind: input, shape index: {}]   ;;  %s15328_s12 = inlined_call_operand.vmem [shape: f32[2,64,8], index: 12, kind: output, shape index: {}]  }
   0x1 LB: > { %s9514_s22 = sadd.s32 4294967295, %s10799_s21   ;;  %p9518_p0 = scmp.ge.s32.totalorder %s10799_s21, 1  ;;  %s10799_s21 = sphi %s10878_s21, %s22_s21  }
   0x2   : > { %p362_p1 = scmp.lt.s32.totalorder %s10799_s21, 3 }
   0x4   : > { %p363_p2 = pnand %p9518_p0, %p362_p1 }
   0x6   : > { %366 = sbr.rel (%p363_p2) target bundleno = 1732 (0x6c4), region = 68 }
   0xb   : > { %v10889_v0 = vld [vmem:[%s15321_s5 + $0x10] sm:$0xff]  ;;  %v10894_v1 = vld [vmem:[%s15321_s5] sm:$0xff]  ;;  %vm449_vm0 = vcmask 31744   ;;  %v15331_v2 = vmov 0   ;;  %v10802_v3 = vmov 0.0   ;;  %vm771_vm1 = vcmask 24576  }
   0xc   : > { %10679 = vset.pattern.permute.xlu1 %v15331_v2  ;;  %10678 = vset.pattern.permute.xlu0 %v15331_v2  ;;  %770 = vst.msk [vmem:[#allocation2 + $0x8] sm:$0xff] %vm449_vm0, %v10802_v3  ;;  %769 = vst.msk [vmem:[#allocation2] sm:$0xff] %vm449_vm0, %v10802_v3  ;;  %p404_p3 = scmp.lt.s32.totalorder %s9514_s22, 1  ;;  %v10909_v4 = vld [vmem:[%s15321_s5 + $0x18] sm:$0xff]  ;;  %v10914_v5 = vld [vmem:[%s15321_s5 + $0x8] sm:$0xff]  ;;  %s10803_s30 = smov 4  }
   0xd   : > { %773 = vst.msk [vmem:[#allocation2 + $0x111] sm:$0xff] %vm449_vm0, %v10802_v3  ;;  %774 = vst.msk [vmem:[#allocation2 + $0x119] sm:$0xff] %vm449_vm0, %v10802_v3  ;;  %884 = vperm.xlu1 %10679, %v10889_v0   ;;  %874 = vperm.xlu0 %10678, %v10894_v1   ;;  %v10924_v6 = vld [vmem:[%s15321_s5 + $0x28] sm:$0xff]  ;;  %v10929_v7 = vld [vmem:[%s15321_s5 + $0x20] sm:$0xff]  ;;  %vm1192_vm2 = vcmask 27648   ;;  %vm1449_vm3 = vcmask 60448  }
   0xe   : > { %6482 = vst.msk [vmem:[#allocation3] sm:$0xff] %vm449_vm0, %v10802_v3  ;;  %6484 = vst.msk [vmem:[#allocation3 + $0x49] sm:$0xff] %vm449_vm0, %v10802_v3  ;;  %s15745_s22 = smov (!%p404_p3, %s9514_s22), 1  ;;  %v10941_v8 = vld [vmem:[%s15321_s5 + $0x38] sm:$0xff]  ;;  %v10946_v9 = vld [vmem:[%s15321_s5 + $0x30] sm:$0xff]  ;;  %s10805_s17 = smov 8  }
   0xf   : > { %772 = vst.msk [vmem:[#allocation2 + $0x10] sm:$0x1] %vm771_vm1, %v10802_v3  ;;  %775 = vst.msk [vmem:[#allocation2 + $0x121] sm:$0x1] %vm771_vm1, %v10802_v3  ;;  %s10193_s13 = sshll.u32 %s15745_s22, 8  ;;  %v817_v20 = vld [vmem:[%s15321_s5 + $0x48] sm:$0xff] }
  0x10   : > { %6483 = vst.msk [vmem:[#allocation3 + $0x8] sm:$0x1] %vm771_vm1, %v10802_v3  ;;  %6485 = vst.msk [vmem:[#allocation3 + $0x51] sm:$0x1] %vm771_vm1, %v10802_v3  ;;  %s10934_s20 = scalar_lea.vmem %s15316_s0, %s10193_s13  ;;  %v816_v21 = vld [vmem:[%s15321_s5 + $0x40] sm:$0xff]  ;;  %v819_v28 = vld [vmem:[%s15321_s5 + $0x58] sm:$0xff] }
  0x11   : > { %889 = vperm.xlu1 %10679, %v10909_v4   ;;  %879 = vperm.xlu0 %10678, %v10914_v5   ;;  %v10949_v10 = vld [vmem:[%s10934_s20] sm:$0xff]  ;;  %v10952_v11 = vld [vmem:[%s10934_s20 + $0x8] sm:$0xff]  ;;  %v10955_v12 = vld [vmem:[%s10934_s20 + $0x10] sm:$0xff]  ;;  %s10806_s18 = smov 12   ;;  %s10807_s19 = smov 16   ;;  %vm3757_vm4 = vcmask 1041408  }
  0x12   : > { %v10958_v13 = vld [vmem:[%s10934_s20 + $0x18] sm:$0xff]  ;;  %v450_v14 = vsel %vm449_vm0, %v10949_v10, 0.0  ;;  %v451_v15 = vsel %vm449_vm0, %v10952_v11, 0.0  ;;  %v10965_v16 = vld [vmem:[%s10934_s20 + $0x20] sm:$0xff]  ;;  %v453_v18 = vsel %vm449_vm0, %v10955_v12, 0.0  ;;  %v10980_v22 = vld [vmem:[%s10934_s20 + $0x28] sm:$0xff]  ;;  %v519_v42 = vmul.f32 %v10949_v10, %v10949_v10 }
  0x13   : > { %v452_v17 = vadd.f32 %v451_v15, %v450_v14  ;;  %v455_v19 = vsel %vm449_vm0, %v10958_v13, 0.0  ;;  %v457_v24 = vsel %vm449_vm0, %v10965_v16, 0.0  ;;  %v10985_v25 = vld [vmem:[%s10934_s20 + $0x30] sm:$0xff]  ;;  %v459_v27 = vsel %vm449_vm0, %v10980_v22, 0.0  ;;  %v10996_v30 = vld [vmem:[%s10934_s20 + $0x38] sm:$0xff]  ;;  %v10999_v32 = vld [vmem:[%s10934_s20 + $0x40] sm:$0xff] }
  0x14   : > { %v818_v29 = vld [vmem:[%s15321_s5 + $0x50] sm:$0xff]  ;;  %v461_v33 = vsel %vm449_vm0, %v10985_v25, 0.0  ;;  %v821_v35 = vld [vmem:[%s15321_s5 + $0x68] sm:$0xff]  ;;  %v820_v36 = vld [vmem:[%s15321_s5 + $0x60] sm:$0xff]  ;;  %v463_v37 = vsel %vm449_vm0, %v10996_v30, 0.0  ;;  %v465_v41 = vsel %vm449_vm0, %v10999_v32, 0.0  ;;  %v520_v46 = vmul.f32 %v10952_v11, %v10952_v11 }
  0x15   : > { %899 = vperm.xlu1 %10679, %v10924_v6   ;;  %894 = vperm.xlu0 %10678, %v10929_v7   ;;  %v454_v23 = vadd.f32 %v453_v18, %v452_v17  ;;  %v11012_v38 = vld [vmem:[%s10934_s20 + $0x48] sm:$0xff]  ;;  %v11015_v39 = vld [vmem:[%s10934_s20 + $0x50] sm:$0xff]  ;;  %v823_v44 = vld [vmem:[%s15321_s5 + $0x78] sm:$0xff]  ;;  %v521_v50 = vmul.f32 %v10955_v12, %v10955_v12  ;;  %v522_v52 = vmul.f32 %v10958_v13, %v10958_v13  ;;  %v551_v53 = vsel %vm449_vm0, %v519_v42, 0.0  ;;  %s10808_s23 = smov 20   ;;  %s10809_s24 = smov 24  }
  0x16   : > { %v467_v45 = vsel %vm449_vm0, %v11012_v38, 0.0  ;;  %v822_v47 = vld [vmem:[%s15321_s5 + $0x70] sm:$0xff]  ;;  %v11032_v48 = vld [vmem:[%s10934_s20 + $0x58] sm:$0xff]  ;;  %v469_v51 = vsel %vm449_vm0, %v11015_v39, 0.0  ;;  %v11042_v54 = vld [vmem:[%s10934_s20 + $0x60] sm:$0xff]  ;;  %v523_v57 = vmul.f32 %v10965_v16, %v10965_v16  ;;  %v552_v58 = vsel %vm449_vm0, %v520_v46, 0.0 }
  0x17   : > { %v456_v26 = vadd.f32 %v455_v19, %v454_v23  ;;  %v471_v56 = vsel %vm449_vm0, %v11032_v48, 0.0  ;;  %v825_v59 = vld [vmem:[%s15321_s5 + $0x88] sm:$0xff]  ;;  %v824_v60 = vld [vmem:[%s15321_s5 + $0x80] sm:$0xff]  ;;  %v553_v63 = vadd.f32 %v552_v58, %v551_v53  ;;  %v554_v3 = vsel %vm449_vm0, %v521_v50, 0.0  ;;  %v11065_v18 = vld [vmem:[%s10934_s20 + $0x70] sm:$0xff]  ;;  %s10810_s25 = smov 28  }
  0x18   : > { %v11056_v61 = vld [vmem:[%s10934_s20 + $0x68] sm:$0xff]  ;;  %v473_v14 = vsel %vm449_vm0, %v11042_v54, 0.0  ;;  %v524_v15 = vmul.f32 %v10980_v22, %v10980_v22  ;;  %v556_v17 = vsel %vm449_vm0, %v522_v52, 0.0  ;;  %v525_v23 = vmul.f32 %v10985_v25, %v10985_v25  ;;  %v11109_v53 = vld [vmem:[%s10934_s20 + $0x90] sm:$0xff]  ;;  %s10811_s26 = smov 32  }
  0x19   : > { %909 = vperm.xlu1 %10679, %v10941_v8   ;;  %904 = vperm.xlu0 %10678, %v10946_v9   ;;  %v458_v31 = vadd.f32 %v457_v24, %v456_v26  ;;  %v558_v24 = vsel %vm449_vm0, %v523_v57, 0.0  ;;  %v827_v26 = vld [vmem:[%s15321_s5 + $0x98] sm:$0xff]  ;;  %v527_v42 = vmul.f32 %v10999_v32, %v10999_v32  ;;  %v11101_v46 = vld [vmem:[%s10934_s20 + $0x88] sm:$0xff]  ;;  %v529_v58 = vmul.f32 %v11015_v39, %v11015_v39 }
  0x1a   : > { %v483_v57 = vsel %vm449_vm0, %v11101_v46, 0.0  ;;  %vm1866_vm5 = vcmask 93248   ;;  %vm2155_vm6 = vcmask 126048   ;;  %vm2412_vm7 = vcmask 158848  }
  0x1b   : > { %v460_v34 = vadd.f32 %v459_v27, %v458_v31  ;;  %v826_v27 = vld [vmem:[%s15321_s5 + $0x90] sm:$0xff]  ;;  %vm2701_vm8 = vcmask 191648   ;;  %vm2990_vm9 = vcmask 224448   ;;  %vm15375_vm10 = vcmask 257248  }
  0x1c   : > { %vm15374_vm11 = vcmask 290048   ;;  %vm15373_vm12 = vcmask 293888   ;;  %vm5588_vm13 = vcmask 1041409   ;;  %vm5590_vm14 = vcmask 1042434  }
  0x1d   : > { %919 = vperm.xlu1 %10679, %v817_v20   ;;  %914 = vperm.xlu0 %10678, %v816_v21   ;;  %v462_v40 = vadd.f32 %v461_v33, %v460_v34  ;;  %v555_v20 = vadd.f32 %v554_v3, %v553_v63  ;;  %v475_v21 = vsel %vm449_vm0, %v11056_v61, 0.0  ;;  %v477_v33 = vsel %vm449_vm0, %v11065_v18, 0.0  ;;  %v11123_v63 = vld [vmem:[%s10934_s20 + $0x98] sm:$0xff] }
  0x1e   : > { %v526_v34 = vmul.f32 %v10996_v30, %v10996_v30  ;;  %vm5592_vm15 = vcmask 1043459   ;;  %vm5594_vm1 = vcmask 1044484  }
  0x1f   : > { %v464_v43 = vadd.f32 %v463_v37, %v462_v40  ;;  %v557_v31 = vadd.f32 %v556_v17, %v555_v20  ;;  %v530_v17 = vmul.f32 %v11032_v48, %v11032_v48  ;;  %v11131_v20 = vld [vmem:[%s10934_s20 + $0xa0] sm:$0xff] }
  0x20   : > { %v564_v52 = vsel %vm449_vm0, %v526_v34, 0.0 }
  0x21   : > { %929 = vperm.xlu1 %10679, %v819_v28   ;;  %924 = vperm.xlu0 %10678, %v818_v29   ;;  %v466_v49 = vadd.f32 %v465_v41, %v464_v43  ;;  %v11079_v28 = vld [vmem:[%s10934_s20 + $0x78] sm:$0xff]  ;;  %v559_v40 = vadd.f32 %v558_v24, %v557_v31  ;;  %v562_v43 = vsel %vm449_vm0, %v525_v23, 0.0  ;;  %v487_v24 = vsel %vm449_vm0, %v11123_v63, 0.0  ;;  %v11146_v31 = vld [vmem:[%s15321_s5 + $0xc0] sm:$0xff] }
  0x22   : > { %v479_v41 = vsel %vm449_vm0, %v11079_v28, 0.0 }
  0x23   : > { %v468_v55 = vadd.f32 %v467_v45, %v466_v49  ;;  %v828_v45 = vld [vmem:[%s15321_s5 + $0xa0] sm:$0xff] }
  0x25   : > { %939 = vperm.xlu1 %10679, %v821_v35   ;;  %934 = vperm.xlu0 %10678, %v820_v36   ;;  %v470_v62 = vadd.f32 %v469_v51, %v468_v55  ;;  %v560_v35 = vsel %vm449_vm0, %v524_v15, 0.0  ;;  %v11087_v36 = vld [vmem:[%s10934_s20 + $0x80] sm:$0xff]  ;;  %v528_v51 = vmul.f32 %v11012_v38, %v11012_v38  ;;  %v485_v15 = vsel %vm449_vm0, %v11109_v53, 0.0 }
  0x26   : > { %v561_v49 = vadd.f32 %v560_v35, %v559_v40  ;;  %v481_v50 = vsel %vm449_vm0, %v11087_v36, 0.0  ;;  %v532_v40 = vmul.f32 %v11056_v61, %v11056_v61 }
  0x27   : > { %v472_v19 = vadd.f32 %v471_v56, %v470_v62  ;;  %v830_v62 = vld [vmem:[%s15321_s5 + $0xb0] sm:$0xff] }
  0x28   : > { %v563_v56 = vadd.f32 %v562_v43, %v561_v49 }
  0x29   : > { %949 = vperm.xlu1 %10679, %v823_v44   ;;  %944 = vperm.xlu0 %10678, %v822_v47   ;;  %v474_v29 = vadd.f32 %v473_v14, %v472_v19  ;;  %v829_v44 = vld [vmem:[%s15321_s5 + $0xa8] sm:$0xff]  ;;  %v568_v19 = vsel %vm449_vm0, %v528_v51, 0.0  ;;  %v834_v51 = vld [vmem:[%s15321_s5 + $0xd0] sm:$0xff] }
  0x2a   : > { %v565_v14 = vadd.f32 %v564_v52, %v563_v56  ;;  %v11175_v52 = vld [vmem:[%s10934_s20 + $0xb8] sm:$0xff] }
  0x2b   : > { %v476_v37 = vadd.f32 %v475_v21, %v474_v29  ;;  %v11141_v29 = vld [vmem:[%s15321_s5 + $0xc8] sm:$0xff] }
  0x2d   : > { %959 = vperm.xlu1 %10679, %v825_v59   ;;  %954 = vperm.xlu0 %10678, %v824_v60   ;;  %v478_v47 = vadd.f32 %v477_v33, %v476_v37  ;;  %v566_v59 = vsel %vm449_vm0, %v527_v42, 0.0  ;;  %v831_v60 = vld [vmem:[%s15321_s5 + $0xb8] sm:$0xff]  ;;  %v11149_v33 = vld [vmem:[%s10934_s20 + $0xa8] sm:$0xff]  ;;  %v489_v37 = vsel %vm449_vm0, %v11131_v20, 0.0  ;;  %v11157_v42 = vld [vmem:[%s10934_s20 + $0xb0] sm:$0xff] }
  0x2e   : > { %v567_v23 = vadd.f32 %v566_v59, %v565_v14  ;;  %v576_v59 = vsel %vm449_vm0, %v532_v40, 0.0  ;;  %v495_v14 = vsel %vm449_vm0, %v11175_v52, 0.0 }
  0x2f   : > { %v480_v55 = vadd.f32 %v479_v41, %v478_v47  ;;  %v572_v41 = vsel %vm449_vm0, %v530_v17, 0.0  ;;  %v533_v47 = vmul.f32 %v11065_v18, %v11065_v18 }
  0x30   : > { %v569_v35 = vadd.f32 %v568_v19, %v567_v23  ;;  %v837_v19 = vld [vmem:[%s15321_s5 + $0xe8] sm:$0xff] }
  0x31   : > { %969 = vperm.xlu1 %10679, %v827_v26   ;;  %964 = vperm.xlu0 %10678, %v826_v27   ;;  %v482_v3 = vadd.f32 %v481_v50, %v480_v55  ;;  %v531_v26 = vmul.f32 %v11042_v54, %v11042_v54  ;;  %v570_v27 = vsel %vm449_vm0, %v529_v58, 0.0  ;;  %v11169_v50 = vld [vmem:[%s15321_s5 + $0xd8] sm:$0xff]  ;;  %v534_v58 = vmul.f32 %v11079_v28, %v11079_v28  ;;  %v11198_v23 = vld [vmem:[%s10934_s20 + $0xc8] sm:$0xff] }
  0x32   : > { %v578_v17 = vsel %vm449_vm0, %v533_v47, 0.0  ;;  %v537_v47 = vmul.f32 %v11109_v53, %v11109_v53 }
  0x33   : > { %v484_v21 = vadd.f32 %v483_v57, %v482_v3  ;;  %v574_v49 = vsel %vm449_vm0, %v531_v26, 0.0  ;;  %v493_v57 = vsel %vm449_vm0, %v11157_v42, 0.0 }
  0x35   : > { %979 = vperm.xlu1 %10679, %v829_v44   ;;  %974 = vperm.xlu0 %10678, %v828_v45   ;;  %v486_v34 = vadd.f32 %v485_v15, %v484_v21  ;;  %v571_v44 = vadd.f32 %v570_v27, %v569_v35  ;;  %v491_v45 = vsel %vm449_vm0, %v11149_v33, 0.0  ;;  %v535_v15 = vmul.f32 %v11087_v36, %v11087_v36  ;;  %v836_v21 = vld [vmem:[%s15321_s5 + $0xe0] sm:$0xff] }
  0x36   : > { %v580_v35 = vsel %vm449_vm0, %v534_v58, 0.0 }
  0x37   : > { %v488_v43 = vadd.f32 %v487_v24, %v486_v34  ;;  %v573_v56 = vadd.f32 %v572_v41, %v571_v44  ;;  %v536_v34 = vmul.f32 %v11101_v46, %v11101_v46  ;;  %v1226_v44 = vld [vmem:[#allocation2 + $0x9] sm:$0xff] }
  0x39   : > { %989 = vperm.xlu1 %10679, %v831_v60   ;;  %984 = vperm.xlu0 %10678, %v830_v62   ;;  %v490_v55 = vadd.f32 %v489_v37, %v488_v43  ;;  %v11183_v60 = vld [vmem:[%s10934_s20 + $0xc0] sm:$0xff]  ;;  %v575_v3 = vadd.f32 %v574_v49, %v573_v56  ;;  %v11206_v37 = vld [vmem:[%s10934_s20 + $0xd0] sm:$0xff]  ;;  %v839_v43 = vld [vmem:[%s15321_s5 + $0xf8] sm:$0xff]  ;;  %v582_v49 = vsel %vm449_vm0, %v535_v15, 0.0 }
  0x3a   : > { %v497_v27 = vsel %vm449_vm0, %v11183_v60, 0.0  ;;  %v11220_v56 = vld [vmem:[%s10934_s20 + $0xd8] sm:$0xff]  ;;  %v11228_v15 = vld [vmem:[%s10934_s20 + $0xe0] sm:$0xff] }
  0x3b   : > { %v492_v62 = vadd.f32 %v491_v45, %v490_v55  ;;  %v577_v26 = vadd.f32 %v576_v59, %v575_v3  ;;  %v499_v45 = vsel %vm449_vm0, %v11198_v23, 0.0  ;;  %v1225_v55 = vld [vmem:[#allocation2 + $0x1] sm:$0xff]  ;;  %v501_v59 = vsel %vm449_vm0, %v11206_v37, 0.0 }
  0x3c   : > { %v584_v3 = vsel %vm449_vm0, %v536_v34, 0.0 }
  0x3d   : > { %999 = vperm.xlu1 %10679, %v11141_v29   ;;  %994 = vperm.xlu0 %10678, %v11146_v31   ;;  %v494_v24 = vadd.f32 %v493_v57, %v492_v62  ;;  %v579_v41 = vadd.f32 %v578_v17, %v577_v26  ;;  %v538_v62 = vmul.f32 %v11123_v63, %v11123_v63 }
  0x3e   : > { %v539_v26 = vmul.f32 %v11131_v20, %v11131_v20 }
  0x3f   : > { %v496_v40 = vadd.f32 %v495_v14, %v494_v24  ;;  %v581_v58 = vadd.f32 %v580_v35, %v579_v41  ;;  %v10228_v14 = vpack.c.bf16 %v1226_v44, %v1226_v44  ;;  %v503_v24 = vsel %vm449_vm0, %v11220_v56, 0.0  ;;  %v11236_v35 = vld [vmem:[%s10934_s20 + $0xe8] sm:$0xff] }
  0x40   : > { %v505_v41 = vsel %vm449_vm0, %v11228_v15, 0.0  ;;  %v588_v44 = vsel %vm449_vm0, %v538_v62, 0.0 }
  0x41   : > { %1009 = vperm.xlu1 %10679, %v11169_v50   ;;  %1004 = vperm.xlu0 %10678, %v834_v51   ;;  %v838_v51 = vld [vmem:[%s15321_s5 + $0xf0] sm:$0xff]  ;;  %v498_v57 = vadd.f32 %v497_v27, %v496_v40  ;;  %v586_v27 = vsel %vm449_vm0, %v537_v47, 0.0  ;;  %v507_v47 = vsel %vm449_vm0, %v11236_v35, 0.0 }
  0x43   : > { %v500_v17 = vadd.f32 %v499_v45, %v498_v57  ;;  %v11244_v45 = vld [vmem:[%s10934_s20 + $0xf0] sm:$0xff]  ;;  %v590_v57 = vsel %vm449_vm0, %v539_v26, 0.0 }
  0x45   : > { %1019 = vperm.xlu1 %10679, %v837_v19   ;;  %1014 = vperm.xlu0 %10678, %v836_v21   ;;  %v583_v19 = vadd.f32 %v582_v49, %v581_v58  ;;  %v10227_v21 = vpack.c.bf16 %v1225_v55, %v1225_v55  ;;  %v502_v34 = vadd.f32 %v501_v59, %v500_v17  ;;  %v15329_v58 = vmov 1   ;;  %v11256_v59 = vld [vmem:[%s10934_s20 + $0xf8] sm:$0xff] }
  0x46   : > { %v541_v55 = vmul.f32 %v11157_v42, %v11157_v42  ;;  %v542_v17 = vmul.f32 %v11175_v52, %v11175_v52  ;;  %v511_v26 = vsel %vm449_vm0, %v11256_v59, 0.0 }
  0x47   : > { %v585_v40 = vadd.f32 %v584_v3, %v583_v19  ;;  %v504_v49 = vadd.f32 %v503_v24, %v502_v34 }
  0x48   : > { %v594_v34 = vsel %vm449_vm0, %v541_v55, 0.0 }
  0x49   : > { %1029 = vperm.xlu1 %10679, %v839_v43   ;;  %1024 = vperm.xlu0 %10678, %v838_v51   ;;  %v540_v43 = vmul.f32 %v11149_v33, %v11149_v33  ;;  %v587_v51 = vadd.f32 %v586_v27, %v585_v40  ;;  %v506_v62 = vadd.f32 %v505_v41, %v504_v49 }
  0x4a   : > { %v543_v27 = vmul.f32 %v11183_v60, %v11183_v60 }
  0x4b   : > { %v589_v3 = vadd.f32 %v588_v44, %v587_v51  ;;  %v592_v19 = vsel %vm449_vm0, %v540_v43, 0.0  ;;  %v544_v44 = vmul.f32 %v11198_v23, %v11198_v23  ;;  %v596_v43 = vsel %vm449_vm0, %v542_v17, 0.0 }
  0x4d   : > { %1355 = vrot.lane.b32.xlu1 %v10228_v14, %s10803_s30  ;;  %1353 = vrot.lane.b32.xlu0 %v10227_v21, %s10803_s30  ;;  %v509_v14 = vsel %vm449_vm0, %v11244_v45, 0.0  ;;  %v508_v21 = vadd.f32 %v507_v47, %v506_v62  ;;  %v591_v24 = vadd.f32 %v590_v57, %v589_v3  ;;  %v546_v57 = vmul.f32 %v11220_v56, %v11220_v56 }
  0x4e   : > { %10680 = vset.pattern.permute.xlu1 %v15329_v58  ;;  %10681 = vset.pattern.permute.xlu0 %v15329_v58  ;;  %v600_v62 = vsel %vm449_vm0, %v544_v44, 0.0 }
  0x4f   : > { %v510_v40 = vadd.f32 %v509_v14, %v508_v21  ;;  %v593_v41 = vadd.f32 %v592_v19, %v591_v24  ;;  %v548_v19 = vmul.f32 %v11236_v35, %v11236_v35  ;;  %v604_v21 = vsel %vm449_vm0, %v546_v57, 0.0 }
  0x51   : > { %1515 = vperm.xlu1 %10680, %v10894_v1   ;;  %1519 = vperm.xlu0 %10681, %v10914_v5   ;;  %v512_v49 = vadd.f32 %v511_v26, %v510_v40  ;;  %v595_v51 = vadd.f32 %v594_v34, %v593_v41  ;;  %v545_v1 = vmul.f32 %v11206_v37, %v11206_v37  ;;  %v598_v5 = vsel %vm449_vm0, %v543_v27, 0.0 }
  0x52   : > { %v550_v34 = vmul.f32 %v11256_v59, %v11256_v59  ;;  %v608_v40 = vsel %vm449_vm0, %v548_v19, 0.0 }
  0x53   : > { %v513_v47 = vrot.slane %v512_v49, 4  ;;  %v597_v55 = vadd.f32 %v596_v43, %v595_v51 }
  0x55   : > { %1523 = vperm.xlu1 %10680, %v10889_v0   ;;  %1531 = vperm.xlu0 %10681, %v10929_v7   ;;  %v599_v3 = vadd.f32 %v598_v5, %v597_v55  ;;  %v547_v0 = vmul.f32 %v11228_v15, %v11228_v15  ;;  %v602_v7 = vsel %vm449_vm0, %v545_v1, 0.0  ;;  %v514_v14 = vadd.f32 %v513_v47, %v512_v49 }
  0x57   : > { %v601_v17 = vadd.f32 %v600_v62, %v599_v3  ;;  %v515_v26 = vrot.slane %v514_v14, 2 }
  0x59   : > { %1527 = vperm.xlu1 %10680, %v10909_v4   ;;  %1539 = vperm.xlu0 %10681, %v10946_v9   ;;  %v603_v24 = vadd.f32 %v602_v7, %v601_v17  ;;  %v549_v4 = vmul.f32 %v11244_v45, %v11244_v45  ;;  %v606_v9 = vsel %vm449_vm0, %v547_v0, 0.0  ;;  %v516_v43 = vadd.f32 %v515_v26, %v514_v14 }
  0x5a   : > { %v628_v14 = vlaneseq }
  0x5b   : > { %v605_v27 = vadd.f32 %v604_v21, %v603_v24  ;;  %v610_v44 = vsel %vm449_vm0, %v549_v4, 0.0  ;;  %v517_v1 = vrot.slane %v516_v43, 1 }
  0x5c   : > { %v11299_v4 = vshrl.u32 %v628_v14, 7 }
  0x5d   : > { %1535 = vperm.xlu1 %10680, %v10924_v6   ;;  %v607_v41 = vadd.f32 %v606_v9, %v605_v27  ;;  %v612_v6 = vsel %vm449_vm0, %v550_v34, 0.0  ;;  %v518_v55 = vadd.f32 %v517_v1, %v516_v43  ;;  %v447_v9 = vld [vmem:[%s15324_s8] sm:$0x1] }
  0x5e   : > { %15482 = vst [vmem:[#allocation5_spill] sm:$0xff] %v11299_v4  ;;  %v11305_v26 = vsub.s32 0, %v11299_v4  ;;  %v840_v27 = vld [vmem:[#allocation2] sm:$0xff] }
  0x5f   : > { %v609_v49 = vadd.f32 %v608_v40, %v607_v41  ;;  %v620_v0 = vmul.f32 0.00390625, %v518_v55  ;;  %v448_v43 = vld [vmem:[%s15325_s9] sm:$0x1] }
  0x60   : > { %15483 = vst [vmem:[#allocation6_spill] sm:$0xff] %v11305_v26 }
  0x61   : > { %1543 = vperm.xlu1 %10680, %v10941_v8   ;;  %v611_v51 = vadd.f32 %v610_v44, %v609_v49  ;;  %v622_v19 = vmul.f32 %v620_v0, %v620_v0 }
  0x63   : > { %v613_v5 = vadd.f32 %v612_v6, %v611_v51 }
  0x65   : > { %v614_v47 = vrot.slane %v613_v5, 4 }
  0x67   : > { %v615_v57 = vadd.f32 %v614_v47, %v613_v5 }
  0x69   : > { %v616_v62 = vrot.slane %v615_v57, 2 }
  0x6b   : > { %v617_v3 = vadd.f32 %v616_v62, %v615_v57 }
  0x6d   : > { %v618_v7 = vrot.slane %v617_v3, 1 }
  0x6f   : > { %v619_v17 = vadd.f32 %v618_v7, %v617_v3 }
  0x71   : > { %v621_v21 = vmul.f32 0.00390625, %v619_v17 }
  0x73   : > { %v623_v8 = vsub.f32 %v621_v21, %v622_v19 }
  0x75   : > { %v624_v24 = vadd.f32 1e-05, %v623_v8 }
  0x77   : > { %10717 = vrsqrt.f32 %v624_v24 }
  0x84   : > { %v10718_v34 = vpop.eup %10717 }
  0x85   : > { %v626_v41 = vmul.f32 %v10718_v34, %v447_v9 }
  0x87   : > { %v11316_v6 = vrot.slane %v626_v41, %v11305_v26  ;;  %v665_v51 = vmul.f32 %v626_v41, %v620_v0 }
  0x88   : > { %v11307_v40 = vpop.permute.xlu1 %884  ;;  %v11309_v44 = vpop.permute.xlu0 %874 }
  0x89   : > { %v1032_v49 = vmul.f32 %v11309_v44, %v840_v27  ;;  %v633_v5 = vmul.f32 %v11316_v6, %v10949_v10  ;;  %v636_v47 = vmul.f32 %v11316_v6, %v10958_v13  ;;  %v637_v55 = vmul.f32 %v11316_v6, %v10965_v16 }
  0x8a   : > { %v666_v57 = vsub.f32 %v448_v43, %v665_v51  ;;  %v634_v7 = vmul.f32 %v11316_v6, %v10952_v11  ;;  %v635_v0 = vmul.f32 %v11316_v6, %v10955_v12  ;;  %v638_v10 = vmul.f32 %v11316_v6, %v10980_v22 }
  0x8b   : > { %v10195_v1 = vpack.c.bf16 %v1032_v49, %v1032_v49  ;;  %v639_v16 = vmul.f32 %v11316_v6, %v10985_v25  ;;  %v640_v17 = vmul.f32 %v11316_v6, %v10996_v30  ;;  %v641_v11 = vmul.f32 %v11316_v6, %v10999_v32 }
  0x8c   : > { %v11324_v62 = vpop.permute.xlu1 %889  ;;  %v11326_v3 = vpop.permute.xlu0 %879  ;;  %v11336_v13 = vrot.slane %v666_v57, %v11305_v26  ;;  %v642_v12 = vmul.f32 %v11316_v6, %v11012_v38  ;;  %v643_v22 = vmul.f32 %v11316_v6, %v11015_v39  ;;  %v644_v19 = vmul.f32 %v11316_v6, %v11032_v48 }
  0x8d   : > { %1193 = vst.msk [vmem:[#allocation4] sm:$0xf] %vm1192_vm2, %v10195_v1  ;;  %v645_v21 = vmul.f32 %v11316_v6, %v11042_v54 }
  0x8e   : > { %v673_v25 = vadd.f32 %v11336_v13, %v633_v5  ;;  %v676_v8 = vadd.f32 %v11336_v13, %v636_v47  ;;  %v677_v30 = vadd.f32 %v11336_v13, %v637_v55  ;;  %v674_v32 = vadd.f32 %v11336_v13, %v634_v7 }
  0x8f   : > { %v675_v39 = vadd.f32 %v11336_v13, %v635_v0  ;;  %v678_v14 = vadd.f32 %v11336_v13, %v638_v10  ;;  %v679_v48 = vadd.f32 %v11336_v13, %v639_v16  ;;  %v680_v54 = vadd.f32 %v11336_v13, %v640_v17 }
  0x90   : > { %v11356_v24 = vpop.permute.xlu1 %899  ;;  %v11358_v38 = vpop.permute.xlu0 %894  ;;  %v705_v9 = vmul.f32 0.2, %v673_v25  ;;  %v708_v27 = vmul.f32 0.2, %v676_v8  ;;  %v709_v34 = vmul.f32 0.2, %v677_v30  ;;  %v681_v41 = vadd.f32 %v11336_v13, %v641_v11 }
  0x91   : > { %v706_v43 = vmul.f32 0.2, %v674_v32  ;;  %v707_v49 = vmul.f32 0.2, %v675_v39  ;;  %v710_v51 = vmul.f32 0.2, %v678_v14  ;;  %v682_v1 = vadd.f32 %v11336_v13, %v642_v12 }
  0x92   : > { %v737_v5 = vmax.f32 %v673_v25, %v705_v9  ;;  %v740_v47 = vmax.f32 %v676_v8, %v708_v27  ;;  %v741_v55 = vmax.f32 %v677_v30, %v709_v34  ;;  %v711_v57 = vmul.f32 0.2, %v679_v48 }
  0x93   : > { %v738_v10 = vmax.f32 %v674_v32, %v706_v43  ;;  %v739_v16 = vmax.f32 %v675_v39, %v707_v49  ;;  %v742_v17 = vmax.f32 %v678_v14, %v710_v51  ;;  %v712_v58 = vmul.f32 0.2, %v680_v54 }
  0x94   : > { %v11366_v7 = vpop.permute.xlu1 %909  ;;  %v11368_v0 = vpop.permute.xlu0 %904  ;;  %776 = vst.msk [vmem:[#allocation2 + $0x11] sm:$0xff] %vm449_vm0, %v737_v5  ;;  %779 = vst.msk [vmem:[#allocation2 + $0x29] sm:$0xff] %vm449_vm0, %v740_v47  ;;  %v743_v11 = vmax.f32 %v679_v48, %v711_v57  ;;  %v713_v12 = vmul.f32 0.2, %v681_v41  ;;  %v714_v25 = vmul.f32 0.2, %v682_v1  ;;  %v683_v8 = vadd.f32 %v11336_v13, %v643_v22 }
  0x95   : > { %780 = vst.msk [vmem:[#allocation2 + $0x31] sm:$0xff] %vm449_vm0, %v741_v55  ;;  %777 = vst.msk [vmem:[#allocation2 + $0x19] sm:$0xff] %vm449_vm0, %v738_v10  ;;  %v744_v30 = vmax.f32 %v680_v54, %v712_v58  ;;  %v684_v32 = vadd.f32 %v11336_v13, %v644_v19  ;;  %v646_v39 = vmul.f32 %v11316_v6, %v11056_v61 }
  0x96   : > { %778 = vst.msk [vmem:[#allocation2 + $0x21] sm:$0xff] %vm449_vm0, %v739_v16  ;;  %781 = vst.msk [vmem:[#allocation2 + $0x39] sm:$0xff] %vm449_vm0, %v742_v17  ;;  %v685_v14 = vadd.f32 %v11336_v13, %v645_v21  ;;  %v745_v48 = vmax.f32 %v681_v41, %v713_v12  ;;  %v746_v9 = vmax.f32 %v682_v1, %v714_v25  ;;  %v715_v22 = vmul.f32 0.2, %v683_v8 }
  0x97   : > { %782 = vst.msk [vmem:[#allocation2 + $0x41] sm:$0xff] %vm449_vm0, %v743_v11  ;;  %783 = vst.msk [vmem:[#allocation2 + $0x49] sm:$0xff] %vm449_vm0, %v744_v30  ;;  %v716_v43 = vmul.f32 0.2, %v684_v32  ;;  %v686_v58 = vadd.f32 %v11336_v13, %v646_v39  ;;  %v647_v11 = vmul.f32 %v11316_v6, %v11065_v18 }
  0x98   : > { %v11382_v27 = vpop.permute.xlu1 %919  ;;  %v11384_v34 = vpop.permute.xlu0 %914  ;;  %v717_v19 = vmul.f32 0.2, %v685_v14  ;;  %784 = vst.msk [vmem:[#allocation2 + $0x51] sm:$0xff] %vm449_vm0, %v745_v48  ;;  %785 = vst.msk [vmem:[#allocation2 + $0x59] sm:$0xff] %vm449_vm0, %v746_v9  ;;  %v747_v61 = vmax.f32 %v683_v8, %v715_v22 }
  0x99   : > { %15484 = vst [vmem:[#allocation7_spill] sm:$0xff] %v11382_v27  ;;  %15485 = vst [vmem:[#allocation8_spill] sm:$0xff] %v11384_v34  ;;  %v748_v21 = vmax.f32 %v684_v32, %v716_v43  ;;  %v718_v54 = vmul.f32 0.2, %v686_v58  ;;  %v648_v32 = vmul.f32 %v11316_v6, %v11079_v28  ;;  %v687_v48 = vadd.f32 %v11336_v13, %v647_v11 }
  0x9a   : > { %v749_v41 = vmax.f32 %v685_v14, %v717_v19  ;;  %786 = vst.msk [vmem:[#allocation2 + $0x61] sm:$0xff] %vm449_vm0, %v747_v61  ;;  %v649_v28 = vmul.f32 %v11316_v6, %v11087_v36  ;;  %v650_v61 = vmul.f32 %v11316_v6, %v11101_v46 }
  0x9b   : > { %v1227_v1 = vld [vmem:[#allocation2 + $0x11] sm:$0xff]  ;;  %787 = vst.msk [vmem:[#allocation2 + $0x69] sm:$0xff] %vm449_vm0, %v748_v21  ;;  %v750_v5 = vmax.f32 %v686_v58, %v718_v54  ;;  %v1230_v10 = vld [vmem:[#allocation2 + $0x29] sm:$0xff]  ;;  %v688_v58 = vadd.f32 %v11336_v13, %v648_v32  ;;  %v719_v54 = vmul.f32 0.2, %v687_v48 }
  0x9c   : > { %v11391_v49 = vpop.permute.xlu1 %929  ;;  %v11393_v51 = vpop.permute.xlu0 %924  ;;  %788 = vst.msk [vmem:[#allocation2 + $0x71] sm:$0xff] %vm449_vm0, %v749_v41  ;;  %v1228_v47 = vld [vmem:[#allocation2 + $0x19] sm:$0xff]  ;;  %v10229_v55 = vpack.c.bf16 %v1227_v1, %v1227_v1  ;;  %v10232_v25 = vpack.c.bf16 %v1230_v10, %v1230_v10  ;;  %v1231_v30 = vld [vmem:[#allocation2 + $0x31] sm:$0xff]  ;;  %v689_v10 = vadd.f32 %v11336_v13, %v649_v28  ;;  %v690_v36 = vadd.f32 %v11336_v13, %v650_v61 }
  0x9d   : > { %15486 = vst [vmem:[#allocation9_spill] sm:$0xff] %v11391_v49  ;;  %15487 = vst [vmem:[#allocation10_spill] sm:$0xff] %v11393_v51  ;;  %v10230_v57 = vpack.c.bf16 %v1228_v47, %v1228_v47  ;;  %v1229_v16 = vld [vmem:[#allocation2 + $0x21] sm:$0xff]  ;;  %v1232_v39 = vld [vmem:[#allocation2 + $0x39] sm:$0xff]  ;;  %v10233_v14 = vpack.c.bf16 %v1231_v30, %v1231_v30 }
  0x9e   : > { %789 = vst.msk [vmem:[#allocation2 + $0x79] sm:$0xff] %vm449_vm0, %v750_v5  ;;  %1357 = vrot.lane.b32.xlu0 %v10229_v55, %s10803_s30  ;;  %v10231_v8 = vpack.c.bf16 %v1229_v16, %v1229_v16  ;;  %v10234_v18 = vpack.c.bf16 %v1232_v39, %v1232_v39  ;;  %v1233_v43 = vld [vmem:[#allocation2 + $0x41] sm:$0xff]  ;;  %v1234_v19 = vld [vmem:[#allocation2 + $0x49] sm:$0xff]  ;;  %v720_v55 = vmul.f32 0.2, %v688_v58  ;;  %v751_v16 = vmax.f32 %v687_v48, %v719_v54 }
  0x9f   : > { %1359 = vrot.lane.b32.xlu1 %v10230_v57, %s10803_s30  ;;  %v10235_v21 = vpack.c.bf16 %v1233_v43, %v1233_v43  ;;  %v10236_v5 = vpack.c.bf16 %v1234_v19, %v1234_v19  ;;  %v1235_v47 = vld [vmem:[#allocation2 + $0x51] sm:$0xff]  ;;  %v1236_v57 = vld [vmem:[#allocation2 + $0x59] sm:$0xff]  ;;  %v653_v48 = vmul.f32 %v11316_v6, %v11131_v20  ;;  %v721_v43 = vmul.f32 0.2, %v689_v10 }
  0xa0   : > { %v11399_v17 = vpop.permute.xlu1 %939  ;;  %v11403_v12 = vpop.permute.xlu0 %934  ;;  %v10237_v46 = vpack.c.bf16 %v1235_v47, %v1235_v47  ;;  %v752_v39 = vmax.f32 %v688_v58, %v720_v55  ;;  %790 = vst.msk [vmem:[#allocation2 + $0x81] sm:$0xff] %vm449_vm0, %v751_v16  ;;  %v722_v19 = vmul.f32 0.2, %v690_v36  ;;  %v654_v55 = vmul.f32 %v11316_v6, %v11149_v33 }
  0xa1   : > { %15488 = vst [vmem:[#allocation11_spill] sm:$0xff] %v11399_v17  ;;  %15489 = vst [vmem:[#allocation12_spill] sm:$0xff] %v11403_v12  ;;  %v1237_v32 = vld [vmem:[#allocation2 + $0x61] sm:$0xff]  ;;  %v656_v16 = vmul.f32 %v11316_v6, %v11175_v52 }
  0xa2   : > { %1361 = vrot.lane.b32.xlu0 %v10231_v8, %s10803_s30  ;;  %v10238_v8 = vpack.c.bf16 %v1236_v57, %v1236_v57  ;;  %v1238_v30 = vld [vmem:[#allocation2 + $0x69] sm:$0xff]  ;;  %791 = vst.msk [vmem:[#allocation2 + $0x89] sm:$0xff] %vm449_vm0, %v752_v39  ;;  %v10239_v61 = vpack.c.bf16 %v1237_v32, %v1237_v32  ;;  %v754_v54 = vmax.f32 %v690_v36, %v722_v19 }
  0xa3   : > { %1363 = vrot.lane.b32.xlu1 %v10232_v25, %s10803_s30  ;;  %v10240_v28 = vpack.c.bf16 %v1238_v30, %v1238_v30  ;;  %v693_v57 = vadd.f32 %v11336_v13, %v653_v48  ;;  %v694_v30 = vadd.f32 %v11336_v13, %v654_v55 }
  0xa4   : > { %v11410_v9 = vpop.permute.xlu1 %949  ;;  %v11412_v22 = vpop.permute.xlu0 %944  ;;  %793 = vst.msk [vmem:[#allocation2 + $0x99] sm:$0xff] %vm449_vm0, %v754_v54 }
  0xa5   : > { %15490 = vst [vmem:[#allocation13_spill] sm:$0xff] %v11410_v9  ;;  %15491 = vst [vmem:[#allocation14_spill] sm:$0xff] %v11412_v22  ;;  %v1240_v47 = vld [vmem:[#allocation2 + $0x79] sm:$0xff]  ;;  %v725_v32 = vmul.f32 0.2, %v693_v57 }
  0xa6   : > { %1365 = vrot.lane.b32.xlu0 %v10233_v14, %s10803_s30  ;;  %v651_v14 = vmul.f32 %v11316_v6, %v11109_v53  ;;  %v1239_v53 = vld [vmem:[#allocation2 + $0x71] sm:$0xff] }
  0xa7   : > { %1367 = vrot.lane.b32.xlu1 %v10234_v18, %s10803_s30  ;;  %v652_v18 = vmul.f32 %v11316_v6, %v11123_v63  ;;  %v753_v63 = vmax.f32 %v689_v10, %v721_v43  ;;  %v10241_v33 = vpack.c.bf16 %v1239_v53, %v1239_v53  ;;  %v1241_v52 = vld [vmem:[#allocation2 + $0x81] sm:$0xff]  ;;  %v757_v54 = vmax.f32 %v693_v57, %v725_v32 }
  0xa8   : > { %v11421_v41 = vpop.permute.xlu1 %959  ;;  %v11423_v1 = vpop.permute.xlu0 %954 }
  0xa9   : > { %15492 = vst [vmem:[#allocation15_spill] sm:$0xff] %v11423_v1  ;;  %v692_v20 = vadd.f32 %v11336_v13, %v652_v18  ;;  %792 = vst.msk [vmem:[#allocation2 + $0x91] sm:$0xff] %vm449_vm0, %v753_v63  ;;  %v1242_v19 = vld [vmem:[#allocation2 + $0x89] sm:$0xff]  ;;  %v726_v63 = vmul.f32 0.2, %v694_v30 }
  0xaa   : > { %1369 = vrot.lane.b32.xlu0 %v10235_v21, %s10803_s30  ;;  %796 = vst.msk [vmem:[#allocation2 + $0xb1] sm:$0xff] %vm449_vm0, %v757_v54 }
  0xab   : > { %1371 = vrot.lane.b32.xlu1 %v10236_v5, %s10803_s30  ;;  %v691_v5 = vadd.f32 %v11336_v13, %v651_v14  ;;  %v724_v36 = vmul.f32 0.2, %v692_v20  ;;  %v1244_v55 = vld [vmem:[#allocation2 + $0x99] sm:$0xff] }
  0xac   : > { %v11429_v11 = vpop.permute.xlu1 %969  ;;  %v11431_v25 = vpop.permute.xlu0 %964  ;;  %v10246_v32 = vpack.c.bf16 %v1244_v55, %v1244_v55  ;;  %v661_v55 = vmul.f32 %v11316_v6, %v11228_v15 }
  0xad   : > { %15493 = vst [vmem:[#allocation16_spill] sm:$0xff] %v11429_v11  ;;  %15494 = vst [vmem:[#allocation17_spill] sm:$0xff] %v11431_v25  ;;  %v723_v10 = vmul.f32 0.2, %v691_v5  ;;  %v756_v18 = vmax.f32 %v692_v20, %v724_v36  ;;  %v10244_v20 = vpack.c.bf16 %v1242_v19, %v1242_v19 }
  0xae   : > { %1373 = vrot.lane.b32.xlu0 %v10237_v46, %s10803_s30  ;;  %v655_v46 = vmul.f32 %v11316_v6, %v11157_v42  ;;  %v10242_v42 = vpack.c.bf16 %v1240_v47, %v1240_v47 }
  0xaf   : > { %1375 = vrot.lane.b32.xlu1 %v10238_v8, %s10803_s30  ;;  %v657_v8 = vmul.f32 %v11316_v6, %v11183_v60  ;;  %v755_v14 = vmax.f32 %v691_v5, %v723_v10  ;;  %v696_v60 = vadd.f32 %v11336_v13, %v656_v16  ;;  %795 = vst.msk [vmem:[#allocation2 + $0xa9] sm:$0xff] %vm449_vm0, %v756_v18 }
  0xb0   : > { %v11443_v58 = vpop.permute.xlu1 %979  ;;  %v11445_v21 = vpop.permute.xlu0 %974  ;;  %v695_v48 = vadd.f32 %v11336_v13, %v655_v46  ;;  %v758_v46 = vmax.f32 %v694_v30, %v726_v63  ;;  %v1243_v36 = vld [vmem:[#allocation2 + $0x91] sm:$0xff] }
  0xb1   : > { %15495 = vst [vmem:[#allocation18_spill] sm:$0xff] %v11443_v58  ;;  %15496 = vst [vmem:[#allocation19_spill] sm:$0xff] %v11445_v21  ;;  %v697_v53 = vadd.f32 %v11336_v13, %v657_v8  ;;  %v10245_v57 = vpack.c.bf16 %v1243_v36, %v1243_v36 }
  0xb2   : > { %1377 = vrot.lane.b32.xlu0 %v10239_v61, %s10803_s30  ;;  %v658_v61 = vmul.f32 %v11316_v6, %v11198_v23  ;;  %794 = vst.msk [vmem:[#allocation2 + $0xa1] sm:$0xff] %vm449_vm0, %v755_v14  ;;  %v727_v47 = vmul.f32 0.2, %v695_v48  ;;  %v728_v23 = vmul.f32 0.2, %v696_v60  ;;  %797 = vst.msk [vmem:[#allocation2 + $0xb9] sm:$0xff] %vm449_vm0, %v758_v46 }
  0xb3   : > { %1379 = vrot.lane.b32.xlu1 %v10240_v28, %s10803_s30  ;;  %v10243_v28 = vpack.c.bf16 %v1241_v52, %v1241_v52  ;;  %v729_v10 = vmul.f32 0.2, %v697_v53 }
  0xb4   : > { %v11463_v39 = vpop.permute.xlu0 %984  ;;  %v11467_v43 = vpop.permute.xlu1 %989  ;;  %v698_v16 = vadd.f32 %v11336_v13, %v658_v61  ;;  %v760_v52 = vmax.f32 %v696_v60, %v728_v23  ;;  %v659_v61 = vmul.f32 %v11316_v6, %v11206_v37 }
  0xb5   : > { %15497 = vst [vmem:[#allocation20_spill] sm:$0xff] %v11463_v39  ;;  %15498 = vst [vmem:[#allocation21_spill] sm:$0xff] %v11467_v43  ;;  %v761_v18 = vmax.f32 %v697_v53, %v729_v10  ;;  %v1247_v53 = vld [vmem:[#allocation2 + $0xb1] sm:$0xff] }
  0xb6   : > { %1381 = vrot.lane.b32.xlu0 %v10241_v33, %s10803_s30  ;;  %v1246_v30 = vld [vmem:[#allocation2 + $0xa9] sm:$0xff]  ;;  %v730_v14 = vmul.f32 0.2, %v698_v16  ;;  %799 = vst.msk [vmem:[#allocation2 + $0xc9] sm:$0xff] %vm449_vm0, %v760_v52  ;;  %v10249_v46 = vpack.c.bf16 %v1247_v53, %v1247_v53 }
  0xb7   : > { %1383 = vrot.lane.b32.xlu1 %v10242_v42, %s10803_s30  ;;  %v759_v42 = vmax.f32 %v695_v48, %v727_v47  ;;  %800 = vst.msk [vmem:[#allocation2 + $0xd1] sm:$0xff] %vm449_vm0, %v761_v18  ;;  %v10248_v60 = vpack.c.bf16 %v1246_v30, %v1246_v30  ;;  %v662_v30 = vmul.f32 %v11316_v6, %v11236_v35  ;;  %v841_v52 = vld [vmem:[#allocation2 + $0x8] sm:$0xff] }
  0xb8   : > { %v11476_v5 = vpop.permute.xlu0 %994  ;;  %v11481_v8 = vpop.permute.xlu1 %999  ;;  %v762_v37 = vmax.f32 %v698_v16, %v730_v14  ;;  %v663_v35 = vmul.f32 %v11316_v6, %v11244_v45  ;;  %v10721_v53 = vld [vmem:[%s15321_s5 + $0x48] sm:$0xff] }
  0xb9   : > { %v1245_v19 = vld [vmem:[#allocation2 + $0xa1] sm:$0xff]  ;;  %798 = vst.msk [vmem:[#allocation2 + $0xc1] sm:$0xff] %vm449_vm0, %v759_v42  ;;  %v701_v42 = vadd.f32 %v11336_v13, %v661_v55 }
  0xba   : > { %1385 = vrot.lane.b32.xlu0 %v10243_v28, %s10803_s30  ;;  %v660_v28 = vmul.f32 %v11316_v6, %v11220_v56  ;;  %v10247_v63 = vpack.c.bf16 %v1245_v19, %v1245_v19  ;;  %v699_v56 = vadd.f32 %v11336_v13, %v659_v61  ;;  %801 = vst.msk [vmem:[#allocation2 + $0xd9] sm:$0xff] %vm449_vm0, %v762_v37  ;;  %v2750_v4 = vld [vmem:[#allocation2 + $0xa0] sm:$0xff] }
  0xbb   : > { %1387 = vrot.lane.b32.xlu1 %v10244_v20, %s10803_s30  ;;  %v1248_v20 = vld [vmem:[#allocation2 + $0xb9] sm:$0xff]  ;;  %v664_v61 = vmul.f32 %v11316_v6, %v11256_v59  ;;  %v703_v45 = vadd.f32 %v11336_v13, %v663_v35 }
  0xbc   : > { %v11485_v33 = vpop.permute.xlu0 %1004  ;;  %v11499_v54 = vpop.permute.xlu1 %1009  ;;  %v700_v47 = vadd.f32 %v11336_v13, %v660_v28  ;;  %v10250_v10 = vpack.c.bf16 %v1248_v20, %v1248_v20  ;;  %v731_v36 = vmul.f32 0.2, %v699_v56  ;;  %v1033_v28 = vmul.f32 %v11326_v3, %v841_v52  ;;  %v10727_v52 = vld [vmem:[%s15321_s5 + $0x78] sm:$0xff] }
  0xbd   : > { %v704_v59 = vadd.f32 %v11336_v13, %v664_v61  ;;  %v843_v35 = vld [vmem:[#allocation2 + $0x18] sm:$0xff] }
  0xbe   : > { %1389 = vrot.lane.b32.xlu0 %v10245_v57, %s10803_s30  ;;  %v732_v16 = vmul.f32 0.2, %v700_v47  ;;  %v763_v57 = vmax.f32 %v699_v56, %v731_v36  ;;  %v10196_v55 = vpack.c.bf16 %v1033_v28, %v1033_v28  ;;  %v10723_v36 = vld [vmem:[%s15321_s5 + $0x58] sm:$0xff]  ;;  %v11565_v28 = vld [vmem:[#allocation2 + $0x28] sm:$0xff] }
  0xbf   : > { %1391 = vrot.lane.b32.xlu1 %v10246_v32, %s10803_s30  ;;  %v11563_v61 = vld [vmem:[#allocation2 + $0x38] sm:$0xff] }
  0xc0   : > { %v11496_v48 = vpop.permute.xlu0 %1014  ;;  %v764_v32 = vmax.f32 %v700_v47, %v732_v16  ;;  %v11513_v15 = vpop.permute.xlu1 %1019  ;;  %v1249_v14 = vld [vmem:[#allocation2 + $0xc1] sm:$0xff]  ;;  %802 = vst.msk [vmem:[#allocation2 + $0xe1] sm:$0xff] %vm449_vm0, %v763_v57  ;;  %v735_v47 = vmul.f32 0.2, %v703_v45 }
  0xc1   : > { %15499 = vst [vmem:[#allocation22_spill] sm:$0xff] %v11513_v15  ;;  %v10251_v19 = vpack.c.bf16 %v1249_v14, %v1249_v14  ;;  %1194 = vst.msk [vmem:[#allocation4 + $0x4] sm:$0xf] %vm1192_vm2, %v10196_v55  ;;  %v842_v14 = vld [vmem:[#allocation2 + $0x10] sm:$0xff]  ;;  %v11586_v55 = vmul.f32 %v11324_v62, %v843_v35  ;;  %v10731_v35 = vld [vmem:[%s15321_s5 + $0x98] sm:$0xff] }
  0xc2   : > { %1393 = vrot.lane.b32.xlu0 %v10247_v63, %s10803_s30  ;;  %803 = vst.msk [vmem:[#allocation2 + $0xe9] sm:$0xff] %vm449_vm0, %v764_v32  ;;  %v702_v63 = vadd.f32 %v11336_v13, %v662_v30  ;;  %v767_v13 = vmax.f32 %v703_v45, %v735_v47  ;;  %v10724_v32 = vld [vmem:[%s15321_s5 + $0x50] sm:$0xff]  ;;  %v10725_v30 = vld [vmem:[%s15321_s5 + $0x68] sm:$0xff]  ;;  %v1034_v47 = vmul.f32 %v11307_v40, %v842_v14  ;;  %v2749_v14 = vld [vmem:[#allocation2 + $0x98] sm:$0xff] }
  0xc3   : > { %1395 = vrot.lane.b32.xlu1 %v10248_v60, %s10803_s30  ;;  %v733_v60 = vmul.f32 0.2, %v701_v42  ;;  %v11578_v45 = vld [vmem:[#allocation2 + $0x50] sm:$0xff] }
  0xc4   : > { %v11507_v23 = vpop.permute.xlu0 %1024  ;;  %v734_v37 = vmul.f32 0.2, %v702_v63  ;;  %v11531_v56 = vpop.permute.xlu1 %1029  ;;  %806 = vst.msk [vmem:[#allocation2 + $0x101] sm:$0xff] %vm449_vm0, %v767_v13  ;;  %v10730_v13 = vld [vmem:[%s15321_s5 + $0x80] sm:$0xff]  ;;  %v1042_v2 = vmul.f32 %v11578_v45, %v11393_v51 }
  0xc5   : > { %v765_v20 = vmax.f32 %v701_v42, %v733_v60  ;;  %v10726_v42 = vld [vmem:[%s15321_s5 + $0x60] sm:$0xff]  ;;  %v11570_v60 = vld [vmem:[#allocation2 + $0x30] sm:$0xff] }
  0xc6   : > { %1397 = vrot.lane.b32.xlu0 %v10249_v46, %s10803_s30  ;;  %v766_v6 = vmax.f32 %v702_v63, %v734_v37  ;;  %v10722_v46 = vld [vmem:[%s15321_s5 + $0x40] sm:$0xff]  ;;  %v10729_v63 = vld [vmem:[%s15321_s5 + $0x88] sm:$0xff] }
  0xc7   : > { %1399 = vrot.lane.b32.xlu1 %v10250_v10, %s10803_s30  ;;  %804 = vst.msk [vmem:[#allocation2 + $0xf1] sm:$0xff] %vm449_vm0, %v765_v20  ;;  %v736_v10 = vmul.f32 0.2, %v704_v59  ;;  %v11574_v37 = vld [vmem:[#allocation2 + $0x40] sm:$0xff]  ;;  %v11576_v20 = vld [vmem:[#allocation2 + $0x58] sm:$0xff] }
  0xc8   : > { %v1354_v18 = vpop.permute.xlu0 %1353  ;;  %805 = vst.msk [vmem:[#allocation2 + $0xf9] sm:$0xff] %vm449_vm0, %v766_v6  ;;  %v1356_v16 = vpop.permute.xlu1 %1355  ;;  %15500 = vst [vmem:[#allocation23_spill] sm:$0xff] %v11576_v20  ;;  %v11582_v6 = vld [vmem:[#allocation2 + $0x60] sm:$0xff] }
  0xc9   : > { %1450 = vst.msk [vmem:[#allocation4] sm:$0xf] %vm1449_vm3, %v1354_v18  ;;  %v768_v57 = vmax.f32 %v704_v59, %v736_v10  ;;  %1451 = vst.msk [vmem:[#allocation4 + $0x4] sm:$0xf] %vm1449_vm3, %v1356_v16  ;;  %v11558_v18 = vld [vmem:[#allocation2 + $0x20] sm:$0xff]  ;;  %v11580_v59 = vld [vmem:[#allocation2 + $0x68] sm:$0xff] }
  0xca   : > { %1401 = vrot.lane.b32.xlu0 %v10251_v19, %s10803_s30  ;;  %v10728_v19 = vld [vmem:[%s15321_s5 + $0x70] sm:$0xff]  ;;  %15501 = vst [vmem:[#allocation24_spill] sm:$0xff] %v11580_v59  ;;  %v11592_v10 = vld [vmem:[#allocation2 + $0x78] sm:$0xff]  ;;  %v2746_v16 = vld [vmem:[#allocation2 + $0x80] sm:$0xff]  ;;  %v11626_v26 = vmul.f32 %v11580_v59, %v11399_v17  ;;  %v11645_v17 = vmul.f32 %v2749_v14, %v11429_v11 }
  0xcb   : > { %1551 = vperm.xlu1 %10680, %v10721_v53   ;;  %807 = vst.msk [vmem:[#allocation2 + $0x109] sm:$0xff] %vm449_vm0, %v768_v57  ;;  %v11572_v53 = vld [vmem:[#allocation2 + $0x48] sm:$0xff]  ;;  %15502 = vst [vmem:[#allocation25_spill] sm:$0xff] %v11592_v10  ;;  %v11601_v57 = vmul.f32 %v11565_v28, %v11356_v24  ;;  %v2753_v59 = vld [vmem:[#allocation2 + $0xb8] sm:$0xff] }
  0xcc   : > { %v11660_v14 = vmul.f32 %v2753_v59, %v11467_v43  ;;  %v2757_v11 = vld [vmem:[#allocation2 + $0xd8] sm:$0xff]  ;;  %v10197_v43 = vpack.c.bf16 %v1034_v47, %v1034_v47 }
  0xce   : > { %1547 = vperm.xlu0 %10681, %v10722_v46   ;;  %v11590_v46 = vmul.f32 %v11558_v18, %v11358_v38  ;;  %1195 = vst.msk [vmem:[#allocation4 + $0x8] sm:$0xf] %vm1192_vm2, %v10197_v43 }
  0xcf   : > { %1559 = vperm.xlu1 %10680, %v10723_v36   ;;  %v11594_v36 = vld [vmem:[#allocation2 + $0x70] sm:$0xff] }
  0xd2   : > { %1555 = vperm.xlu0 %10681, %v10724_v32   ;;  %v11605_v32 = vmul.f32 %v11563_v61, %v11366_v7 }
  0xd3   : > { %1567 = vperm.xlu1 %10680, %v10725_v30   ;;  %v1038_v30 = vmul.f32 %v11570_v60, %v11368_v0 }
  0xd4   : > { %v10202_v47 = vpack.c.bf16 %v11605_v32, %v11605_v32 }
  0xd6   : > { %1563 = vperm.xlu0 %10681, %v10726_v42   ;;  %v11611_v42 = vmul.f32 %v11572_v53, %v11382_v27  ;;  %v1044_v27 = vmul.f32 %v11582_v6, %v11403_v12  ;;  %1200 = vst.msk [vmem:[#allocation4 + $0x1c] sm:$0xf] %vm1192_vm2, %v10202_v47 }
  0xd7   : > { %1575 = vperm.xlu1 %10680, %v10727_v52   ;;  %v2747_v52 = vld [vmem:[#allocation2 + $0x88] sm:$0xff] }
  0xd8   : > { %v11642_v51 = vmul.f32 %v2747_v52, %v11421_v41  ;;  %v11657_v52 = vmul.f32 %v2750_v4, %v11445_v21  ;;  %v2758_v4 = vld [vmem:[#allocation2 + $0xe0] sm:$0xff]  ;;  %v11673_v21 = vmul.f32 %v2757_v11, %v11499_v54  ;;  %v10201_v11 = vpack.c.bf16 %v1038_v30, %v1038_v30 }
  0xd9   : > { %v10204_v43 = vpack.c.bf16 %v11611_v42, %v11611_v42 }
  0xda   : > { %1571 = vperm.xlu0 %10681, %v10728_v19   ;;  %v2748_v19 = vld [vmem:[#allocation2 + $0x90] sm:$0xff]  ;;  %1199 = vst.msk [vmem:[#allocation4 + $0x18] sm:$0xf] %vm1192_vm2, %v10201_v11 }
  0xdb   : > { %1583 = vperm.xlu1 %10680, %v10729_v63   ;;  %v1040_v63 = vmul.f32 %v11574_v37, %v11384_v34  ;;  %v11636_v34 = vmul.f32 %v11594_v36, %v11412_v22  ;;  %v11648_v12 = vmul.f32 %v2748_v19, %v11431_v25  ;;  %v2755_v22 = vld [vmem:[#allocation2 + $0xc8] sm:$0xff]  ;;  %v2756_v25 = vld [vmem:[#allocation2 + $0xd0] sm:$0xff]  ;;  %1202 = vst.msk [vmem:[#allocation4 + $0x24] sm:$0xf] %vm1192_vm2, %v10204_v43 }
  0xdc   : > { %v11676_v59 = vmul.f32 %v2756_v25, %v11485_v33  ;;  %v10200_v25 = vpack.c.bf16 %v11601_v57, %v11601_v57  ;;  %v11703_v57 = vpop.permute.xlu1 %1515  ;;  %v2445_v43 = vld [vmem:[#allocation2 + $0x12] sm:$0xff] }
  0xdd   : > { %v10213_v30 = vpack.c.bf16 %v11648_v12, %v11648_v12  ;;  %v10214_v12 = vpack.c.bf16 %v11645_v17, %v11645_v17 }
  0xde   : > { %1579 = vperm.xlu0 %10681, %v10730_v13   ;;  %v11620_v13 = vmul.f32 %v11576_v20, %v11391_v49  ;;  %v2751_v49 = vld [vmem:[#allocation2 + $0xa8] sm:$0xff]  ;;  %v11639_v20 = vmul.f32 %v2746_v16, %v11423_v1  ;;  %v10732_v16 = vld [vmem:[%s15321_s5 + $0x90] sm:$0xff]  ;;  %v2754_v1 = vld [vmem:[#allocation2 + $0xc0] sm:$0xff]  ;;  %1198 = vst.msk [vmem:[#allocation4 + $0x14] sm:$0xf] %vm1192_vm2, %v10200_v25 }
  0xdf   : > { %1591 = vperm.xlu1 %10680, %v10731_v35   ;;  %v11632_v35 = vmul.f32 %v11592_v10, %v11410_v9  ;;  %v2752_v9 = vld [vmem:[#allocation2 + $0xb0] sm:$0xff]  ;;  %v11651_v10 = vmul.f32 %v2751_v49, %v11443_v58  ;;  %v11666_v49 = vmul.f32 %v2755_v22, %v11481_v8  ;;  %v2759_v58 = vld [vmem:[#allocation2 + $0xe8] sm:$0xff]  ;;  %v11682_v22 = vmul.f32 %v2758_v4, %v11496_v48  ;;  %v2761_v4 = vld [vmem:[#allocation2 + $0xf8] sm:$0xff] }
  0xe0   : > { %v11663_v19 = vmul.f32 %v2752_v9, %v11463_v39  ;;  %v11679_v9 = vmul.f32 %v2759_v58, %v11513_v15  ;;  %v2760_v39 = vld [vmem:[#allocation2 + $0xf0] sm:$0xff]  ;;  %v10203_v58 = vpack.c.bf16 %v1040_v63, %v1040_v63  ;;  %v10734_v63 = vld [vmem:[%s15321_s5 + $0xa8] sm:$0xff]  ;;  %1211 = vst.msk [vmem:[#allocation4 + $0x48] sm:$0xf] %vm1192_vm2, %v10213_v30  ;;  %1212 = vst.msk [vmem:[#allocation4 + $0x4c] sm:$0xf] %vm1192_vm2, %v10214_v12 }
  0xe1   : > { %v11695_v15 = vmul.f32 %v2760_v39, %v11507_v23  ;;  %v10211_v39 = vpack.c.bf16 %v11639_v20, %v11639_v20  ;;  %v10210_v32 = vpack.c.bf16 %v11632_v35, %v11632_v35  ;;  %v10215_v20 = vpack.c.bf16 %v11657_v52, %v11657_v52  ;;  %v1482_v25 = vld [vmem:[#allocation2 + $0x2] sm:$0xff] }
  0xe2   : > { %1587 = vperm.xlu0 %10681, %v10732_v16   ;;  %v11670_v16 = vmul.f32 %v2754_v1, %v11476_v5  ;;  %v10198_v1 = vpack.c.bf16 %v11586_v55, %v11586_v55  ;;  %v10207_v55 = vpack.c.bf16 %v1044_v27, %v1044_v27  ;;  %1201 = vst.msk [vmem:[#allocation4 + $0x20] sm:$0xf] %vm1192_vm2, %v10203_v58  ;;  %v2446_v58 = vld [vmem:[#allocation2 + $0x1a] sm:$0xff]  ;;  %v1902_v12 = vld [vmem:[#allocation2 + $0x28] sm:$0xff] }
  0xe3   : > { %1615 = vperm.xlu1 %10680, %v11141_v29   ;;  %v10199_v29 = vpack.c.bf16 %v11590_v46, %v11590_v46  ;;  %v1063_v46 = vmul.f32 %v2761_v4, %v11531_v56  ;;  %v10208_v27 = vpack.c.bf16 %v11626_v26, %v11626_v26  ;;  %v10733_v26 = vld [vmem:[%s15321_s5 + $0xd0] sm:$0xff]  ;;  %v10216_v42 = vpack.c.bf16 %v11651_v10, %v11651_v10  ;;  %v10739_v4 = vld [vmem:[%s15321_s5 + $0xe0] sm:$0xff] }
  0xe4   : > { %1196 = vst.msk [vmem:[#allocation4 + $0xc] sm:$0xf] %vm1192_vm2, %v10198_v1  ;;  %1205 = vst.msk [vmem:[#allocation4 + $0x30] sm:$0xf] %vm1192_vm2, %v10207_v55  ;;  %v10219_v17 = vpack.c.bf16 %v11670_v16, %v11670_v16  ;;  %v10220_v10 = vpack.c.bf16 %v11666_v49, %v11666_v49  ;;  %v10221_v35 = vpack.c.bf16 %v11676_v59, %v11676_v59  ;;  %v10735_v49 = vld [vmem:[%s15321_s5 + $0xa0] sm:$0xff]  ;;  %v11772_v59 = vpop.permute.xlu1 %1523  ;;  %v10738_v1 = vld [vmem:[%s15321_s5 + $0xe8] sm:$0xff] }
  0xe5   : > { %1197 = vst.msk [vmem:[#allocation4 + $0x10] sm:$0xf] %vm1192_vm2, %v10199_v29  ;;  %1206 = vst.msk [vmem:[#allocation4 + $0x34] sm:$0xf] %vm1192_vm2, %v10208_v27  ;;  %v10222_v52 = vpack.c.bf16 %v11673_v21, %v11673_v21  ;;  %v10225_v16 = vpack.c.bf16 %v11695_v15, %v11695_v15  ;;  %v10226_v21 = vpack.c.bf16 %v1063_v46, %v1063_v46  ;;  %v11783_v15 = vpop.permute.xlu0 %1519  ;;  %v10737_v29 = vld [vmem:[%s15321_s5 + $0xb0] sm:$0xff]  ;;  %v10740_v55 = vld [vmem:[%s15321_s5 + $0xf8] sm:$0xff] }
  0xe6   : > { %1611 = vperm.xlu0 %10681, %v11146_v31   ;;  %v10205_v31 = vpack.c.bf16 %v1042_v2, %v1042_v2  ;;  %v10209_v2 = vpack.c.bf16 %v11636_v34, %v11636_v34  ;;  %v10212_v34 = vpack.c.bf16 %v11642_v51, %v11642_v51  ;;  %v10217_v51 = vpack.c.bf16 %v11663_v19, %v11663_v19 }
  0xe7   : > { %1623 = vperm.xlu1 %10680, %v11169_v50   ;;  %v10206_v50 = vpack.c.bf16 %v11620_v13, %v11620_v13  ;;  %1209 = vst.msk [vmem:[#allocation4 + $0x40] sm:$0xf] %vm1192_vm2, %v10211_v39  ;;  %1208 = vst.msk [vmem:[#allocation4 + $0x3c] sm:$0xf] %vm1192_vm2, %v10210_v32  ;;  %v10218_v13 = vpack.c.bf16 %v11660_v14, %v11660_v14  ;;  %v10223_v14 = vpack.c.bf16 %v11682_v22, %v11682_v22  ;;  %v10736_v22 = vld [vmem:[%s15321_s5 + $0xb8] sm:$0xff] }
  0xe8   : > { %1203 = vst.msk [vmem:[#allocation4 + $0x28] sm:$0xf] %vm1192_vm2, %v10205_v31  ;;  %1207 = vst.msk [vmem:[#allocation4 + $0x38] sm:$0xf] %vm1192_vm2, %v10209_v2  ;;  %v10224_v19 = vpack.c.bf16 %v11679_v9, %v11679_v9  ;;  %v1483_v9 = vld [vmem:[#allocation2 + $0xa] sm:$0xff]  ;;  %v11793_v47 = vpop.permute.xlu1 %1527  ;;  %v1642_v31 = vmul.f32 %v11703_v57, %v1482_v25  ;;  %v1900_v39 = vld [vmem:[#allocation2 + $0x18] sm:$0xff]  ;;  %v1644_v32 = vmul.f32 %v2445_v43, %v11772_v59 }
  0xe9   : > { %1204 = vst.msk [vmem:[#allocation4 + $0x2c] sm:$0xf] %vm1192_vm2, %v10206_v50  ;;  %1210 = vst.msk [vmem:[#allocation4 + $0x44] sm:$0xf] %vm1192_vm2, %v10212_v34  ;;  %v1643_v11 = vmul.f32 %v11783_v15, %v1483_v9  ;;  %v1645_v50 = vmul.f32 %v2446_v58, %v11793_v47  ;;  %v10741_v2 = vld [vmem:[%s15321_s5 + $0xf0] sm:$0xff]  ;;  %v1932_v34 = vmul.f32 %v1900_v39, %v11326_v3 }
  0xea   : > { %1619 = vperm.xlu0 %10681, %v10733_v26   ;;  %1213 = vst.msk [vmem:[#allocation4 + $0x50] sm:$0xf] %vm1192_vm2, %v10215_v20  ;;  %1215 = vst.msk [vmem:[#allocation4 + $0x58] sm:$0xf] %vm1192_vm2, %v10217_v51  ;;  %v10259_v27 = vpack.c.bf16 %v1642_v31, %v1642_v31  ;;  %v1899_v26 = vld [vmem:[#allocation2 + $0x10] sm:$0xff]  ;;  %v10261_v20 = vpack.c.bf16 %v1644_v32, %v1644_v32  ;;  %v2478_v25 = vmul.f32 %v2446_v58, %v11783_v15 }
  0xeb   : > { %1599 = vperm.xlu1 %10680, %v10734_v63   ;;  %1214 = vst.msk [vmem:[#allocation4 + $0x54] sm:$0xf] %vm1192_vm2, %v10216_v42  ;;  %1217 = vst.msk [vmem:[#allocation4 + $0x60] sm:$0xf] %vm1192_vm2, %v10219_v17  ;;  %v10260_v46 = vpack.c.bf16 %v1643_v11, %v1643_v11  ;;  %v10262_v30 = vpack.c.bf16 %v1645_v50, %v1645_v50  ;;  %v1931_v51 = vmul.f32 %v1899_v26, %v11309_v44  ;;  %v1901_v17 = vld [vmem:[#allocation2 + $0x20] sm:$0xff]  ;;  %v11829_v31 = vld [vmem:[#allocation2 + $0x2a] sm:$0xff] }
  0xec   : > { %1216 = vst.msk [vmem:[#allocation4 + $0x5c] sm:$0xf] %vm1192_vm2, %v10218_v13  ;;  %1218 = vst.msk [vmem:[#allocation4 + $0x64] sm:$0xf] %vm1192_vm2, %v10220_v10  ;;  %v10292_v42 = vpack.c.bf16 %v1932_v34, %v1932_v34  ;;  %v1934_v63 = vmul.f32 %v1902_v12, %v11324_v62  ;;  %v2189_v10 = vld [vmem:[#allocation2 + $0x19] sm:$0xff]  ;;  %v2480_v39 = vmul.f32 %v11829_v31, %v11793_v47 }
  0xed   : > { %1219 = vst.msk [vmem:[#allocation4 + $0x68] sm:$0xf] %vm1192_vm2, %v10221_v35  ;;  %1220 = vst.msk [vmem:[#allocation4 + $0x6c] sm:$0xf] %vm1192_vm2, %v10222_v52  ;;  %v10291_v13 = vpack.c.bf16 %v1931_v51, %v1931_v51  ;;  %v1933_v35 = vmul.f32 %v1901_v17, %v11307_v40  ;;  %v2767_v34 = vmul.f32 %v11565_v28, %v11326_v3 }
  0xee   : > { %1595 = vperm.xlu0 %10681, %v10735_v49   ;;  %1221 = vst.msk [vmem:[#allocation4 + $0x70] sm:$0xf] %vm1192_vm2, %v10223_v14  ;;  %1222 = vst.msk [vmem:[#allocation4 + $0x74] sm:$0xf] %vm1192_vm2, %v10224_v19  ;;  %v10294_v52 = vpack.c.bf16 %v1934_v63, %v1934_v63  ;;  %v11816_v14 = vpop.permute.xlu0 %1531  ;;  %v11819_v19 = vpop.permute.xlu1 %1535  ;;  %v2188_v49 = vld [vmem:[#allocation2 + $0x11] sm:$0xff]  ;;  %v10358_v26 = vpack.c.bf16 %v2480_v39, %v2480_v39  ;;  %v2766_v12 = vmul.f32 %v11558_v18, %v11309_v44 }
  0xef   : > { %1607 = vperm.xlu1 %10680, %v10736_v22   ;;  %1223 = vst.msk [vmem:[#allocation4 + $0x78] sm:$0xf] %vm1192_vm2, %v10225_v16  ;;  %1224 = vst.msk [vmem:[#allocation4 + $0x7c] sm:$0xf] %vm1192_vm2, %v10226_v21  ;;  %v10324_v16 = vpack.c.bf16 %v2189_v10, %v2189_v10  ;;  %v10293_v21 = vpack.c.bf16 %v1933_v35, %v1933_v35  ;;  %v2191_v22 = vld [vmem:[#allocation2 + $0x29] sm:$0xff]  ;;  %v10323_v9 = vpack.c.bf16 %v2188_v49, %v2188_v49  ;;  %v3025_v49 = vld [vmem:[#allocation2 + $0x31] sm:$0xff] }
  0xf0   : > { %v2769_v63 = vmul.f32 %v11563_v61, %v11324_v62  ;;  %v10388_v17 = vpack.c.bf16 %v2767_v34, %v2767_v34  ;;  %v2768_v28 = vmul.f32 %v11570_v60, %v11307_v40  ;;  %v10387_v44 = vpack.c.bf16 %v2766_v12, %v2766_v12 }
  0xf2   : > { %1603 = vperm.xlu0 %10681, %v10737_v29   ;;  %v10326_v29 = vpack.c.bf16 %v2191_v22, %v2191_v22  ;;  %v11824_v11 = vpop.permute.xlu0 %1539  ;;  %v10389_v10 = vpack.c.bf16 %v2768_v28, %v2768_v28  ;;  %v3313_v22 = vmul.f32 %v11829_v31, %v11783_v15  ;;  %v1936_v28 = vmul.f32 %v11563_v61, %v11356_v24 }
  0xf3   : > { %1631 = vperm.xlu1 %10680, %v10738_v1   ;;  %v2190_v1 = vld [vmem:[#allocation2 + $0x21] sm:$0xff] }
  0xf4   : > { %v10452_v15 = vpack.c.bf16 %v3313_v22, %v3313_v22  ;;  %v10296_v61 = vpack.c.bf16 %v1936_v28, %v1936_v28 }
  0xf6   : > { %1627 = vperm.xlu0 %10681, %v10739_v4   ;;  %v11827_v4 = vpop.permute.xlu1 %1543 }
  0xf7   : > { %1639 = vperm.xlu1 %10680, %v10740_v55   ;;  %v10325_v55 = vpack.c.bf16 %v2190_v1, %v2190_v1  ;;  %v11873_v1 = vld [vmem:[#allocation2 + $0x3a] sm:$0xff] }
  0xfa   : > { %1635 = vperm.xlu0 %10681, %v10741_v2   ;;  %v11834_v2 = vld [vmem:[#allocation2 + $0x22] sm:$0xff] }
  0xfb   : > { %1772 = vrot.lane.b32.xlu1 %v10260_v46, %s10805_s17  ;;  %v2477_v46 = vmul.f32 %v2445_v43, %v11703_v57  ;;  %v2479_v43 = vmul.f32 %v11834_v2, %v11772_v59 }
  0xfd   : > { %v10355_v32 = vpack.c.bf16 %v2477_v46, %v2477_v46  ;;  %v10357_v51 = vpack.c.bf16 %v2479_v43, %v2479_v43  ;;  %v1647_v43 = vmul.f32 %v11829_v31, %v11819_v19 }
  0xfe   : > { %1770 = vrot.lane.b32.xlu0 %v10259_v27, %s10805_s17  ;;  %v10356_v27 = vpack.c.bf16 %v2478_v25, %v2478_v25  ;;  %v11876_v25 = vpack.c.bf16 %v3025_v49, %v3025_v49  ;;  %v1937_v49 = vmul.f32 %v11574_v37, %v11368_v0 }
  0xff   : > { %1776 = vrot.lane.b32.xlu1 %v10262_v30, %s10805_s17  ;;  %v10264_v12 = vpack.c.bf16 %v1647_v43, %v1647_v43 }
 0x100   : > { %v10297_v22 = vpack.c.bf16 %v1937_v49, %v1937_v49 }
 0x102   : > { %1774 = vrot.lane.b32.xlu0 %v10261_v20, %s10805_s17 }
 0x103   : > { %2061 = vrot.lane.b32.xlu1 %v10292_v42, %s10806_s18 }
 0x106   : > { %2059 = vrot.lane.b32.xlu0 %v10291_v13, %s10806_s18  ;;  %v10390_v13 = vpack.c.bf16 %v2769_v63, %v2769_v63 }
 0x107   : > { %2065 = vrot.lane.b32.xlu1 %v10294_v52, %s10806_s18  ;;  %v3026_v52 = vld [vmem:[#allocation2 + $0x39] sm:$0xff] }
 0x108   : > { %v11868_v40 = vpack.c.bf16 %v3026_v52, %v3026_v52 }
 0x10a   : > { %2063 = vrot.lane.b32.xlu0 %v10293_v21, %s10806_s18 }
 0x10b   : > { %2318 = vrot.lane.b32.xlu1 %v10324_v16, %s10807_s19 }
 0x10e   : > { %2316 = vrot.lane.b32.xlu0 %v10323_v9, %s10807_s19 }
 0x10f   : > { %2322 = vrot.lane.b32.xlu1 %v10326_v29, %s10807_s19 }
 0x110   : > { %v1358_v50 = vpop.permute.xlu0 %1357 }
 0x111   : > { %1452 = vst.msk [vmem:[#allocation4 + $0x8] sm:$0xf] %vm1449_vm3, %v1358_v50  ;;  %v1360_v58 = vpop.permute.xlu1 %1359  ;;  %v11883_v50 = vld [vmem:[#allocation2 + $0x32] sm:$0xff] }
 0x112   : > { %2320 = vrot.lane.b32.xlu0 %v10325_v55, %s10807_s19  ;;  %1453 = vst.msk [vmem:[#allocation4 + $0xc] sm:$0xf] %vm1449_vm3, %v1360_v58 }
 0x113   : > { %2607 = vrot.lane.b32.xlu1 %v10356_v27, %s10808_s23  ;;  %v3315_v27 = vmul.f32 %v11873_v1, %v11793_v47  ;;  %v3314_v47 = vmul.f32 %v11883_v50, %v11772_v59  ;;  %v10692_v59 = vld [vmem:[%s15317_s1 + $0x8] sm:$0xff]  }
 0x114   : > { %v1362_v30 = vpop.permute.xlu0 %1361 }
 0x115   : > { %1454 = vst.msk [vmem:[#allocation4 + $0x10] sm:$0xf] %vm1449_vm3, %v1362_v30  ;;  %v1364_v20 = vpop.permute.xlu1 %1363  ;;  %v10453_v31 = vpack.c.bf16 %v3314_v47, %v3314_v47 }
 0x116   : > { %2605 = vrot.lane.b32.xlu0 %v10355_v32, %s10808_s23  ;;  %1455 = vst.msk [vmem:[#allocation4 + $0x14] sm:$0xf] %vm1449_vm3, %v1364_v20  ;;  %v10454_v32 = vpack.c.bf16 %v3315_v27, %v3315_v27  ;;  %v3285_v27 = vld [vmem:[#allocation2 + $0x4a] sm:$0xff] }
 0x117   : > { %2611 = vrot.lane.b32.xlu1 %v10358_v26, %s10808_s23  ;;  %v1646_v26 = vmul.f32 %v11834_v2, %v11816_v14 }
 0x118   : > { %v1366_v42 = vpop.permute.xlu0 %1365 }
 0x119   : > { %1456 = vst.msk [vmem:[#allocation4 + $0x18] sm:$0xf] %vm1449_vm3, %v1366_v42  ;;  %v1368_v3 = vpop.permute.xlu1 %1367  ;;  %v10263_v63 = vpack.c.bf16 %v1646_v26, %v1646_v26 }
 0x11a   : > { %2609 = vrot.lane.b32.xlu0 %v10357_v51, %s10808_s23  ;;  %1457 = vst.msk [vmem:[#allocation4 + $0x1c] sm:$0xf] %vm1449_vm3, %v1368_v3  ;;  %v1649_v51 = vmul.f32 %v11873_v1, %v11827_v4 }
 0x11b   : > { %2896 = vrot.lane.b32.xlu1 %v10388_v17, %s10809_s24  ;;  %v1648_v17 = vmul.f32 %v11883_v50, %v11824_v11 }
 0x11c   : > { %v1370_v18 = vpop.permute.xlu0 %1369 }
 0x11d   : > { %1458 = vst.msk [vmem:[#allocation4 + $0x20] sm:$0xf] %vm1449_vm3, %v1370_v18  ;;  %v1372_v62 = vpop.permute.xlu1 %1371 }
 0x11e   : > { %2894 = vrot.lane.b32.xlu0 %v10387_v44, %s10809_s24  ;;  %1459 = vst.msk [vmem:[#allocation4 + $0x24] sm:$0xf] %vm1449_vm3, %v1372_v62  ;;  %v10266_v44 = vpack.c.bf16 %v1649_v51, %v1649_v51  ;;  %v10265_v62 = vpack.c.bf16 %v1648_v17, %v1648_v17 }
 0x11f   : > { %2900 = vrot.lane.b32.xlu1 %v10390_v13, %s10809_s24  ;;  %v1935_v13 = vmul.f32 %v11570_v60, %v11358_v38 }
 0x120   : > { %v1374_v35 = vpop.permute.xlu0 %1373 }
 0x121   : > { %1460 = vst.msk [vmem:[#allocation4 + $0x28] sm:$0xf] %vm1449_vm3, %v1374_v35  ;;  %v1376_v16 = vpop.permute.xlu1 %1375  ;;  %v1938_v35 = vmul.f32 %v11572_v53, %v11366_v7 }
 0x122   : > { %2898 = vrot.lane.b32.xlu0 %v10389_v10, %s10809_s24  ;;  %1461 = vst.msk [vmem:[#allocation4 + $0x2c] sm:$0xf] %vm1449_vm3, %v1376_v16  ;;  %v10295_v16 = vpack.c.bf16 %v1935_v13, %v1935_v13 }
 0x123   : > { %3153 = vrot.lane.b32.xlu1 %v10326_v29, %s10810_s25  ;;  %v3312_v29 = vmul.f32 %v11834_v2, %v11703_v57  ;;  %v10691_v57 = vld [vmem:[%s15317_s1 + $0x10] ss:$0 sps:$4 sm:$0x33]   ;;  %v10693_v2 = vld [vmem:[%s15317_s1] sm:$0xff]  }
 0x124   : > { %v1378_v21 = vpop.permute.xlu0 %1377  ;;  %10654 = vmatprep.subr.msk.bf16.mxu0 %vm3757_vm4, %v10691_v57  ;;  %v3759_v34 = vsel %vm3757_vm4, %v10691_v57, 0  ;;  %10655 = vmatprep.subr.msk.bf16.mxu1 %vm3757_vm4, %v10691_v57 }
 0x125   : > { %1462 = vst.msk [vmem:[#allocation4 + $0x30] sm:$0xf] %vm1449_vm3, %v1378_v21  ;;  %v1380_v9 = vpop.permute.xlu1 %1379  ;;  %v10451_v39 = vpack.c.bf16 %v3312_v29, %v3312_v29  ;;  %10587 = vmatpush3.bf16.msra.mxu0 %v3759_v34  ;;  %10651 = vmatpush3.bf16.msra.mxu1 %v3759_v34  ;;  %v10298_v21 = vpack.c.bf16 %v1938_v35, %v1938_v35 }
 0x126   : > { %3151 = vrot.lane.b32.xlu0 %v10325_v55, %s10810_s25  ;;  %1463 = vst.msk [vmem:[#allocation4 + $0x34] sm:$0xf] %vm1449_vm3, %v1380_v9  ;;  %10588 = vmatprep.subr.bf16.mxu0 %v10692_v59  ;;  %v2195_v9 = vld [vmem:[#allocation2 + $0x49] sm:$0xff] }
 0x127   : > { %3157 = vrot.lane.b32.xlu1 %v11868_v40, %s10810_s25  ;;  %10649 = vmatprep.subr.bf16.mxu1 %v10692_v59  ;;  %v10330_v29 = vpack.c.bf16 %v2195_v9, %v2195_v9 }
 0x128   : > { %v1382_v46 = vpop.permute.xlu0 %1381 }
 0x129   : > { %1464 = vst.msk [vmem:[#allocation4 + $0x38] sm:$0xf] %vm1449_vm3, %v1382_v46  ;;  %v1384_v55 = vpop.permute.xlu1 %1383  ;;  %10589 = vmatpush3.bf16.msra.mxu0 %v10692_v59  ;;  %10652 = vmatpush3.bf16.msra.mxu1 %v10692_v59  ;;  %v2194_v46 = vld [vmem:[#allocation2 + $0x41] sm:$0xff] }
 0x12a   : > { %3155 = vrot.lane.b32.xlu0 %v11876_v25, %s10810_s25  ;;  %1465 = vst.msk [vmem:[#allocation4 + $0x3c] sm:$0xf] %vm1449_vm3, %v1384_v55  ;;  %10590 = vmatprep.subr.bf16.mxu0 %v10693_v2  ;;  %v10329_v57 = vpack.c.bf16 %v2194_v46, %v2194_v46 }
 0x12b   : > { %3442 = vrot.lane.b32.xlu1 %v10452_v15, %s10811_s26  ;;  %10650 = vmatprep.subr.bf16.mxu1 %v10693_v2  ;;  %v2482_v15 = vmul.f32 %v11873_v1, %v11819_v19 }
 0x12c   : > { %v1386_v58 = vpop.permute.xlu0 %1385 }
 0x12d   : > { %1466 = vst.msk [vmem:[#allocation4 + $0x40] sm:$0xf] %vm1449_vm3, %v1386_v58  ;;  %v1388_v30 = vpop.permute.xlu1 %1387  ;;  %10591 = vmatpush3.bf16.msra.mxu0 %v10693_v2  ;;  %10653 = vmatpush3.bf16.msra.mxu1 %v10693_v2  ;;  %v10360_v47 = vpack.c.bf16 %v2482_v15, %v2482_v15  ;;  %v3284_v58 = vld [vmem:[#allocation2 + $0x42] sm:$0xff]  ;;  %v2772_v2 = vmul.f32 %v11578_v45, %v11368_v0 }
 0x12e   : > { %3440 = vrot.lane.b32.xlu0 %v10451_v39, %s10811_s26  ;;  %1467 = vst.msk [vmem:[#allocation4 + $0x44] sm:$0xf] %vm1449_vm3, %v1388_v30  ;;  %v2481_v39 = vmul.f32 %v11883_v50, %v11816_v14  ;;  %v2771_v30 = vmul.f32 %v11572_v53, %v11356_v24  ;;  %v3316_v35 = vmul.f32 %v3284_v58, %v11816_v14 }
 0x12f   : > { %3446 = vrot.lane.b32.xlu1 %v10454_v32, %s10811_s26 }
 0x130   : > { %v1390_v20 = vpop.permute.xlu0 %1389  ;;  %v10359_v1 = vpack.c.bf16 %v2481_v39, %v2481_v39 }
 0x131   : > { %1468 = vst.msk [vmem:[#allocation4 + $0x48] sm:$0xf] %vm1449_vm3, %v1390_v20  ;;  %v1392_v42 = vpop.permute.xlu1 %1391  ;;  %v10392_v20 = vpack.c.bf16 %v2771_v30, %v2771_v30 }
 0x132   : > { %3444 = vrot.lane.b32.xlu0 %v10453_v31, %s10811_s26  ;;  %1469 = vst.msk [vmem:[#allocation4 + $0x4c] sm:$0xf] %vm1449_vm3, %v1392_v42  ;;  %v2770_v31 = vmul.f32 %v11574_v37, %v11358_v38  ;;  %v3030_v37 = vld [vmem:[#allocation2 + $0x59] sm:$0xff] }
 0x133   : > { %1780 = vrot.lane.b32.xlu1 %v10264_v12, %s10805_s17  ;;  %v15503_v12 = vld [vmem:[#allocation23_spill] sm:$0xff]  ;;  %v11993_v0 = vpack.c.bf16 %v3030_v37, %v3030_v37 }
 0x134   : > { %v1394_v3 = vpop.permute.xlu0 %1393  ;;  %v2773_v51 = vmul.f32 %v15503_v12, %v11366_v7  ;;  %v10391_v53 = vpack.c.bf16 %v2770_v31, %v2770_v31  ;;  %v10393_v7 = vpack.c.bf16 %v2772_v2, %v2772_v2  ;;  %v15505_v31 = vld [vmem:[#allocation8_spill] sm:$0xff] }
 0x135   : > { %1470 = vst.msk [vmem:[#allocation4 + $0x50] sm:$0xf] %vm1449_vm3, %v1394_v3  ;;  %v1396_v18 = vpop.permute.xlu1 %1395  ;;  %v15507_v2 = vld [vmem:[#allocation24_spill] sm:$0xff] }
 0x136   : > { %1778 = vrot.lane.b32.xlu0 %v10263_v63, %s10805_s17  ;;  %1471 = vst.msk [vmem:[#allocation4 + $0x54] sm:$0xf] %vm1449_vm3, %v1396_v18  ;;  %v10394_v63 = vpack.c.bf16 %v2773_v51, %v2773_v51  ;;  %v3317_v18 = vmul.f32 %v3285_v27, %v11819_v19  ;;  %v12010_v19 = vld [vmem:[#allocation2 + $0x52] sm:$0xff] }
 0x137   : > { %1784 = vrot.lane.b32.xlu1 %v10266_v44, %s10805_s17  ;;  %v3029_v44 = vld [vmem:[#allocation2 + $0x51] sm:$0xff] }
 0x138   : > { %v1398_v10 = vpop.permute.xlu0 %1397 }
 0x139   : > { %1472 = vst.msk [vmem:[#allocation4 + $0x58] sm:$0xf] %vm1449_vm3, %v1398_v10  ;;  %v1400_v52 = vpop.permute.xlu1 %1399 }
 0x13a   : > { %1782 = vrot.lane.b32.xlu0 %v10265_v62, %s10805_s17  ;;  %1473 = vst.msk [vmem:[#allocation4 + $0x5c] sm:$0xf] %vm1449_vm3, %v1400_v52  ;;  %v11998_v62 = vld [vmem:[#allocation2 + $0x5a] sm:$0xff]  ;;  %v10456_v52 = vpack.c.bf16 %v3317_v18, %v3317_v18 }
 0x13b   : > { %2069 = vrot.lane.b32.xlu1 %v10296_v61, %s10806_s18  ;;  %v12003_v61 = vpack.c.bf16 %v3029_v44, %v3029_v44  ;;  %v15508_v44 = vld [vmem:[#allocation10_spill] sm:$0xff] }
 0x13c   : > { %v1402_v60 = vpop.permute.xlu0 %1401  ;;  %v1941_v18 = vmul.f32 %v11582_v6, %v15508_v44 }
 0x13d   : > { %1474 = vst.msk [vmem:[#allocation4 + $0x60] sm:$0xf] %vm1449_vm3, %v1402_v60 }
 0x13e   : > { %2067 = vrot.lane.b32.xlu0 %v10295_v16, %s10806_s18  ;;  %v3319_v16 = vmul.f32 %v11998_v62, %v11827_v4 }
 0x13f   : > { %2073 = vrot.lane.b32.xlu1 %v10298_v21, %s10806_s18  ;;  %v10455_v21 = vpack.c.bf16 %v3316_v35, %v3316_v35 }
 0x140   : > { %v10458_v14 = vpack.c.bf16 %v3319_v16, %v3319_v16  ;;  %v10301_v16 = vpack.c.bf16 %v1941_v18, %v1941_v18 }
 0x142   : > { %2071 = vrot.lane.b32.xlu0 %v10297_v22, %s10806_s18  ;;  %v3318_v22 = vmul.f32 %v12010_v19, %v11824_v11 }
 0x143   : > { %2326 = vrot.lane.b32.xlu1 %v11868_v40, %s10807_s19  ;;  %v2484_v40 = vmul.f32 %v3285_v27, %v11827_v4 }
 0x144   : > { %v10457_v46 = vpack.c.bf16 %v3318_v22, %v3318_v22 }
 0x145   : > { %v10362_v34 = vpack.c.bf16 %v2484_v40, %v2484_v40 }
 0x146   : > { %v11946_v55 = vpop.permute.xlu1 %1551  ;;  %2324 = vrot.lane.b32.xlu0 %v11876_v25, %s10807_s19  ;;  %v2483_v25 = vmul.f32 %v3284_v58, %v11824_v11 }
 0x147   : > { %2330 = vrot.lane.b32.xlu1 %v10330_v29, %s10807_s19  ;;  %v1651_v9 = vmul.f32 %v3285_v27, %v11946_v55 }
 0x148   : > { %v10361_v26 = vpack.c.bf16 %v2483_v25, %v2483_v25 }
 0x149   : > { %v11954_v32 = vpop.permute.xlu0 %1547 }
 0x14a   : > { %v11956_v43 = vpop.permute.xlu1 %1559  ;;  %2328 = vrot.lane.b32.xlu0 %v10329_v57, %s10807_s19  ;;  %v1650_v15 = vmul.f32 %v3284_v58, %v11954_v32 }
 0x14b   : > { %2615 = vrot.lane.b32.xlu1 %v10360_v47, %s10808_s23  ;;  %v1653_v39 = vmul.f32 %v11998_v62, %v11956_v43 }
 0x14c   : > { %v10267_v27 = vpack.c.bf16 %v1650_v15, %v1650_v15  ;;  %v2486_v15 = vmul.f32 %v11998_v62, %v11946_v55 }
 0x14d   : > { %v11963_v50 = vpop.permute.xlu0 %1555  ;;  %v10270_v58 = vpack.c.bf16 %v1653_v39, %v1653_v39 }
 0x14e   : > { %v11965_v59 = vpop.permute.xlu1 %1567  ;;  %2613 = vrot.lane.b32.xlu0 %v10359_v1, %s10808_s23  ;;  %v1652_v40 = vmul.f32 %v12010_v19, %v11963_v50  ;;  %v15504_v1 = vld [vmem:[#allocation7_spill] sm:$0xff] }
 0x14f   : > { %2619 = vrot.lane.b32.xlu1 %v10362_v34, %s10808_s23  ;;  %v1940_v25 = vmul.f32 %v15503_v12, %v15504_v1 }
 0x151   : > { %v11973_v42 = vpop.permute.xlu0 %1563  ;;  %v10300_v51 = vpack.c.bf16 %v1940_v25, %v1940_v25  ;;  %v10364_v25 = vpack.c.bf16 %v2486_v15, %v2486_v15 }
 0x152   : > { %v11975_v24 = vpop.permute.xlu1 %1575  ;;  %2617 = vrot.lane.b32.xlu0 %v10361_v26, %s10808_s23  ;;  %v1939_v26 = vmul.f32 %v11578_v45, %v15505_v31 }
 0x153   : > { %2904 = vrot.lane.b32.xlu1 %v10392_v20, %s10809_s24  ;;  %v10269_v20 = vpack.c.bf16 %v1652_v40, %v1652_v40  ;;  %v12076_v40 = vld [vmem:[#allocation2 + $0x6a] sm:$0xff] }
 0x154   : > { %v10299_v37 = vpack.c.bf16 %v1939_v26, %v1939_v26  ;;  %v2488_v62 = vmul.f32 %v12076_v40, %v11956_v43 }
 0x155   : > { %v11981_v17 = vpop.permute.xlu0 %1571 }
 0x156   : > { %v11983_v38 = vpop.permute.xlu1 %1583  ;;  %2902 = vrot.lane.b32.xlu0 %v10391_v53, %s10809_s24  ;;  %v15506_v53 = vld [vmem:[#allocation9_spill] sm:$0xff] }
 0x157   : > { %2908 = vrot.lane.b32.xlu1 %v10394_v63, %s10809_s24  ;;  %v1942_v63 = vmul.f32 %v15507_v2, %v15506_v53 }
 0x159   : > { %v11987_v3 = vpop.permute.xlu0 %1579  ;;  %v10302_v35 = vpack.c.bf16 %v1942_v63, %v1942_v63  ;;  %v10366_v63 = vpack.c.bf16 %v2488_v62, %v2488_v62 }
 0x15a   : > { %v11989_v28 = vpop.permute.xlu1 %1591  ;;  %2906 = vrot.lane.b32.xlu0 %v10393_v7, %s10809_s24 }
 0x15b   : > { %3161 = vrot.lane.b32.xlu1 %v10330_v29, %s10810_s25 }
 0x15d   : > { %v11996_v13 = vpop.permute.xlu0 %1587 }
 0x15e   : > { %v12000_v10 = vpop.permute.xlu1 %1615  ;;  %3159 = vrot.lane.b32.xlu0 %v10329_v57, %s10810_s25  ;;  %v10268_v57 = vpack.c.bf16 %v1651_v9, %v1651_v9 }
 0x15f   : > { %3165 = vrot.lane.b32.xlu1 %v11993_v0, %s10810_s25 }
 0x161   : > { %v12012_v49 = vpop.permute.xlu0 %1611 }
 0x162   : > { %v12014_v60 = vpop.permute.xlu1 %1623  ;;  %3163 = vrot.lane.b32.xlu0 %v12003_v61, %s10810_s25 }
 0x163   : > { %3450 = vrot.lane.b32.xlu1 %v10456_v52, %s10811_s26 }
 0x165   : > { %v12022_v29 = vpop.permute.xlu0 %1619 }
 0x166   : > { %v12024_v4 = vpop.permute.xlu1 %1599  ;;  %3448 = vrot.lane.b32.xlu0 %v10455_v21, %s10811_s26  ;;  %v2199_v21 = vld [vmem:[#allocation2 + $0x69] sm:$0xff] }
 0x167   : > { %3454 = vrot.lane.b32.xlu1 %v10458_v14, %s10811_s26  ;;  %v10334_v9 = vpack.c.bf16 %v2199_v21, %v2199_v21  ;;  %v15509_v21 = vld [vmem:[#allocation25_spill] sm:$0xff] }
 0x169   : > { %v12031_v47 = vpop.permute.xlu0 %1595 }
 0x16a   : > { %v12033_v11 = vpop.permute.xlu1 %1607  ;;  %3452 = vrot.lane.b32.xlu0 %v10457_v46, %s10811_s26  ;;  %v2198_v46 = vld [vmem:[#allocation2 + $0x61] sm:$0xff] }
 0x16b   : > { %1788 = vrot.lane.b32.xlu1 %v10268_v57, %s10805_s17 }
 0x16d   : > { %v12041_v30 = vpop.permute.xlu0 %1603 }
 0x16e   : > { %v12043_v34 = vpop.permute.xlu1 %1631  ;;  %1786 = vrot.lane.b32.xlu0 %v10267_v27, %s10805_s17  ;;  %v10333_v27 = vpack.c.bf16 %v2198_v46, %v2198_v46  ;;  %v2776_v46 = vmul.f32 %v11594_v36, %v15508_v44  ;;  %v3033_v44 = vld [vmem:[#allocation2 + $0x71] sm:$0xff] }
 0x16f   : > { %1792 = vrot.lane.b32.xlu1 %v10270_v58, %s10805_s17 }
 0x171   : > { %v12051_v7 = vpop.permute.xlu0 %1627 }
 0x172   : > { %v12053_v12 = vpop.permute.xlu1 %1639  ;;  %1790 = vrot.lane.b32.xlu0 %v10269_v20, %s10805_s17 }
 0x173   : > { %2077 = vrot.lane.b32.xlu1 %v10300_v51, %s10806_s18  ;;  %v2775_v51 = vmul.f32 %v15507_v2, %v15504_v1  ;;  %v2777_v1 = vmul.f32 %v15509_v21, %v15506_v53  ;;  %v10397_v53 = vpack.c.bf16 %v2776_v46, %v2776_v46  ;;  %v15510_v46 = vld [vmem:[#allocation11_spill] sm:$0xff] }
 0x175   : > { %v12059_v52 = vpop.permute.xlu0 %1635 }
 0x176   : > { %v1773_v45 = vpop.permute.xlu1 %1772  ;;  %2075 = vrot.lane.b32.xlu0 %v10299_v37, %s10806_s18 }
 0x177   : > { %1868 = vst.msk [vmem:[#allocation4 + $0x4] sm:$0xf] %vm1866_vm5, %v1773_v45  ;;  %2081 = vrot.lane.b32.xlu1 %v10302_v35, %s10806_s18  ;;  %v2774_v35 = vmul.f32 %v11582_v6, %v15505_v31  ;;  %v10398_v6 = vpack.c.bf16 %v2777_v1, %v2777_v1 }
 0x179   : > { %v1771_v22 = vpop.permute.xlu0 %1770 }
 0x17a   : > { %v1777_v14 = vpop.permute.xlu1 %1776  ;;  %1867 = vst.msk [vmem:[#allocation4] sm:$0xf] %vm1866_vm5, %v1771_v22  ;;  %2079 = vrot.lane.b32.xlu0 %v10301_v16, %s10806_s18  ;;  %v10396_v16 = vpack.c.bf16 %v2775_v51, %v2775_v51  ;;  %v12131_v51 = vld [vmem:[#allocation2 + $0x72] sm:$0xff] }
 0x17b   : > { %1870 = vst.msk [vmem:[#allocation4 + $0xc] sm:$0xf] %vm1866_vm5, %v1777_v14  ;;  %2334 = vrot.lane.b32.xlu1 %v11993_v0, %s10807_s19  ;;  %v2485_v0 = vmul.f32 %v12010_v19, %v11954_v32  ;;  %v10395_v14 = vpack.c.bf16 %v2774_v35, %v2774_v35 }
 0x17d   : > { %v1775_v57 = vpop.permute.xlu0 %1774  ;;  %v10363_v20 = vpack.c.bf16 %v2485_v0, %v2485_v0 }
 0x17e   : > { %v2062_v39 = vpop.permute.xlu1 %2061  ;;  %1869 = vst.msk [vmem:[#allocation4 + $0x8] sm:$0xf] %vm1866_vm5, %v1775_v57  ;;  %2332 = vrot.lane.b32.xlu0 %v12003_v61, %s10807_s19  ;;  %v12084_v61 = vld [vmem:[#allocation2 + $0x62] sm:$0xff]  ;;  %v3034_v57 = vld [vmem:[#allocation2 + $0x79] sm:$0xff] }
 0x17f   : > { %2157 = vst.msk [vmem:[#allocation4 + $0x4] sm:$0xf] %vm2155_vm6, %v2062_v39  ;;  %2338 = vrot.lane.b32.xlu1 %v10334_v9, %s10807_s19  ;;  %v2487_v19 = vmul.f32 %v12084_v61, %v11963_v50  ;;  %v12114_v36 = vpack.c.bf16 %v3034_v57, %v3034_v57  ;;  %v1654_v21 = vmul.f32 %v12084_v61, %v11973_v42  ;;  %v10743_v57 = vld [vmem:[#allocation2 + $0x70] sm:$0xff] }
 0x181   : > { %v2060_v58 = vpop.permute.xlu0 %2059  ;;  %v10365_v45 = vpack.c.bf16 %v2487_v19, %v2487_v19 }
 0x182   : > { %v2066_v26 = vpop.permute.xlu1 %2065  ;;  %2156 = vst.msk [vmem:[#allocation4] sm:$0xf] %vm2155_vm6, %v2060_v58  ;;  %2336 = vrot.lane.b32.xlu0 %v10333_v27, %s10807_s19  ;;  %v12118_v58 = vld [vmem:[#allocation2 + $0x7a] sm:$0xff] }
 0x183   : > { %2159 = vst.msk [vmem:[#allocation4 + $0xc] sm:$0xf] %vm2155_vm6, %v2066_v26  ;;  %2623 = vrot.lane.b32.xlu1 %v10364_v25, %s10808_s23  ;;  %v3321_v25 = vmul.f32 %v12076_v40, %v11946_v55  ;;  %v3323_v55 = vmul.f32 %v12118_v58, %v11956_v43  ;;  %v1655_v43 = vmul.f32 %v12076_v40, %v11965_v59 }
 0x184   : > { %v1657_v1 = vmul.f32 %v12118_v58, %v11975_v24 }
 0x185   : > { %v2064_v37 = vpop.permute.xlu0 %2063  ;;  %v10460_v19 = vpack.c.bf16 %v3321_v25, %v3321_v25 }
 0x186   : > { %v2319_v18 = vpop.permute.xlu1 %2318  ;;  %2158 = vst.msk [vmem:[#allocation4 + $0x8] sm:$0xf] %vm2155_vm6, %v2064_v37  ;;  %2621 = vrot.lane.b32.xlu0 %v10363_v20, %s10808_s23  ;;  %v12122_v20 = vpack.c.bf16 %v3033_v44, %v3033_v44 }
 0x187   : > { %2414 = vst.msk [vmem:[#allocation4 + $0x4] sm:$0xf] %vm2412_vm7, %v2319_v18  ;;  %2627 = vrot.lane.b32.xlu1 %v10366_v63, %s10808_s23  ;;  %v10462_v18 = vpack.c.bf16 %v3323_v55, %v3323_v55 }
 0x189   : > { %v2317_v2 = vpop.permute.xlu0 %2316 }
 0x18a   : > { %v2323_v22 = vpop.permute.xlu1 %2322  ;;  %2413 = vst.msk [vmem:[#allocation4] sm:$0xf] %vm2412_vm7, %v2317_v2  ;;  %2625 = vrot.lane.b32.xlu0 %v10365_v45, %s10808_s23 }
 0x18b   : > { %2416 = vst.msk [vmem:[#allocation4 + $0xc] sm:$0xf] %vm2412_vm7, %v2323_v22  ;;  %2912 = vrot.lane.b32.xlu1 %v10396_v16, %s10809_s24  ;;  %v10271_v22 = vpack.c.bf16 %v1654_v21, %v1654_v21 }
 0x18d   : > { %v2321_v31 = vpop.permute.xlu0 %2320 }
 0x18e   : > { %v2608_v15 = vpop.permute.xlu1 %2607  ;;  %2415 = vst.msk [vmem:[#allocation4 + $0x8] sm:$0xf] %vm2412_vm7, %v2321_v31  ;;  %2910 = vrot.lane.b32.xlu0 %v10395_v14, %s10809_s24  ;;  %v1656_v14 = vmul.f32 %v12131_v51, %v11981_v17  ;;  %v10274_v31 = vpack.c.bf16 %v1657_v1, %v1657_v1 }
 0x18f   : > { %2703 = vst.msk [vmem:[#allocation4 + $0x4] sm:$0xf] %vm2701_vm8, %v2608_v15  ;;  %2916 = vrot.lane.b32.xlu1 %v10398_v6, %s10809_s24 }
 0x190   : > { %v10273_v44 = vpack.c.bf16 %v1656_v14, %v1656_v14 }
 0x191   : > { %v2606_v39 = vpop.permute.xlu0 %2605 }
 0x192   : > { %v2612_v0 = vpop.permute.xlu1 %2611  ;;  %2702 = vst.msk [vmem:[#allocation4] sm:$0xf] %vm2701_vm8, %v2606_v39  ;;  %2914 = vrot.lane.b32.xlu0 %v10397_v53, %s10809_s24  ;;  %v15511_v39 = vld [vmem:[#allocation12_spill] sm:$0xff] }
 0x193   : > { %2705 = vst.msk [vmem:[#allocation4 + $0xc] sm:$0xf] %vm2701_vm8, %v2612_v0  ;;  %3169 = vrot.lane.b32.xlu1 %v10334_v9, %s10810_s25  ;;  %v3320_v9 = vmul.f32 %v12084_v61, %v11954_v32  ;;  %v3322_v32 = vmul.f32 %v12131_v51, %v11963_v50  ;;  %v10272_v50 = vpack.c.bf16 %v1655_v43, %v1655_v43  ;;  %v10742_v61 = vld [vmem:[#allocation2 + $0x78] sm:$0xff] }
 0x194   : > { %v1944_v6 = vmul.f32 %v10742_v61, %v15510_v46  ;;  %v1943_v0 = vmul.f32 %v10743_v57, %v15511_v39 }
 0x195   : > { %v2610_v62 = vpop.permute.xlu0 %2609  ;;  %v10461_v16 = vpack.c.bf16 %v3322_v32, %v3322_v32 }
 0x196   : > { %v2897_v26 = vpop.permute.xlu1 %2896  ;;  %2704 = vst.msk [vmem:[#allocation4 + $0x8] sm:$0xf] %vm2701_vm8, %v2610_v62  ;;  %3167 = vrot.lane.b32.xlu0 %v10333_v27, %s10810_s25  ;;  %v10459_v27 = vpack.c.bf16 %v3320_v9, %v3320_v9  ;;  %v10304_v25 = vpack.c.bf16 %v1944_v6, %v1944_v6  ;;  %v10744_v62 = vld [vmem:[#allocation2 + $0x88] sm:$0xff] }
 0x197   : > { %2992 = vst.msk [vmem:[#allocation4 + $0x4] sm:$0xf] %vm2990_vm9, %v2897_v26  ;;  %3173 = vrot.lane.b32.xlu1 %v12114_v36, %s10810_s25  ;;  %v15512_v26 = vld [vmem:[#allocation13_spill] sm:$0xff] }
 0x198   : > { %v1946_v9 = vmul.f32 %v10744_v62, %v15512_v26 }
 0x199   : > { %v2895_v63 = vpop.permute.xlu0 %2894 }
 0x19a   : > { %v2901_v37 = vpop.permute.xlu1 %2900  ;;  %2991 = vst.msk [vmem:[#allocation4] sm:$0xf] %vm2990_vm9, %v2895_v63  ;;  %3171 = vrot.lane.b32.xlu0 %v12122_v20, %s10810_s25  ;;  %v10303_v63 = vpack.c.bf16 %v1943_v0, %v1943_v0 }
 0x19b   : > { %2994 = vst.msk [vmem:[#allocation4 + $0xc] sm:$0xf] %vm2990_vm9, %v2901_v37  ;;  %3458 = vrot.lane.b32.xlu1 %v10460_v19, %s10811_s26  ;;  %v10745_v37 = vld [vmem:[#allocation2 + $0x80] sm:$0xff] }
 0x19d   : > { %v2899_v35 = vpop.permute.xlu0 %2898 }
 0x19e   : > { %v3154_v45 = vpop.permute.xlu1 %3153  ;;  %2993 = vst.msk [vmem:[#allocation4 + $0x8] sm:$0xf] %vm2990_vm9, %v2899_v35  ;;  %3456 = vrot.lane.b32.xlu0 %v10459_v27, %s10811_s26  ;;  %v15513_v27 = vld [vmem:[#allocation14_spill] sm:$0xff] }
 0x19f   : > { %3249 = vst.msk [vmem:[#allocation4 + $0x4] sm:$0xf] %vm15375_vm10, %v3154_v45  ;;  %3462 = vrot.lane.b32.xlu1 %v10462_v18, %s10811_s26  ;;  %v1945_v32 = vmul.f32 %v10745_v37, %v15513_v27  ;;  %v10306_v18 = vpack.c.bf16 %v1946_v9, %v1946_v9 }
 0x1a1   : > { %v3152_v40 = vpop.permute.xlu0 %3151  ;;  %v10305_v45 = vpack.c.bf16 %v1945_v32, %v1945_v32 }
 0x1a2   : > { %v3158_v2 = vpop.permute.xlu1 %3157  ;;  %3248 = vst.msk [vmem:[#allocation4] sm:$0xf] %vm15375_vm10, %v3152_v40  ;;  %3460 = vrot.lane.b32.xlu0 %v10461_v16, %s10811_s26  ;;  %v2203_v16 = vld [vmem:[#allocation2 + $0x89] sm:$0xff] }
 0x1a3   : > { %3251 = vst.msk [vmem:[#allocation4 + $0xc] sm:$0xf] %vm15375_vm10, %v3158_v2  ;;  %1796 = vrot.lane.b32.xlu1 %v10272_v50, %s10805_s17  ;;  %v10338_v40 = vpack.c.bf16 %v2203_v16, %v2203_v16  ;;  %v2202_v2 = vld [vmem:[#allocation2 + $0x81] sm:$0xff]  ;;  %v12214_v16 = vld [vmem:[#allocation2 + $0x90] sm:$0xff] }
 0x1a5   : > { %v3156_v15 = vpop.permute.xlu0 %3155 }
 0x1a6   : > { %v3443_v53 = vpop.permute.xlu1 %3442  ;;  %3250 = vst.msk [vmem:[#allocation4 + $0x8] sm:$0xf] %vm15375_vm10, %v3156_v15  ;;  %1794 = vrot.lane.b32.xlu0 %v10271_v22, %s10805_s17  ;;  %v2490_v22 = vmul.f32 %v12118_v58, %v11965_v59  ;;  %v2489_v58 = vmul.f32 %v12131_v51, %v11973_v42 }
 0x1a7   : > { %3538 = vst.msk [vmem:[#allocation4 + $0x4] sm:$0xf] %vm15374_vm11, %v3443_v53  ;;  %1800 = vrot.lane.b32.xlu1 %v10274_v31, %s10805_s17  ;;  %v10337_v31 = vpack.c.bf16 %v2202_v2, %v2202_v2 }
 0x1a8   : > { %v10368_v15 = vpack.c.bf16 %v2490_v22, %v2490_v22 }
 0x1a9   : > { %v3441_v19 = vpop.permute.xlu0 %3440 }
 0x1aa   : > { %v3447_v55 = vpop.permute.xlu1 %3446  ;;  %3537 = vst.msk [vmem:[#allocation4] sm:$0xf] %vm15374_vm11, %v3441_v19  ;;  %1798 = vrot.lane.b32.xlu0 %v10273_v44, %s10805_s17  ;;  %v10367_v44 = vpack.c.bf16 %v2489_v58, %v2489_v58  ;;  %v12230_v58 = vld [vmem:[#allocation2 + $0x9a] sm:$0xff] }
 0x1ab   : > { %3540 = vst.msk [vmem:[#allocation4 + $0xc] sm:$0xf] %vm15374_vm11, %v3447_v55  ;;  %2085 = vrot.lane.b32.xlu1 %v10304_v25, %s10806_s18  ;;  %v2779_v25 = vmul.f32 %v10744_v62, %v15510_v46 }
 0x1ad   : > { %v3445_v43 = vpop.permute.xlu0 %3444 }
 0x1ae   : > { %v1781_v35 = vpop.permute.xlu1 %1780  ;;  %3539 = vst.msk [vmem:[#allocation4 + $0x8] sm:$0xf] %vm15374_vm11, %v3445_v43  ;;  %2083 = vrot.lane.b32.xlu0 %v10303_v63, %s10806_s18  ;;  %v2778_v63 = vmul.f32 %v10745_v37, %v15511_v39  ;;  %v12206_v43 = vld [vmem:[#allocation2 + $0x98] sm:$0xff]  ;;  %v2780_v39 = vmul.f32 %v12214_v16, %v15513_v27 }
 0x1af   : > { %1872 = vst.msk [vmem:[#allocation4 + $0x14] sm:$0xf] %vm1866_vm5, %v1781_v35  ;;  %2089 = vrot.lane.b32.xlu1 %v10306_v18, %s10806_s18  ;;  %v10400_v18 = vpack.c.bf16 %v2779_v25, %v2779_v25  ;;  %v2781_v46 = vmul.f32 %v12206_v43, %v15512_v26 }
 0x1b0   : > { %v10401_v26 = vpack.c.bf16 %v2780_v39, %v2780_v39 }
 0x1b1   : > { %v1779_v21 = vpop.permute.xlu0 %1778  ;;  %v10694_v50 = vld [vmem:[#allocation4] sm:$0xff]   ;;  %v10402_v37 = vpack.c.bf16 %v2781_v46, %v2781_v46 }
 0x1b2   : > { %v1785_v1 = vpop.permute.xlu1 %1784  ;;  %1871 = vst.msk [vmem:[#allocation4 + $0x10] sm:$0xf] %vm1866_vm5, %v1779_v21  ;;  %2087 = vrot.lane.b32.xlu0 %v10305_v45, %s10806_s18  ;;  %10592 = vmatprep.mubr.msk.bf16.mxu0 %vm15373_vm12, %v10694_v50  ;;  %v10399_v45 = vpack.c.bf16 %v2778_v63, %v2778_v63 }
 0x1b3   : > { %1874 = vst.msk [vmem:[#allocation4 + $0x1c] sm:$0xf] %vm1866_vm5, %v1785_v1  ;;  %2342 = vrot.lane.b32.xlu1 %v12114_v36, %s10807_s19  ;;  %v12186_v36 = vld [vmem:[#allocation2 + $0x8a] sm:$0xff]  ;;  %v3038_v1 = vld [vmem:[#allocation2 + $0x99] sm:$0xff] }
 0x1b4   : > { %v2492_v53 = vmul.f32 %v12186_v36, %v11975_v24  ;;  %v12226_v27 = vpack.c.bf16 %v3038_v1, %v3038_v1  ;;  %v12276_v1 = vld [vmem:[#allocation2 + $0xa8] sm:$0xff] }
 0x1b5   : > { %v1783_v14 = vpop.permute.xlu0 %1782  ;;  %v10695_v61 = vld [vmem:[#allocation4 + $0x8] sm:$0xff]  }
 0x1b6   : > { %v2070_v6 = vpop.permute.xlu1 %2069  ;;  %1873 = vst.msk [vmem:[#allocation4 + $0x18] sm:$0xf] %vm1866_vm5, %v1783_v14  ;;  %2340 = vrot.lane.b32.xlu0 %v12122_v20, %s10807_s19  ;;  %10593 = vmatmul.mubr.msk.bf16.vlgmr.msra.gmra.mxu0 %vm15373_vm12, %v10695_v61  ;;  %v12194_v20 = vld [vmem:[#allocation2 + $0x82] sm:$0xff]  ;;  %v10370_v9 = vpack.c.bf16 %v2492_v53, %v2492_v53  ;;  %v3037_v14 = vld [vmem:[#allocation2 + $0x91] sm:$0xff]  ;;  %v3325_v61 = vmul.f32 %v12186_v36, %v11965_v59 }
 0x1b7   : > { %2161 = vst.msk [vmem:[#allocation4 + $0x14] sm:$0xf] %vm2155_vm6, %v2070_v6  ;;  %2346 = vrot.lane.b32.xlu1 %v10338_v40, %s10807_s19  ;;  %v2491_v51 = vmul.f32 %v12194_v20, %v11981_v17  ;;  %v12234_v53 = vpack.c.bf16 %v3037_v14, %v3037_v14  ;;  %v3327_v59 = vmul.f32 %v12230_v58, %v11975_v24 }
 0x1b8   : > { %v1659_v24 = vmul.f32 %v12186_v36, %v11983_v38  ;;  %v1658_v63 = vmul.f32 %v12194_v20, %v11987_v3 }
 0x1b9   : > { %v2068_v57 = vpop.permute.xlu0 %2067  ;;  %v10369_v32 = vpack.c.bf16 %v2491_v51, %v2491_v51  ;;  %v10466_v25 = vpack.c.bf16 %v3327_v59, %v3327_v59 }
 0x1ba   : > { %v2074_v0 = vpop.permute.xlu1 %2073  ;;  %2160 = vst.msk [vmem:[#allocation4 + $0x10] sm:$0xf] %vm2155_vm6, %v2068_v57  ;;  %2344 = vrot.lane.b32.xlu0 %v10337_v31, %s10807_s19  ;;  %v10464_v57 = vpack.c.bf16 %v3325_v61, %v3325_v61  ;;  %v10275_v46 = vpack.c.bf16 %v1658_v63, %v1658_v63 }
 0x1bb   : > { %2163 = vst.msk [vmem:[#allocation4 + $0x1c] sm:$0xf] %vm2155_vm6, %v2074_v0  ;;  %2631 = vrot.lane.b32.xlu1 %v10368_v15, %s10808_s23  ;;  %v12243_v0 = vld [vmem:[#allocation2 + $0x92] sm:$0xff] }
 0x1bd   : > { %v2072_v19 = vpop.permute.xlu0 %2071 }
 0x1be   : > { %v2327_v55 = vpop.permute.xlu1 %2326  ;;  %2162 = vst.msk [vmem:[#allocation4 + $0x18] sm:$0xf] %vm2155_vm6, %v2072_v19  ;;  %2629 = vrot.lane.b32.xlu0 %v10367_v44, %s10808_s23 }
 0x1bf   : > { %2418 = vst.msk [vmem:[#allocation4 + $0x14] sm:$0xf] %vm2412_vm7, %v2327_v55  ;;  %2635 = vrot.lane.b32.xlu1 %v10370_v9, %s10808_s23 }
 0x1c1   : > { %v2325_v62 = vpop.permute.xlu0 %2324 }
 0x1c2   : > { %v2331_v35 = vpop.permute.xlu1 %2330  ;;  %2417 = vst.msk [vmem:[#allocation4 + $0x10] sm:$0xf] %vm2412_vm7, %v2325_v62  ;;  %2633 = vrot.lane.b32.xlu0 %v10369_v32, %s10808_s23  ;;  %v10276_v32 = vpack.c.bf16 %v1659_v24, %v1659_v24  ;;  %v1660_v62 = vmul.f32 %v12243_v0, %v11996_v13 }
 0x1c3   : > { %2420 = vst.msk [vmem:[#allocation4 + $0x1c] sm:$0xf] %vm2412_vm7, %v2331_v35  ;;  %2920 = vrot.lane.b32.xlu1 %v10400_v18, %s10809_s24 }
 0x1c5   : > { %v2329_v21 = vpop.permute.xlu0 %2328 }
 0x1c6   : > { %v2616_v50 = vpop.permute.xlu1 %2615  ;;  %2419 = vst.msk [vmem:[#allocation4 + $0x18] sm:$0xf] %vm2412_vm7, %v2329_v21  ;;  %2918 = vrot.lane.b32.xlu0 %v10399_v45, %s10809_s24 }
 0x1c7   : > { %2707 = vst.msk [vmem:[#allocation4 + $0x14] sm:$0xf] %vm2701_vm8, %v2616_v50  ;;  %2924 = vrot.lane.b32.xlu1 %v10402_v37, %s10809_s24  ;;  %v15514_v37 = vld [vmem:[#allocation15_spill] sm:$0xff]  ;;  %v10277_v50 = vpack.c.bf16 %v1660_v62, %v1660_v62 }
 0x1c8   : > { %v1947_v21 = vmul.f32 %v12214_v16, %v15514_v37  ;;  %v15516_v16 = vld [vmem:[#allocation17_spill] sm:$0xff] }
 0x1c9   : > { %v2614_v2 = vpop.permute.xlu0 %2613 }
 0x1ca   : > { %v2620_v22 = vpop.permute.xlu1 %2619  ;;  %2706 = vst.msk [vmem:[#allocation4 + $0x10] sm:$0xf] %vm2701_vm8, %v2614_v2  ;;  %2922 = vrot.lane.b32.xlu0 %v10401_v26, %s10809_s24  ;;  %v15515_v2 = vld [vmem:[#allocation16_spill] sm:$0xff]  ;;  %v10307_v61 = vpack.c.bf16 %v1947_v21, %v1947_v21 }
 0x1cb   : > { %2709 = vst.msk [vmem:[#allocation4 + $0x1c] sm:$0xf] %vm2701_vm8, %v2620_v22  ;;  %3177 = vrot.lane.b32.xlu1 %v10338_v40, %s10810_s25  ;;  %v3324_v40 = vmul.f32 %v12194_v20, %v11973_v42  ;;  %v3326_v42 = vmul.f32 %v12243_v0, %v11981_v17  ;;  %v1661_v17 = vmul.f32 %v12230_v58, %v11989_v28 }
 0x1cc   : > { %v1948_v20 = vmul.f32 %v12206_v43, %v11421_v41  ;;  %v1950_v43 = vmul.f32 %v12276_v1, %v15515_v2 }
 0x1cd   : > { %v2618_v6 = vpop.permute.xlu0 %2617  ;;  %v10465_v55 = vpack.c.bf16 %v3326_v42, %v3326_v42  ;;  %v10278_v35 = vpack.c.bf16 %v1661_v17, %v1661_v17 }
 0x1ce   : > { %v2905_v15 = vpop.permute.xlu1 %2904  ;;  %2708 = vst.msk [vmem:[#allocation4 + $0x18] sm:$0xf] %vm2701_vm8, %v2618_v6  ;;  %3175 = vrot.lane.b32.xlu0 %v10337_v31, %s10810_s25  ;;  %v10463_v31 = vpack.c.bf16 %v3324_v40, %v3324_v40  ;;  %v10308_v26 = vpack.c.bf16 %v1948_v20, %v1948_v20  ;;  %v12284_v6 = vld [vmem:[#allocation2 + $0xa0] sm:$0xff]  ;;  %v10310_v40 = vpack.c.bf16 %v1950_v43, %v1950_v43 }
 0x1cf   : > { %2996 = vst.msk [vmem:[#allocation4 + $0x14] sm:$0xf] %vm2990_vm9, %v2905_v15  ;;  %3181 = vrot.lane.b32.xlu1 %v12226_v27, %s10810_s25  ;;  %v1949_v15 = vmul.f32 %v12284_v6, %v15516_v16  ;;  %v12332_v43 = vld [vmem:[#allocation2 + $0xa2] sm:$0xff] }
 0x1d1   : > { %v2903_v44 = vpop.permute.xlu0 %2902 }
 0x1d2   : > { %v2909_v51 = vpop.permute.xlu1 %2908  ;;  %2995 = vst.msk [vmem:[#allocation4 + $0x10] sm:$0xf] %vm2990_vm9, %v2903_v44  ;;  %3179 = vrot.lane.b32.xlu0 %v12234_v53, %s10810_s25  ;;  %v10309_v44 = vpack.c.bf16 %v1949_v15, %v1949_v15 }
 0x1d3   : > { %2998 = vst.msk [vmem:[#allocation4 + $0x1c] sm:$0xf] %vm2990_vm9, %v2909_v51  ;;  %3466 = vrot.lane.b32.xlu1 %v10464_v57, %s10811_s26  ;;  %v2206_v51 = vld [vmem:[#allocation2 + $0xa1] sm:$0xff] }
 0x1d4   : > { %v12298_v24 = vpack.c.bf16 %v2206_v51, %v2206_v51 }
 0x1d5   : > { %v2907_v9 = vpop.permute.xlu0 %2906 }
 0x1d6   : > { %v3162_v19 = vpop.permute.xlu1 %3161  ;;  %2997 = vst.msk [vmem:[#allocation4 + $0x18] sm:$0xf] %vm2990_vm9, %v2907_v9  ;;  %3464 = vrot.lane.b32.xlu0 %v10463_v31, %s10811_s26  ;;  %v1250_v9 = vld [vmem:[#allocation2 + $0xc9] sm:$0xff] }
 0x1d7   : > { %3253 = vst.msk [vmem:[#allocation4 + $0x14] sm:$0xf] %vm15375_vm10, %v3162_v19  ;;  %3470 = vrot.lane.b32.xlu1 %v10466_v25, %s10811_s26  ;;  %v2493_v19 = vmul.f32 %v12243_v0, %v11987_v3  ;;  %v12305_v17 = vpack.c.bf16 %v1250_v9, %v1250_v9 }
 0x1d9   : > { %v3160_v18 = vpop.permute.xlu0 %3159  ;;  %v10371_v0 = vpack.c.bf16 %v2493_v19, %v2493_v19  ;;  %v12357_v19 = vld [vmem:[#allocation2 + $0xd2] sm:$0xff] }
 0x1da   : > { %v3166_v36 = vpop.permute.xlu1 %3165  ;;  %3252 = vst.msk [vmem:[#allocation4 + $0x10] sm:$0xf] %vm15375_vm10, %v3160_v18  ;;  %3468 = vrot.lane.b32.xlu0 %v10465_v55, %s10811_s26  ;;  %v1251_v18 = vld [vmem:[#allocation2 + $0xd1] sm:$0xff] }
 0x1db   : > { %3255 = vst.msk [vmem:[#allocation4 + $0x1c] sm:$0xf] %vm15375_vm10, %v3166_v36  ;;  %1804 = vrot.lane.b32.xlu1 %v10276_v32, %s10805_s17  ;;  %v12320_v20 = vpack.c.bf16 %v1251_v18, %v1251_v18  ;;  %v12367_v18 = vld [vmem:[#allocation2 + $0xd0] sm:$0xff] }
 0x1dd   : > { %v3164_v45 = vpop.permute.xlu0 %3163 }
 0x1de   : > { %v3451_v39 = vpop.permute.xlu1 %3450  ;;  %3254 = vst.msk [vmem:[#allocation4 + $0x18] sm:$0xf] %vm15375_vm10, %v3164_v45  ;;  %1802 = vrot.lane.b32.xlu0 %v10275_v46, %s10805_s17  ;;  %v12311_v46 = vld [vmem:[#allocation2 + $0xc2] sm:$0xff] }
 0x1df   : > { %3542 = vst.msk [vmem:[#allocation4 + $0x14] sm:$0xf] %vm15374_vm11, %v3451_v39  ;;  %1808 = vrot.lane.b32.xlu1 %v10278_v35, %s10805_s17  ;;  %v2494_v35 = vmul.f32 %v12230_v58, %v11983_v38  ;;  %v1666_v45 = vmul.f32 %v12012_v49, %v12311_v46  ;;  %v12334_v58 = vld [vmem:[#allocation2 + $0xca] sm:$0xff] }
 0x1e1   : > { %v3449_v22 = vpop.permute.xlu0 %3448 }
 0x1e2   : > { %v3455_v14 = vpop.permute.xlu1 %3454  ;;  %3541 = vst.msk [vmem:[#allocation4 + $0x10] sm:$0xf] %vm15374_vm11, %v3449_v22  ;;  %1806 = vrot.lane.b32.xlu0 %v10277_v50, %s10805_s17  ;;  %v1252_v50 = vld [vmem:[#allocation2 + $0xd9] sm:$0xff]  ;;  %v2495_v22 = vmul.f32 %v12332_v43, %v11996_v13 }
 0x1e3   : > { %3544 = vst.msk [vmem:[#allocation4 + $0x1c] sm:$0xf] %vm15374_vm11, %v3455_v14  ;;  %2093 = vrot.lane.b32.xlu1 %v10308_v26, %s10806_s18  ;;  %v10372_v26 = vpack.c.bf16 %v2494_v35, %v2494_v35  ;;  %v10283_v14 = vpack.c.bf16 %v1666_v45, %v1666_v45  ;;  %v12373_v45 = vld [vmem:[#allocation2 + $0xda] sm:$0xff] }
 0x1e5   : > { %v3453_v57 = vpop.permute.xlu0 %3452 }
 0x1e6   : > { %v1789_v59 = vpop.permute.xlu1 %1788  ;;  %3543 = vst.msk [vmem:[#allocation4 + $0x18] sm:$0xf] %vm15374_vm11, %v3453_v57  ;;  %2091 = vrot.lane.b32.xlu0 %v10307_v61, %s10806_s18  ;;  %v1667_v57 = vmul.f32 %v12000_v10, %v12334_v58 }
 0x1e7   : > { %1876 = vst.msk [vmem:[#allocation4 + $0x24] sm:$0xf] %vm1866_vm5, %v1789_v59  ;;  %2097 = vrot.lane.b32.xlu1 %v10310_v40, %s10806_s18  ;;  %v12340_v40 = vpack.c.bf16 %v1252_v50, %v1252_v50  ;;  %v2782_v59 = vmul.f32 %v12284_v6, %v15514_v37  ;;  %v1668_v6 = vmul.f32 %v12357_v19, %v12022_v29 }
 0x1e8   : > { %v10284_v9 = vpack.c.bf16 %v1667_v57, %v1667_v57 }
 0x1e9   : > { %v1787_v31 = vpop.permute.xlu0 %1786  ;;  %v10696_v42 = vld [vmem:[#allocation4 + $0x10] sm:$0xff]   ;;  %v10403_v37 = vpack.c.bf16 %v2782_v59, %v2782_v59 }
 0x1ea   : > { %v1793_v25 = vpop.permute.xlu1 %1792  ;;  %1875 = vst.msk [vmem:[#allocation4 + $0x20] sm:$0xf] %vm1866_vm5, %v1787_v31  ;;  %2095 = vrot.lane.b32.xlu0 %v10309_v44, %s10806_s18  ;;  %10596 = vmatprep.mubr.msk.bf16.mxu0 %vm15373_vm12, %v10696_v42  ;;  %v10373_v44 = vpack.c.bf16 %v2495_v22, %v2495_v22  ;;  %v12351_v42 = vld [vmem:[#allocation2 + $0xaa] sm:$0xff] }
 0x1eb   : > { %1878 = vst.msk [vmem:[#allocation4 + $0x2c] sm:$0xf] %vm1866_vm5, %v1793_v25  ;;  %2350 = vrot.lane.b32.xlu1 %v12226_v27, %s10807_s19  ;;  %v2207_v27 = vld [vmem:[#allocation2 + $0xa9] sm:$0xff]  ;;  %v2496_v25 = vmul.f32 %v12351_v42, %v11989_v28 }
 0x1ed   : > { %v1791_v55 = vpop.permute.xlu0 %1790  ;;  %v10697_v63 = vld [vmem:[#allocation4 + $0x18] sm:$0xff]  }
 0x1ee   : > { %v2078_v32 = vpop.permute.xlu1 %2077  ;;  %1877 = vst.msk [vmem:[#allocation4 + $0x28] sm:$0xf] %vm1866_vm5, %v1791_v55  ;;  %2348 = vrot.lane.b32.xlu0 %v12234_v53, %s10807_s19  ;;  %10597 = vmatmul.mubr.msk.bf16.gmra.mxu0 %vm15373_vm12, %v10697_v63  ;;  %v12316_v53 = vpack.c.bf16 %v2207_v27, %v2207_v27  ;;  %v10374_v27 = vpack.c.bf16 %v2496_v25, %v2496_v25  ;;  %v12399_v25 = vld [vmem:[#allocation2 + $0xe0] sm:$0xff] }
 0x1ef   : > { %2165 = vst.msk [vmem:[#allocation4 + $0x24] sm:$0xf] %vm2155_vm6, %v2078_v32  ;;  %2352 = vrot.lane.b32.xlu1 %v12298_v24, %s10807_s19  ;;  %v2783_v32 = vmul.f32 %v12276_v1, %v11421_v41  ;;  %v1669_v1 = vmul.f32 %v12373_v45, %v12014_v60 }
 0x1f1   : > { %v2076_v36 = vpop.permute.xlu0 %2075  ;;  %v10404_v41 = vpack.c.bf16 %v2783_v32, %v2783_v32 }
 0x1f2   : > { %v2082_v62 = vpop.permute.xlu1 %2081  ;;  %2164 = vst.msk [vmem:[#allocation4 + $0x20] sm:$0xf] %vm2155_vm6, %v2076_v36  ;;  %1403 = vrot.lane.b32.xlu0 %v12305_v17, %s10803_s30  ;;  %v10285_v36 = vpack.c.bf16 %v1668_v6, %v1668_v6 }
 0x1f3   : > { %2167 = vst.msk [vmem:[#allocation4 + $0x2c] sm:$0xf] %vm2155_vm6, %v2082_v62  ;;  %2637 = vrot.lane.b32.xlu1 %v10371_v0, %s10808_s23  ;;  %v1955_v0 = vmul.f32 %v12367_v18, %v11476_v5 }
 0x1f5   : > { %v2080_v39 = vpop.permute.xlu0 %2079  ;;  %v10315_v50 = vpack.c.bf16 %v1955_v0, %v1955_v0 }
 0x1f6   : > { %v2335_v21 = vpop.permute.xlu1 %2334  ;;  %2166 = vst.msk [vmem:[#allocation4 + $0x28] sm:$0xf] %vm2155_vm6, %v2080_v39  ;;  %2354 = vrot.lane.b32.xlu0 %v12316_v53, %s10807_s19  ;;  %v12379_v39 = vld [vmem:[#allocation2 + $0xb0] sm:$0xff] }
 0x1f7   : > { %2422 = vst.msk [vmem:[#allocation4 + $0x24] sm:$0xf] %vm2412_vm7, %v2335_v21  ;;  %1405 = vrot.lane.b32.xlu1 %v12320_v20, %s10803_s30  ;;  %v2784_v21 = vmul.f32 %v12379_v39, %v15516_v16 }
 0x1f9   : > { %v2333_v61 = vpop.permute.xlu0 %2332  ;;  %v10405_v57 = vpack.c.bf16 %v2784_v21, %v2784_v21 }
 0x1fa   : > { %v2339_v15 = vpop.permute.xlu1 %2338  ;;  %2421 = vst.msk [vmem:[#allocation4 + $0x20] sm:$0xf] %vm2412_vm7, %v2333_v61  ;;  %2639 = vrot.lane.b32.xlu0 %v10372_v26, %s10808_s23 }
 0x1fb   : > { %2424 = vst.msk [vmem:[#allocation4 + $0x2c] sm:$0xf] %vm2412_vm7, %v2339_v15  ;;  %1818 = vrot.lane.b32.xlu1 %v10283_v14, %s10805_s17  ;;  %v12387_v14 = vld [vmem:[#allocation2 + $0xd8] sm:$0xff]  ;;  %v10286_v15 = vpack.c.bf16 %v1669_v1, %v1669_v1  ;;  %v3328_v1 = vmul.f32 %v12332_v43, %v11987_v3 }
 0x1fc   : > { %v1956_v61 = vmul.f32 %v12387_v14, %v11481_v8 }
 0x1fd   : > { %v2337_v51 = vpop.permute.xlu0 %2336 }
 0x1fe   : > { %v2624_v31 = vpop.permute.xlu1 %2623  ;;  %2423 = vst.msk [vmem:[#allocation4 + $0x28] sm:$0xf] %vm2412_vm7, %v2337_v51  ;;  %1407 = vrot.lane.b32.xlu0 %v12340_v40, %s10803_s30 }
 0x1ff   : > { %2711 = vst.msk [vmem:[#allocation4 + $0x24] sm:$0xf] %vm2701_vm8, %v2624_v31  ;;  %2641 = vrot.lane.b32.xlu1 %v10373_v44, %s10808_s23  ;;  %v12395_v44 = vld [vmem:[#allocation2 + $0xb8] sm:$0xff]  ;;  %v10316_v31 = vpack.c.bf16 %v1956_v61, %v1956_v61 }
 0x200   : > { %v2785_v51 = vmul.f32 %v12395_v44, %v15515_v2 }
 0x201   : > { %v2622_v55 = vpop.permute.xlu0 %2621 }
 0x202   : > { %v2628_v63 = vpop.permute.xlu1 %2627  ;;  %2710 = vst.msk [vmem:[#allocation4 + $0x20] sm:$0xf] %vm2701_vm8, %v2622_v55  ;;  %1820 = vrot.lane.b32.xlu0 %v10284_v9, %s10805_s17  ;;  %v1957_v9 = vmul.f32 %v12399_v25, %v11485_v33  ;;  %v10406_v55 = vpack.c.bf16 %v2785_v51, %v2785_v51  ;;  %v2501_v51 = vmul.f32 %v12357_v19, %v12012_v49 }
 0x203   : > { %2713 = vst.msk [vmem:[#allocation4 + $0x2c] sm:$0xf] %vm2701_vm8, %v2628_v63  ;;  %2926 = vrot.lane.b32.xlu1 %v10403_v37, %s10809_s24 }
 0x204   : > { %v10317_v63 = vpack.c.bf16 %v1957_v9, %v1957_v9 }
 0x205   : > { %v2626_v62 = vpop.permute.xlu0 %2625 }
 0x206   : > { %v2913_v35 = vpop.permute.xlu1 %2912  ;;  %2712 = vst.msk [vmem:[#allocation4 + $0x28] sm:$0xf] %vm2701_vm8, %v2626_v62  ;;  %2643 = vrot.lane.b32.xlu0 %v10374_v27, %s10808_s23  ;;  %v12412_v27 = vld [vmem:[#allocation2 + $0xe8] sm:$0xff] }
 0x207   : > { %3000 = vst.msk [vmem:[#allocation4 + $0x24] sm:$0xf] %vm2990_vm9, %v2913_v35  ;;  %1822 = vrot.lane.b32.xlu1 %v10285_v36, %s10805_s17  ;;  %v1958_v0 = vmul.f32 %v12412_v27, %v11499_v54  ;;  %v3041_v36 = vld [vmem:[#allocation2 + $0xb1] sm:$0xff] }
 0x208   : > { %v12422_v35 = vpack.c.bf16 %v3041_v36, %v3041_v36 }
 0x209   : > { %v2911_v26 = vpop.permute.xlu0 %2910 }
 0x20a   : > { %v2917_v22 = vpop.permute.xlu1 %2916  ;;  %2999 = vst.msk [vmem:[#allocation4 + $0x20] sm:$0xf] %vm2990_vm9, %v2911_v26  ;;  %2928 = vrot.lane.b32.xlu0 %v10404_v41, %s10809_s24  ;;  %v10318_v41 = vpack.c.bf16 %v1958_v0, %v1958_v0  ;;  %v2214_v26 = vld [vmem:[#allocation2 + $0xe1] sm:$0xff] }
 0x20b   : > { %3002 = vst.msk [vmem:[#allocation4 + $0x2c] sm:$0xf] %vm2990_vm9, %v2917_v22  ;;  %2107 = vrot.lane.b32.xlu1 %v10315_v50, %s10806_s18  ;;  %v10467_v22 = vpack.c.bf16 %v3328_v1, %v3328_v1 }
 0x20d   : > { %v2915_v59 = vpop.permute.xlu0 %2914 }
 0x20e   : > { %v3170_v16 = vpop.permute.xlu1 %3169  ;;  %3001 = vst.msk [vmem:[#allocation4 + $0x28] sm:$0xf] %vm2990_vm9, %v2915_v59  ;;  %1824 = vrot.lane.b32.xlu0 %v10286_v15, %s10805_s17  ;;  %v12439_v59 = vpack.c.bf16 %v2214_v26, %v2214_v26  ;;  %v12475_v26 = vld [vmem:[#allocation2 + $0xe2] sm:$0xff] }
 0x20f   : > { %3257 = vst.msk [vmem:[#allocation4 + $0x24] sm:$0xf] %vm15375_vm10, %v3170_v16  ;;  %2930 = vrot.lane.b32.xlu1 %v10405_v57, %s10809_s24  ;;  %v3329_v16 = vmul.f32 %v12351_v42, %v11983_v38  ;;  %v2215_v38 = vld [vmem:[#allocation2 + $0xe9] sm:$0xff] }
 0x210   : > { %v12458_v36 = vpack.c.bf16 %v2215_v38, %v2215_v38 }
 0x211   : > { %v3168_v37 = vpop.permute.xlu0 %3167 }
 0x212   : > { %v3174_v6 = vpop.permute.xlu1 %3173  ;;  %3256 = vst.msk [vmem:[#allocation4 + $0x20] sm:$0xf] %vm15375_vm10, %v3168_v37  ;;  %2109 = vrot.lane.b32.xlu0 %v10316_v31, %s10806_s18  ;;  %v12445_v37 = vld [vmem:[#allocation2 + $0xb2] sm:$0xff] }
 0x213   : > { %3259 = vst.msk [vmem:[#allocation4 + $0x2c] sm:$0xf] %vm15375_vm10, %v3174_v6  ;;  %3183 = vrot.lane.b32.xlu1 %v12298_v24, %s10810_s25 }
 0x215   : > { %v3172_v2 = vpop.permute.xlu0 %3171 }
 0x216   : > { %v3459_v32 = vpop.permute.xlu1 %3458  ;;  %3258 = vst.msk [vmem:[#allocation4 + $0x28] sm:$0xf] %vm15375_vm10, %v3172_v2  ;;  %2932 = vrot.lane.b32.xlu0 %v10406_v55, %s10809_s24  ;;  %v10468_v55 = vpack.c.bf16 %v3329_v16, %v3329_v16  ;;  %v10379_v2 = vpack.c.bf16 %v2501_v51, %v2501_v51  ;;  %v2790_v16 = vmul.f32 %v12399_v25, %v11476_v5 }
 0x217   : > { %3546 = vst.msk [vmem:[#allocation4 + $0x24] sm:$0xf] %vm15374_vm11, %v3459_v32  ;;  %2111 = vrot.lane.b32.xlu1 %v10317_v63, %s10806_s18  ;;  %v3330_v63 = vmul.f32 %v12445_v37, %v11996_v13  ;;  %v1662_v13 = vmul.f32 %v12332_v43, %v12031_v47  ;;  %v2503_v43 = vmul.f32 %v12475_v26, %v12022_v29 }
 0x218   : > { %v1664_v5 = vmul.f32 %v12445_v37, %v12041_v30 }
 0x219   : > { %v3457_v62 = vpop.permute.xlu0 %3456  ;;  %v10381_v51 = vpack.c.bf16 %v2503_v43, %v2503_v43 }
 0x21a   : > { %v3463_v24 = vpop.permute.xlu1 %3462  ;;  %3545 = vst.msk [vmem:[#allocation4 + $0x20] sm:$0xf] %vm15374_vm11, %v3457_v62  ;;  %3185 = vrot.lane.b32.xlu0 %v12316_v53, %s10810_s25  ;;  %v3042_v53 = vld [vmem:[#allocation2 + $0xb9] sm:$0xff]  ;;  %v2502_v62 = vmul.f32 %v12373_v45, %v12000_v10 }
 0x21b   : > { %3548 = vst.msk [vmem:[#allocation4 + $0x2c] sm:$0xf] %vm15374_vm11, %v3463_v24  ;;  %2364 = vrot.lane.b32.xlu1 %v12320_v20, %s10807_s19  ;;  %v12434_v3 = vpack.c.bf16 %v3042_v53, %v3042_v53  ;;  %v12464_v24 = vld [vmem:[#allocation2 + $0xba] sm:$0xff] }
 0x21c   : > { %v10380_v53 = vpack.c.bf16 %v2502_v62, %v2502_v62 }
 0x21d   : > { %v3461_v21 = vpop.permute.xlu0 %3460 }
 0x21e   : > { %v1797_v50 = vpop.permute.xlu1 %1796  ;;  %3547 = vst.msk [vmem:[#allocation4 + $0x28] sm:$0xf] %vm15374_vm11, %v3461_v21  ;;  %2113 = vrot.lane.b32.xlu0 %v10318_v41, %s10806_s18  ;;  %v10469_v41 = vpack.c.bf16 %v3330_v63, %v3330_v63 }
 0x21f   : > { %1880 = vst.msk [vmem:[#allocation4 + $0x34] sm:$0xf] %vm1866_vm5, %v1797_v50  ;;  %3187 = vrot.lane.b32.xlu1 %v12422_v35, %s10810_s25  ;;  %v3331_v50 = vmul.f32 %v12464_v24, %v11989_v28  ;;  %v1663_v28 = vmul.f32 %v12351_v42, %v12024_v4 }
 0x221   : > { %v1795_v61 = vpop.permute.xlu0 %1794  ;;  %v10698_v15 = vld [vmem:[#allocation4 + $0x20] sm:$0xff]   ;;  %v10280_v42 = vpack.c.bf16 %v1663_v28, %v1663_v28 }
 0x222   : > { %v1801_v57 = vpop.permute.xlu1 %1800  ;;  %1879 = vst.msk [vmem:[#allocation4 + $0x30] sm:$0xf] %vm1866_vm5, %v1795_v61  ;;  %2366 = vrot.lane.b32.xlu0 %v12340_v40, %s10807_s19  ;;  %10600 = vmatprep.mubr.msk.bf16.mxu0 %vm15373_vm12, %v10698_v15 }
 0x223   : > { %1882 = vst.msk [vmem:[#allocation4 + $0x3c] sm:$0xf] %vm1866_vm5, %v1801_v57  ;;  %3472 = vrot.lane.b32.xlu1 %v10467_v22, %s10811_s26  ;;  %v10279_v22 = vpack.c.bf16 %v1662_v13, %v1662_v13  ;;  %v10470_v57 = vpack.c.bf16 %v3331_v50, %v3331_v50  ;;  %v1665_v50 = vmul.f32 %v12464_v24, %v12033_v11 }
 0x225   : > { %v1799_v31 = vpop.permute.xlu0 %1798  ;;  %v10699_v9 = vld [vmem:[#allocation4 + $0x28] sm:$0xff]  }
 0x226   : > { %v2086_v6 = vpop.permute.xlu1 %2085  ;;  %1881 = vst.msk [vmem:[#allocation4 + $0x38] sm:$0xf] %vm1866_vm5, %v1799_v31  ;;  %3189 = vrot.lane.b32.xlu0 %v12434_v3, %s10810_s25  ;;  %10601 = vmatmul.mubr.msk.bf16.gmra.mxu0 %vm15373_vm12, %v10699_v9 }
 0x227   : > { %2169 = vst.msk [vmem:[#allocation4 + $0x34] sm:$0xf] %vm2155_vm6, %v2086_v6  ;;  %2368 = vrot.lane.b32.xlu1 %v12439_v59, %s10807_s19  ;;  %v12489_v6 = vld [vmem:[#allocation2 + $0xea] sm:$0xff] }
 0x228   : > { %v2504_v38 = vmul.f32 %v12489_v6, %v12014_v60 }
 0x229   : > { %v2084_v32 = vpop.permute.xlu0 %2083 }
 0x22a   : > { %v2090_v0 = vpop.permute.xlu1 %2089  ;;  %2168 = vst.msk [vmem:[#allocation4 + $0x30] sm:$0xf] %vm2155_vm6, %v2084_v32  ;;  %3474 = vrot.lane.b32.xlu0 %v10468_v55, %s10811_s26  ;;  %v10411_v55 = vpack.c.bf16 %v2790_v16, %v2790_v16  ;;  %v10382_v32 = vpack.c.bf16 %v2504_v38, %v2504_v38 }
 0x22b   : > { %2171 = vst.msk [vmem:[#allocation4 + $0x3c] sm:$0xf] %vm2155_vm6, %v2090_v0  ;;  %2653 = vrot.lane.b32.xlu1 %v10379_v2, %s10808_s23  ;;  %v2791_v2 = vmul.f32 %v12412_v27, %v11481_v8  ;;  %v15517_v0 = vld [vmem:[#allocation19_spill] sm:$0xff] }
 0x22c   : > { %v1951_v62 = vmul.f32 %v12379_v39, %v15517_v0  ;;  %v12511_v27 = vld [vmem:[#allocation2 + $0xf0] sm:$0xff] }
 0x22d   : > { %v2088_v1 = vpop.permute.xlu0 %2087  ;;  %v2792_v39 = vmul.f32 %v12511_v27, %v11485_v33 }
 0x22e   : > { %v2343_v21 = vpop.permute.xlu1 %2342  ;;  %2170 = vst.msk [vmem:[#allocation4 + $0x38] sm:$0xf] %vm2155_vm6, %v2088_v1  ;;  %2370 = vrot.lane.b32.xlu0 %v12458_v36, %s10807_s19  ;;  %v10311_v8 = vpack.c.bf16 %v1951_v62, %v1951_v62 }
 0x22f   : > { %2426 = vst.msk [vmem:[#allocation4 + $0x34] sm:$0xf] %vm2412_vm7, %v2343_v21  ;;  %3476 = vrot.lane.b32.xlu1 %v10469_v41, %s10811_s26  ;;  %v10281_v41 = vpack.c.bf16 %v1664_v5, %v1664_v5  ;;  %v10412_v21 = vpack.c.bf16 %v2791_v2, %v2791_v2  ;;  %v12542_v2 = vld [vmem:[#allocation2 + $0xc8] sm:$0xff] }
 0x231   : > { %v2341_v61 = vpop.permute.xlu0 %2340 }
 0x232   : > { %v2347_v15 = vpop.permute.xlu1 %2346  ;;  %2425 = vst.msk [vmem:[#allocation4 + $0x30] sm:$0xf] %vm2412_vm7, %v2341_v61  ;;  %2655 = vrot.lane.b32.xlu0 %v10380_v53, %s10808_s23 }
 0x233   : > { %2428 = vst.msk [vmem:[#allocation4 + $0x3c] sm:$0xf] %vm2412_vm7, %v2347_v15  ;;  %1810 = vrot.lane.b32.xlu1 %v10279_v22, %s10805_s17  ;;  %v15518_v22 = vld [vmem:[#allocation18_spill] sm:$0xff]  ;;  %v10282_v15 = vpack.c.bf16 %v1665_v50, %v1665_v50 }
 0x234   : > { %v1952_v61 = vmul.f32 %v12395_v44, %v15518_v22  ;;  %v15519_v44 = vld [vmem:[#allocation20_spill] sm:$0xff] }
 0x235   : > { %v2345_v31 = vpop.permute.xlu0 %2344 }
 0x236   : > { %v2632_v9 = vpop.permute.xlu1 %2631  ;;  %2427 = vst.msk [vmem:[#allocation4 + $0x38] sm:$0xf] %vm2412_vm7, %v2345_v31  ;;  %3478 = vrot.lane.b32.xlu0 %v10470_v57, %s10811_s26  ;;  %v10413_v57 = vpack.c.bf16 %v2792_v39, %v2792_v39  ;;  %v10312_v33 = vpack.c.bf16 %v1952_v61, %v1952_v61 }
 0x237   : > { %2715 = vst.msk [vmem:[#allocation4 + $0x34] sm:$0xf] %vm2701_vm8, %v2632_v9  ;;  %2657 = vrot.lane.b32.xlu1 %v10381_v51, %s10808_s23  ;;  %v12525_v51 = vld [vmem:[#allocation2 + $0xf8] sm:$0xff]  ;;  %v12529_v9 = vld [vmem:[#allocation2 + $0xc0] sm:$0xff] }
 0x238   : > { %v2793_v31 = vmul.f32 %v12525_v51, %v11499_v54  ;;  %v1953_v38 = vmul.f32 %v12529_v9, %v15519_v44 }
 0x239   : > { %v2630_v25 = vpop.permute.xlu0 %2629 }
 0x23a   : > { %v2636_v63 = vpop.permute.xlu1 %2635  ;;  %2714 = vst.msk [vmem:[#allocation4 + $0x30] sm:$0xf] %vm2701_vm8, %v2630_v25  ;;  %1812 = vrot.lane.b32.xlu0 %v10280_v42, %s10805_s17  ;;  %v10414_v5 = vpack.c.bf16 %v2793_v31, %v2793_v31  ;;  %v10313_v25 = vpack.c.bf16 %v1953_v38, %v1953_v38 }
 0x23b   : > { %2717 = vst.msk [vmem:[#allocation4 + $0x3c] sm:$0xf] %vm2701_vm8, %v2636_v63  ;;  %2942 = vrot.lane.b32.xlu1 %v10411_v55, %s10809_s24 }
 0x23d   : > { %v2634_v13 = vpop.permute.xlu0 %2633 }
 0x23e   : > { %v2921_v1 = vpop.permute.xlu1 %2920  ;;  %2716 = vst.msk [vmem:[#allocation4 + $0x38] sm:$0xf] %vm2701_vm8, %v2634_v13  ;;  %2659 = vrot.lane.b32.xlu0 %v10382_v32, %s10808_s23  ;;  %v15520_v32 = vld [vmem:[#allocation21_spill] sm:$0xff] }
 0x23f   : > { %3004 = vst.msk [vmem:[#allocation4 + $0x34] sm:$0xf] %vm2990_vm9, %v2921_v1  ;;  %1814 = vrot.lane.b32.xlu1 %v10281_v41, %s10805_s17  ;;  %v1954_v62 = vmul.f32 %v12542_v2, %v15520_v32  ;;  %v3049_v41 = vld [vmem:[#allocation2 + $0xf1] sm:$0xff] }
 0x241   : > { %v2919_v53 = vpop.permute.xlu0 %2918  ;;  %v10314_v50 = vpack.c.bf16 %v1954_v62, %v1954_v62 }
 0x242   : > { %v2925_v43 = vpop.permute.xlu1 %2924  ;;  %3003 = vst.msk [vmem:[#allocation4 + $0x30] sm:$0xf] %vm2990_vm9, %v2919_v53  ;;  %2944 = vrot.lane.b32.xlu0 %v10412_v21, %s10809_s24  ;;  %v12552_v21 = vpack.c.bf16 %v3049_v41, %v3049_v41  ;;  %v12598_v41 = vld [vmem:[#allocation2 + $0xfa] sm:$0xff] }
 0x243   : > { %3006 = vst.msk [vmem:[#allocation4 + $0x3c] sm:$0xf] %vm2990_vm9, %v2925_v43  ;;  %2099 = vrot.lane.b32.xlu1 %v10311_v8, %s10806_s18  ;;  %v3336_v8 = vmul.f32 %v12475_v26, %v12012_v49  ;;  %v3050_v43 = vld [vmem:[#allocation2 + $0xf9] sm:$0xff] }
 0x244   : > { %v12564_v49 = vpack.c.bf16 %v3050_v43, %v3050_v43  ;;  %v2499_v43 = vmul.f32 %v12041_v30, %v12311_v46 }
 0x245   : > { %v2923_v28 = vpop.permute.xlu0 %2922  ;;  %v10475_v61 = vpack.c.bf16 %v3336_v8, %v3336_v8 }
 0x246   : > { %v3178_v16 = vpop.permute.xlu1 %3177  ;;  %3005 = vst.msk [vmem:[#allocation4 + $0x38] sm:$0xf] %vm2990_vm9, %v2923_v28  ;;  %1816 = vrot.lane.b32.xlu0 %v10282_v15, %s10805_s17  ;;  %v3337_v28 = vmul.f32 %v12489_v6, %v12000_v10  ;;  %v2497_v10 = vmul.f32 %v12445_v37, %v12031_v47  ;;  %v2498_v37 = vmul.f32 %v12464_v24, %v12024_v4 }
 0x247   : > { %3261 = vst.msk [vmem:[#allocation4 + $0x34] sm:$0xf] %vm15375_vm10, %v3178_v16  ;;  %2946 = vrot.lane.b32.xlu1 %v10413_v57, %s10809_s24  ;;  %v2210_v16 = vld [vmem:[#allocation2 + $0xc1] sm:$0xff]  ;;  %v1670_v24 = vmul.f32 %v12475_v26, %v12051_v7  ;;  %v1671_v26 = vmul.f32 %v12489_v6, %v12043_v34 }
 0x249   : > { %v3176_v42 = vpop.permute.xlu0 %3175 }
 0x24a   : > { %v3182_v55 = vpop.permute.xlu1 %3181  ;;  %3260 = vst.msk [vmem:[#allocation4 + $0x30] sm:$0xf] %vm15375_vm10, %v3176_v42  ;;  %2101 = vrot.lane.b32.xlu0 %v10312_v33, %s10806_s18  ;;  %v10476_v42 = vpack.c.bf16 %v3337_v28, %v3337_v28 }
 0x24b   : > { %3263 = vst.msk [vmem:[#allocation4 + $0x3c] sm:$0xf] %vm15375_vm10, %v3182_v55  ;;  %3199 = vrot.lane.b32.xlu1 %v12439_v59, %s10810_s25 }
 0x24d   : > { %v3180_v63 = vpop.permute.xlu0 %3179 }
 0x24e   : > { %v3467_v54 = vpop.permute.xlu1 %3466  ;;  %3262 = vst.msk [vmem:[#allocation4 + $0x38] sm:$0xf] %vm15375_vm10, %v3180_v63  ;;  %2948 = vrot.lane.b32.xlu0 %v10414_v5, %s10809_s24  ;;  %v12582_v5 = vld [vmem:[#allocation2 + $0xf2] sm:$0xff]  ;;  %v10375_v63 = vpack.c.bf16 %v2497_v10, %v2497_v10 }
 0x24f   : > { %3550 = vst.msk [vmem:[#allocation4 + $0x34] sm:$0xf] %vm15374_vm11, %v3467_v54  ;;  %2103 = vrot.lane.b32.xlu1 %v10313_v25, %s10806_s18 }
 0x251   : > { %v3465_v13 = vpop.permute.xlu0 %3464 }
 0x252   : > { %v3471_v1 = vpop.permute.xlu1 %3470  ;;  %3549 = vst.msk [vmem:[#allocation4 + $0x30] sm:$0xf] %vm15374_vm11, %v3465_v13  ;;  %3201 = vrot.lane.b32.xlu0 %v12458_v36, %s10810_s25 }
 0x253   : > { %3552 = vst.msk [vmem:[#allocation4 + $0x3c] sm:$0xf] %vm15374_vm11, %v3471_v1  ;;  %2356 = vrot.lane.b32.xlu1 %v12422_v35, %s10807_s19 }
 0x255   : > { %v3469_v39 = vpop.permute.xlu0 %3468 }
 0x256   : > { %v1805_v53 = vpop.permute.xlu1 %1804  ;;  %3551 = vst.msk [vmem:[#allocation4 + $0x38] sm:$0xf] %vm15374_vm11, %v3469_v39  ;;  %2105 = vrot.lane.b32.xlu0 %v10314_v50, %s10806_s18  ;;  %v10376_v50 = vpack.c.bf16 %v2498_v37, %v2498_v37 }
 0x257   : > { %1884 = vst.msk [vmem:[#allocation4 + $0x44] sm:$0xf] %vm1866_vm5, %v1805_v53  ;;  %3203 = vrot.lane.b32.xlu1 %v12552_v21, %s10810_s25 }
 0x259   : > { %v1803_v35 = vpop.permute.xlu0 %1802  ;;  %v10700_v15 = vld [vmem:[#allocation4 + $0x30] sm:$0xff]  }
 0x25a   : > { %v1809_v57 = vpop.permute.xlu1 %1808  ;;  %1883 = vst.msk [vmem:[#allocation4 + $0x40] sm:$0xf] %vm1866_vm5, %v1803_v35  ;;  %2358 = vrot.lane.b32.xlu0 %v12434_v3, %s10807_s19  ;;  %10604 = vmatprep.mubr.msk.bf16.mxu0 %vm15373_vm12, %v10700_v15  ;;  %v12578_v3 = vpack.c.bf16 %v2210_v16, %v2210_v16  ;;  %v2786_v15 = vmul.f32 %v12529_v9, %v15517_v0 }
 0x25b   : > { %1886 = vst.msk [vmem:[#allocation4 + $0x4c] sm:$0xf] %vm1866_vm5, %v1809_v57  ;;  %3488 = vrot.lane.b32.xlu1 %v10475_v61, %s10811_s26  ;;  %v10377_v57 = vpack.c.bf16 %v2499_v43, %v2499_v43  ;;  %v1672_v0 = vmul.f32 %v12582_v5, %v12059_v52 }
 0x25c   : > { %v10407_v6 = vpack.c.bf16 %v2786_v15, %v2786_v15 }
 0x25d   : > { %v1807_v33 = vpop.permute.xlu0 %1806  ;;  %v10701_v31 = vld [vmem:[#allocation4 + $0x38] sm:$0xff]  }
 0x25e   : > { %v2094_v38 = vpop.permute.xlu1 %2093  ;;  %1885 = vst.msk [vmem:[#allocation4 + $0x48] sm:$0xf] %vm1866_vm5, %v1807_v33  ;;  %3205 = vrot.lane.b32.xlu0 %v12564_v49, %s10810_s25  ;;  %10605 = vmatmul.mubr.msk.bf16.gmra.mxu0 %vm15373_vm12, %v10701_v31  ;;  %v2500_v33 = vmul.f32 %v12033_v11, %v12334_v58  ;;  %v10288_v31 = vpack.c.bf16 %v1671_v26, %v1671_v26 }
 0x25f   : > { %2173 = vst.msk [vmem:[#allocation4 + $0x44] sm:$0xf] %vm2155_vm6, %v2094_v38  ;;  %1409 = vrot.lane.b32.xlu1 %v12439_v59, %s10803_s30  ;;  %v3338_v59 = vmul.f32 %v12582_v5, %v12022_v29 }
 0x260   : > { %v10378_v10 = vpack.c.bf16 %v2500_v33, %v2500_v33 }
 0x261   : > { %v2092_v55 = vpop.permute.xlu0 %2091  ;;  %v10477_v13 = vpack.c.bf16 %v3338_v59, %v3338_v59 }
 0x262   : > { %v2098_v25 = vpop.permute.xlu1 %2097  ;;  %2172 = vst.msk [vmem:[#allocation4 + $0x40] sm:$0xf] %vm2155_vm6, %v2092_v55  ;;  %3490 = vrot.lane.b32.xlu0 %v10476_v42, %s10811_s26  ;;  %v2787_v42 = vmul.f32 %v12542_v2, %v15518_v22  ;;  %v1959_v55 = vmul.f32 %v12511_v27, %v11496_v48  ;;  %v2788_v22 = vmul.f32 %v12367_v18, %v15519_v44 }
 0x263   : > { %2175 = vst.msk [vmem:[#allocation4 + $0x4c] sm:$0xf] %vm2155_vm6, %v2098_v25  ;;  %2360 = vrot.lane.b32.xlu1 %v12578_v3, %s10807_s19  ;;  %v10289_v25 = vpack.c.bf16 %v1672_v0, %v1672_v0  ;;  %v2789_v18 = vmul.f32 %v12387_v14, %v15520_v32 }
 0x264   : > { %v10319_v2 = vpack.c.bf16 %v1959_v55, %v1959_v55 }
 0x265   : > { %v2096_v54 = vpop.permute.xlu0 %2095  ;;  %v10410_v43 = vpack.c.bf16 %v2789_v18, %v2789_v18  ;;  %v2765_v18 = vld [vmem:[#allocation2 + $0x118] sm:$0xff] }
 0x266   : > { %v2351_v62 = vpop.permute.xlu1 %2350  ;;  %2174 = vst.msk [vmem:[#allocation4 + $0x48] sm:$0xf] %vm2155_vm6, %v2096_v54  ;;  %1411 = vrot.lane.b32.xlu0 %v12458_v36, %s10803_s30  ;;  %v3339_v36 = vmul.f32 %v12598_v41, %v12014_v60  ;;  %v10287_v60 = vpack.c.bf16 %v1670_v24, %v1670_v24  ;;  %v10408_v54 = vpack.c.bf16 %v2787_v42, %v2787_v42 }
 0x267   : > { %2430 = vst.msk [vmem:[#allocation4 + $0x44] sm:$0xf] %vm2412_vm7, %v2351_v62  ;;  %2645 = vrot.lane.b32.xlu1 %v10375_v63, %s10808_s23  ;;  %v1673_v62 = vmul.f32 %v12598_v41, %v12053_v12 }
 0x268   : > { %v10478_v53 = vpack.c.bf16 %v3339_v36, %v3339_v36  ;;  %v10409_v36 = vpack.c.bf16 %v2788_v22, %v2788_v22  ;;  %v2764_v22 = vld [vmem:[#allocation2 + $0x110] sm:$0xff] }
 0x269   : > { %v2349_v1 = vpop.permute.xlu0 %2348 }
 0x26a   : > { %v2353_v29 = vpop.permute.xlu1 %2352  ;;  %2429 = vst.msk [vmem:[#allocation4 + $0x40] sm:$0xf] %vm2412_vm7, %v2349_v1  ;;  %2362 = vrot.lane.b32.xlu0 %v12305_v17, %s10807_s19 }
 0x26b   : > { %2431 = vst.msk [vmem:[#allocation4 + $0x48] sm:$0xf] %vm2412_vm7, %v2353_v29  ;;  %3492 = vrot.lane.b32.xlu1 %v10477_v13, %s10811_s26  ;;  %v15521_v13 = vld [vmem:[#allocation22_spill] sm:$0xff]  ;;  %v10290_v29 = vpack.c.bf16 %v1673_v62, %v1673_v62 }
 0x26c   : > { %v1960_v1 = vmul.f32 %v12525_v51, %v15521_v13 }
 0x26d   : > { %v1404_v8 = vpop.permute.xlu0 %1403 }
 0x26e   : > { %v2638_v39 = vpop.permute.xlu1 %2637  ;;  %1475 = vst.msk [vmem:[#allocation4 + $0x64] sm:$0xf] %vm1449_vm3, %v1404_v8  ;;  %2647 = vrot.lane.b32.xlu0 %v10376_v50, %s10808_s23  ;;  %v10320_v44 = vpack.c.bf16 %v1960_v1, %v1960_v1  ;;  %v12661_v8 = vld [vmem:[#allocation2 + $0x100] sm:$0xff]  ;;  %v2796_v1 = vmul.f32 %v2764_v22, %v11507_v23 }
 0x26f   : > { %2718 = vst.msk [vmem:[#allocation4 + $0x40] sm:$0xf] %vm2701_vm8, %v2638_v39  ;;  %1413 = vrot.lane.b32.xlu1 %v12552_v21, %s10803_s30  ;;  %v1961_v51 = vmul.f32 %v12661_v8, %v11507_v23 }
 0x271   : > { %v2355_v61 = vpop.permute.xlu0 %2354 }
 0x272   : > { %v1406_v35 = vpop.permute.xlu1 %1405  ;;  %2432 = vst.msk [vmem:[#allocation4 + $0x4c] sm:$0xf] %vm2412_vm7, %v2355_v61  ;;  %3494 = vrot.lane.b32.xlu0 %v10478_v53, %s10811_s26  ;;  %v12672_v61 = vld [vmem:[#allocation2 + $0x108] sm:$0xff] }
 0x273   : > { %1476 = vst.msk [vmem:[#allocation4 + $0x68] sm:$0xf] %vm1449_vm3, %v1406_v35  ;;  %1826 = vrot.lane.b32.xlu1 %v10287_v60, %s10805_s17  ;;  %v10321_v60 = vpack.c.bf16 %v1961_v51, %v1961_v51  ;;  %v1962_v35 = vmul.f32 %v12672_v61, %v11531_v56 }
 0x275   : > { %v2640_v28 = vpop.permute.xlu0 %2639 }
 0x276   : > { %v1819_v16 = vpop.permute.xlu1 %1818  ;;  %2719 = vst.msk [vmem:[#allocation4 + $0x44] sm:$0xf] %vm2701_vm8, %v2640_v28  ;;  %1415 = vrot.lane.b32.xlu0 %v12564_v49, %s10803_s30 }
 0x277   : > { %1891 = vst.msk [vmem:[#allocation4 + $0x60] sm:$0xf] %vm1866_vm5, %v1819_v16  ;;  %2649 = vrot.lane.b32.xlu1 %v10377_v57, %s10808_s23  ;;  %v3332_v57 = vmul.f32 %v12031_v47, %v12311_v46  ;;  %v3333_v46 = vmul.f32 %v12024_v4, %v12334_v58  ;;  %v3334_v4 = vmul.f32 %v12357_v19, %v12041_v30 }
 0x279   : > { %v1408_v9 = vpop.permute.xlu0 %1407  ;;  %v10471_v33 = vpack.c.bf16 %v3332_v57, %v3332_v57  ;;  %v10473_v55 = vpack.c.bf16 %v3334_v4, %v3334_v4  ;;  %v15522_v4 = vmov 0  }
 0x27a   : > { %v2642_v38 = vpop.permute.xlu1 %2641  ;;  %1477 = vst.msk [vmem:[#allocation4 + $0x6c] sm:$0xf] %vm1449_vm3, %v1408_v9  ;;  %1828 = vrot.lane.b32.xlu0 %v10288_v31, %s10805_s17  ;;  %v10472_v9 = vpack.c.bf16 %v3333_v46, %v3333_v46 }
 0x27b   : > { %2720 = vst.msk [vmem:[#allocation4 + $0x48] sm:$0xf] %vm2701_vm8, %v2642_v38  ;;  %2934 = vrot.lane.b32.xlu1 %v10407_v6, %s10809_s24 }
 0x27d   : > { %v1821_v59 = vpop.permute.xlu0 %1820 }
 0x27e   : > { %v2927_v63 = vpop.permute.xlu1 %2926  ;;  %1892 = vst.msk [vmem:[#allocation4 + $0x64] sm:$0xf] %vm1866_vm5, %v1821_v59  ;;  %2651 = vrot.lane.b32.xlu0 %v10378_v10, %s10808_s23  ;;  %v3308_v10 = vld [vmem:[#allocation2 + $0x102] sm:$0xff]  ;;  %v3335_v59 = vmul.f32 %v12373_v45, %v12033_v11 }
 0x27f   : > { %3007 = vst.msk [vmem:[#allocation4 + $0x40] sm:$0xf] %vm2990_vm9, %v2927_v63  ;;  %1830 = vrot.lane.b32.xlu1 %v10289_v25, %s10805_s17  ;;  %v2507_v30 = vmul.f32 %v3308_v10, %v12059_v52 }
 0x281   : > { %v2644_v27 = vpop.permute.xlu0 %2643 }
 0x282   : > { %v1823_v37 = vpop.permute.xlu1 %1822  ;;  %2721 = vst.msk [vmem:[#allocation4 + $0x4c] sm:$0xf] %vm2701_vm8, %v2644_v27  ;;  %2936 = vrot.lane.b32.xlu0 %v10408_v54, %s10809_s24  ;;  %v10385_v54 = vpack.c.bf16 %v2507_v30, %v2507_v30  ;;  %v3309_v27 = vld [vmem:[#allocation2 + $0x10a] sm:$0xff] }
 0x283   : > { %1893 = vst.msk [vmem:[#allocation4 + $0x68] sm:$0xf] %vm1866_vm5, %v1823_v37  ;;  %2115 = vrot.lane.b32.xlu1 %v10319_v2, %s10806_s18  ;;  %v10474_v37 = vpack.c.bf16 %v3335_v59, %v3335_v59  ;;  %v2508_v11 = vmul.f32 %v3309_v27, %v12053_v12 }
 0x285   : > { %v2929_v50 = vpop.permute.xlu0 %2928 }
 0x286   : > { %v2108_v24 = vpop.permute.xlu1 %2107  ;;  %3008 = vst.msk [vmem:[#allocation4 + $0x44] sm:$0xf] %vm2990_vm9, %v2929_v50  ;;  %1832 = vrot.lane.b32.xlu0 %v10290_v29, %s10805_s17  ;;  %v2795_v50 = vmul.f32 %v12672_v61, %v15521_v13 }
 0x287   : > { %2180 = vst.msk [vmem:[#allocation4 + $0x60] sm:$0xf] %vm2155_vm6, %v2108_v24  ;;  %2938 = vrot.lane.b32.xlu1 %v10409_v36, %s10809_s24  ;;  %v10386_v24 = vpack.c.bf16 %v2508_v11, %v2508_v11 }
 0x288   : > { %v10416_v51 = vpack.c.bf16 %v2795_v50, %v2795_v50 }
 0x289   : > { %v1825_v39 = vpop.permute.xlu0 %1824 }
 0x28a   : > { %v2931_v53 = vpop.permute.xlu1 %2930  ;;  %1894 = vst.msk [vmem:[#allocation4 + $0x6c] sm:$0xf] %vm1866_vm5, %v1825_v39  ;;  %2117 = vrot.lane.b32.xlu0 %v10320_v44, %s10806_s18  ;;  %v10417_v44 = vpack.c.bf16 %v2796_v1, %v2796_v1  ;;  %v2797_v39 = vmul.f32 %v2765_v18, %v11531_v56 }
 0x28b   : > { %3009 = vst.msk [vmem:[#allocation4 + $0x48] sm:$0xf] %vm2990_vm9, %v2931_v53  ;;  %3191 = vrot.lane.b32.xlu1 %v12578_v3, %s10810_s25  ;;  %v10322_v3 = vpack.c.bf16 %v1962_v35, %v1962_v35  ;;  %v3053_v53 = vld [vmem:[#allocation2 + $0x111] sm:$0xff] }
 0x28c   : > { %v10449_v13 = vpack.c.bf16 %v3053_v53, %v3053_v53 }
 0x28d   : > { %v2110_v14 = vpop.permute.xlu0 %2109 }
 0x28e   : > { %v3184_v32 = vpop.permute.xlu1 %3183  ;;  %2181 = vst.msk [vmem:[#allocation4 + $0x64] sm:$0xf] %vm2155_vm6, %v2110_v14  ;;  %2940 = vrot.lane.b32.xlu0 %v10410_v43, %s10809_s24  ;;  %v10418_v14 = vpack.c.bf16 %v2797_v39, %v2797_v39 }
 0x28f   : > { %3264 = vst.msk [vmem:[#allocation4 + $0x40] sm:$0xf] %vm15375_vm10, %v3184_v32  ;;  %2119 = vrot.lane.b32.xlu1 %v10321_v60, %s10806_s18  ;;  %v3340_v32 = vmul.f32 %v3308_v10, %v12051_v7 }
 0x291   : > { %v2933_v26 = vpop.permute.xlu0 %2932 }
 0x292   : > { %v2112_v15 = vpop.permute.xlu1 %2111  ;;  %3010 = vst.msk [vmem:[#allocation4 + $0x4c] sm:$0xf] %vm2990_vm9, %v2933_v26  ;;  %3193 = vrot.lane.b32.xlu0 %v12305_v17, %s10810_s25  ;;  %v2218_v17 = vld [vmem:[#allocation2 + $0x101] sm:$0xff]  ;;  %v3310_v26 = vld [vmem:[#allocation2 + $0x112] sm:$0xff] }
 0x293   : > { %2182 = vst.msk [vmem:[#allocation4 + $0x68] sm:$0xf] %vm2155_vm6, %v2112_v15  ;;  %2372 = vrot.lane.b32.xlu1 %v12552_v21, %s10807_s19  ;;  %v12696_v47 = vpack.c.bf16 %v2218_v17, %v2218_v17  ;;  %v3054_v15 = vld [vmem:[#allocation2 + $0x119] sm:$0xff]  ;;  %v3342_v57 = vmul.f32 %v3310_v26, %v12059_v52  ;;  %v3341_v17 = vmul.f32 %v3309_v27, %v12043_v34 }
 0x295   : > { %v3186_v28 = vpop.permute.xlu0 %3185  ;;  %v10480_v52 = vpack.c.bf16 %v3341_v17, %v3341_v17 }
 0x296   : > { %v2365_v16 = vpop.permute.xlu1 %2364  ;;  %3265 = vst.msk [vmem:[#allocation4 + $0x44] sm:$0xf] %vm15375_vm10, %v3186_v28  ;;  %2121 = vrot.lane.b32.xlu0 %v10322_v3, %s10806_s18  ;;  %v10479_v3 = vpack.c.bf16 %v3340_v32, %v3340_v32 }
 0x297   : > { %2437 = vst.msk [vmem:[#allocation4 + $0x60] sm:$0xf] %vm2412_vm7, %v2365_v16  ;;  %3195 = vrot.lane.b32.xlu1 %v12320_v20, %s10810_s25  ;;  %v2505_v20 = vmul.f32 %v12582_v5, %v12051_v7  ;;  %v10450_v16 = vpack.c.bf16 %v3054_v15, %v3054_v15 }
 0x299   : > { %v2114_v31 = vpop.permute.xlu0 %2113  ;;  %v10383_v58 = vpack.c.bf16 %v2505_v20, %v2505_v20  ;;  %v6878_v20 = vld [vmem:[%s15322_s6] sm:$0xff] }
 0x29a   : > { %v3188_v6 = vpop.permute.xlu1 %3187  ;;  %2183 = vst.msk [vmem:[#allocation4 + $0x6c] sm:$0xf] %vm2155_vm6, %v2114_v31  ;;  %2374 = vrot.lane.b32.xlu0 %v12564_v49, %s10807_s19  ;;  %v2219_v49 = vld [vmem:[#allocation2 + $0x109] sm:$0xff]  ;;  %v10481_v31 = vpack.c.bf16 %v3342_v57, %v3342_v57 }
 0x29b   : > { %3266 = vst.msk [vmem:[#allocation4 + $0x48] sm:$0xf] %vm15375_vm10, %v3188_v6  ;;  %3480 = vrot.lane.b32.xlu1 %v10471_v33, %s10811_s26  ;;  %v12712_v42 = vpack.c.bf16 %v2219_v49, %v2219_v49  ;;  %v3311_v33 = vld [vmem:[#allocation2 + $0x11a] sm:$0xff] }
 0x29c   : > { %v3343_v46 = vmul.f32 %v3311_v33, %v12053_v12  ;;  %v6879_v12 = vld [vmem:[%s15322_s6 + $0x8] sm:$0xff] }
 0x29d   : > { %v2367_v21 = vpop.permute.xlu0 %2366 }
 0x29e   : > { %v3473_v0 = vpop.permute.xlu1 %3472  ;;  %2438 = vst.msk [vmem:[#allocation4 + $0x64] sm:$0xf] %vm2412_vm7, %v2367_v21  ;;  %3197 = vrot.lane.b32.xlu0 %v12340_v40, %s10810_s25  ;;  %v2506_v40 = vmul.f32 %v12598_v41, %v12043_v34  ;;  %v2794_v41 = vmul.f32 %v12661_v8, %v11496_v48 }
 0x29f   : > { %3553 = vst.msk [vmem:[#allocation4 + $0x40] sm:$0xf] %vm15374_vm11, %v3473_v0  ;;  %2376 = vrot.lane.b32.xlu1 %v12696_v47, %s10807_s19  ;;  %v10482_v0 = vpack.c.bf16 %v3343_v46, %v3343_v46 }
 0x2a0   : > { %v10384_v63 = vpack.c.bf16 %v2506_v40, %v2506_v40  ;;  %v10415_v45 = vpack.c.bf16 %v2794_v41, %v2794_v41 }
 0x2a1   : > { %v3190_v38 = vpop.permute.xlu0 %3189 }
 0x2a2   : > { %v2369_v5 = vpop.permute.xlu1 %2368  ;;  %3267 = vst.msk [vmem:[#allocation4 + $0x4c] sm:$0xf] %vm15375_vm10, %v3190_v38  ;;  %3482 = vrot.lane.b32.xlu0 %v10472_v9, %s10811_s26 }
 0x2a3   : > { %2439 = vst.msk [vmem:[#allocation4 + $0x68] sm:$0xf] %vm2412_vm7, %v2369_v5  ;;  %2661 = vrot.lane.b32.xlu1 %v10383_v58, %s10808_s23  ;;  %v12787_v5 = vld [vmem:[%s15322_s6 + $0x20] sm:$0xff] }
 0x2a5   : > { %v3475_v19 = vpop.permute.xlu0 %3474 }
 0x2a6   : > { %v2654_v25 = vpop.permute.xlu1 %2653  ;;  %3554 = vst.msk [vmem:[#allocation4 + $0x44] sm:$0xf] %vm15374_vm11, %v3475_v19  ;;  %2378 = vrot.lane.b32.xlu0 %v12712_v42, %s10807_s19 }
 0x2a7   : > { %2726 = vst.msk [vmem:[#allocation4 + $0x60] sm:$0xf] %vm2701_vm8, %v2654_v25  ;;  %3484 = vrot.lane.b32.xlu1 %v10473_v55, %s10811_s26 }
 0x2a9   : > { %v2371_v62 = vpop.permute.xlu0 %2370 }
 0x2aa   : > { %v3477_v2 = vpop.permute.xlu1 %3476  ;;  %2440 = vst.msk [vmem:[#allocation4 + $0x6c] sm:$0xf] %vm2412_vm7, %v2371_v62  ;;  %2663 = vrot.lane.b32.xlu0 %v10384_v63, %s10808_s23 }
 0x2ab   : > { %3555 = vst.msk [vmem:[#allocation4 + $0x48] sm:$0xf] %vm15374_vm11, %v3477_v2  ;;  %2665 = vrot.lane.b32.xlu1 %v10385_v54, %s10808_s23 }
 0x2ad   : > { %v2656_v48 = vpop.permute.xlu0 %2655  ;;  %v10702_v29 = vld [vmem:[#allocation4 + $0x40] sm:$0xff]  }
 0x2ae   : > { %v1811_v36 = vpop.permute.xlu1 %1810  ;;  %2727 = vst.msk [vmem:[#allocation4 + $0x64] sm:$0xf] %vm2701_vm8, %v2656_v48  ;;  %3486 = vrot.lane.b32.xlu0 %v10474_v37, %s10811_s26  ;;  %10608 = vmatprep.mubr.msk.bf16.mxu0 %vm15373_vm12, %v10702_v29 }
 0x2af   : > { %1887 = vst.msk [vmem:[#allocation4 + $0x50] sm:$0xf] %vm1866_vm5, %v1811_v36  ;;  %2950 = vrot.lane.b32.xlu1 %v10415_v45, %s10809_s24 }
 0x2b1   : > { %v3479_v23 = vpop.permute.xlu0 %3478 }
 0x2b2   : > { %v2658_v8 = vpop.permute.xlu1 %2657  ;;  %3556 = vst.msk [vmem:[#allocation4 + $0x4c] sm:$0xf] %vm15374_vm11, %v3479_v23  ;;  %2667 = vrot.lane.b32.xlu0 %v10386_v24, %s10808_s23 }
 0x2b3   : > { %2728 = vst.msk [vmem:[#allocation4 + $0x68] sm:$0xf] %vm2701_vm8, %v2658_v8  ;;  %2954 = vrot.lane.b32.xlu1 %v10417_v44, %s10809_s24 }
 0x2b5   : > { %v1813_v43 = vpop.permute.xlu0 %1812 }
 0x2b6   : > { %v2943_v60 = vpop.permute.xlu1 %2942  ;;  %1888 = vst.msk [vmem:[#allocation4 + $0x54] sm:$0xf] %vm1866_vm5, %v1813_v43  ;;  %2952 = vrot.lane.b32.xlu0 %v10416_v51, %s10809_s24 }
 0x2b7   : > { %3015 = vst.msk [vmem:[#allocation4 + $0x60] sm:$0xf] %vm2990_vm9, %v2943_v60  ;;  %3207 = vrot.lane.b32.xlu1 %v12696_v47, %s10810_s25 }
 0x2b9   : > { %v2660_v61 = vpop.permute.xlu0 %2659  ;;  %v10703_v35 = vld [vmem:[#allocation4 + $0x48] sm:$0xff]  }
 0x2ba   : > { %v1815_v56 = vpop.permute.xlu1 %1814  ;;  %2729 = vst.msk [vmem:[#allocation4 + $0x6c] sm:$0xf] %vm2701_vm8, %v2660_v61  ;;  %2956 = vrot.lane.b32.xlu0 %v10418_v14, %s10809_s24  ;;  %10609 = vmatmul.mubr.msk.bf16.gmra.mxu0 %vm15373_vm12, %v10703_v35 }
 0x2bb   : > { %1889 = vst.msk [vmem:[#allocation4 + $0x58] sm:$0xf] %vm1866_vm5, %v1815_v56  ;;  %3211 = vrot.lane.b32.xlu1 %v10449_v13, %s10810_s25 }
 0x2bd   : > { %v2945_v28 = vpop.permute.xlu0 %2944 }
 0x2be   : > { %v2100_v7 = vpop.permute.xlu1 %2099  ;;  %3016 = vst.msk [vmem:[#allocation4 + $0x64] sm:$0xf] %vm2990_vm9, %v2945_v28  ;;  %3209 = vrot.lane.b32.xlu0 %v12712_v42, %s10810_s25  ;;  %v15523_v42 = vmov 1  }
 0x2bf   : > { %2176 = vst.msk [vmem:[#allocation4 + $0x50] sm:$0xf] %vm2155_vm6, %v2100_v7  ;;  %3496 = vrot.lane.b32.xlu1 %v10479_v3, %s10811_s26 }
 0x2c1   : > { %v1817_v6 = vpop.permute.xlu0 %1816 }
 0x2c2   : > { %v2947_v47 = vpop.permute.xlu1 %2946  ;;  %1890 = vst.msk [vmem:[#allocation4 + $0x5c] sm:$0xf] %vm1866_vm5, %v1817_v6  ;;  %3213 = vrot.lane.b32.xlu0 %v10450_v16, %s10810_s25 }
 0x2c3   : > { %3017 = vst.msk [vmem:[#allocation4 + $0x68] sm:$0xf] %vm2990_vm9, %v2947_v47  ;;  %3500 = vrot.lane.b32.xlu1 %v10481_v31, %s10811_s26 }
 0x2c5   : > { %v2102_v34 = vpop.permute.xlu0 %2101 }
 0x2c6   : > { %v3200_v21 = vpop.permute.xlu1 %3199  ;;  %2177 = vst.msk [vmem:[#allocation4 + $0x54] sm:$0xf] %vm2155_vm6, %v2102_v34  ;;  %3498 = vrot.lane.b32.xlu0 %v10480_v52, %s10811_s26 }
 0x2c7   : > { %3272 = vst.msk [vmem:[#allocation4 + $0x60] sm:$0xf] %vm15375_vm10, %v3200_v21  ;;  %7055 = vperm.xlu1 %10680, %v6878_v20  }
 0x2c9   : > { %v2949_v49 = vpop.permute.xlu0 %2948 }
 0x2ca   : > { %v2104_v9 = vpop.permute.xlu1 %2103  ;;  %3018 = vst.msk [vmem:[#allocation4 + $0x6c] sm:$0xf] %vm2990_vm9, %v2949_v49  ;;  %3502 = vrot.lane.b32.xlu0 %v10482_v0, %s10811_s26  ;;  %v10594_v49 = vpop.f32.mrf.mxu0 }
 0x2cb   : > { %2178 = vst.msk [vmem:[#allocation4 + $0x58] sm:$0xf] %vm2155_vm6, %v2104_v9  ;;  %10682 = vset.pattern.permute.xlu1 %v15522_v4 }
 0x2cc   : > { %6896 = vperm.xlu1 %10682, %v6878_v20  }
 0x2cd   : > { %v3202_v58 = vpop.permute.xlu0 %3201 }
 0x2ce   : > { %v2357_v38 = vpop.permute.xlu1 %2356  ;;  %3273 = vst.msk [vmem:[#allocation4 + $0x64] sm:$0xf] %vm15375_vm10, %v3202_v58  ;;  %7059 = vperm.xlu0 %10681, %v6879_v12  }
 0x2cf   : > { %2433 = vst.msk [vmem:[#allocation4 + $0x50] sm:$0xf] %vm2412_vm7, %v2357_v38 }
 0x2d0   : > { %10683 = vset.pattern.permute.xlu1 %v15523_v42 }
 0x2d1   : > { %v2106_v40 = vpop.permute.xlu0 %2105 }
 0x2d2   : > { %v3204_v10 = vpop.permute.xlu1 %3203  ;;  %2179 = vst.msk [vmem:[#allocation4 + $0x5c] sm:$0xf] %vm2155_vm6, %v2106_v40  ;;  %7071 = vperm.xlu0 %10681, %v12787_v5   ;;  %v3795_v40 = vpop.f32.mrf.mxu0 }
 0x2d3   : > { %3274 = vst.msk [vmem:[#allocation4 + $0x68] sm:$0xf] %vm15375_vm10, %v3204_v10 }
 0x2d5   : > { %v2359_v55 = vpop.permute.xlu0 %2358 }
 0x2d6   : > { %v3489_v30 = vpop.permute.xlu1 %3488  ;;  %2434 = vst.msk [vmem:[#allocation4 + $0x54] sm:$0xf] %vm2412_vm7, %v2359_v55  ;;  %10685 = vset.pattern.permute.xlu0 %v15522_v4 }
 0x2d7   : > { %3561 = vst.msk [vmem:[#allocation4 + $0x60] sm:$0xf] %vm15374_vm11, %v3489_v30  ;;  %6901 = vperm.xlu0 %10685, %v6879_v12   ;;  %v10812_v12 = vmov 1983009808  }
 0x2d8   : > { %v3956_v58 = vunpack.c.l.s4 %v10812_v12 }
 0x2d9   : > { %v3206_v19 = vpop.permute.xlu0 %3205 }
 0x2da   : > { %v1410_v25 = vpop.permute.xlu1 %1409  ;;  %3275 = vst.msk [vmem:[#allocation4 + $0x6c] sm:$0xf] %vm15375_vm10, %v3206_v19  ;;  %v3957_v55 = vunpack.c.0.s8 %v3956_v58  ;;  %v12854_v19 = vld [vmem:[%s15318_s2] ss:$0 sm:$0xff] }
 0x2db   : > { %1478 = vst.msk [vmem:[#allocation4 + $0x70] sm:$0xf] %vm1449_vm3, %v1410_v25  ;;  %v3796_v25 = vadd.f32 %v12854_v19, %v3795_v40 }
 0x2dd   : > { %v3491_v59 = vpop.permute.xlu0 %3490 }
 0x2de   : > { %v2361_v63 = vpop.permute.xlu1 %2360  ;;  %3562 = vst.msk [vmem:[#allocation4 + $0x64] sm:$0xf] %vm15374_vm11, %v3491_v59 }
 0x2df   : > { %2435 = vst.msk [vmem:[#allocation4 + $0x58] sm:$0xf] %vm2412_vm7, %v2361_v63  ;;  %v3804_v63 = vadd.f32 %v10594_v49, %v12854_v19 }
 0x2e1   : > { %v1412_v41 = vpop.permute.xlu0 %1411 }
 0x2e2   : > { %v2646_v54 = vpop.permute.xlu1 %2645  ;;  %1479 = vst.msk [vmem:[#allocation4 + $0x74] sm:$0xf] %vm1449_vm3, %v1412_v41  ;;  %v15524_v41 = vld [vmem:[#allocation5_spill] sm:$0xff] }
 0x2e3   : > { %2722 = vst.msk [vmem:[#allocation4 + $0x50] sm:$0xf] %vm2701_vm8, %v2646_v54  ;;  %v12860_v54 = vsub.s32 %v3957_v55, %v15524_v41 }
 0x2e5   : > { %v2363_v62 = vpop.permute.xlu0 %2362  ;;  %v10704_v22 = vld [vmem:[#allocation4 + $0x60] sm:$0xff]   ;;  %15525 = vst [vmem:[#allocation23_spill] sm:$0xff] %v12860_v54 }
 0x2e6   : > { %v3493_v2 = vpop.permute.xlu1 %3492  ;;  %2436 = vst.msk [vmem:[#allocation4 + $0x5c] sm:$0xf] %vm2412_vm7, %v2363_v62  ;;  %10616 = vmatprep.mubr.msk.bf16.mxu1 %vm15373_vm12, %v10704_v22  ;;  %v3961_v62 = vrot.slane %v3796_v25, %v12860_v54 }
 0x2e7   : > { %3563 = vst.msk [vmem:[#allocation4 + $0x68] sm:$0xf] %vm15374_vm11, %v3493_v2  ;;  %v3995_v2 = vrot.slane %v3804_v63, %v12860_v54 }
 0x2e9   : > { %v2648_v27 = vpop.permute.xlu0 %2647 }
 0x2ea   : > { %v1414_v37 = vpop.permute.xlu1 %1413  ;;  %2723 = vst.msk [vmem:[#allocation4 + $0x54] sm:$0xf] %vm2701_vm8, %v2648_v27  ;;  %v3954_v27 = vcombine.high %v3796_v25, %v3796_v25 }
 0x2eb   : > { %1480 = vst.msk [vmem:[#allocation4 + $0x78] sm:$0xf] %vm1449_vm3, %v1414_v37  ;;  %v10595_v37 = vpop.f32.mrf.mxu0 }
 0x2ed   : > { %v3495_v11 = vpop.permute.xlu0 %3494 }
 0x2ee   : > { %v1827_v45 = vpop.permute.xlu1 %1826  ;;  %3564 = vst.msk [vmem:[#allocation4 + $0x6c] sm:$0xf] %vm15374_vm11, %v3495_v11  ;;  %v3988_v11 = vcombine.high %v3804_v63, %v3804_v63 }
 0x2ef   : > { %1895 = vst.msk [vmem:[#allocation4 + $0x70] sm:$0xf] %vm1866_vm5, %v1827_v45  ;;  %v3969_v45 = vcombine.high %v3961_v62, %v3961_v62 }
 0x2f1   : > { %v1416_v1 = vpop.permute.xlu0 %1415 }
 0x2f2   : > { %v2650_v48 = vpop.permute.xlu1 %2649  ;;  %1481 = vst.msk [vmem:[#allocation4 + $0x7c] sm:$0xf] %vm1449_vm3, %v1416_v1 }
 0x2f3   : > { %2724 = vst.msk [vmem:[#allocation4 + $0x58] sm:$0xf] %vm2701_vm8, %v2650_v48  ;;  %v4003_v48 = vcombine.high %v3995_v2, %v3995_v2 }
 0x2f5   : > { %v1829_v29 = vpop.permute.xlu0 %1828  ;;  %v10705_v36 = vld [vmem:[#allocation4 + $0x68] sm:$0xff]  }
 0x2f6   : > { %v2935_v50 = vpop.permute.xlu1 %2934  ;;  %1896 = vst.msk [vmem:[#allocation4 + $0x74] sm:$0xf] %vm1866_vm5, %v1829_v29  ;;  %10617 = vmatmul.mubr.msk.bf16.vlgmr.msra.gmra.mxu1 %vm15373_vm12, %v10705_v36  ;;  %v3968_v29 = vrot.slane %v3954_v27, %v12860_v54  ;;  %v3798_v36 = vpop.f32.mrf.mxu0 }
 0x2f7   : > { %3011 = vst.msk [vmem:[#allocation4 + $0x50] sm:$0xf] %vm2990_vm9, %v2935_v50  ;;  %v4002_v50 = vrot.slane %v3988_v11, %v12860_v54 }
 0x2f9   : > { %v2652_v24 = vpop.permute.xlu0 %2651 }
 0x2fa   : > { %v1831_v18 = vpop.permute.xlu1 %1830  ;;  %2725 = vst.msk [vmem:[#allocation4 + $0x5c] sm:$0xf] %vm2701_vm8, %v2652_v24  ;;  %v9848_v24 = vrot.slane %v3969_v45, 9 }
 0x2fb   : > { %1897 = vst.msk [vmem:[#allocation4 + $0x78] sm:$0xf] %vm1866_vm5, %v1831_v18  ;;  %v3807_v18 = vadd.f32 %v10595_v37, %v12854_v19 }
 0x2fd   : > { %v2937_v44 = vpop.permute.xlu0 %2936 }
 0x2fe   : > { %v2116_v23 = vpop.permute.xlu1 %2115  ;;  %3012 = vst.msk [vmem:[#allocation4 + $0x54] sm:$0xf] %vm2990_vm9, %v2937_v44 }
 0x2ff   : > { %2184 = vst.msk [vmem:[#allocation4 + $0x70] sm:$0xf] %vm2155_vm6, %v2116_v23  ;;  %v9856_v23 = vrot.slane %v4003_v48, 9 }
 0x301   : > { %v1833_v8 = vpop.permute.xlu0 %1832 }
 0x302   : > { %v2939_v51 = vpop.permute.xlu1 %2938  ;;  %1898 = vst.msk [vmem:[#allocation4 + $0x7c] sm:$0xf] %vm1866_vm5, %v1833_v8  ;;  %v3970_v8 = vcombine.high %v3968_v29, %v3968_v29 }
 0x303   : > { %3013 = vst.msk [vmem:[#allocation4 + $0x58] sm:$0xf] %vm2990_vm9, %v2939_v51  ;;  %v9847_v51 = vrot.slane %v3961_v62, 9 }
 0x305   : > { %v2118_v39 = vpop.permute.xlu0 %2117 }
 0x306   : > { %v3192_v53 = vpop.permute.xlu1 %3191  ;;  %2185 = vst.msk [vmem:[#allocation4 + $0x74] sm:$0xf] %vm2155_vm6, %v2118_v39  ;;  %v3799_v39 = vadd.f32 %v12854_v19, %v3798_v36 }
 0x307   : > { %3268 = vst.msk [vmem:[#allocation4 + $0x50] sm:$0xf] %vm15375_vm10, %v3192_v53  ;;  %v9849_v53 = vrot.slane %v3968_v29, 9 }
 0x309   : > { %v2941_v43 = vpop.permute.xlu0 %2940 }
 0x30a   : > { %v2120_v60 = vpop.permute.xlu1 %2119  ;;  %3014 = vst.msk [vmem:[#allocation4 + $0x5c] sm:$0xf] %vm2990_vm9, %v2941_v43  ;;  %v4004_v43 = vcombine.high %v4002_v50, %v4002_v50 }
 0x30b   : > { %2186 = vst.msk [vmem:[#allocation4 + $0x78] sm:$0xf] %vm2155_vm6, %v2120_v60  ;;  %v9855_v60 = vrot.slane %v3995_v2, 9 }
 0x30d   : > { %v3194_v13 = vpop.permute.xlu0 %3193 }
 0x30e   : > { %v2373_v14 = vpop.permute.xlu1 %2372  ;;  %3269 = vst.msk [vmem:[#allocation4 + $0x54] sm:$0xf] %vm15375_vm10, %v3194_v13  ;;  %v5011_v13 = vadd.f32 %v9848_v24, %v3969_v45 }
 0x30f   : > { %2441 = vst.msk [vmem:[#allocation4 + $0x70] sm:$0xf] %vm2412_vm7, %v2373_v14  ;;  %v9857_v14 = vrot.slane %v4002_v50, 9 }
 0x311   : > { %v2122_v32 = vpop.permute.xlu0 %2121 }
 0x312   : > { %v3196_v61 = vpop.permute.xlu1 %3195  ;;  %2187 = vst.msk [vmem:[#allocation4 + $0x7c] sm:$0xf] %vm2155_vm6, %v2122_v32  ;;  %v4005_v32 = vcombine.high %v3807_v18, %v3807_v18 }
 0x313   : > { %3270 = vst.msk [vmem:[#allocation4 + $0x58] sm:$0xf] %vm15375_vm10, %v3196_v61  ;;  %v5019_v61 = vadd.f32 %v9856_v23, %v4003_v48  ;;  %v6881_v48 = vld [vmem:[%s15322_s6 + $0x18] sm:$0xff] }
 0x315   : > { %v2375_v35 = vpop.permute.xlu0 %2374 }
 0x316   : > { %v3481_v26 = vpop.permute.xlu1 %3480  ;;  %2442 = vst.msk [vmem:[#allocation4 + $0x74] sm:$0xf] %vm2412_vm7, %v2375_v35  ;;  %v9850_v35 = vrot.slane %v3970_v8, 9 }
 0x317   : > { %3557 = vst.msk [vmem:[#allocation4 + $0x50] sm:$0xf] %vm15374_vm11, %v3481_v26  ;;  %v5010_v26 = vadd.f32 %v9847_v51, %v3961_v62  ;;  %v6880_v62 = vld [vmem:[%s15322_s6 + $0x10] sm:$0xff] }
 0x318   : > { %7063 = vperm.xlu1 %10683, %v6880_v62   ;;  %6906 = vperm.xlu0 %10685, %v6880_v62  }
 0x319   : > { %v3198_v56 = vpop.permute.xlu0 %3197 }
 0x31a   : > { %v2377_v15 = vpop.permute.xlu1 %2376  ;;  %3271 = vst.msk [vmem:[#allocation4 + $0x5c] sm:$0xf] %vm15375_vm10, %v3198_v56  ;;  %v3971_v56 = vcombine.high %v3799_v39, %v3799_v39 }
 0x31b   : > { %2443 = vst.msk [vmem:[#allocation4 + $0x78] sm:$0xf] %vm2412_vm7, %v2377_v15  ;;  %v5012_v15 = vadd.f32 %v9849_v53, %v3968_v29 }
 0x31c   : > { %7067 = vperm.xlu1 %10683, %v6881_v48  }
 0x31d   : > { %v3483_v3 = vpop.permute.xlu0 %3482 }
 0x31e   : > { %v2662_v57 = vpop.permute.xlu1 %2661  ;;  %3558 = vst.msk [vmem:[#allocation4 + $0x54] sm:$0xf] %vm15374_vm11, %v3483_v3  ;;  %v4012_v3 = vrot.slane %v3807_v18, %v12860_v54  ;;  %v15526_v18 = vld [vmem:[#allocation6_spill] sm:$0xff] }
 0x31f   : > { %2730 = vst.msk [vmem:[#allocation4 + $0x70] sm:$0xf] %vm2701_vm8, %v2662_v57  ;;  %v9858_v57 = vrot.slane %v4004_v43, 9 }
 0x320   : > { %v9859_v49 = vrot.slane %v4012_v3, 9  ;;  %10684 = vset.pattern.permute.xlu1 %v15522_v4 }
 0x321   : > { %v2379_v28 = vpop.permute.xlu0 %2378  ;;  %6911 = vperm.xlu1 %10684, %v6881_v48  }
 0x322   : > { %v3485_v7 = vpop.permute.xlu1 %3484  ;;  %2444 = vst.msk [vmem:[#allocation4 + $0x7c] sm:$0xf] %vm2412_vm7, %v2379_v28  ;;  %v5018_v28 = vadd.f32 %v9855_v60, %v3995_v2 }
 0x323   : > { %3559 = vst.msk [vmem:[#allocation4 + $0x58] sm:$0xf] %vm15374_vm11, %v3485_v7  ;;  %v5139_v7 = vadd.f32 %v5019_v61, %v5011_v13 }
 0x325   : > { %v2664_v16 = vpop.permute.xlu0 %2663  ;;  %v10706_v17 = vld [vmem:[#allocation4 + $0x50] sm:$0xff]   ;;  %10686 = vset.pattern.permute.xlu1 %v15523_v42 }
 0x326   : > { %v2666_v33 = vpop.permute.xlu1 %2665  ;;  %2731 = vst.msk [vmem:[#allocation4 + $0x74] sm:$0xf] %vm2701_vm8, %v2664_v16  ;;  %10612 = vmatprep.mubr.msk.bf16.mxu0 %vm15373_vm12, %v10706_v17  ;;  %v3978_v16 = vrot.slane %v3799_v39, %v12860_v54  ;;  %v5020_v17 = vadd.f32 %v9857_v14, %v4002_v50  ;;  %v6883_v39 = vld [vmem:[%s15322_s6 + $0x28] sm:$0xff] }
 0x327   : > { %2732 = vst.msk [vmem:[#allocation4 + $0x78] sm:$0xf] %vm2701_vm8, %v2666_v33  ;;  %v5013_v33 = vadd.f32 %v9850_v35, %v3970_v8  ;;  %6921 = vperm.xlu0 %10685, %v6883_v39   ;;  %7075 = vperm.xlu1 %10686, %v6883_v39  }
 0x329   : > { %v3487_v31 = vpop.permute.xlu0 %3486 }
 0x32a   : > { %v2951_v6 = vpop.permute.xlu1 %2950  ;;  %3560 = vst.msk [vmem:[#allocation4 + $0x5c] sm:$0xf] %vm15374_vm11, %v3487_v31  ;;  %v5138_v31 = vadd.f32 %v5018_v28, %v5010_v26 }
 0x32b   : > { %3019 = vst.msk [vmem:[#allocation4 + $0x70] sm:$0xf] %vm2990_vm9, %v2951_v6  ;;  %v4019_v6 = vrot.slane %v4005_v32, %v12860_v54  ;;  %10687 = vset.pattern.permute.xlu1 %v15522_v4 }
 0x32c   : > { %v12878_v58 = vmul.f32 0.25, %v5138_v31  ;;  %6916 = vperm.xlu1 %10687, %v12787_v5  }
 0x32d   : > { %v2668_v47 = vpop.permute.xlu0 %2667  ;;  %v9861_v25 = vrot.slane %v4019_v6, 9 }
 0x32e   : > { %v2955_v52 = vpop.permute.xlu1 %2954  ;;  %2733 = vst.msk [vmem:[#allocation4 + $0x7c] sm:$0xf] %vm2701_vm8, %v2668_v47  ;;  %v3985_v47 = vrot.slane %v3971_v56, %v12860_v54  ;;  %v5680_v11 = vmul.f32 %v12878_v58, %v12878_v58  ;;  %v5335_v53 = vrot.slane %v12878_v58, %v15526_v18 }
 0x32f   : > { %3021 = vst.msk [vmem:[#allocation4 + $0x78] sm:$0xf] %vm2990_vm9, %v2955_v52  ;;  %v10598_v52 = vpop.f32.mrf.mxu0  ;;  %v5024_v50 = vadd.f32 %v9861_v25, %v4019_v6 }
 0x330   : > { %v3987_v40 = vcombine.high %v3985_v47, %v3985_v47  ;;  %v9853_v41 = vrot.slane %v3985_v47, 9  ;;  %v3820_v24 = vadd.f32 %v10598_v52, %v12854_v19  ;;  %v5811_v14 = vrot.slane %v5680_v11, %v15526_v18  ;;  %10688 = vset.pattern.permute.xlu1 %v15523_v42 }
 0x331   : > { %v2953_v46 = vpop.permute.xlu0 %2952  ;;  %v10707_v20 = vld [vmem:[#allocation4 + $0x58] sm:$0xff]  }
 0x332   : > { %v3208_v34 = vpop.permute.xlu1 %3207  ;;  %3020 = vst.msk [vmem:[#allocation4 + $0x74] sm:$0xf] %vm2990_vm9, %v2953_v46  ;;  %10613 = vmatmul.mubr.msk.bf16.gmra.mxu0 %vm15373_vm12, %v10707_v20  ;;  %v5140_v46 = vadd.f32 %v5020_v17, %v5012_v15  ;;  %v4020_v20 = vcombine.high %v4012_v3, %v4012_v3  ;;  %v5016_v51 = vadd.f32 %v9853_v41, %v3985_v47 }
 0x333   : > { %3276 = vst.msk [vmem:[#allocation4 + $0x70] sm:$0xf] %vm15375_vm10, %v3208_v34  ;;  %v5021_v34 = vadd.f32 %v9858_v57, %v4004_v43  ;;  %v12916_v56 = vrot.slane %v3820_v24, %v12860_v54 }
 0x334   : > { %v12880_v55 = vmul.f32 0.25, %v5140_v46 }
 0x335   : > { %v2957_v21 = vpop.permute.xlu0 %2956  ;;  %v5141_v12 = vadd.f32 %v5021_v34, %v5013_v33  ;;  %v4056_v33 = vcombine.high %v3820_v24, %v3820_v24 }
 0x336   : > { %v3212_v0 = vpop.permute.xlu1 %3211  ;;  %3022 = vst.msk [vmem:[#allocation4 + $0x7c] sm:$0xf] %vm2990_vm9, %v2957_v21  ;;  %v12876_v21 = vmul.f32 0.25, %v5139_v7  ;;  %v5682_v29 = vmul.f32 %v12880_v55, %v12880_v55  ;;  %v5343_v35 = vrot.slane %v12880_v55, %v15526_v18  ;;  %v5144_v7 = vadd.f32 %v5024_v50, %v5016_v51 }
 0x337   : > { %3278 = vst.msk [vmem:[#allocation4 + $0x78] sm:$0xf] %vm15375_vm10, %v3212_v0  ;;  %v3986_v0 = vcombine.high %v3978_v16, %v3978_v16  ;;  %v12888_v37 = vmul.f32 0.25, %v5141_v12  ;;  %v9871_v50 = vrot.slane %v12916_v56, 9 }
 0x338   : > { %v5819_v26 = vrot.slane %v5682_v29, %v15526_v18  ;;  %v12941_v12 = vmul.f32 0.25, %v5144_v7 }
 0x339   : > { %v3210_v9 = vpop.permute.xlu0 %3209  ;;  %v9852_v63 = vrot.slane %v3986_v0, 9  ;;  %v5683_v13 = vmul.f32 %v12888_v37, %v12888_v37  ;;  %v5347_v47 = vrot.slane %v12888_v37, %v15526_v18 }
 0x33a   : > { %v3497_v38 = vpop.permute.xlu1 %3496  ;;  %3277 = vst.msk [vmem:[#allocation4 + $0x74] sm:$0xf] %vm15375_vm10, %v3210_v9  ;;  %v9851_v9 = vrot.slane %v3978_v16, 9 }
 0x33b   : > { %3565 = vst.msk [vmem:[#allocation4 + $0x70] sm:$0xf] %vm15374_vm11, %v3497_v38  ;;  %v4021_v38 = vcombine.high %v4019_v6, %v4019_v6  ;;  %v5015_v8 = vadd.f32 %v9852_v63, %v3986_v0  ;;  %v5823_v52 = vrot.slane %v5683_v13, %v15526_v18  ;;  %v4071_v0 = vcombine.high %v12916_v56, %v12916_v56 }
 0x33c   : > { %v5014_v2 = vadd.f32 %v9851_v9, %v3978_v16  ;;  %v12923_v16 = vld [vmem:[%s15322_s6 + $0x30] sm:$0xff] }
 0x33d   : > { %v3214_v10 = vpop.permute.xlu0 %3213  ;;  %v9862_v45 = vrot.slane %v4021_v38, 9  ;;  %6926 = vperm.xlu0 %10685, %v12923_v16   ;;  %v9872_v62 = vrot.slane %v4071_v0, 9  ;;  %7079 = vperm.xlu1 %10688, %v12923_v16  }
 0x33e   : > { %v3501_v30 = vpop.permute.xlu1 %3500  ;;  %3279 = vst.msk [vmem:[#allocation4 + $0x7c] sm:$0xf] %vm15375_vm10, %v3214_v10  ;;  %v3811_v10 = vpop.f32.mrf.mxu0  ;;  %vm5600_vm10 = vcmask 1047559  }
 0x33f   : > { %3567 = vst.msk [vmem:[#allocation4 + $0x78] sm:$0xf] %vm15374_vm11, %v3501_v30  ;;  %v9860_v30 = vrot.slane %v4020_v20, 9  ;;  %v3812_v27 = vadd.f32 %v12854_v19, %v3811_v10  ;;  %v5025_v32 = vadd.f32 %v9862_v45, %v4021_v38  ;;  %v5359_v45 = vrot.slane %v12941_v12, %v15526_v18 }
 0x340   : > { %v10599_v6 = vpop.f32.mrf.mxu0  ;;  %v5035_v39 = vadd.f32 %v9872_v62, %v4071_v0 }
 0x341   : > { %v3499_v59 = vpop.permute.xlu0 %3498  ;;  %v5023_v36 = vadd.f32 %v9860_v30, %v4020_v20  ;;  %v12907_v60 = vrot.slane %v3812_v27, %v12860_v54  ;;  %v4022_v15 = vcombine.high %v3812_v27, %v3812_v27  ;;  %10690 = vset.pattern.permute.xlu0 %v15523_v42  ;;  %v3823_v27 = vadd.f32 %v10599_v6, %v12854_v19  ;;  %v6885_v42 = vld [vmem:[%s15322_s6 + $0x38] sm:$0xff] }
 0x342   : > { %3566 = vst.msk [vmem:[#allocation4 + $0x74] sm:$0xf] %vm15374_vm11, %v3499_v59  ;;  %v5681_v59 = vmul.f32 %v12876_v21, %v12876_v21  ;;  %v3814_v30 = vpop.f32.mrf.mxu0  ;;  %7083 = vperm.xlu1 %10688, %v6885_v42  }
 0x343   : > { %v5143_v28 = vadd.f32 %v5023_v36, %v5015_v8  ;;  %v4037_v31 = vcombine.high %v12907_v60, %v12907_v60  ;;  %v3815_v48 = vadd.f32 %v12854_v19, %v3814_v30  ;;  %v4073_v13 = vcombine.high %v3823_v27, %v3823_v27 }
 0x344   : > { %v5815_v23 = vrot.slane %v5681_v59, %v15526_v18 }
 0x345   : > { %v3503_v22 = vpop.permute.xlu0 %3502  ;;  %v12939_v9 = vmul.f32 0.25, %v5143_v28  ;;  %v9864_v10 = vrot.slane %v4037_v31, 9  ;;  %v10602_v28 = vpop.f32.mrf.mxu0 }
 0x346   : > { %3568 = vst.msk [vmem:[#allocation4 + $0x7c] sm:$0xf] %vm15374_vm11, %v3503_v22  ;;  %v5022_v22 = vadd.f32 %v9859_v49, %v4012_v3  ;;  %v6064_v57 = vsel %vm5588_vm13, %v5815_v23, %v5811_v14  ;;  %v4036_v49 = vrot.slane %v4022_v15, %v12860_v54  ;;  %vm5598_vm11 = vcmask 1046534   ;;  %10689 = vset.pattern.permute.xlu1 %v15522_v4 }
 0x347   : > { %v6065_v34 = vsel %vm5590_vm14, %v5819_v26, %v6064_v57  ;;  %v5355_v11 = vrot.slane %v12939_v9, %v15526_v18  ;;  %v5027_v24 = vadd.f32 %v9864_v10, %v4037_v31  ;;  %v5686_v23 = vmul.f32 %v12941_v12, %v12941_v12  ;;  %6931 = vperm.xlu1 %10689, %v6885_v42  }
 0x348   : > { %v5142_v43 = vadd.f32 %v5022_v22, %v5014_v2  ;;  %v6066_v41 = vsel %vm5592_vm15, %v5823_v52, %v6065_v34  ;;  %v4038_v22 = vcombine.high %v4036_v49, %v4036_v49  ;;  %v9863_v2 = vrot.slane %v12907_v60, 9 }
 0x349   : > { %v10708_v1 = vld [vmem:[#allocation4 + $0x70] sm:$0xff]   ;;  %v5034_v15 = vadd.f32 %v9871_v50, %v12916_v56  ;;  %v4080_v57 = vrot.slane %v3823_v27, %v12860_v54  ;;  %v4046_v31 = vrot.slane %v3815_v48, %v12860_v54  ;;  %v4087_v52 = vrot.slane %v4073_v13, %v12860_v54 }
 0x34a   : > { %10620 = vmatprep.mubr.msk.bf16.mxu1 %vm15373_vm12, %v10708_v1  ;;  %v9854_v1 = vrot.slane %v3987_v40, 9  ;;  %v12925_v17 = vmul.f32 0.25, %v5142_v43  ;;  %v5026_v43 = vadd.f32 %v9863_v2, %v12907_v60  ;;  %v5835_v34 = vrot.slane %v5686_v23, %v15526_v18 }
 0x34b   : > { %v4089_v2 = vcombine.high %v4087_v52, %v4087_v52  ;;  %v3836_v23 = vadd.f32 %v10602_v28, %v12854_v19 }
 0x34c   : > { %v5017_v61 = vadd.f32 %v9854_v1, %v3987_v40  ;;  %v5351_v38 = vrot.slane %v12925_v17, %v15526_v18  ;;  %v4070_v40 = vrot.slane %v4056_v33, %v12860_v54  ;;  %v5684_v63 = vmul.f32 %v12925_v17, %v12925_v17 }
 0x34d   : > { %v10709_v44 = vld [vmem:[#allocation4 + $0x78] sm:$0xff]   ;;  %v9865_v1 = vrot.slane %v4036_v49, 9  ;;  %v5146_v5 = vadd.f32 %v5034_v15, %v5026_v43 }
 0x34e   : > { %10621 = vmatmul.mubr.msk.bf16.gmra.mxu1 %vm15373_vm12, %v10709_v44  ;;  %v5339_v44 = vrot.slane %v12876_v21, %v15526_v18  ;;  %v5145_v46 = vadd.f32 %v5025_v32, %v5017_v61  ;;  %vm5596_vm12 = vcmask 1045509   ;;  %v4072_v36 = vcombine.high %v4070_v40, %v4070_v40 }
 0x34f   : > { %v5827_v8 = vrot.slane %v5684_v63, %v15526_v18  ;;  %v9873_v51 = vrot.slane %v4070_v40, 9  ;;  %v5028_v61 = vadd.f32 %v9865_v1, %v4036_v49  ;;  %v4054_v63 = vcombine.high %v4046_v31, %v4046_v31 }
 0x350   : > { %v5589_v3 = vsel %vm5588_vm13, %v5339_v44, %v5335_v53  ;;  %v12947_v25 = vmul.f32 0.25, %v5145_v46  ;;  %v5685_v44 = vmul.f32 %v12939_v9, %v12939_v9  ;;  %v9866_v53 = vrot.slane %v4038_v22, 9 }
 0x351   : > { %v5591_v20 = vsel %vm5590_vm14, %v5343_v35, %v5589_v3  ;;  %v4039_v35 = vcombine.high %v3815_v48, %v3815_v48  ;;  %v9874_v26 = vrot.slane %v4072_v36, 9  ;;  %v5147_v3 = vadd.f32 %v5035_v39, %v5027_v24 }
 0x352   : > { %v5593_v59 = vsel %vm5592_vm15, %v5347_v47, %v5591_v20  ;;  %v5363_v14 = vrot.slane %v12947_v25, %v15526_v18  ;;  %v12978_v60 = vmul.f32 %v12947_v25, %v12947_v25  ;;  %v5831_v7 = vrot.slane %v5685_v44, %v15526_v18 }
 0x353   : > { %v5595_v29 = vsel %vm5594_vm1, %v5351_v38, %v5593_v59  ;;  %v5036_v33 = vadd.f32 %v9873_v51, %v4070_v40  ;;  %v6067_v6 = vsel %vm5594_vm1, %v5827_v8, %v6066_v41  ;;  %v5029_v47 = vadd.f32 %v9866_v53, %v4038_v22  ;;  %v3827_v40 = vpop.f32.mrf.mxu0 }
 0x354   : > { %v5597_v32 = vsel %vm5596_vm12, %v5355_v11, %v5595_v29  ;;  %v4053_v20 = vrot.slane %v4039_v35, %v12860_v54  ;;  %v5037_v0 = vadd.f32 %v9874_v26, %v4072_v36  ;;  %v12988_v49 = vmul.f32 0.25, %v5147_v3 }
 0x355   : > { %v5599_v56 = vsel %vm5598_vm11, %v5359_v45, %v5597_v32  ;;  %v5148_v46 = vadd.f32 %v5036_v33, %v5028_v61  ;;  %v4088_v38 = vcombine.high %v4080_v57, %v4080_v57  ;;  %v5839_v10 = vrot.slane %v12978_v60, %v15526_v18  ;;  %v10603_v33 = vpop.f32.mrf.mxu0 }
 0x356   : > { %v6068_v30 = vsel %vm5596_vm12, %v5831_v7, %v6067_v6  ;;  %v9875_v59 = vrot.slane %v4080_v57, 9  ;;  %v5601_v41 = vsel %vm5600_vm10, %v5363_v14, %v5599_v56  ;;  %v5149_v62 = vadd.f32 %v5037_v0, %v5029_v47 }
 0x357   : > { %v12998_v22 = vmul.f32 0.25, %v5146_v5  ;;  %v13000_v27 = vmul.f32 0.25, %v5148_v46  ;;  %v4055_v16 = vcombine.high %v4053_v20, %v4053_v20  ;;  %v9867_v11 = vrot.slane %v4046_v31, 9  ;;  %v3830_v42 = vpop.f32.mrf.mxu0 }
 0x358   : > { %v3828_v45 = vadd.f32 %v12854_v19, %v3827_v40  ;;  %v6069_v1 = vsel %vm5598_vm11, %v5835_v34, %v6068_v30  ;;  %v5689_v48 = vmul.f32 %v12988_v49, %v12988_v49  ;;  %v9876_v29 = vrot.slane %v4088_v38, 9 }
 0x359   : > { %v9877_v36 = vrot.slane %v4087_v52, 9  ;;  %v5038_v50 = vadd.f32 %v9875_v59, %v4080_v57  ;;  %v9868_v24 = vrot.slane %v4054_v63, 9  ;;  %v9869_v44 = vrot.slane %v4053_v20, 9 }
 0x35a   : > { %v13007_v8 = vmul.f32 0.25, %v5149_v62  ;;  %v5371_v51 = vrot.slane %v12988_v49, %v15526_v18  ;;  %v5688_v39 = vmul.f32 %v12998_v22, %v12998_v22  ;;  %v9878_v53 = vrot.slane %v4089_v2, 9 }
 0x35b   : > { %v5690_v43 = vmul.f32 %v13000_v27, %v13000_v27  ;;  %v9870_v13 = vrot.slane %v4055_v16, 9  ;;  %v5030_v14 = vadd.f32 %v9867_v11, %v4046_v31  ;;  %v4097_v32 = vrot.slane %v3828_v45, %v12860_v54 }
 0x35c   : > { %v5367_v61 = vrot.slane %v12998_v22, %v15526_v18  ;;  %v5847_v35 = vrot.slane %v5689_v48, %v15526_v18  ;;  %v5039_v26 = vadd.f32 %v9876_v29, %v4088_v38  ;;  %v5040_v15 = vadd.f32 %v9877_v36, %v4087_v52 }
 0x35d   : > { %v5375_v3 = vrot.slane %v13000_v27, %v15526_v18  ;;  %v5031_v57 = vadd.f32 %v9868_v24, %v4054_v63  ;;  %v5032_v28 = vadd.f32 %v9869_v44, %v4053_v20  ;;  %v4131_v7 = vrot.slane %v3836_v23, %v12860_v54 }
 0x35e   : > { %v5602_v31 = vsel %vm5588_vm13, %v5371_v51, %v5367_v61  ;;  %v5691_v6 = vmul.f32 %v13007_v8, %v13007_v8  ;;  %v5843_v47 = vrot.slane %v5688_v39, %v15526_v18  ;;  %v4090_v5 = vcombine.high %v3828_v45, %v3828_v45 }
 0x35f   : > { %v5851_v52 = vrot.slane %v5690_v43, %v15526_v18  ;;  %v5033_v4 = vadd.f32 %v9870_v13, %v4055_v16  ;;  %v5150_v56 = vadd.f32 %v5038_v50, %v5030_v14  ;;  %v4105_v46 = vcombine.high %v4097_v32, %v4097_v32 }
 0x360   : > { %v5379_v20 = vrot.slane %v13007_v8, %v15526_v18  ;;  %v6071_v34 = vsel %vm5588_vm13, %v5847_v35, %v5843_v47  ;;  %v5041_v0 = vadd.f32 %v9878_v53, %v4089_v2  ;;  %v4124_v38 = vcombine.high %v3836_v23, %v3836_v23 }
 0x361   : > { %v5603_v40 = vsel %vm5590_vm14, %v5375_v3, %v5602_v31  ;;  %v5151_v30 = vadd.f32 %v5039_v26, %v5031_v57  ;;  %v5152_v59 = vadd.f32 %v5040_v15, %v5032_v28  ;;  %v4139_v63 = vcombine.high %v4131_v7, %v4131_v7 }
 0x362   : > { %v13033_v62 = vsel %vm449_vm0, %v5601_v41, 0.0  ;;  %v5855_v16 = vrot.slane %v5691_v6, %v15526_v18  ;;  %v4104_v11 = vrot.slane %v4090_v5, %v12860_v54  ;;  %v6072_v45 = vsel %vm5590_vm14, %v5851_v52, %v6071_v34 }
 0x363   : > { %v5153_v48 = vadd.f32 %v5041_v0, %v5033_v4  ;;  %v13038_v29 = vmul.f32 0.25, %v5150_v56  ;;  %v9880_v2 = vrot.slane %v4105_v46, 9  ;;  %v13044_v36 = vsel %vm5600_vm10, %v5839_v10, %v6069_v1 }
 0x364   : > { %v5604_v50 = vsel %vm5592_vm15, %v5379_v20, %v5603_v40  ;;  %v4138_v41 = vrot.slane %v4124_v38, %v12860_v54  ;;  %v3831_v24 = vadd.f32 %v12854_v19, %v3830_v42  ;;  %v13049_v44 = vmul.f32 0.25, %v5151_v30 }
 0x365   : > { %v13051_v23 = vmul.f32 0.25, %v5152_v59  ;;  %v9888_v51 = vrot.slane %v4139_v63, 9  ;;  %v9879_v39 = vrot.slane %v4097_v32, 9  ;;  %v13054_v53 = vsel %vm5592_vm15, %v5855_v16, %v6072_v45 }
 0x366   : > { %v4106_v43 = vcombine.high %v4104_v11, %v4104_v11  ;;  %v9881_v60 = vrot.slane %v4104_v11, 9  ;;  %v3839_v10 = vadd.f32 %v10603_v33, %v12854_v19  ;;  %v13057_v1 = vmul.f32 0.25, %v5153_v48  ;;  %v10606_v48 = vpop.f32.mrf.mxu0 }
 0x367   : > { %v5383_v13 = vrot.slane %v13038_v29, %v15526_v18  ;;  %v9887_v14 = vrot.slane %v4131_v7, 9  ;;  %v5043_v61 = vadd.f32 %v9880_v2, %v4105_v46  ;;  %v13063_v35 = vmul.f32 %v13038_v29, %v13038_v29 }
 0x368   : > { %v4140_v26 = vcombine.high %v4138_v41, %v4138_v41  ;;  %v9889_v15 = vrot.slane %v4138_v41, 9  ;;  %v4114_v3 = vrot.slane %v3831_v24, %v12860_v54  ;;  %v5387_v57 = vrot.slane %v13049_v44, %v15526_v18 }
 0x369   : > { %v5391_v28 = vrot.slane %v13051_v23, %v15526_v18  ;;  %v5051_v33 = vadd.f32 %v9888_v51, %v4139_v63  ;;  %v5042_v31 = vadd.f32 %v9879_v39, %v4097_v32  ;;  %v9882_v6 = vrot.slane %v4106_v43, 9 }
 0x36a   : > { %v5044_v47 = vadd.f32 %v9881_v60, %v4104_v11  ;;  %v4148_v5 = vrot.slane %v3839_v10, %v12860_v54  ;;  %v4107_v52 = vcombine.high %v3831_v24, %v3831_v24  ;;  %v13073_v4 = vmul.f32 %v13049_v44, %v13049_v44 }
 0x36b   : > { %v13077_v56 = vmul.f32 %v13051_v23, %v13051_v23  ;;  %v5050_v46 = vadd.f32 %v9887_v14, %v4131_v7  ;;  %v5155_v20 = vadd.f32 %v5051_v33, %v5043_v61  ;;  %v9890_v34 = vrot.slane %v4140_v26, 9 }
 0x36c   : > { %v5052_v0 = vadd.f32 %v9889_v15, %v4138_v41  ;;  %v4141_v38 = vcombine.high %v3839_v10, %v3839_v10  ;;  %v4122_v40 = vcombine.high %v4114_v3, %v4114_v3  ;;  %v5395_v32 = vrot.slane %v13057_v1, %v15526_v18 }
 0x36d   : > { %v5605_v30 = vsel %vm5594_vm1, %v5383_v13, %v5604_v50  ;;  %v5154_v59 = vadd.f32 %v5050_v46, %v5042_v31  ;;  %v9883_v63 = vrot.slane %v4114_v3, 9  ;;  %v5045_v42 = vadd.f32 %v9882_v6, %v4106_v43  ;;  %v3843_v31 = vpop.f32.mrf.mxu0 }
 0x36e   : > { %v5156_v16 = vadd.f32 %v5052_v0, %v5044_v47  ;;  %v4156_v11 = vcombine.high %v4148_v5, %v4148_v5  ;;  %v4121_v45 = vrot.slane %v4107_v52, %v12860_v54  ;;  %v13085_v7 = vmul.f32 %v13057_v1, %v13057_v1 }
 0x36f   : > { %v5859_v2 = vrot.slane %v13063_v35, %v15526_v18  ;;  %v13089_v41 = vmul.f32 0.25, %v5155_v20  ;;  %v9891_v24 = vrot.slane %v4148_v5, 9  ;;  %v5606_v50 = vsel %vm5596_vm12, %v5387_v57, %v5605_v30 }
 0x370   : > { %v5053_v51 = vadd.f32 %v9890_v34, %v4140_v26  ;;  %v4155_v39 = vrot.slane %v4141_v38, %v12860_v54  ;;  %v9884_v43 = vrot.slane %v4122_v40, 9  ;;  %v5863_v60 = vrot.slane %v13073_v4, %v15526_v18 }
 0x371   : > { %15527 = vst [vmem:[#allocation7_spill] sm:$0xff] %v13089_v41  ;;  %v5867_v10 = vrot.slane %v13077_v56, %v15526_v18  ;;  %v13097_v13 = vmul.f32 0.25, %v5154_v59  ;;  %v5046_v14 = vadd.f32 %v9883_v63, %v4114_v3  ;;  %v13099_v35 = vmul.f32 0.25, %v5156_v16 }
 0x372   : > { %v5157_v61 = vadd.f32 %v5053_v51, %v5045_v42  ;;  %v9892_v15 = vrot.slane %v4156_v11, 9  ;;  %v4123_v33 = vcombine.high %v4121_v45, %v4121_v45  ;;  %v5607_v26 = vsel %vm5598_vm11, %v5391_v28, %v5606_v50 }
 0x373   : > { %15528 = vst [vmem:[#allocation8_spill] sm:$0xff] %v13097_v13  ;;  %15529 = vst [vmem:[#allocation9_spill] sm:$0xff] %v13099_v35  ;;  %v5403_v57 = vrot.slane %v13089_v41, %v15526_v18  ;;  %v5054_v6 = vadd.f32 %v9891_v24, %v4148_v5  ;;  %v9885_v47 = vrot.slane %v4121_v45, 9  ;;  %v5697_v52 = vmul.f32 %v13089_v41, %v13089_v41 }
 0x374   : > { %v4157_v4 = vcombine.high %v4155_v39, %v4155_v39  ;;  %v9893_v46 = vrot.slane %v4155_v39, 9  ;;  %v5047_v20 = vadd.f32 %v9884_v43, %v4122_v40  ;;  %v5399_v3 = vrot.slane %v13097_v13, %v15526_v18 }
 0x375   : > { %v5696_v34 = vmul.f32 %v13097_v13, %v13097_v13  ;;  %v5158_v0 = vadd.f32 %v5054_v6, %v5046_v14  ;;  %v3844_v28 = vadd.f32 %v12854_v19, %v3843_v31  ;;  %v13111_v38 = vmul.f32 0.25, %v5157_v61 }
 0x376   : > { %v5407_v5 = vrot.slane %v13099_v35, %v15526_v18  ;;  %v5055_v30 = vadd.f32 %v9892_v15, %v4156_v11  ;;  %v9886_v59 = vrot.slane %v4123_v33, 9  ;;  %v5609_v63 = vsel %vm5588_vm13, %v5403_v57, %v5399_v3  ;;  %v10607_v3 = vpop.f32.mrf.mxu0 }
 0x377   : > { %15530 = vst [vmem:[#allocation24_spill] sm:$0xff] %v13111_v38  ;;  %v5698_v40 = vmul.f32 %v13099_v35, %v13099_v35  ;;  %v5048_v42 = vadd.f32 %v9885_v47, %v4121_v45  ;;  %v3852_v16 = vadd.f32 %v10606_v48, %v12854_v19  ;;  %v6074_v24 = vsel %vm5594_vm1, %v5859_v2, %v13054_v53 }
 0x378   : > { %v5879_v50 = vrot.slane %v5697_v52, %v15526_v18  ;;  %v9894_v51 = vrot.slane %v4157_v4, 9  ;;  %v5159_v43 = vadd.f32 %v5055_v30, %v5047_v20  ;;  %v5875_v14 = vrot.slane %v5696_v34, %v15526_v18 }
 0x379   : > { %v5056_v61 = vadd.f32 %v9893_v46, %v4155_v39  ;;  %v13123_v11 = vmul.f32 0.25, %v5158_v0  ;;  %v4165_v15 = vrot.slane %v3844_v28, %v12860_v54  ;;  %v5411_v31 = vrot.slane %v13111_v38, %v15526_v18 }
 0x37a   : > { %v5610_v45 = vsel %vm5590_vm14, %v5407_v5, %v5609_v63  ;;  %v5699_v48 = vmul.f32 %v13111_v38, %v13111_v38  ;;  %v5049_v53 = vadd.f32 %v9886_v59, %v4123_v33  ;;  %v5883_v2 = vrot.slane %v5698_v40, %v15526_v18 }
 0x37b   : > { %15531 = vst [vmem:[#allocation10_spill] sm:$0xff] %v13123_v11  ;;  %v5160_v57 = vadd.f32 %v5056_v61, %v5048_v42  ;;  %v4199_v6 = vrot.slane %v3852_v16, %v12860_v54  ;;  %v4158_v47 = vcombine.high %v3844_v28, %v3844_v28  ;;  %v5608_v39 = vsel %vm5600_vm10, %v5395_v32, %v5607_v26 }
 0x37c   : > { %v6078_v52 = vsel %vm5588_vm13, %v5879_v50, %v5875_v14  ;;  %v5057_v46 = vadd.f32 %v9894_v51, %v4157_v4  ;;  %v13138_v20 = vmul.f32 0.25, %v5159_v43  ;;  %v6075_v34 = vsel %vm5596_vm12, %v5863_v60, %v6074_v24  ;;  %v3846_v24 = vpop.f32.mrf.mxu0 }
 0x37d   : > { %v5415_v33 = vrot.slane %v13123_v11, %v15526_v18  ;;  %v4192_v0 = vcombine.high %v3852_v16, %v3852_v16  ;;  %v4173_v5 = vcombine.high %v4165_v15, %v4165_v15  ;;  %v13145_v28 = vsel %vm449_vm0, %v13044_v36, 0.0 }
 0x37e   : > { %15532 = vst [vmem:[#allocation25_spill] sm:$0xff] %v13138_v20  ;;  %v5887_v30 = vrot.slane %v5699_v48, %v15526_v18  ;;  %v5161_v32 = vadd.f32 %v5057_v46, %v5049_v53  ;;  %v5611_v26 = vsel %vm5592_vm15, %v5411_v31, %v5610_v45  ;;  %v6079_v4 = vsel %vm5590_vm14, %v5883_v2, %v6078_v52 }
 0x37f   : > { %v13150_v59 = vmul.f32 0.25, %v5160_v57  ;;  %v4207_v63 = vcombine.high %v4199_v6, %v4199_v6  ;;  %v4172_v60 = vrot.slane %v4158_v47, %v12860_v54  ;;  %v5660_v40 = vsel %vm449_vm0, %v5608_v39, 0.0 }
 0x380   : > { %v5871_v42 = vrot.slane %v13085_v7, %v15526_v18  ;;  %v6076_v36 = vsel %vm5598_vm11, %v5867_v10, %v6075_v34  ;;  %v5419_v16 = vrot.slane %v13138_v20, %v15526_v18  ;;  %v5612_v50 = vsel %vm5594_vm1, %v5415_v33, %v5611_v26 }
 0x381   : > { %15533 = vst [vmem:[#allocation11_spill] sm:$0xff] %v13150_v59  ;;  %v5700_v51 = vmul.f32 %v13123_v11, %v13123_v11  ;;  %v4206_v43 = vrot.slane %v4192_v0, %v12860_v54  ;;  %v9896_v14 = vrot.slane %v4173_v5, 9  ;;  %v13166_v61 = vmul.f32 0.25, %v5161_v32 }
 0x382   : > { %v5701_v7 = vmul.f32 %v13138_v20, %v13138_v20  ;;  %v6080_v56 = vsel %vm5592_vm15, %v5887_v30, %v6079_v4  ;;  %v9895_v10 = vrot.slane %v4165_v15, 9  ;;  %v5423_v31 = vrot.slane %v13150_v59, %v15526_v18 }
 0x383   : > { %15534 = vst [vmem:[#allocation12_spill] sm:$0xff] %v13166_v61  ;;  %v9904_v45 = vrot.slane %v4207_v63, 9  ;;  %v4174_v48 = vcombine.high %v4172_v60, %v4172_v60  ;;  %v3847_v53 = vadd.f32 %v12854_v19, %v3846_v24  ;;  %v5613_v2 = vsel %vm5596_vm12, %v5419_v16, %v5612_v50 }
 0x384   : > { %v9903_v57 = vrot.slane %v4199_v6, 9  ;;  %v9897_v47 = vrot.slane %v4172_v60, 9  ;;  %v3855_v39 = vadd.f32 %v10607_v3, %v12854_v19  ;;  %v5702_v52 = vmul.f32 %v13150_v59, %v13150_v59 }
 0x385   : > { %v5891_v46 = vrot.slane %v5700_v51, %v15526_v18  ;;  %v4208_v34 = vcombine.high %v4206_v43, %v4206_v43  ;;  %v5059_v33 = vadd.f32 %v9896_v14, %v4173_v5  ;;  %v5427_v0 = vrot.slane %v13166_v61, %v15526_v18 }
 0x386   : > { %v5895_v30 = vrot.slane %v5701_v7, %v15526_v18  ;;  %v9905_v32 = vrot.slane %v4206_v43, 9  ;;  %v5058_v26 = vadd.f32 %v9895_v10, %v4165_v15  ;;  %v5614_v4 = vsel %vm5598_vm11, %v5423_v31, %v5613_v2  ;;  %v10610_v31 = vpop.f32.mrf.mxu0 }
 0x387   : > { %v5067_v16 = vadd.f32 %v9904_v45, %v4207_v63  ;;  %v9898_v24 = vrot.slane %v4174_v48, 9  ;;  %v4175_v50 = vcombine.high %v3847_v53, %v3847_v53  ;;  %v5066_v3 = vadd.f32 %v9903_v57, %v4199_v6 }
 0x388   : > { %v5060_v20 = vadd.f32 %v9897_v47, %v4172_v60  ;;  %v4209_v11 = vcombine.high %v3855_v39, %v3855_v39  ;;  %v4182_v59 = vrot.slane %v3847_v53, %v12860_v54  ;;  %v6081_v51 = vsel %vm5594_vm1, %v5891_v46, %v6080_v56 }
 0x389   : > { %v9906_v5 = vrot.slane %v4208_v34, 9  ;;  %v5163_v14 = vadd.f32 %v5067_v16, %v5059_v33  ;;  %v4216_v38 = vrot.slane %v3855_v39, %v12860_v54  ;;  %v6077_v7 = vsel %vm5600_vm10, %v5871_v42, %v6076_v36 }
 0x38a   : > { %v13189_v15 = vmul.f32 %v13166_v61, %v13166_v61  ;;  %v5068_v63 = vadd.f32 %v9905_v32, %v4206_v43  ;;  %v5162_v10 = vadd.f32 %v5066_v3, %v5058_v26  ;;  %v5615_v6 = vsel %vm5600_vm10, %v5427_v0, %v5614_v4  ;;  %v3859_v0 = vpop.f32.mrf.mxu0 }
 0x38b   : > { %v5899_v60 = vrot.slane %v5702_v52, %v15526_v18  ;;  %v5061_v45 = vadd.f32 %v9898_v24, %v4174_v48  ;;  %v4189_v56 = vrot.slane %v4175_v50, %v12860_v54  ;;  %v6082_v53 = vsel %vm5596_vm12, %v5895_v30, %v6081_v51 }
 0x38c   : > { %v5164_v2 = vadd.f32 %v5068_v63, %v5060_v20  ;;  %v4223_v57 = vrot.slane %v4209_v11, %v12860_v54  ;;  %v4190_v42 = vcombine.high %v4182_v59, %v4182_v59  ;;  %v5069_v36 = vadd.f32 %v9906_v5, %v4208_v34 }
 0x38d   : > { %v13196_v47 = vmul.f32 0.25, %v5163_v14  ;;  %v4224_v39 = vcombine.high %v4216_v38, %v4216_v38  ;;  %v9899_v43 = vrot.slane %v4182_v59, 9  ;;  %v5661_v46 = vadd.f32 %v5660_v40, %v13033_v62 }
 0x38e   : > { %v6129_v33 = vsel %vm449_vm0, %v6077_v7, 0.0  ;;  %v5903_v48 = vrot.slane %v13189_v15, %v15526_v18  ;;  %v13202_v52 = vmul.f32 0.25, %v5162_v10  ;;  %v5662_v20 = vsel %vm449_vm0, %v5615_v6, 0.0 }
 0x38f   : > { %15535 = vst [vmem:[#allocation13_spill] sm:$0xff] %v13196_v47  ;;  %v5165_v30 = vadd.f32 %v5069_v36, %v5061_v45  ;;  %v9907_v11 = vrot.slane %v4216_v38, 9  ;;  %v4191_v32 = vcombine.high %v4189_v56, %v4189_v56  ;;  %v6083_v34 = vsel %vm5598_vm11, %v5899_v60, %v6082_v53 }
 0x390   : > { %15536 = vst [vmem:[#allocation14_spill] sm:$0xff] %v13202_v52  ;;  %v13206_v26 = vmul.f32 0.25, %v5164_v2  ;;  %v4225_v4 = vcombine.high %v4223_v57, %v4223_v57  ;;  %v9900_v16 = vrot.slane %v4190_v42, 9  ;;  %v5705_v62 = vmul.f32 %v13196_v47, %v13196_v47 }
 0x391   : > { %v9908_v40 = vrot.slane %v4224_v39, 9  ;;  %v5062_v24 = vadd.f32 %v9899_v43, %v4182_v59  ;;  %v3860_v50 = vadd.f32 %v12854_v19, %v3859_v0  ;;  %v5435_v3 = vrot.slane %v13196_v47, %v15526_v18 }
 0x392   : > { %15537 = vst [vmem:[#allocation15_spill] sm:$0xff] %v13206_v26  ;;  %v5704_v51 = vmul.f32 %v13202_v52, %v13202_v52  ;;  %v9909_v5 = vrot.slane %v4223_v57, 9  ;;  %v9901_v14 = vrot.slane %v4189_v56, 9  ;;  %v13215_v7 = vmul.f32 0.25, %v5165_v30 }
 0x393   : > { %v5070_v15 = vadd.f32 %v9907_v11, %v4216_v38  ;;  %v9902_v63 = vrot.slane %v4191_v32, 9  ;;  %v3868_v10 = vadd.f32 %v10610_v31, %v12854_v19  ;;  %v5431_v6 = vrot.slane %v13202_v52, %v15526_v18 }
 0x394   : > { %15538 = vst [vmem:[#allocation16_spill] sm:$0xff] %v13215_v7  ;;  %v5706_v59 = vmul.f32 %v13206_v26, %v13206_v26  ;;  %v9910_v60 = vrot.slane %v4225_v4, 9  ;;  %v5063_v45 = vadd.f32 %v9900_v16, %v4190_v42  ;;  %v5911_v53 = vrot.slane %v5705_v62, %v15526_v18 }
 0x395   : > { %v5071_v2 = vadd.f32 %v9908_v40, %v4224_v39  ;;  %v5166_v36 = vadd.f32 %v5070_v15, %v5062_v24  ;;  %v4233_v43 = vrot.slane %v3860_v50, %v12860_v54  ;;  %v5439_v38 = vrot.slane %v13206_v26, %v15526_v18 }
 0x396   : > { %v5616_v0 = vsel %vm5588_vm13, %v5435_v3, %v5431_v6  ;;  %v5907_v31 = vrot.slane %v5704_v51, %v15526_v18  ;;  %v5064_v30 = vadd.f32 %v9901_v14, %v4189_v56  ;;  %v5707_v11 = vmul.f32 %v13215_v7, %v13215_v7 }
 0x397   : > { %v5065_v47 = vadd.f32 %v9902_v63, %v4191_v32  ;;  %v4267_v42 = vrot.slane %v3868_v10, %v12860_v54  ;;  %v4226_v16 = vcombine.high %v3860_v50, %v3860_v50  ;;  %v5915_v39 = vrot.slane %v5706_v59, %v15526_v18  ;;  %v10611_v50 = vpop.f32.mrf.mxu0 }
 0x398   : > { %v5072_v62 = vadd.f32 %v9909_v5, %v4223_v57  ;;  %v5073_v40 = vadd.f32 %v9910_v60, %v4225_v4  ;;  %v5167_v24 = vadd.f32 %v5071_v2, %v5063_v45  ;;  %v6085_v15 = vsel %vm5588_vm13, %v5911_v53, %v5907_v31 }
 0x399   : > { %v13233_v26 = vmul.f32 0.25, %v5166_v36  ;;  %v4260_v3 = vcombine.high %v3868_v10, %v3868_v10  ;;  %v4241_v6 = vcombine.high %v4233_v43, %v4233_v43  ;;  %v6084_v56 = vsel %vm5600_vm10, %v5903_v48, %v6083_v34 }
 0x39a   : > { %v5443_v51 = vrot.slane %v13215_v7, %v15526_v18  ;;  %v5617_v32 = vsel %vm5590_vm14, %v5439_v38, %v5616_v0  ;;  %v5168_v14 = vadd.f32 %v5072_v62, %v5064_v30  ;;  %v5919_v63 = vrot.slane %v5707_v11, %v15526_v18 }
 0x39b   : > { %15539 = vst [vmem:[#allocation17_spill] sm:$0xff] %v13233_v26  ;;  %v5169_v57 = vadd.f32 %v5073_v40, %v5065_v47  ;;  %v4275_v4 = vcombine.high %v4267_v42, %v4267_v42  ;;  %v4240_v5 = vrot.slane %v4226_v16, %v12860_v54  ;;  %v6130_v59 = vadd.f32 %v6129_v33, %v13145_v28  ;;  %v3862_v28 = vpop.f32.mrf.mxu0 }
 0x39c   : > { %v6086_v10 = vsel %vm5590_vm14, %v5915_v39, %v6085_v15  ;;  %v13243_v60 = vmul.f32 0.25, %v5167_v24  ;;  %v13245_v48 = vadd.f32 %v5662_v20, %v5661_v46  ;;  %v5447_v34 = vrot.slane %v13233_v26, %v15526_v18  ;;  %v13264_v24 = vld [vmem:[%s15318_s2] ss:$0 sm:$0xff] }
 0x39d   : > { %v4274_v45 = vrot.slane %v4260_v3, %v12860_v54  ;;  %v9912_v53 = vrot.slane %v4241_v6, 9  ;;  %v6131_v2 = vsel %vm449_vm0, %v6084_v56, 0.0  ;;  %v13251_v47 = vmul.f32 0.25, %v5168_v14 }
 0x39e   : > { %15540 = vst [vmem:[#allocation19_spill] sm:$0xff] %v13243_v60  ;;  %v5618_v36 = vsel %vm5592_vm15, %v5443_v51, %v5617_v32  ;;  %v9911_v38 = vrot.slane %v4233_v43, 9  ;;  %v13254_v33 = vmul.f32 0.25, %v5169_v57  ;;  %v6087_v0 = vsel %vm5592_vm15, %v5919_v63, %v6086_v10 }
 0x39f   : > { %15541 = vst [vmem:[#allocation18_spill] sm:$0xff] %v13251_v47  ;;  %v9920_v46 = vrot.slane %v4275_v4, 9  ;;  %v4242_v20 = vcombine.high %v4240_v5, %v4240_v5  ;;  %v5451_v31 = vrot.slane %v13243_v60, %v15526_v18  ;;  %v9919_v30 = vrot.slane %v4267_v42, 9 }
 0x3a0   : > { %15542 = vst [vmem:[#allocation20_spill] sm:$0xff] %v13254_v33  ;;  %v9913_v11 = vrot.slane %v4240_v5, 9  ;;  %v3871_v16 = vadd.f32 %v10611_v50, %v12854_v19  ;;  %v5619_v39 = vsel %vm5594_vm1, %v5447_v34, %v5618_v36  ;;  %v4276_v62 = vcombine.high %v4274_v45, %v4274_v45 }
 0x3a1   : > { %v5075_v40 = vadd.f32 %v9912_v53, %v4241_v6  ;;  %v3863_v15 = vadd.f32 %v13264_v24, %v3862_v28  ;;  %v5455_v3 = vrot.slane %v13251_v47, %v15526_v18  ;;  %v5708_v56 = vmul.f32 %v13233_v26, %v13233_v26 }
 0x3a2   : > { %v9921_v51 = vrot.slane %v4274_v45, 9  ;;  %v5074_v32 = vadd.f32 %v9911_v38, %v4233_v43  ;;  %v5709_v19 = vmul.f32 %v13243_v60, %v13243_v60  ;;  %v13275_v6 = vmul.f32 %v13251_v47, %v13251_v47 }
 0x3a3   : > { %v5083_v14 = vadd.f32 %v9920_v46, %v4275_v4  ;;  %v9914_v50 = vrot.slane %v4242_v20, 9  ;;  %v5620_v63 = vsel %vm5596_vm12, %v5451_v31, %v5619_v39  ;;  %v5082_v57 = vadd.f32 %v9919_v30, %v4267_v42 }
 0x3a4   : > { %v5076_v10 = vadd.f32 %v9913_v11, %v4240_v5  ;;  %v4284_v34 = vrot.slane %v3871_v16, %v12860_v54  ;;  %v5459_v53 = vrot.slane %v13254_v33, %v15526_v18  ;;  %v9922_v36 = vrot.slane %v4276_v62, 9 }
 0x3a5   : > { %v5171_v43 = vadd.f32 %v5083_v14, %v5075_v40  ;;  %v4250_v38 = vrot.slane %v3863_v15, %v12860_v54  ;;  %v5923_v60 = vrot.slane %v5708_v56, %v15526_v18  ;;  %v5084_v47 = vadd.f32 %v9921_v51, %v4274_v45 }
 0x3a6   : > { %v5170_v26 = vadd.f32 %v5082_v57, %v5074_v32  ;;  %v4277_v4 = vcombine.high %v3871_v16, %v3871_v16  ;;  %v5621_v46 = vsel %vm5598_vm11, %v5455_v3, %v5620_v63  ;;  %v13286_v42 = vmul.f32 %v13254_v33, %v13254_v33 }
 0x3a7   : > { %v5077_v5 = vadd.f32 %v9914_v50, %v4242_v20  ;;  %v4243_v31 = vcombine.high %v3863_v15, %v3863_v15  ;;  %v13288_v30 = vadd.f32 %v6131_v2, %v6130_v59  ;;  %v5927_v11 = vrot.slane %v5709_v19, %v15526_v18 }
 0x3a8   : > { %v5172_v39 = vadd.f32 %v5084_v47, %v5076_v10  ;;  %v4292_v40 = vcombine.high %v4284_v34, %v4284_v34  ;;  %v5931_v56 = vrot.slane %v13275_v6, %v15526_v18  ;;  %v5085_v45 = vadd.f32 %v9922_v36, %v4276_v62 }
 0x3a9   : > { %v13293_v51 = vmul.f32 0.25, %v5171_v43  ;;  %v4258_v16 = vcombine.high %v4250_v38, %v4250_v38  ;;  %v5622_v32 = vsel %vm5600_vm10, %v5459_v53, %v5621_v46  ;;  %v6088_v14 = vsel %vm5594_vm1, %v5923_v60, %v6087_v0 }
 0x3aa   : > { %v13297_v20 = vmul.f32 0.25, %v5170_v26  ;;  %v4291_v59 = vrot.slane %v4277_v4, %v12860_v54  ;;  %v5173_v47 = vadd.f32 %v5085_v45, %v5077_v5  ;;  %v4257_v15 = vrot.slane %v4243_v31, %v12860_v54 }
 0x3ab   : > { %15543 = vst [vmem:[#allocation21_spill] sm:$0xff] %v13293_v51  ;;  %v9915_v19 = vrot.slane %v4250_v38, 9  ;;  %v13303_v62 = vmul.f32 0.25, %v5172_v39  ;;  %v9923_v6 = vrot.slane %v4284_v34, 9  ;;  %v9924_v50 = vrot.slane %v4292_v40, 9 }
 0x3ac   : > { %15544 = vst [vmem:[#allocation22_spill] sm:$0xff] %v13297_v20  ;;  %v5664_v57 = vsel %vm449_vm0, %v5622_v32, 0.0  ;;  %v6089_v26 = vsel %vm5596_vm12, %v5927_v11, %v6088_v14  ;;  %v5713_v60 = vmul.f32 %v13293_v51, %v13293_v51  ;;  %v9916_v0 = vrot.slane %v4258_v16, 9 }
 0x3ad   : > { %15545 = vst [vmem:[#allocation5_spill] sm:$0xff] %v13303_v62  ;;  %v5712_v10 = vmul.f32 %v13297_v20, %v13297_v20  ;;  %v4293_v53 = vcombine.high %v4291_v59, %v4291_v59  ;;  %v9925_v36 = vrot.slane %v4291_v59, 9  ;;  %v13313_v4 = vmul.f32 0.25, %v5173_v47 }
 0x3ae   : > { %v5467_v46 = vrot.slane %v13293_v51, %v15526_v18  ;;  %v4259_v5 = vcombine.high %v4257_v15, %v4257_v15  ;;  %v5078_v31 = vadd.f32 %v9915_v19, %v4250_v38  ;;  %v5714_v11 = vmul.f32 %v13303_v62, %v13303_v62 }
 0x3af   : > { %15546 = vst [vmem:[#allocation6_spill] sm:$0xff] %v13313_v4  ;;  %v5086_v39 = vadd.f32 %v9923_v6, %v4284_v34  ;;  %v5087_v45 = vadd.f32 %v9924_v50, %v4292_v40  ;;  %v5463_v32 = vrot.slane %v13297_v20, %v15526_v18  ;;  %v5943_v14 = vrot.slane %v5713_v60, %v15526_v18 }
 0x3b0   : > { %v5079_v47 = vadd.f32 %v9916_v0, %v4258_v16  ;;  %v5471_v2 = vrot.slane %v13303_v62, %v15526_v18  ;;  %v5939_v51 = vrot.slane %v5712_v10, %v15526_v18  ;;  %v5715_v40 = vmul.f32 %v13313_v4, %v13313_v4 }
 0x3b1   : > { %v5623_v34 = vsel %vm5588_vm13, %v5467_v46, %v5463_v32  ;;  %v9918_v6 = vrot.slane %v4259_v5, 9  ;;  %v5174_v50 = vadd.f32 %v5086_v39, %v5078_v31  ;;  %v5947_v60 = vrot.slane %v5714_v11, %v15526_v18 }
 0x3b2   : > { %v9926_v33 = vrot.slane %v4293_v53, 9  ;;  %v5475_v62 = vrot.slane %v13313_v4, %v15526_v18  ;;  %v6092_v10 = vsel %vm5588_vm13, %v5943_v14, %v5939_v51  ;;  %v6090_v46 = vsel %vm5598_vm11, %v5931_v56, %v6089_v26 }
 0x3b3   : > { %v5624_v32 = vsel %vm5590_vm14, %v5471_v2, %v5623_v34  ;;  %v5951_v39 = vrot.slane %v5715_v40, %v15526_v18  ;;  %v5088_v11 = vadd.f32 %v9925_v36, %v4291_v59  ;;  %v5081_v61 = vadd.f32 %v9918_v6, %v4259_v5 }
 0x3b4   : > { %v13341_v4 = vadd.f32 %v5664_v57, %v13245_v48  ;;  %v6093_v51 = vsel %vm5590_vm14, %v5947_v60, %v6092_v10  ;;  %v5089_v26 = vadd.f32 %v9926_v33, %v4293_v53  ;;  %v5625_v14 = vsel %vm5592_vm15, %v5475_v62, %v5624_v32 }
 0x3b5   : > { %v6094_v57 = vsel %vm5592_vm15, %v5951_v39, %v6093_v51 }
 0x3b6   : > { %v10618_v28 = vpop.f32.mrf.mxu1 }
 0x3b7   : > { %v3900_v43 = vadd.f32 %v13264_v24, %v10618_v28  ;;  %v9917_v28 = vrot.slane %v4257_v15, 9 }
 0x3b8   : > { %v3891_v3 = vpop.f32.mrf.mxu1 }
 0x3b9   : > { %v3892_v63 = vadd.f32 %v13264_v24, %v3891_v3  ;;  %v4403_v38 = vrot.slane %v3900_v43, %v12860_v54  ;;  %v4396_v16 = vcombine.high %v3900_v43, %v3900_v43  ;;  %v5080_v7 = vadd.f32 %v9917_v28, %v4257_v15 }
 0x3ba   : > { %v10619_v20 = vpop.f32.mrf.mxu1  ;;  %v13338_v43 = vmul.f32 0.25, %v5174_v50 }
 0x3bb   : > { %v4369_v3 = vrot.slane %v3892_v63, %v12860_v54  ;;  %v4362_v19 = vcombine.high %v3892_v63, %v3892_v63  ;;  %v5175_v63 = vadd.f32 %v5087_v45, %v5079_v47  ;;  %v4411_v52 = vcombine.high %v4403_v38, %v4403_v38 }
 0x3bc   : > { %15547 = vst [vmem:[#allocation26_spill] sm:$0xff] %v13338_v43  ;;  %v3894_v35 = vpop.f32.mrf.mxu1  ;;  %v4410_v15 = vrot.slane %v4396_v16, %v12860_v54  ;;  %v5176_v2 = vadd.f32 %v5088_v11, %v5080_v7  ;;  %v5177_v47 = vadd.f32 %v5089_v26, %v5081_v61  ;;  %v5716_v48 = vmul.f32 %v13338_v43, %v13338_v43 }
 0x3bd   : > { %v4377_v0 = vcombine.high %v4369_v3, %v4369_v3  ;;  %v4376_v31 = vrot.slane %v4362_v19, %v12860_v54  ;;  %v13345_v45 = vmul.f32 0.25, %v5175_v63  ;;  %v9952_v28 = vrot.slane %v4411_v52, 9 }
 0x3be   : > { %v9943_v36 = vrot.slane %v4369_v3, 9  ;;  %v3895_v5 = vadd.f32 %v13264_v24, %v3894_v35  ;;  %v4412_v34 = vcombine.high %v4410_v15, %v4410_v15  ;;  %v9951_v40 = vrot.slane %v4403_v38, 9 }
 0x3bf   : > { %v9944_v56 = vrot.slane %v4377_v0, 9  ;;  %15548 = vst [vmem:[#allocation27_spill] sm:$0xff] %v13345_v45  ;;  %v4378_v59 = vcombine.high %v4376_v31, %v4376_v31  ;;  %v9945_v19 = vrot.slane %v4376_v31, 9  ;;  %v3903_v7 = vadd.f32 %v13264_v24, %v10619_v20 }
 0x3c0   : > { %v13353_v53 = vmul.f32 0.25, %v5176_v2  ;;  %v5479_v62 = vrot.slane %v13338_v43, %v15526_v18  ;;  %v5717_v35 = vmul.f32 %v13345_v45, %v13345_v45  ;;  %v9953_v61 = vrot.slane %v4410_v15, 9 }
 0x3c1   : > { %v5107_v33 = vadd.f32 %v9944_v56, %v4377_v0  ;;  %v5115_v6 = vadd.f32 %v9952_v28, %v4411_v52  ;;  %v9946_v50 = vrot.slane %v4378_v59, 9  ;;  %v5106_v60 = vadd.f32 %v9943_v36, %v4369_v3 }
 0x3c2   : > { %15549 = vst [vmem:[#allocation28_spill] sm:$0xff] %v13353_v53  ;;  %v4379_v16 = vcombine.high %v3895_v5, %v3895_v5  ;;  %v13359_v10 = vmul.f32 0.25, %v5177_v47  ;;  %v5483_v0 = vrot.slane %v13345_v45, %v15526_v18  ;;  %v5955_v20 = vrot.slane %v5716_v48, %v15526_v18 }
 0x3c3   : > { %v5108_v63 = vadd.f32 %v9945_v19, %v4376_v31  ;;  %v9954_v32 = vrot.slane %v4412_v34, 9  ;;  %v5114_v39 = vadd.f32 %v9951_v40, %v4403_v38  ;;  %v5187_v11 = vadd.f32 %v5115_v6, %v5107_v33 }
 0x3c4   : > { %15550 = vst [vmem:[#allocation29_spill] sm:$0xff] %v13359_v10  ;;  %v4413_v51 = vcombine.high %v3903_v7, %v3903_v7  ;;  %v5626_v56 = vsel %vm5594_vm1, %v5479_v62, %v5625_v14  ;;  %v5718_v52 = vmul.f32 %v13353_v53, %v13353_v53  ;;  %v5116_v26 = vadd.f32 %v9953_v61, %v4410_v15 }
 0x3c5   : > { %v4386_v3 = vrot.slane %v3895_v5, %v12860_v54  ;;  %v5959_v2 = vrot.slane %v5717_v35, %v15526_v18  ;;  %v5109_v28 = vadd.f32 %v9946_v50, %v4378_v59  ;;  %v5186_v36 = vadd.f32 %v5114_v39, %v5106_v60 }
 0x3c6   : > { %v4393_v47 = vrot.slane %v4379_v16, %v12860_v54  ;;  %v15551_v31 = vrot.slane %v13286_v42, %v15526_v18  ;;  %v6095_v48 = vsel %vm5594_vm1, %v5955_v20, %v6094_v57  ;;  %v5188_v14 = vadd.f32 %v5116_v26, %v5108_v63 }
 0x3c7   : > { %v4420_v19 = vrot.slane %v3903_v7, %v12860_v54  ;;  %v5487_v15 = vrot.slane %v13353_v53, %v15526_v18  ;;  %v5117_v5 = vadd.f32 %v9954_v32, %v4412_v34  ;;  %v13378_v40 = vmul.f32 0.25, %v5187_v11 }
 0x3c8   : > { %v6091_v38 = vsel %vm5600_vm10, %v15551_v31, %v6090_v46  ;;  %v4427_v59 = vrot.slane %v4413_v51, %v12860_v54  ;;  %v5627_v33 = vsel %vm5596_vm12, %v5483_v0, %v5626_v56  ;;  %v5719_v42 = vmul.f32 %v13359_v10, %v13359_v10 }
 0x3c9   : > { %15552 = vst [vmem:[#allocation30_spill] sm:$0xff] %v13378_v40  ;;  %v5963_v46 = vrot.slane %v5718_v52, %v15526_v18  ;;  %v4394_v62 = vcombine.high %v4386_v3, %v4386_v3  ;;  %v6096_v57 = vsel %vm5596_vm12, %v5959_v2, %v6095_v48  ;;  %v5189_v35 = vadd.f32 %v5117_v5, %v5109_v28 }
 0x3ca   : > { %v13386_v7 = vmul.f32 0.25, %v5186_v36  ;;  %v4395_v61 = vcombine.high %v4393_v47, %v4393_v47  ;;  %v6133_v34 = vsel %vm449_vm0, %v6091_v38, 0.0  ;;  %v5491_v6 = vrot.slane %v13359_v10, %v15526_v18 }
 0x3cb   : > { %v13391_v50 = vmul.f32 0.25, %v5188_v14  ;;  %v4428_v60 = vcombine.high %v4420_v19, %v4420_v19  ;;  %v5628_v16 = vsel %vm5598_vm11, %v5487_v15, %v5627_v33  ;;  %v5729_v0 = vmul.f32 %v13378_v40, %v13378_v40 }
 0x3cc   : > { %15553 = vst [vmem:[#allocation31_spill] sm:$0xff] %v13386_v7  ;;  %v4429_v20 = vcombine.high %v4427_v59, %v4427_v59  ;;  %v9947_v63 = vrot.slane %v4386_v3, 9  ;;  %v5967_v32 = vrot.slane %v5719_v42, %v15526_v18  ;;  %v6097_v39 = vsel %vm5598_vm11, %v5963_v46, %v6096_v57 }
 0x3cd   : > { %15554 = vst [vmem:[#allocation32_spill] sm:$0xff] %v13391_v50  ;;  %v9955_v11 = vrot.slane %v4420_v19, 9  ;;  %v9948_v51 = vrot.slane %v4394_v62, 9  ;;  %v13398_v56 = vmul.f32 0.25, %v5189_v35  ;;  %v5728_v52 = vmul.f32 %v13386_v7, %v13386_v7 }
 0x3ce   : > { %v9949_v26 = vrot.slane %v4393_v47, 9  ;;  %v9950_v2 = vrot.slane %v4395_v61, 9  ;;  %v5629_v28 = vsel %vm5600_vm10, %v5491_v6, %v5628_v16  ;;  %v5730_v36 = vmul.f32 %v13391_v50, %v13391_v50 }
 0x3cf   : > { %15555 = vst [vmem:[#allocation33_spill] sm:$0xff] %v13398_v56  ;;  %v9956_v31 = vrot.slane %v4428_v60, 9  ;;  %v9957_v38 = vrot.slane %v4427_v59, 9  ;;  %v5531_v48 = vrot.slane %v13378_v40, %v15526_v18  ;;  %v6007_v14 = vrot.slane %v5729_v0, %v15526_v18 }
 0x3d0   : > { %v9958_v15 = vrot.slane %v4429_v20, 9  ;;  %v5110_v5 = vadd.f32 %v9947_v63, %v4386_v3  ;;  %v6098_v33 = vsel %vm5600_vm10, %v5967_v32, %v6097_v39  ;;  %v5527_v42 = vrot.slane %v13386_v7, %v15526_v18 }
 0x3d1   : > { %v5118_v46 = vadd.f32 %v9955_v11, %v4420_v19  ;;  %v5111_v57 = vadd.f32 %v9948_v51, %v4394_v62  ;;  %v5731_v35 = vmul.f32 %v13398_v56, %v13398_v56  ;;  %v6003_v6 = vrot.slane %v5728_v52, %v15526_v18 }
 0x3d2   : > { %v5112_v16 = vadd.f32 %v9949_v26, %v4393_v47  ;;  %v5113_v10 = vadd.f32 %v9950_v2, %v4395_v61  ;;  %v5535_v40 = vrot.slane %v13391_v50, %v15526_v18  ;;  %v6011_v0 = vrot.slane %v5730_v36, %v15526_v18 }
 0x3d3   : > { %v5119_v3 = vadd.f32 %v9956_v31, %v4428_v60  ;;  %v5120_v63 = vadd.f32 %v9957_v38, %v4427_v59  ;;  %v5637_v32 = vsel %vm5588_vm13, %v5531_v48, %v5527_v42  ;;  %v6106_v39 = vsel %vm5588_vm13, %v6007_v14, %v6003_v6 }
 0x3d4   : > { %v5121_v19 = vadd.f32 %v9958_v15, %v4429_v20  ;;  %v5190_v62 = vadd.f32 %v5118_v46, %v5110_v5  ;;  %v6134_v11 = vadd.f32 %v6133_v34, %v13288_v30  ;;  %v5666_v51 = vsel %vm449_vm0, %v5629_v28, 0.0 }
 0x3d5   : > { %v6135_v47 = vsel %vm449_vm0, %v6098_v33, 0.0  ;;  %v5191_v61 = vadd.f32 %v5119_v3, %v5111_v57  ;;  %v5539_v52 = vrot.slane %v13398_v56, %v15526_v18  ;;  %v6015_v26 = vrot.slane %v5731_v35, %v15526_v18 }
 0x3d6   : > { %v5192_v60 = vadd.f32 %v5120_v63, %v5112_v16  ;;  %v5193_v59 = vadd.f32 %v5121_v19, %v5113_v10  ;;  %v5638_v36 = vsel %vm5590_vm14, %v5535_v40, %v5637_v32  ;;  %v6107_v20 = vsel %vm5590_vm14, %v6011_v0, %v6106_v39 }
 0x3d7   : > { %v13429_v30 = vadd.f32 %v5666_v51, %v13341_v4  ;;  %v13431_v34 = vadd.f32 %v6135_v47, %v6134_v11  ;;  %v13433_v28 = vmul.f32 0.25, %v5190_v62  ;;  %v13435_v48 = vmul.f32 0.25, %v5191_v61 }
 0x3d8   : > { %v13439_v40 = vmul.f32 0.25, %v5192_v60  ;;  %v13441_v5 = vmul.f32 0.25, %v5193_v59  ;;  %v5639_v33 = vsel %vm5592_vm15, %v5539_v52, %v5638_v36  ;;  %v13445_v4 = vsel %vm5592_vm15, %v6015_v26, %v6107_v20 }
 0x3d9   : > { %15556 = vst [vmem:[#allocation34_spill] sm:$0xff] %v13433_v28  ;;  %15557 = vst [vmem:[#allocation35_spill] sm:$0xff] %v13435_v48  ;;  %v5543_v16 = vrot.slane %v13433_v28, %v15526_v18  ;;  %v13452_v0 = vmul.f32 %v13433_v28, %v13433_v28  ;;  %v13465_v52 = vmul.f32 %v13435_v48, %v13435_v48 }
 0x3da   : > { %15558 = vst [vmem:[#allocation36_spill] sm:$0xff] %v13439_v40  ;;  %15559 = vst [vmem:[#allocation37_spill] sm:$0xff] %v13441_v5 }
 0x3f2   : > { %v10614_v2 = vpop.f32.mrf.mxu0 }
 0x3f3   : > { %v3884_v31 = vadd.f32 %v13264_v24, %v10614_v2 }
 0x3f4   : > { %v3875_v38 = vpop.f32.mrf.mxu0 }
 0x3f5   : > { %v4328_v14 = vcombine.high %v3884_v31, %v3884_v31  ;;  %v4335_v10 = vrot.slane %v3884_v31, %v12860_v54  ;;  %v3876_v15 = vadd.f32 %v13264_v24, %v3875_v38 }
 0x3f6   : > { %v10615_v42 = vpop.f32.mrf.mxu0 }
 0x3f7   : > { %v4342_v46 = vrot.slane %v4328_v14, %v12860_v54  ;;  %v4343_v57 = vcombine.high %v4335_v10, %v4335_v10  ;;  %v9935_v35 = vrot.slane %v4335_v10, 9  ;;  %v4294_v6 = vcombine.high %v3876_v15, %v3876_v15 }
 0x3f8   : > { %v4301_v3 = vrot.slane %v3876_v15, %v12860_v54  ;;  %v3887_v63 = vadd.f32 %v13264_v24, %v10615_v42  ;;  %v3878_v50 = vpop.f32.mrf.mxu0 }
 0x3f9   : > { %v4344_v39 = vcombine.high %v4342_v46, %v4342_v46  ;;  %v9936_v19 = vrot.slane %v4343_v57, 9  ;;  %v9937_v62 = vrot.slane %v4342_v46, 9  ;;  %v4308_v11 = vrot.slane %v4294_v6, %v12860_v54 }
 0x3fa   : > { %v4309_v51 = vcombine.high %v4301_v3, %v4301_v3  ;;  %v9927_v47 = vrot.slane %v4301_v3, 9  ;;  %v4345_v61 = vcombine.high %v3887_v63, %v3887_v63  ;;  %v5098_v60 = vadd.f32 %v9935_v35, %v4335_v10 }
 0x3fb   : > { %v9938_v26 = vrot.slane %v4344_v39, 9  ;;  %v4352_v59 = vrot.slane %v3887_v63, %v12860_v54  ;;  %v4310_v2 = vcombine.high %v4308_v11, %v4308_v11  ;;  %v9929_v20 = vrot.slane %v4308_v11, 9 }
 0x3fc   : > { %v9928_v36 = vrot.slane %v4309_v51, 9  ;;  %v5090_v31 = vadd.f32 %v9927_v47, %v4301_v3  ;;  %v5099_v38 = vadd.f32 %v9936_v19, %v4343_v57  ;;  %v5100_v14 = vadd.f32 %v9937_v62, %v4342_v46  ;;  %v6886_v62 = vld [vmem:[#allocation3] sm:$0xff] }
 0x3fd   : > { %v4359_v15 = vrot.slane %v4345_v61, %v12860_v54  ;;  %v4360_v42 = vcombine.high %v4352_v59, %v4352_v59  ;;  %v9930_v6 = vrot.slane %v4310_v2, 9  ;;  %v5092_v28 = vadd.f32 %v9929_v20, %v4308_v11 }
 0x3fe   : > { %v5091_v32 = vadd.f32 %v9928_v36, %v4309_v51  ;;  %v5178_v56 = vadd.f32 %v5098_v60, %v5090_v31  ;;  %v13469_v10 = vmul.f32 %v13439_v40, %v13439_v40  ;;  %v5101_v35 = vadd.f32 %v9938_v26, %v4344_v39 }
 0x3ff   : > { %v9939_v3 = vrot.slane %v4352_v59, 9  ;;  %v5093_v57 = vadd.f32 %v9930_v6, %v4310_v2  ;;  %v5180_v63 = vadd.f32 %v5100_v14, %v5092_v28  ;;  %v4361_v11 = vcombine.high %v4359_v15, %v4359_v15 }
 0x400   : > { %v5179_v46 = vadd.f32 %v5099_v38, %v5091_v32  ;;  %v13471_v19 = vmul.f32 0.25, %v5178_v56  ;;  %v9940_v51 = vrot.slane %v4360_v42, 9  ;;  %v3879_v47 = vadd.f32 %v13264_v24, %v3878_v50  ;;  %v13492_v38 = vpop.permute.xlu1 %7055 }
 0x401   : > { %v5181_v61 = vadd.f32 %v5101_v35, %v5093_v57  ;;  %v13478_v36 = vmul.f32 0.25, %v5180_v63  ;;  %v9941_v20 = vrot.slane %v4359_v15, 9  ;;  %v13481_v39 = vsel %vm5594_vm1, %v5543_v16, %v5639_v33  ;;  %15564 = vst [vmem:[#allocation42_spill] sm:$0xff] %v13492_v38 }
 0x402   : > { %15560 = vst [vmem:[#allocation38_spill] sm:$0xff] %v13471_v19  ;;  %v13476_v60 = vmul.f32 0.25, %v5179_v46  ;;  %v5720_v56 = vmul.f32 %v13471_v19, %v13471_v19  ;;  %v4311_v28 = vcombine.high %v3879_v47, %v3879_v47  ;;  %v4318_v32 = vrot.slane %v3879_v47, %v12860_v54 }
 0x403   : > { %15562 = vst [vmem:[#allocation40_spill] sm:$0xff] %v13478_v36  ;;  %v13486_v26 = vmul.f32 0.25, %v5181_v61  ;;  %v5102_v31 = vadd.f32 %v9939_v3, %v4352_v59  ;;  %v5722_v33 = vmul.f32 %v13478_v36, %v13478_v36  ;;  %v9942_v16 = vrot.slane %v4361_v11, 9 }
 0x404   : > { %15561 = vst [vmem:[#allocation39_spill] sm:$0xff] %v13476_v60  ;;  %v5499_v50 = vrot.slane %v13476_v60, %v15526_v18  ;;  %v5721_v2 = vmul.f32 %v13476_v60, %v13476_v60  ;;  %v4325_v14 = vrot.slane %v4311_v28, %v12860_v54  ;;  %v4326_v6 = vcombine.high %v4318_v32, %v4318_v32 }
 0x405   : > { %15563 = vst [vmem:[#allocation41_spill] sm:$0xff] %v13486_v26  ;;  %v5495_v35 = vrot.slane %v13471_v19, %v15526_v18  ;;  %v5103_v46 = vadd.f32 %v9940_v51, %v4360_v42  ;;  %v5104_v63 = vadd.f32 %v9941_v20, %v4359_v15  ;;  %v5503_v47 = vrot.slane %v13478_v36, %v15526_v18  ;;  %v13509_v20 = vpop.permute.xlu1 %6896 }
 0x406   : > { %v5975_v57 = vrot.slane %v5721_v2, %v15526_v18  ;;  %v5971_v59 = vrot.slane %v5720_v56, %v15526_v18  ;;  %v4327_v3 = vcombine.high %v4325_v14, %v4325_v14  ;;  %v9931_v61 = vrot.slane %v4318_v32, 9  ;;  %15565 = vst [vmem:[#allocation43_spill] sm:$0xff] %v13509_v20 }
 0x407   : > { %v5630_v38 = vsel %vm5588_vm13, %v5499_v50, %v5495_v35  ;;  %v5723_v28 = vmul.f32 %v13486_v26, %v13486_v26  ;;  %v9932_v7 = vrot.slane %v4326_v6, 9  ;;  %v9933_v60 = vrot.slane %v4325_v14, 9 }
 0x408   : > { %v5507_v2 = vrot.slane %v13486_v26, %v15526_v18  ;;  %v5979_v15 = vrot.slane %v5722_v33, %v15526_v18  ;;  %v9934_v42 = vrot.slane %v4327_v3, 9  ;;  %v5094_v51 = vadd.f32 %v9931_v61, %v4318_v32 }
 0x409   : > { %v6099_v56 = vsel %vm5588_vm13, %v5975_v57, %v5971_v59  ;;  %v5095_v36 = vadd.f32 %v9932_v7, %v4326_v6  ;;  %v5096_v19 = vadd.f32 %v9933_v60, %v4325_v14  ;;  %v6934_v50 = vmul.f32 %v13509_v20, %v6886_v62 }
 0x40a   : > { %v5631_v35 = vsel %vm5590_vm14, %v5503_v47, %v5630_v38  ;;  %v5105_v53 = vadd.f32 %v9942_v16, %v4361_v11  ;;  %v5097_v45 = vadd.f32 %v9934_v42, %v4327_v3  ;;  %v5182_v43 = vadd.f32 %v5102_v31, %v5094_v51 }
 0x40b   : > { %v5983_v41 = vrot.slane %v5723_v28, %v15526_v18  ;;  %v5183_v26 = vadd.f32 %v5103_v46, %v5095_v36  ;;  %v5184_v13 = vadd.f32 %v5104_v63, %v5096_v19  ;;  %v10483_v33 = vpack.c.bf16 %v6934_v50, %v6934_v50 }
 0x40c   : > { %v13517_v32 = vmul.f32 %v13441_v5, %v13441_v5  ;;  %v6100_v57 = vsel %vm5590_vm14, %v5979_v15, %v6099_v56  ;;  %v5185_v7 = vadd.f32 %v5105_v53, %v5097_v45  ;;  %v13520_v60 = vmul.f32 0.25, %v5182_v43 }
 0x40d   : > { %v6019_v62 = vrot.slane %v13452_v0, %v15526_v18  ;;  %v13524_v11 = vmul.f32 0.25, %v5183_v26  ;;  %v13526_v31 = vmul.f32 0.25, %v5184_v13  ;;  %v5632_v36 = vsel %vm5592_vm15, %v5507_v2, %v5631_v35  ;;  %6974 = vst.msk [vmem:[#allocation4] sm:$0xf] %vm1192_vm2, %v10483_v33 }
 0x40e   : > { %15566 = vst [vmem:[#allocation44_spill] sm:$0xff] %v13520_v60  ;;  %v10622_v19 = vpop.f32.mrf.mxu1  ;;  %v13530_v38 = vmul.f32 0.25, %v5185_v7  ;;  %v5511_v16 = vrot.slane %v13520_v60, %v15526_v18  ;;  %v5724_v43 = vmul.f32 %v13520_v60, %v13520_v60  ;;  %v6101_v26 = vsel %vm5592_vm15, %v5983_v41, %v6100_v57 }
 0x40f   : > { %15567 = vst [vmem:[#allocation45_spill] sm:$0xff] %v13524_v11  ;;  %15568 = vst [vmem:[#allocation46_spill] sm:$0xff] %v13526_v31  ;;  %v3916_v45 = vadd.f32 %v13264_v24, %v10622_v19  ;;  %v5515_v53 = vrot.slane %v13524_v11, %v15526_v18  ;;  %v5725_v13 = vmul.f32 %v13524_v11, %v13524_v11 }
 0x410   : > { %15569 = vst [vmem:[#allocation47_spill] sm:$0xff] %v13530_v38  ;;  %v5726_v0 = vmul.f32 %v13526_v31, %v13526_v31  ;;  %v3907_v14 = vpop.f32.mrf.mxu1  ;;  %v15570_v6 = vrot.slane %v13435_v48, %v15526_v18  ;;  %v5519_v63 = vrot.slane %v13526_v31, %v15526_v18  ;;  %v5633_v47 = vsel %vm5594_vm1, %v5511_v16, %v5632_v36 }
 0x411   : > { %v5987_v59 = vrot.slane %v5724_v43, %v15526_v18  ;;  %v6023_v3 = vrot.slane %v13465_v52, %v15526_v18  ;;  %v5634_v61 = vsel %vm5596_vm12, %v5515_v53, %v5633_v47  ;;  %v5991_v41 = vrot.slane %v5725_v13, %v15526_v18 }
 0x412   : > { %v5641_v46 = vsel %vm5596_vm12, %v15570_v6, %v13481_v39  ;;  %v4464_v28 = vcombine.high %v3916_v45, %v3916_v45  ;;  %v10623_v2 = vpop.f32.mrf.mxu1  ;;  %v6109_v15 = vsel %vm5594_vm1, %v6019_v62, %v13445_v4  ;;  %v5727_v39 = vmul.f32 %v13530_v38, %v13530_v38 }
 0x413   : > { %v6102_v42 = vsel %vm5594_vm1, %v5987_v59, %v6101_v26  ;;  %v4471_v51 = vrot.slane %v3916_v45, %v12860_v54  ;;  %v5523_v56 = vrot.slane %v13530_v38, %v15526_v18  ;;  %v5995_v52 = vrot.slane %v5726_v0, %v15526_v18 }
 0x414   : > { %v4478_v50 = vrot.slane %v4464_v28, %v12860_v54  ;;  %v3908_v35 = vadd.f32 %v13264_v24, %v3907_v14  ;;  %v5635_v33 = vsel %vm5598_vm11, %v5519_v63, %v5634_v61  ;;  %v6103_v4 = vsel %vm5596_vm12, %v5991_v41, %v6102_v42  ;;  %v3910_v45 = vpop.f32.mrf.mxu1 }
 0x415   : > { %v4479_v57 = vcombine.high %v4471_v51, %v4471_v51  ;;  %v9967_v7 = vrot.slane %v4471_v51, 9  ;;  %v15571_v62 = vrot.slane %v13439_v40, %v15526_v18  ;;  %v13581_v13 = vsel %vm5596_vm12, %v6023_v3, %v6109_v15 }
 0x416   : > { %v4480_v16 = vcombine.high %v4478_v50, %v4478_v50  ;;  %v9969_v43 = vrot.slane %v4478_v50, 9  ;;  %v5999_v0 = vrot.slane %v5727_v39, %v15526_v18  ;;  %v4430_v26 = vcombine.high %v3908_v35, %v3908_v35 }
 0x417   : > { %v13574_v36 = vsel %vm5598_vm11, %v15571_v62, %v5641_v46  ;;  %v5636_v14 = vsel %vm5600_vm10, %v5523_v56, %v5635_v33  ;;  %v6104_v6 = vsel %vm5598_vm11, %v5995_v52, %v6103_v4  ;;  %v9968_v46 = vrot.slane %v4479_v57, 9 }
 0x418   : > { %v4437_v63 = vrot.slane %v3908_v35, %v12860_v54  ;;  %v5130_v47 = vadd.f32 %v9967_v7, %v4471_v51  ;;  %v4444_v59 = vrot.slane %v4430_v26, %v12860_v54  ;;  %v3919_v61 = vadd.f32 %v13264_v24, %v10623_v2 }
 0x419   : > { %v3911_v41 = vadd.f32 %v13264_v24, %v3910_v45  ;;  %v9970_v28 = vrot.slane %v4480_v16, 9  ;;  %v5132_v3 = vadd.f32 %v9969_v43, %v4478_v50  ;;  %v5131_v52 = vadd.f32 %v9968_v46, %v4479_v57 }
 0x41a   : > { %v4445_v15 = vcombine.high %v4437_v63, %v4437_v63  ;;  %v9959_v42 = vrot.slane %v4437_v63, 9  ;;  %v4446_v39 = vcombine.high %v4444_v59, %v4444_v59  ;;  %v9961_v62 = vrot.slane %v4444_v59, 9 }
 0x41b   : > { %v4481_v53 = vcombine.high %v3919_v61, %v3919_v61  ;;  %v4488_v56 = vrot.slane %v3919_v61, %v12860_v54  ;;  %v4447_v35 = vcombine.high %v3911_v41, %v3911_v41  ;;  %v5133_v19 = vadd.f32 %v9970_v28, %v4480_v16 }
 0x41c   : > { %v9960_v33 = vrot.slane %v4445_v15, 9  ;;  %v5122_v4 = vadd.f32 %v9959_v42, %v4437_v63  ;;  %v9962_v51 = vrot.slane %v4446_v39, 9  ;;  %v5124_v7 = vadd.f32 %v9961_v62, %v4444_v59 }
 0x41d   : > { %v4495_v26 = vrot.slane %v4481_v53, %v12860_v54  ;;  %v4496_v2 = vcombine.high %v4488_v56, %v4488_v56  ;;  %v9971_v50 = vrot.slane %v4488_v56, 9  ;;  %v5668_v38 = vsel %vm449_vm0, %v5636_v14, 0.0 }
 0x41e   : > { %v5123_v24 = vadd.f32 %v9960_v33, %v4445_v15  ;;  %v5194_v45 = vadd.f32 %v5130_v47, %v5122_v4  ;;  %v5125_v43 = vadd.f32 %v9962_v51, %v4446_v39  ;;  %v5196_v20 = vadd.f32 %v5132_v3, %v5124_v7 }
 0x41f   : > { %v4497_v40 = vcombine.high %v4495_v26, %v4495_v26  ;;  %v9972_v48 = vrot.slane %v4496_v2, 9  ;;  %v4454_v46 = vrot.slane %v3911_v41, %v12860_v54  ;;  %v6105_v63 = vsel %vm5600_vm10, %v5999_v0, %v6104_v6 }
 0x420   : > { %v5195_v61 = vadd.f32 %v5131_v52, %v5123_v24  ;;  %v13593_v57 = vmul.f32 0.25, %v5194_v45  ;;  %v5197_v59 = vadd.f32 %v5133_v19, %v5125_v43  ;;  %v13597_v53 = vmul.f32 0.25, %v5196_v20 }
 0x421   : > { %v4461_v16 = vrot.slane %v4447_v35, %v12860_v54  ;;  %v9973_v3 = vrot.slane %v4495_v26, 9  ;;  %v5134_v15 = vadd.f32 %v9971_v50, %v4488_v56  ;;  %v9974_v41 = vrot.slane %v4497_v40, 9 }
 0x422   : > { %v13600_v47 = vmul.f32 0.25, %v5195_v61  ;;  %v5736_v28 = vmul.f32 %v13593_v57, %v13593_v57  ;;  %v13604_v14 = vmul.f32 0.25, %v5197_v59  ;;  %v5738_v42 = vmul.f32 %v13597_v53, %v13597_v53 }
 0x423   : > { %v5135_v39 = vadd.f32 %v9972_v48, %v4496_v2  ;;  %v5559_v20 = vrot.slane %v13593_v57, %v15526_v18  ;;  %v4462_v6 = vcombine.high %v4454_v46, %v4454_v46  ;;  %v5567_v62 = vrot.slane %v13597_v53, %v15526_v18 }
 0x424   : > { %v5563_v19 = vrot.slane %v13600_v47, %v15526_v18  ;;  %v5737_v0 = vmul.f32 %v13600_v47, %v13600_v47  ;;  %v5739_v56 = vmul.f32 %v13604_v14, %v13604_v14  ;;  %v6035_v52 = vrot.slane %v5736_v28, %v15526_v18 }
 0x425   : > { %v4463_v33 = vcombine.high %v4461_v16, %v4461_v16  ;;  %v6043_v4 = vrot.slane %v5738_v42, %v15526_v18  ;;  %v9963_v35 = vrot.slane %v4454_v46, 9  ;;  %v9964_v51 = vrot.slane %v4462_v6, 9 }
 0x426   : > { %v6039_v48 = vrot.slane %v5737_v0, %v15526_v18  ;;  %v5644_v7 = vsel %vm5588_vm13, %v5563_v19, %v5559_v20  ;;  %v5136_v2 = vadd.f32 %v9973_v3, %v4495_v26  ;;  %v9965_v24 = vrot.slane %v4461_v16, 9 }
 0x427   : > { %v9966_v45 = vrot.slane %v4463_v33, 9  ;;  %v5137_v43 = vadd.f32 %v9974_v41, %v4497_v40  ;;  %v5126_v61 = vadd.f32 %v9963_v35, %v4454_v46  ;;  %v5127_v59 = vadd.f32 %v9964_v51, %v4462_v6 }
 0x428   : > { %v6113_v50 = vsel %vm5588_vm13, %v6039_v48, %v6035_v52  ;;  %v5571_v28 = vrot.slane %v13604_v14, %v15526_v18  ;;  %v6047_v31 = vrot.slane %v5739_v56, %v15526_v18  ;;  %v5128_v0 = vadd.f32 %v9965_v24, %v4461_v16 }
 0x429   : > { %v5129_v11 = vadd.f32 %v9966_v45, %v4463_v33  ;;  %v5645_v42 = vsel %vm5590_vm14, %v5567_v62, %v5644_v7  ;;  %v6114_v60 = vsel %vm5590_vm14, %v6043_v4, %v6113_v50  ;;  %v5198_v20 = vadd.f32 %v5134_v15, %v5126_v61 }
 0x42a   : > { %v5199_v26 = vadd.f32 %v5135_v39, %v5127_v59  ;;  %v15572_v3 = vrot.slane %v13441_v5, %v15526_v18  ;;  %v15573_v46 = vrot.slane %v13469_v10, %v15526_v18  ;;  %v5200_v16 = vadd.f32 %v5136_v2, %v5128_v0 }
 0x42b   : > { %v5201_v19 = vadd.f32 %v5137_v43, %v5129_v11  ;;  %v5669_v6 = vadd.f32 %v5668_v38, %v13429_v30  ;;  %v6137_v62 = vsel %vm449_vm0, %v6105_v63, 0.0  ;;  %v13640_v15 = vmul.f32 0.25, %v5198_v20 }
 0x42c   : > { %v5643_v40 = vsel %vm5600_vm10, %v15572_v3, %v13574_v36  ;;  %v6111_v41 = vsel %vm5598_vm11, %v15573_v46, %v13581_v13  ;;  %v13642_v39 = vmul.f32 0.25, %v5199_v26  ;;  %v13644_v56 = vmul.f32 0.25, %v5200_v16 }
 0x42d   : > { %v13646_v52 = vmul.f32 0.25, %v5201_v19  ;;  %v5646_v36 = vsel %vm5592_vm15, %v5571_v28, %v5645_v42  ;;  %v6115_v10 = vsel %vm5592_vm15, %v6047_v31, %v6114_v60  ;;  %v5575_v13 = vrot.slane %v13640_v15, %v15526_v18 }
 0x42e   : > { %v5579_v30 = vrot.slane %v13642_v39, %v15526_v18  ;;  %v5740_v11 = vmul.f32 %v13640_v15, %v13640_v15  ;;  %v5741_v38 = vmul.f32 %v13642_v39, %v13642_v39  ;;  %v5583_v63 = vrot.slane %v13644_v56, %v15526_v18 }
 0x42f   : > { %v5587_v33 = vrot.slane %v13646_v52, %v15526_v18  ;;  %v5742_v60 = vmul.f32 %v13644_v56, %v13644_v56  ;;  %v5743_v31 = vmul.f32 %v13646_v52, %v13646_v52  ;;  %v15574_v48 = vrot.slane %v13517_v32, %v15526_v18 }
 0x430   : > { %v5647_v35 = vsel %vm5594_vm1, %v5575_v13, %v5646_v36  ;;  %v6051_v51 = vrot.slane %v5740_v11, %v15526_v18  ;;  %v6055_v7 = vrot.slane %v5741_v38, %v15526_v18  ;;  %v6138_v2 = vadd.f32 %v6137_v62, %v13431_v34 }
 0x431   : > { %v6112_v4 = vsel %vm5600_vm10, %v15574_v48, %v6111_v41  ;;  %v5648_v24 = vsel %vm5596_vm12, %v5579_v30, %v5647_v35  ;;  %v6059_v45 = vrot.slane %v5742_v60, %v15526_v18  ;;  %v6063_v50 = vrot.slane %v5743_v31, %v15526_v18 }
 0x432   : > { %v5670_v43 = vsel %vm449_vm0, %v5643_v40, 0.0  ;;  %v5649_v32 = vsel %vm5598_vm11, %v5583_v63, %v5648_v24  ;;  %v6116_v61 = vsel %vm5594_vm1, %v6051_v51, %v6115_v10  ;;  %v6139_v42 = vsel %vm449_vm0, %v6112_v4, 0.0  ;;  %v6982_v51 = vld [vmem:[#allocation3 + $0x1] sm:$0xff] }
 0x433   : > { %v5650_v59 = vsel %vm5600_vm10, %v5587_v33, %v5649_v32  ;;  %v5671_v28 = vadd.f32 %v5670_v43, %v5669_v6  ;;  %v6117_v0 = vsel %vm5596_vm12, %v6055_v7, %v6116_v61  ;;  %v6140_v46 = vadd.f32 %v6139_v42, %v6138_v2  ;;  %v5266_v2 = vld [vmem:[%s15326_s10] sm:$0x1] }
 0x434   : > { %v5672_v34 = vsel %vm449_vm0, %v5650_v59, 0.0  ;;  %v6118_v20 = vsel %vm5598_vm11, %v6059_v45, %v6117_v0  ;;  %v10491_v7 = vpack.c.bf16 %v6982_v51, %v6982_v51 }
 0x435   : > { %v5673_v26 = vadd.f32 %v5672_v34, %v5671_v28  ;;  %v6119_v3 = vsel %vm5600_vm10, %v6063_v50, %v6118_v20  ;;  %v5267_v50 = vld [vmem:[%s15327_s11] sm:$0x1] }
 0x436   : > { %v6141_v40 = vsel %vm449_vm0, %v6119_v3, 0.0  ;;  %7014 = vrot.lane.b32.xlu0 %v10491_v7, %s10803_s30 }
 0x437   : > { %v5674_v41 = vrot.slane %v5673_v26, 4  ;;  %v6142_v16 = vadd.f32 %v6141_v40, %v6140_v46 }
 0x439   : > { %v5675_v19 = vadd.f32 %v5674_v41, %v5673_v26  ;;  %v6143_v62 = vrot.slane %v6142_v16, 4 }
 0x43b   : > { %v5676_v36 = vrot.slane %v5675_v19, 2  ;;  %v6144_v6 = vadd.f32 %v6143_v62, %v6142_v16 }
 0x43d   : > { %v5677_v10 = vadd.f32 %v5676_v36, %v5675_v19  ;;  %v6145_v13 = vrot.slane %v6144_v6, 2 }
 0x43f   : > { %v5678_v30 = vrot.slane %v5677_v10, 1  ;;  %v6146_v11 = vadd.f32 %v6145_v13, %v6144_v6 }
 0x441   : > { %v5679_v38 = vadd.f32 %v5678_v30, %v5677_v10  ;;  %v6147_v63 = vrot.slane %v6146_v11, 1 }
 0x443   : > { %v6148_v33 = vadd.f32 %v6147_v63, %v6146_v11  ;;  %v6149_v60 = vmul.f32 0.015625, %v5679_v38 }
 0x445   : > { %v6150_v31 = vmul.f32 0.015625, %v6148_v33  ;;  %v6151_v48 = vmul.f32 %v6149_v60, %v6149_v60 }
 0x447   : > { %v6152_v4 = vsub.f32 %v6150_v31, %v6151_v48 }
 0x449   : > { %v6153_v35 = vadd.f32 1e-05, %v6152_v4 }
 0x44b   : > { %10719 = vrsqrt.f32 %v6153_v35 }
 0x458   : > { %v10720_v24 = vpop.eup %10719 }
 0x459   : > { %v6155_v45 = vmul.f32 %v10720_v24, %v5266_v2 }
 0x45b   : > { %v6160_v43 = vrot.slane %v6155_v45, %v15526_v18  ;;  %v6254_v32 = vmul.f32 %v6155_v45, %v6149_v60 }
 0x45d   : > { %v6161_v61 = vcombine.high %v6160_v43, %v6160_v43  ;;  %v13696_v59 = vrot.slane %v6160_v43, %v12860_v54  ;;  %v6255_v28 = vsub.f32 %v5267_v50, %v6254_v32 }
 0x45f   : > { %15575 = vst [vmem:[#allocation48_spill] sm:$0xff] %v13696_v59  ;;  %v13699_v0 = vrot.slane %v6161_v61, %v12860_v54  ;;  %v13703_v42 = vcombine.high %v13696_v59, %v13696_v59  ;;  %v13706_v34 = vrot.slane %v13696_v59, 1  ;;  %v6260_v20 = vrot.slane %v6255_v28, %v15526_v18 }
 0x460   : > { %v6246_v40 = vmul.f32 %v13696_v59, %v13593_v57  ;;  %v13726_v19 = vmul.f32 %v13696_v59, %v12878_v58  ;;  %v13730_v62 = vmul.f32 %v13696_v59, %v12998_v22 }
 0x461   : > { %v13711_v26 = vcombine.high %v13699_v0, %v13699_v0  ;;  %v13714_v3 = vrot.slane %v13703_v42, 1  ;;  %v13717_v46 = vrot.slane %v13699_v0, 1  ;;  %v6261_v41 = vcombine.high %v6260_v20, %v6260_v20 }
 0x462   : > { %v13722_v16 = vrot.slane %v6260_v20, %v12860_v54  ;;  %v6247_v6 = vmul.f32 %v13706_v34, %v13600_v47  ;;  %v6248_v57 = vmul.f32 %v13703_v42, %v13597_v53  ;;  %v6250_v10 = vmul.f32 %v13699_v0, %v13640_v15 }
 0x463   : > { %v13733_v36 = vrot.slane %v13711_v26, 1  ;;  %v13742_v13 = vrot.slane %v6261_v41, %v12860_v54  ;;  %v6249_v47 = vmul.f32 %v13714_v3, %v13604_v14  ;;  %v6251_v53 = vmul.f32 %v13717_v46, %v13642_v39 }
 0x464   : > { %v13746_v58 = vcombine.high %v13722_v16, %v13722_v16  ;;  %v13749_v22 = vrot.slane %v13722_v16, 1  ;;  %v6346_v30 = vadd.f32 %v13722_v16, %v6246_v40  ;;  %v6252_v15 = vmul.f32 %v13711_v26, %v13644_v56 }
 0x465   : > { %15576 = vst [vmem:[#allocation49_spill] sm:$0xff] %v13742_v13  ;;  %v6253_v11 = vmul.f32 %v13733_v36, %v13646_v52  ;;  %v13762_v38 = vcombine.high %v13742_v13, %v13742_v13  ;;  %v13768_v33 = vrot.slane %v13742_v13, 1  ;;  %v6350_v60 = vadd.f32 %v13742_v13, %v6250_v10 }
 0x466   : > { %v13765_v63 = vrot.slane %v13746_v58, 1  ;;  %v6347_v14 = vadd.f32 %v13749_v22, %v6247_v6  ;;  %v6348_v39 = vadd.f32 %v13746_v58, %v6248_v57  ;;  %v6410_v56 = vmul.f32 0.2, %v6346_v30 }
 0x467   : > { %15577 = vst [vmem:[#allocation50_spill] sm:$0xff] %v13762_v38  ;;  %15579 = vst [vmem:[#allocation52_spill] sm:$0xff] %v13768_v33  ;;  %v6191_v52 = vmul.f32 %v13706_v34, %v12876_v21  ;;  %v13776_v31 = vrot.slane %v13762_v38, 1  ;;  %v6351_v4 = vadd.f32 %v13768_v33, %v6251_v53  ;;  %v6352_v35 = vadd.f32 %v13762_v38, %v6252_v15 }
 0x468   : > { %15578 = vst [vmem:[#allocation51_spill] sm:$0xff] %v13765_v63  ;;  %v6349_v48 = vadd.f32 %v13765_v63, %v6249_v47  ;;  %v6411_v51 = vmul.f32 0.2, %v6347_v14  ;;  %v6412_v7 = vmul.f32 0.2, %v6348_v39  ;;  %v6474_v24 = vmax.f32 %v6346_v30, %v6410_v56 }
 0x469   : > { %15580 = vst [vmem:[#allocation53_spill] sm:$0xff] %v13776_v31  ;;  %v6414_v2 = vmul.f32 0.2, %v6350_v60  ;;  %v6353_v45 = vadd.f32 %v13776_v31, %v6253_v11  ;;  %v6415_v43 = vmul.f32 0.2, %v6351_v4  ;;  %v6192_v20 = vmul.f32 %v13703_v42, %v12880_v55 }
 0x46a   : > { %v6413_v50 = vmul.f32 0.2, %v6349_v48  ;;  %v6416_v32 = vmul.f32 0.2, %v6352_v35  ;;  %v6475_v61 = vmax.f32 %v6347_v14, %v6411_v51  ;;  %v6476_v21 = vmax.f32 %v6348_v39, %v6412_v7 }
 0x46b   : > { %v6478_v28 = vmax.f32 %v6350_v60, %v6414_v2  ;;  %v6417_v40 = vmul.f32 0.2, %v6353_v45  ;;  %v6479_v6 = vmax.f32 %v6351_v4, %v6415_v43  ;;  %v6777_v10 = vrot.slane %v6474_v24, %v15526_v18 }
 0x46c   : > { %v6477_v41 = vmax.f32 %v6349_v48, %v6413_v50  ;;  %v6480_v57 = vmax.f32 %v6352_v35, %v6416_v32  ;;  %v6781_v47 = vrot.slane %v6475_v61, %v15526_v18  ;;  %v6785_v30 = vrot.slane %v6476_v21, %v15526_v18 }
 0x46d   : > { %v6193_v53 = vmul.f32 %v13714_v3, %v12888_v37  ;;  %v6481_v15 = vmax.f32 %v6353_v45, %v6417_v40  ;;  %v6793_v14 = vrot.slane %v6478_v28, %v15526_v18  ;;  %v6194_v55 = vmul.f32 %v13699_v0, %v12925_v17 }
 0x46e   : > { %v6789_v11 = vrot.slane %v6477_v41, %v15526_v18  ;;  %v6797_v39 = vrot.slane %v6479_v6, %v15526_v18  ;;  %v6801_v60 = vrot.slane %v6480_v57, %v15526_v18  ;;  %v6855_v56 = vsel %vm5588_vm13, %v6781_v47, %v6777_v10 }
 0x46f   : > { %v6195_v48 = vmul.f32 %v13717_v46, %v12939_v9  ;;  %v6856_v4 = vsel %vm5590_vm14, %v6785_v30, %v6855_v56  ;;  %v6196_v37 = vmul.f32 %v13711_v26, %v12941_v12  ;;  %v6197_v35 = vmul.f32 %v13733_v36, %v12947_v25 }
 0x470   : > { %v6199_v17 = vmul.f32 %v13706_v34, %v12988_v49  ;;  %v6805_v51 = vrot.slane %v6481_v15, %v15526_v18  ;;  %v6857_v7 = vsel %vm5592_vm15, %v6789_v11, %v6856_v4  ;;  %v6200_v2 = vmul.f32 %v13703_v42, %v13000_v27 }
 0x471   : > { %v6201_v9 = vmul.f32 %v13714_v3, %v13007_v8  ;;  %v6858_v24 = vsel %vm5594_vm1, %v6793_v14, %v6857_v7  ;;  %v6202_v12 = vmul.f32 %v13699_v0, %v13038_v29  ;;  %v6203_v25 = vmul.f32 %v13717_v46, %v13049_v44  ;;  %v15581_v14 = vld [vmem:[#allocation8_spill] sm:$0xff] }
 0x472   : > { %v6204_v49 = vmul.f32 %v13711_v26, %v13051_v23  ;;  %v6859_v45 = vsel %vm5596_vm12, %v6797_v39, %v6858_v24  ;;  %v6205_v50 = vmul.f32 %v13733_v36, %v13057_v1  ;;  %v6290_v27 = vadd.f32 %v13722_v16, %v13726_v19 }
 0x473   : > { %v6291_v8 = vadd.f32 %v13749_v22, %v6191_v52  ;;  %v6860_v43 = vsel %vm5598_vm11, %v6801_v60, %v6859_v45  ;;  %v6292_v29 = vadd.f32 %v13746_v58, %v6192_v20  ;;  %v6293_v32 = vadd.f32 %v13765_v63, %v6193_v53 }
 0x474   : > { %v6294_v44 = vadd.f32 %v13742_v13, %v6194_v55  ;;  %v6861_v23 = vsel %vm5600_vm10, %v6805_v51, %v6860_v43  ;;  %v6295_v61 = vadd.f32 %v13768_v33, %v6195_v48  ;;  %v6296_v21 = vadd.f32 %v13762_v38, %v6196_v37  ;;  %v15582_v48 = vld [vmem:[#allocation7_spill] sm:$0xff] }
 0x475   : > { %v6298_v1 = vadd.f32 %v13722_v16, %v13730_v62  ;;  %6877 = vst.msk [vmem:[#allocation3 + $0x41] sm:$0xff] %vm449_vm0, %v6861_v23  ;;  %v6297_v19 = vadd.f32 %v13776_v31, %v6197_v35  ;;  %v6299_v52 = vadd.f32 %v13749_v22, %v6199_v17  ;;  %v6300_v28 = vadd.f32 %v13746_v58, %v6200_v2 }
 0x476   : > { %v6301_v20 = vadd.f32 %v13765_v63, %v6201_v9  ;;  %v6302_v40 = vadd.f32 %v13742_v13, %v6202_v12  ;;  %v6303_v41 = vadd.f32 %v13768_v33, %v6203_v25  ;;  %v6304_v6 = vadd.f32 %v13762_v38, %v6204_v49 }
 0x477   : > { %v6355_v57 = vmul.f32 0.2, %v6291_v8  ;;  %v6305_v10 = vadd.f32 %v13776_v31, %v6205_v50  ;;  %v6354_v62 = vmul.f32 0.2, %v6290_v27  ;;  %v6356_v47 = vmul.f32 0.2, %v6292_v29 }
 0x478   : > { %v6357_v30 = vmul.f32 0.2, %v6293_v32  ;;  %v6358_v53 = vmul.f32 0.2, %v6294_v44  ;;  %v6359_v15 = vmul.f32 0.2, %v6295_v61  ;;  %v13844_v55 = vmul.f32 %v13696_v59, %v15581_v14 }
 0x479   : > { %v6362_v11 = vmul.f32 0.2, %v6298_v1  ;;  %v6363_v39 = vmul.f32 0.2, %v6299_v52  ;;  %v6364_v60 = vmul.f32 0.2, %v6300_v28  ;;  %v13848_v4 = vmul.f32 %v13706_v34, %v15582_v48 }
 0x47a   : > { %v6365_v56 = vmul.f32 0.2, %v6301_v20  ;;  %v6360_v37 = vmul.f32 0.2, %v6296_v21  ;;  %v6361_v35 = vmul.f32 0.2, %v6297_v19  ;;  %v6419_v51 = vmax.f32 %v6291_v8, %v6355_v57 }
 0x47b   : > { %v6366_v17 = vmul.f32 0.2, %v6302_v40  ;;  %v6367_v7 = vmul.f32 0.2, %v6303_v41  ;;  %v6368_v2 = vmul.f32 0.2, %v6304_v6  ;;  %v6420_v24 = vmax.f32 %v6292_v29, %v6356_v47 }
 0x47c   : > { %v6369_v9 = vmul.f32 0.2, %v6305_v10  ;;  %v6418_v12 = vmax.f32 %v6290_v27, %v6354_v62  ;;  %v6421_v25 = vmax.f32 %v6293_v32, %v6357_v30  ;;  %v6426_v49 = vmax.f32 %v6298_v1, %v6362_v11 }
 0x47d   : > { %v6427_v45 = vmax.f32 %v6299_v52, %v6363_v39  ;;  %v6422_v50 = vmax.f32 %v6294_v44, %v6358_v53  ;;  %v6423_v43 = vmax.f32 %v6295_v61, %v6359_v15  ;;  %v6428_v23 = vmax.f32 %v6300_v28, %v6364_v60  ;;  %v15583_v15 = vld [vmem:[#allocation9_spill] sm:$0xff] }
 0x47e   : > { %v6429_v14 = vmax.f32 %v6301_v20, %v6365_v56  ;;  %v6424_v54 = vmax.f32 %v6296_v21, %v6360_v37  ;;  %v6425_v5 = vmax.f32 %v6297_v19, %v6361_v35  ;;  %v6430_v48 = vmax.f32 %v6302_v40, %v6366_v17  ;;  %v15585_v56 = vld [vmem:[#allocation10_spill] sm:$0xff]  ;;  %v15586_v35 = vld [vmem:[#allocation25_spill] sm:$0xff] }
 0x47f   : > { %v6557_v31 = vrot.slane %v6419_v51, %v15526_v18  ;;  %v6431_v38 = vmax.f32 %v6303_v41, %v6367_v7  ;;  %v6432_v33 = vmax.f32 %v6304_v6, %v6368_v2  ;;  %v6433_v8 = vmax.f32 %v6305_v10, %v6369_v9  ;;  %v15587_v2 = vld [vmem:[#allocation11_spill] sm:$0xff] }
 0x480   : > { %v6561_v57 = vrot.slane %v6420_v24, %v15526_v18  ;;  %v6553_v29 = vrot.slane %v6418_v12, %v15526_v18  ;;  %v6565_v27 = vrot.slane %v6421_v25, %v15526_v18  ;;  %v6585_v32 = vrot.slane %v6426_v49, %v15526_v18  ;;  %v15588_v24 = vld [vmem:[#allocation12_spill] sm:$0xff] }
 0x481   : > { %v6589_v44 = vrot.slane %v6427_v45, %v15526_v18  ;;  %v6569_v61 = vrot.slane %v6422_v50, %v15526_v18  ;;  %v6573_v21 = vrot.slane %v6423_v43, %v15526_v18  ;;  %v6593_v1 = vrot.slane %v6428_v23, %v15526_v18  ;;  %v15589_v45 = vld [vmem:[#allocation14_spill] sm:$0xff]  ;;  %v15590_v43 = vld [vmem:[#allocation13_spill] sm:$0xff] }
 0x482   : > { %v6597_v19 = vrot.slane %v6429_v14, %v15526_v18  ;;  %v6577_v52 = vrot.slane %v6424_v54, %v15526_v18  ;;  %v6581_v28 = vrot.slane %v6425_v5, %v15526_v18  ;;  %v6806_v20 = vsel %vm5588_vm13, %v6557_v31, %v6553_v29  ;;  %v15591_v14 = vld [vmem:[#allocation15_spill] sm:$0xff]  ;;  %v15593_v29 = vld [vmem:[#allocation17_spill] sm:$0xff] }
 0x483   : > { %v6813_v40 = vsel %vm5588_vm13, %v6589_v44, %v6585_v32  ;;  %v6601_v41 = vrot.slane %v6430_v48, %v15526_v18  ;;  %v6605_v6 = vrot.slane %v6431_v38, %v15526_v18  ;;  %v6807_v10 = vsel %vm5590_vm14, %v6561_v57, %v6806_v20  ;;  %v15584_v38 = vld [vmem:[#allocation24_spill] sm:$0xff]  ;;  %v15594_v32 = vld [vmem:[#allocation19_spill] sm:$0xff]  ;;  %v15598_v20 = vld [vmem:[#allocation21_spill] sm:$0xff] }
 0x484   : > { %v6814_v62 = vsel %vm5590_vm14, %v6593_v1, %v6813_v40  ;;  %v6609_v47 = vrot.slane %v6432_v33, %v15526_v18  ;;  %v6613_v30 = vrot.slane %v6433_v8, %v15526_v18  ;;  %v6808_v54 = vsel %vm5592_vm15, %v6565_v27, %v6807_v10  ;;  %v15592_v8 = vld [vmem:[#allocation16_spill] sm:$0xff]  ;;  %v15600_v10 = vld [vmem:[#allocation6_spill] sm:$0xff] }
 0x485   : > { %v6815_v5 = vsel %vm5592_vm15, %v6597_v19, %v6814_v62  ;;  %v6809_v31 = vsel %vm5594_vm1, %v6569_v61, %v6808_v54  ;;  %v6208_v11 = vmul.f32 %v13703_v42, %v15583_v15  ;;  %v6209_v39 = vmul.f32 %v13714_v3, %v15584_v38  ;;  %v15595_v61 = vld [vmem:[#allocation18_spill] sm:$0xff]  ;;  %v15596_v1 = vld [vmem:[#allocation20_spill] sm:$0xff]  ;;  %v15602_v54 = vld [vmem:[#allocation27_spill] sm:$0xff] }
 0x486   : > { %v6816_v53 = vsel %vm5594_vm1, %v6601_v41, %v6815_v5  ;;  %v6810_v60 = vsel %vm5596_vm12, %v6573_v21, %v6809_v31  ;;  %v6210_v37 = vmul.f32 %v13699_v0, %v15585_v56  ;;  %v6211_v17 = vmul.f32 %v13717_v46, %v15586_v35  ;;  %v15599_v41 = vld [vmem:[#allocation5_spill] sm:$0xff]  ;;  %v15603_v31 = vld [vmem:[#allocation28_spill] sm:$0xff] }
 0x487   : > { %v6817_v33 = vsel %vm5596_vm12, %v6605_v6, %v6816_v53  ;;  %v6811_v51 = vsel %vm5598_vm11, %v6577_v52, %v6810_v60  ;;  %v6212_v9 = vmul.f32 %v13711_v26, %v15587_v2  ;;  %v6213_v12 = vmul.f32 %v13733_v36, %v15588_v24  ;;  %v15597_v52 = vld [vmem:[#allocation22_spill] sm:$0xff]  ;;  %v15604_v15 = vld [vmem:[#allocation29_spill] sm:$0xff] }
 0x488   : > { %v6818_v7 = vsel %vm5598_vm11, %v6609_v47, %v6817_v33  ;;  %v6812_v25 = vsel %vm5600_vm10, %v6581_v28, %v6811_v51  ;;  %v6214_v50 = vmul.f32 %v13696_v59, %v15589_v45  ;;  %v6215_v23 = vmul.f32 %v13706_v34, %v15590_v43  ;;  %v15601_v47 = vld [vmem:[#allocation26_spill] sm:$0xff] }
 0x489   : > { %v6819_v49 = vsel %vm5600_vm10, %v6613_v30, %v6818_v7  ;;  %6870 = vst.msk [vmem:[#allocation3 + $0x9] sm:$0xff] %vm449_vm0, %v6812_v25  ;;  %v6216_v48 = vmul.f32 %v13703_v42, %v15591_v14  ;;  %v6217_v57 = vmul.f32 %v13714_v3, %v15592_v8  ;;  %v6218_v27 = vmul.f32 %v13699_v0, %v15593_v29  ;;  %v15605_v7 = vld [vmem:[#allocation52_spill] sm:$0xff]  ;;  %v15606_v24 = vld [vmem:[#allocation50_spill] sm:$0xff] }
 0x48a   : > { %6871 = vst.msk [vmem:[#allocation3 + $0x11] sm:$0xff] %vm449_vm0, %v6819_v49  ;;  %v6219_v44 = vmul.f32 %v13717_v46, %v15594_v32  ;;  %v6220_v21 = vmul.f32 %v13711_v26, %v15595_v61  ;;  %v6221_v19 = vmul.f32 %v13733_v36, %v15596_v1  ;;  %v6222_v28 = vmul.f32 %v13696_v59, %v15597_v52  ;;  %v15608_v1 = vld [vmem:[#allocation38_spill] sm:$0xff] }
 0x48b   : > { %v6223_v40 = vmul.f32 %v13706_v34, %v15598_v20  ;;  %v6224_v6 = vmul.f32 %v13703_v42, %v15599_v41  ;;  %v6225_v62 = vmul.f32 %v13714_v3, %v15600_v10  ;;  %v6226_v30 = vmul.f32 %v13699_v0, %v15601_v47 }
 0x48c   : > { %v6227_v5 = vmul.f32 %v13717_v46, %v15602_v54  ;;  %v6228_v53 = vmul.f32 %v13711_v26, %v15603_v31  ;;  %v6229_v38 = vmul.f32 %v13733_v36, %v15604_v15  ;;  %v13928_v60 = vadd.f32 %v13722_v16, %v13844_v55  ;;  %v15607_v55 = vld [vmem:[#allocation53_spill] sm:$0xff] }
 0x48d   : > { %v13932_v33 = vadd.f32 %v13749_v22, %v13848_v4  ;;  %v13935_v56 = vadd.f32 %v13746_v58, %v6208_v11  ;;  %v13938_v35 = vadd.f32 %v13765_v63, %v6209_v39  ;;  %v13941_v51 = vadd.f32 %v13742_v13, %v6210_v37 }
 0x48e   : > { %v13944_v2 = vadd.f32 %v15605_v7, %v6211_v17  ;;  %v13947_v25 = vadd.f32 %v15606_v24, %v6212_v9  ;;  %v13950_v49 = vadd.f32 %v15607_v55, %v6213_v12  ;;  %v13953_v4 = vadd.f32 %v13722_v16, %v6214_v50 }
 0x48f   : > { %v13956_v11 = vadd.f32 %v13749_v22, %v6215_v23  ;;  %v13959_v39 = vadd.f32 %v13746_v58, %v6216_v48  ;;  %v13962_v37 = vadd.f32 %v13765_v63, %v6217_v57  ;;  %v13965_v17 = vadd.f32 %v13742_v13, %v6218_v27 }
 0x490   : > { %v13968_v9 = vadd.f32 %v15605_v7, %v6219_v44  ;;  %v13971_v12 = vadd.f32 %v15606_v24, %v6220_v21  ;;  %v13974_v45 = vadd.f32 %v15607_v55, %v6221_v19  ;;  %v13977_v50 = vadd.f32 %v13722_v16, %v6222_v28 }
 0x491   : > { %v13980_v43 = vadd.f32 %v13749_v22, %v6223_v40  ;;  %v13983_v23 = vadd.f32 %v13746_v58, %v6224_v6  ;;  %v13986_v14 = vadd.f32 %v13765_v63, %v6225_v62  ;;  %v13989_v48 = vadd.f32 %v13742_v13, %v6226_v30 }
 0x492   : > { %v13992_v8 = vadd.f32 %v15605_v7, %v6227_v5  ;;  %v13995_v57 = vadd.f32 %v15606_v24, %v6228_v53  ;;  %v6370_v29 = vmul.f32 0.2, %v13928_v60  ;;  %v6371_v27 = vmul.f32 0.2, %v13932_v33 }
 0x493   : > { %v6372_v32 = vmul.f32 0.2, %v13935_v56  ;;  %v14001_v44 = vadd.f32 %v15607_v55, %v6229_v38  ;;  %v6373_v61 = vmul.f32 0.2, %v13938_v35  ;;  %v6374_v21 = vmul.f32 0.2, %v13941_v51 }
 0x494   : > { %v14007_v19 = vmul.f32 %v13696_v59, %v15608_v1  ;;  %v6375_v52 = vmul.f32 0.2, %v13944_v2  ;;  %v6376_v28 = vmul.f32 0.2, %v13947_v25  ;;  %v6377_v20 = vmul.f32 0.2, %v13950_v49 }
 0x495   : > { %v6434_v40 = vmax.f32 %v13928_v60, %v6370_v29  ;;  %v6378_v41 = vmul.f32 0.2, %v13953_v4  ;;  %v6379_v6 = vmul.f32 0.2, %v13956_v11  ;;  %v6380_v10 = vmul.f32 0.2, %v13959_v39 }
 0x496   : > { %v6435_v62 = vmax.f32 %v13932_v33, %v6371_v27  ;;  %v6381_v47 = vmul.f32 0.2, %v13962_v37  ;;  %v6382_v30 = vmul.f32 0.2, %v13965_v17  ;;  %v6383_v54 = vmul.f32 0.2, %v13968_v9 }
 0x497   : > { %v6436_v5 = vmax.f32 %v13935_v56, %v6372_v32  ;;  %v6384_v31 = vmul.f32 0.2, %v13971_v12  ;;  %v6385_v53 = vmul.f32 0.2, %v13974_v45  ;;  %v6386_v15 = vmul.f32 0.2, %v13977_v50 }
 0x498   : > { %v6437_v38 = vmax.f32 %v13938_v35, %v6373_v61  ;;  %v6387_v60 = vmul.f32 0.2, %v13980_v43  ;;  %v6388_v33 = vmul.f32 0.2, %v13983_v23  ;;  %v6389_v29 = vmul.f32 0.2, %v13986_v14 }
 0x499   : > { %v6438_v27 = vmax.f32 %v13941_v51, %v6374_v21  ;;  %v6390_v1 = vmul.f32 0.2, %v13989_v48  ;;  %v6391_v56 = vmul.f32 0.2, %v13992_v8  ;;  %v6392_v32 = vmul.f32 0.2, %v13995_v57 }
 0x49a   : > { %v6439_v59 = vmax.f32 %v13944_v2, %v6375_v52  ;;  %v6393_v55 = vmul.f32 0.2, %v14001_v44  ;;  %v6440_v35 = vmax.f32 %v13947_v25, %v6376_v28  ;;  %v6441_v61 = vmax.f32 %v13950_v49, %v6377_v20 }
 0x49b   : > { %v6442_v24 = vmax.f32 %v13953_v4, %v6378_v41  ;;  %v6443_v7 = vmax.f32 %v13956_v11, %v6379_v6  ;;  %v6444_v51 = vmax.f32 %v13959_v39, %v6380_v10  ;;  %v6445_v21 = vmax.f32 %v13962_v37, %v6381_v47 }
 0x49c   : > { %v6446_v13 = vmax.f32 %v13965_v17, %v6382_v30  ;;  %v6447_v63 = vmax.f32 %v13968_v9, %v6383_v54  ;;  %v6448_v2 = vmax.f32 %v13971_v12, %v6384_v31  ;;  %v6449_v52 = vmax.f32 %v13974_v45, %v6385_v53  ;;  %v14077_v54 = vpop.permute.xlu0 %7059 }
 0x49d   : > { %v6450_v25 = vmax.f32 %v13977_v50, %v6386_v15  ;;  %v6451_v49 = vmax.f32 %v13980_v43, %v6387_v60  ;;  %v6452_v4 = vmax.f32 %v13983_v23, %v6388_v33  ;;  %v6453_v11 = vmax.f32 %v13986_v14, %v6389_v29  ;;  %v15609_v15 = vld [vmem:[#allocation39_spill] sm:$0xff]  ;;  %v14084_v60 = vpop.permute.xlu1 %7063 }
 0x49e   : > { %v6454_v39 = vmax.f32 %v13989_v48, %v6390_v1  ;;  %v6455_v37 = vmax.f32 %v13992_v8, %v6391_v56  ;;  %v6456_v17 = vmax.f32 %v13995_v57, %v6392_v32  ;;  %v6457_v9 = vmax.f32 %v14001_v44, %v6393_v55  ;;  %v15610_v1 = vld [vmem:[#allocation40_spill] sm:$0xff] }
 0x49f   : > { %v6617_v12 = vrot.slane %v6434_v40, %v15526_v18  ;;  %v6621_v45 = vrot.slane %v6435_v62, %v15526_v18  ;;  %v6625_v50 = vrot.slane %v6436_v5, %v15526_v18  ;;  %v6629_v43 = vrot.slane %v6437_v38, %v15526_v18 }
 0x4a0   : > { %v6633_v23 = vrot.slane %v6438_v27, %v15526_v18  ;;  %v6637_v14 = vrot.slane %v6439_v59, %v15526_v18  ;;  %v6641_v48 = vrot.slane %v6440_v35, %v15526_v18  ;;  %v6645_v8 = vrot.slane %v6441_v61, %v15526_v18 }
 0x4a1   : > { %v6649_v57 = vrot.slane %v6442_v24, %v15526_v18  ;;  %v6653_v55 = vrot.slane %v6443_v7, %v15526_v18  ;;  %v6657_v44 = vrot.slane %v6444_v51, %v15526_v18  ;;  %v6661_v28 = vrot.slane %v6445_v21, %v15526_v18  ;;  %v15611_v51 = vld [vmem:[#allocation41_spill] sm:$0xff] }
 0x4a2   : > { %v6665_v20 = vrot.slane %v6446_v13, %v15526_v18  ;;  %v6669_v40 = vrot.slane %v6447_v63, %v15526_v18  ;;  %v6673_v41 = vrot.slane %v6448_v2, %v15526_v18  ;;  %v6677_v59 = vrot.slane %v6449_v52, %v15526_v18 }
 0x4a3   : > { %v6681_v6 = vrot.slane %v6450_v25, %v15526_v18  ;;  %v6685_v10 = vrot.slane %v6451_v49, %v15526_v18  ;;  %v6689_v24 = vrot.slane %v6452_v4, %v15526_v18  ;;  %v6693_v7 = vrot.slane %v6453_v11, %v15526_v18  ;;  %v15612_v49 = vld [vmem:[#allocation44_spill] sm:$0xff] }
 0x4a4   : > { %v6697_v62 = vrot.slane %v6454_v39, %v15526_v18  ;;  %v6701_v47 = vrot.slane %v6455_v37, %v15526_v18  ;;  %v6705_v13 = vrot.slane %v6456_v17, %v15526_v18  ;;  %v6709_v63 = vrot.slane %v6457_v9, %v15526_v18  ;;  %v15613_v17 = vld [vmem:[#allocation45_spill] sm:$0xff] }
 0x4a5   : > { %v6820_v30 = vsel %vm5588_vm13, %v6621_v45, %v6617_v12  ;;  %v6827_v31 = vsel %vm5588_vm13, %v6653_v55, %v6649_v57  ;;  %v6834_v53 = vsel %vm5588_vm13, %v6685_v10, %v6681_v6  ;;  %v6231_v38 = vmul.f32 %v13706_v34, %v15609_v15  ;;  %v15615_v55 = vld [vmem:[#allocation47_spill] sm:$0xff]  ;;  %v15617_v6 = vld [vmem:[#allocation49_spill] sm:$0xff] }
 0x4a6   : > { %v6821_v5 = vsel %vm5590_vm14, %v6625_v50, %v6820_v30  ;;  %v6828_v29 = vsel %vm5590_vm14, %v6657_v44, %v6827_v31  ;;  %v6835_v27 = vsel %vm5590_vm14, %v6689_v24, %v6834_v53  ;;  %v6232_v56 = vmul.f32 %v13703_v42, %v15610_v1  ;;  %v15618_v24 = vld [vmem:[#allocation52_spill] sm:$0xff] }
 0x4a7   : > { %v6822_v33 = vsel %vm5592_vm15, %v6629_v43, %v6821_v5  ;;  %v6829_v35 = vsel %vm5592_vm15, %v6661_v28, %v6828_v29  ;;  %v6836_v61 = vsel %vm5592_vm15, %v6693_v7, %v6835_v27  ;;  %v6233_v21 = vmul.f32 %v13714_v3, %v15611_v51  ;;  %v15614_v43 = vld [vmem:[#allocation46_spill] sm:$0xff]  ;;  %v14122_v28 = vpop.permute.xlu1 %7067 }
 0x4a8   : > { %v6823_v32 = vsel %vm5594_vm1, %v6633_v23, %v6822_v33  ;;  %v6830_v52 = vsel %vm5594_vm1, %v6665_v20, %v6829_v35  ;;  %v6837_v25 = vsel %vm5594_vm1, %v6697_v62, %v6836_v61  ;;  %v6234_v4 = vmul.f32 %v13699_v0, %v15612_v49  ;;  %v15619_v62 = vld [vmem:[#allocation50_spill] sm:$0xff] }
 0x4a9   : > { %v6824_v2 = vsel %vm5596_vm12, %v6637_v14, %v6823_v32  ;;  %v6831_v39 = vsel %vm5596_vm12, %v6669_v40, %v6830_v52  ;;  %v6838_v37 = vsel %vm5596_vm12, %v6701_v47, %v6837_v25  ;;  %v6235_v9 = vmul.f32 %v13717_v46, %v15613_v17  ;;  %v14111_v14 = vpop.permute.xlu0 %7071 }
 0x4aa   : > { %v6825_v11 = vsel %vm5598_vm11, %v6641_v48, %v6824_v2  ;;  %v6832_v45 = vsel %vm5598_vm11, %v6673_v41, %v6831_v39  ;;  %v6839_v50 = vsel %vm5598_vm11, %v6705_v13, %v6838_v37  ;;  %v6236_v23 = vmul.f32 %v13711_v26, %v15614_v43  ;;  %v15616_v41 = vld [vmem:[#allocation51_spill] sm:$0xff]  ;;  %v15620_v13 = vld [vmem:[#allocation53_spill] sm:$0xff] }
 0x4ab   : > { %v6826_v12 = vsel %vm5600_vm10, %v6645_v8, %v6825_v11  ;;  %v6833_v48 = vsel %vm5600_vm10, %v6677_v59, %v6832_v45  ;;  %v6840_v57 = vsel %vm5600_vm10, %v6709_v63, %v6839_v50  ;;  %v6237_v44 = vmul.f32 %v13733_v36, %v15615_v55  ;;  %v14137_v25 = vpop.permute.xlu1 %6911 }
 0x4ac   : > { %6872 = vst.msk [vmem:[#allocation3 + $0x19] sm:$0xff] %vm449_vm0, %v6826_v12  ;;  %v6330_v8 = vadd.f32 %v13722_v16, %v14007_v19  ;;  %6873 = vst.msk [vmem:[#allocation3 + $0x21] sm:$0xff] %vm449_vm0, %v6833_v48  ;;  %v6331_v20 = vadd.f32 %v13749_v22, %v6231_v38  ;;  %v6332_v40 = vadd.f32 %v13746_v58, %v6232_v56 }
 0x4ad   : > { %6874 = vst.msk [vmem:[#allocation3 + $0x29] sm:$0xff] %vm449_vm0, %v6840_v57  ;;  %v6333_v59 = vadd.f32 %v15616_v41, %v6233_v21  ;;  %v6334_v10 = vadd.f32 %v15617_v6, %v6234_v4  ;;  %v6335_v7 = vadd.f32 %v15618_v24, %v6235_v9  ;;  %v6336_v47 = vadd.f32 %v15619_v62, %v6236_v23  ;;  %v14131_v29 = vpop.permute.xlu0 %6901 }
 0x4ae   : > { %v6337_v19 = vadd.f32 %v15620_v13, %v6237_v44  ;;  %v6394_v63 = vmul.f32 0.2, %v6330_v8  ;;  %v6395_v30 = vmul.f32 0.2, %v6331_v20  ;;  %v6396_v5 = vmul.f32 0.2, %v6332_v40 }
 0x4af   : > { %v6397_v31 = vmul.f32 0.2, %v6333_v59  ;;  %v6398_v53 = vmul.f32 0.2, %v6334_v10  ;;  %v6399_v15 = vmul.f32 0.2, %v6335_v7  ;;  %v14154_v44 = vpop.permute.xlu1 %7075 }
 0x4b0   : > { %v6400_v33 = vmul.f32 0.2, %v6336_v47  ;;  %v6458_v38 = vmax.f32 %v6330_v8, %v6394_v63  ;;  %v6401_v27 = vmul.f32 0.2, %v6337_v19  ;;  %v6459_v1 = vmax.f32 %v6331_v20, %v6395_v30  ;;  %v15621_v20 = vld [vmem:[#allocation31_spill] sm:$0xff]  ;;  %v15625_v30 = vld [vmem:[#allocation33_spill] sm:$0xff] }
 0x4b1   : > { %v6460_v56 = vmax.f32 %v6332_v40, %v6396_v5  ;;  %v6461_v32 = vmax.f32 %v6333_v59, %v6397_v31  ;;  %v6462_v35 = vmax.f32 %v6334_v10, %v6398_v53  ;;  %v6463_v61 = vmax.f32 %v6335_v7, %v6399_v15  ;;  %v14144_v9 = vpop.permute.xlu0 %6906  ;;  %v15622_v40 = vld [vmem:[#allocation48_spill] sm:$0xff]  ;;  %v15623_v10 = vld [vmem:[#allocation30_spill] sm:$0xff]  ;;  %v15627_v15 = vld [vmem:[#allocation35_spill] sm:$0xff] }
 0x4b2   : > { %v6713_v51 = vrot.slane %v6458_v38, %v15526_v18  ;;  %v6717_v21 = vrot.slane %v6459_v1, %v15526_v18  ;;  %v6464_v49 = vmax.f32 %v6336_v47, %v6400_v33  ;;  %v6465_v11 = vmax.f32 %v6337_v19, %v6401_v27  ;;  %v15624_v47 = vld [vmem:[#allocation32_spill] sm:$0xff]  ;;  %v15626_v31 = vld [vmem:[#allocation34_spill] sm:$0xff]  ;;  %v15629_v27 = vld [vmem:[#allocation37_spill] sm:$0xff] }
 0x4b3   : > { %v6721_v2 = vrot.slane %v6460_v56, %v15526_v18  ;;  %v6725_v52 = vrot.slane %v6461_v32, %v15526_v18  ;;  %v14139_v4 = vld [vmem:[#allocation3 + $0x18] sm:$0xff]  ;;  %v6729_v37 = vrot.slane %v6462_v35, %v15526_v18  ;;  %v6733_v12 = vrot.slane %v6463_v61, %v15526_v18  ;;  %v15628_v38 = vld [vmem:[#allocation36_spill] sm:$0xff] }
 0x4b4   : > { %v6841_v39 = vsel %vm5588_vm13, %v6717_v21, %v6713_v51  ;;  %v6937_v50 = vmul.f32 %v14137_v25, %v14139_v4  ;;  %v6737_v43 = vrot.slane %v6464_v49, %v15526_v18  ;;  %v6741_v48 = vrot.slane %v6465_v11, %v15526_v18 }
 0x4b5   : > { %v6842_v17 = vsel %vm5590_vm14, %v6721_v2, %v6841_v39  ;;  %v6238_v59 = vmul.f32 %v15622_v40, %v15621_v20  ;;  %v6239_v7 = vmul.f32 %v13706_v34, %v15623_v10  ;;  %v6240_v19 = vmul.f32 %v13703_v42, %v15624_v47  ;;  %v14178_v32 = vpop.permute.xlu0 %6921  ;;  %v14199_v20 = vld [vmem:[#allocation3 + $0x10] sm:$0xff] }
 0x4b6   : > { %v6843_v45 = vsel %vm5592_vm15, %v6725_v52, %v6842_v17  ;;  %v10486_v55 = vpack.c.bf16 %v6937_v50, %v6937_v50  ;;  %v6241_v5 = vmul.f32 %v13714_v3, %v15625_v30  ;;  %v6242_v53 = vmul.f32 %v13699_v0, %v15626_v31  ;;  %v14180_v3 = vld [vmem:[#allocation3 + $0x20] sm:$0xff]  ;;  %v14188_v52 = vpop.permute.xlu1 %6916 }
 0x4b7   : > { %v6844_v23 = vsel %vm5594_vm1, %v6729_v37, %v6843_v45  ;;  %v6243_v33 = vmul.f32 %v13717_v46, %v15627_v15  ;;  %v6244_v34 = vmul.f32 %v13711_v26, %v15628_v38  ;;  %v6245_v42 = vmul.f32 %v13733_v36, %v15629_v27 }
 0x4b8   : > { %v6845_v57 = vsel %vm5596_vm12, %v6733_v12, %v6844_v23  ;;  %6977 = vst.msk [vmem:[#allocation4 + $0xc] sm:$0xf] %vm1192_vm2, %v10486_v55  ;;  %v6338_v1 = vadd.f32 %v13722_v16, %v6238_v59  ;;  %v6339_v56 = vadd.f32 %v13749_v22, %v6239_v7  ;;  %v6340_v0 = vadd.f32 %v13746_v58, %v6240_v19  ;;  %v7150_v12 = vld [vmem:[#allocation3 + $0x8] sm:$0xff] }
 0x4b9   : > { %v6846_v8 = vsel %vm5598_vm11, %v6737_v43, %v6845_v57  ;;  %v6341_v46 = vadd.f32 %v15616_v41, %v6241_v5  ;;  %v6342_v35 = vadd.f32 %v15617_v6, %v6242_v53  ;;  %v6343_v61 = vadd.f32 %v15618_v24, %v6243_v33  ;;  %v14212_v53 = vld [vmem:[#allocation3 + $0x28] sm:$0xff] }
 0x4ba   : > { %v6847_v63 = vsel %vm5600_vm10, %v6741_v48, %v6846_v8  ;;  %v6344_v26 = vadd.f32 %v15619_v62, %v6244_v34  ;;  %v6345_v36 = vadd.f32 %v15620_v13, %v6245_v42  ;;  %v6402_v51 = vmul.f32 0.2, %v6338_v1  ;;  %v14192_v13 = vpop.permute.xlu0 %6926  ;;  %v14204_v7 = vpop.permute.xlu1 %7079  ;;  %v6984_v42 = vld [vmem:[#allocation3 + $0x11] sm:$0xff] }
 0x4bb   : > { %6875 = vst.msk [vmem:[#allocation3 + $0x31] sm:$0xff] %vm449_vm0, %v6847_v63  ;;  %v6403_v16 = vmul.f32 0.2, %v6339_v56  ;;  %v6404_v21 = vmul.f32 0.2, %v6340_v0  ;;  %v6938_v41 = vmul.f32 %v14180_v3, %v14188_v52  ;;  %v6935_v10 = vmul.f32 %v7150_v12, %v14131_v29 }
 0x4bc   : > { %v6405_v22 = vmul.f32 0.2, %v6341_v46  ;;  %v6406_v2 = vmul.f32 0.2, %v6342_v35  ;;  %v6407_v49 = vmul.f32 0.2, %v6343_v61  ;;  %v6466_v58 = vmax.f32 %v6338_v1, %v6402_v51 }
 0x4bd   : > { %v6408_v11 = vmul.f32 0.2, %v6344_v26  ;;  %v6409_v6 = vmul.f32 0.2, %v6345_v36  ;;  %v6467_v39 = vmax.f32 %v6339_v56, %v6403_v16  ;;  %v6468_v24 = vmax.f32 %v6340_v0, %v6404_v21  ;;  %v6983_v0 = vld [vmem:[#allocation3 + $0x9] sm:$0xff]  ;;  %v15630_v21 = vld [vmem:[#allocation42_spill] sm:$0xff] }
 0x4be   : > { %v6469_v37 = vmax.f32 %v6341_v46, %v6405_v22  ;;  %v6470_v62 = vmax.f32 %v6342_v35, %v6406_v2  ;;  %v6471_v17 = vmax.f32 %v6343_v61, %v6407_v49  ;;  %v6745_v45 = vrot.slane %v6466_v58, %v15526_v18  ;;  %v7015_v47 = vpop.permute.xlu0 %7014  ;;  %v7046_v46 = vld [vmem:[#allocation3 + $0x2] sm:$0xff]  ;;  %v6985_v49 = vld [vmem:[#allocation3 + $0x19] sm:$0xff] }
 0x4bf   : > { %v6749_v50 = vrot.slane %v6467_v39, %v15526_v18  ;;  %v6753_v43 = vrot.slane %v6468_v24, %v15526_v18  ;;  %v6472_v48 = vmax.f32 %v6344_v26, %v6408_v11  ;;  %v6473_v57 = vmax.f32 %v6345_v36, %v6409_v6  ;;  %7038 = vst.msk [vmem:[#allocation4] sm:$0xf] %vm1449_vm3, %v7015_v47  ;;  %v14233_v36 = vld [vmem:[#allocation3 + $0x12] sm:$0xff]  ;;  %v7047_v11 = vld [vmem:[#allocation3 + $0xa] sm:$0xff] }
 0x4c0   : > { %v6757_v23 = vrot.slane %v6469_v37, %v15526_v18  ;;  %v10487_v8 = vpack.c.bf16 %v6938_v41, %v6938_v41  ;;  %v6761_v40 = vrot.slane %v6470_v62, %v15526_v18  ;;  %v6765_v19 = vrot.slane %v6471_v17, %v15526_v18  ;;  %v14248_v37 = vld [vmem:[#allocation3 + $0x1a] sm:$0xff]  ;;  %v15631_v17 = vld [vmem:[#allocation43_spill] sm:$0xff] }
 0x4c1   : > { %v6848_v55 = vsel %vm5588_vm13, %v6749_v50, %v6745_v45  ;;  %v6769_v30 = vrot.slane %v6472_v48, %v15526_v18  ;;  %v10484_v31 = vpack.c.bf16 %v6935_v10, %v6935_v10  ;;  %v6773_v15 = vrot.slane %v6473_v57, %v15526_v18  ;;  %v14224_v18 = vpop.permute.xlu1 %7083 }
 0x4c2   : > { %v6849_v59 = vsel %vm5590_vm14, %v6753_v43, %v6848_v55  ;;  %6978 = vst.msk [vmem:[#allocation4 + $0x10] sm:$0xf] %vm1192_vm2, %v10487_v8  ;;  %v6936_v38 = vmul.f32 %v14199_v20, %v14144_v9  ;;  %v14219_v27 = vld [vmem:[#allocation3 + $0x30] sm:$0xff]  ;;  %v6939_v35 = vmul.f32 %v14212_v53, %v14178_v32  ;;  %v14231_v26 = vpack.c.bf16 %v6984_v42, %v6984_v42 }
 0x4c3   : > { %v6850_v63 = vsel %vm5592_vm15, %v6757_v23, %v6849_v59  ;;  %6975 = vst.msk [vmem:[#allocation4 + $0x4] sm:$0xf] %vm1192_vm2, %v10484_v31  ;;  %v6940_v61 = vmul.f32 %v14219_v27, %v14192_v13  ;;  %v10492_v16 = vpack.c.bf16 %v6983_v0, %v6983_v0  ;;  %v7086_v22 = vmul.f32 %v15630_v21, %v7046_v46 }
 0x4c4   : > { %v6851_v5 = vsel %vm5594_vm1, %v6761_v40, %v6850_v63  ;;  %v10485_v56 = vpack.c.bf16 %v6936_v38, %v6936_v38  ;;  %v10488_v51 = vpack.c.bf16 %v6939_v35, %v6939_v35  ;;  %7018 = vrot.lane.b32.xlu0 %v14231_v26, %s10803_s30  ;;  %v7088_v58 = vmul.f32 %v14084_v60, %v14233_v36 }
 0x4c5   : > { %v6852_v33 = vsel %vm5596_vm12, %v6765_v19, %v6851_v5  ;;  %v10489_v2 = vpack.c.bf16 %v6940_v61, %v6940_v61  ;;  %7016 = vrot.lane.b32.xlu1 %v10492_v16, %s10803_s30  ;;  %v10499_v41 = vpack.c.bf16 %v7086_v22, %v7086_v22  ;;  %v14243_v6 = vpop.permute.xlu1 %6931  ;;  %v14245_v39 = vpack.c.bf16 %v6985_v49, %v6985_v49  ;;  %v7225_v5 = vld [vmem:[#allocation3 + $0x21] sm:$0xff] }
 0x4c6   : > { %v6853_v34 = vsel %vm5598_vm11, %v6769_v30, %v6852_v33  ;;  %6976 = vst.msk [vmem:[#allocation4 + $0x8] sm:$0xf] %vm1192_vm2, %v10485_v56  ;;  %6979 = vst.msk [vmem:[#allocation4 + $0x14] sm:$0xf] %vm1192_vm2, %v10488_v51  ;;  %v7087_v24 = vmul.f32 %v14077_v54, %v7047_v11  ;;  %v7158_v45 = vmul.f32 %v7150_v12, %v15631_v17 }
 0x4c7   : > { %v6854_v1 = vsel %vm5600_vm10, %v6773_v15, %v6853_v34  ;;  %6980 = vst.msk [vmem:[#allocation4 + $0x18] sm:$0xf] %vm1192_vm2, %v10489_v2  ;;  %v10501_v50 = vpack.c.bf16 %v7088_v58, %v7088_v58  ;;  %v7089_v23 = vmul.f32 %v14248_v37, %v14122_v28  ;;  %v7160_v12 = vmul.f32 %v14144_v9, %v14139_v4  ;;  %v7496_v34 = vld [vmem:[#allocation3 + $0x22] sm:$0xff]  ;;  %v7497_v58 = vld [vmem:[#allocation3 + $0x2a] sm:$0xff] }
 0x4c8   : > { %6876 = vst.msk [vmem:[#allocation3 + $0x39] sm:$0xff] %vm449_vm0, %v6854_v1  ;;  %7118 = vrot.lane.b32.xlu0 %v10499_v41, %s10805_s17  ;;  %v10500_v48 = vpack.c.bf16 %v7087_v24, %v7087_v24  ;;  %v10507_v8 = vpack.c.bf16 %v7158_v45, %v7158_v45  ;;  %v7159_v59 = vmul.f32 %v14199_v20, %v14131_v29  ;;  %v6988_v24 = vld [vmem:[#allocation3 + $0x31] sm:$0xff] }
 0x4c9   : > { %7020 = vrot.lane.b32.xlu1 %v14245_v39, %s10803_s30  ;;  %v10502_v40 = vpack.c.bf16 %v7089_v23, %v7089_v23  ;;  %v10509_v10 = vpack.c.bf16 %v7160_v12, %v7160_v12  ;;  %v7161_v47 = vmul.f32 %v14180_v3, %v14137_v25  ;;  %v7294_v30 = vmul.f32 %v15630_v21, %v7047_v11 }
 0x4ca   : > { %v10508_v19 = vpack.c.bf16 %v7159_v59, %v7159_v59  ;;  %v7296_v31 = vmul.f32 %v14248_v37, %v14084_v60  ;;  %v10518_v33 = vpack.c.bf16 %v7225_v5, %v7225_v5  ;;  %v7295_v38 = vmul.f32 %v14077_v54, %v14233_v36 }
 0x4cb   : > { %v10510_v63 = vpack.c.bf16 %v7161_v47, %v7161_v47  ;;  %v10523_v15 = vpack.c.bf16 %v7294_v30, %v7294_v30  ;;  %v7366_v42 = vmul.f32 %v14199_v20, %v15631_v17  ;;  %v7297_v56 = vmul.f32 %v7496_v34, %v14122_v28 }
 0x4cc   : > { %7122 = vrot.lane.b32.xlu0 %v10501_v50, %s10805_s17  ;;  %v10525_v1 = vpack.c.bf16 %v7296_v31, %v7296_v31  ;;  %v10524_v0 = vpack.c.bf16 %v7295_v38, %v7295_v38  ;;  %v7368_v35 = vmul.f32 %v14180_v3, %v14144_v9  ;;  %v7367_v51 = vmul.f32 %v14131_v29, %v14139_v4  ;;  %v7433_v4 = vld [vmem:[#allocation3 + $0x29] sm:$0xff] }
 0x4cd   : > { %7120 = vrot.lane.b32.xlu1 %v10500_v48, %s10805_s17  ;;  %v10531_v46 = vpack.c.bf16 %v7366_v42, %v7366_v42  ;;  %v10526_v61 = vpack.c.bf16 %v7297_v56, %v7297_v56  ;;  %v7502_v29 = vmul.f32 %v15630_v21, %v14233_v36  ;;  %v7503_v49 = vmul.f32 %v14248_v37, %v14077_v54  ;;  %v10711_v36 = vld [vmem:[%s15319_s3 + $0x8] sm:$0xff]   ;;  %v10713_v54 = vld [vmem:[%s15319_s3] sm:$0xff]  }
 0x4ce   : > { %v10533_v20 = vpack.c.bf16 %v7368_v35, %v7368_v35  ;;  %v10532_v22 = vpack.c.bf16 %v7367_v51, %v7367_v51  ;;  %v7504_v21 = vmul.f32 %v7496_v34, %v14084_v60  ;;  %v14334_v60 = vpack.c.bf16 %v6988_v24, %v6988_v24 }
 0x4cf   : > { %v14250_v62 = vld [vmem:[#allocation3 + $0x38] sm:$0xff]  ;;  %v10547_v9 = vpack.c.bf16 %v7502_v29, %v7502_v29  ;;  %v10548_v11 = vpack.c.bf16 %v7503_v49, %v7503_v49  ;;  %v7090_v37 = vmul.f32 %v7496_v34, %v14111_v14  ;;  %v7091_v23 = vmul.f32 %v7497_v58, %v14154_v44 }
 0x4d0   : > { %v6941_v43 = vmul.f32 %v14250_v62, %v14243_v6  ;;  %v14263_v55 = vmul.f32 %v14250_v62, %v14192_v13  ;;  %7190 = vrot.lane.b32.xlu0 %v10507_v8, %s10806_s18  ;;  %v10549_v41 = vpack.c.bf16 %v7504_v21, %v7504_v21  ;;  %v14337_v45 = vld [vmem:[#allocation3 + $0x32] sm:$0xff]  ;;  %v7162_v8 = vmul.f32 %v14212_v53, %v14188_v52 }
 0x4d1   : > { %7124 = vrot.lane.b32.xlu1 %v10502_v40, %s10805_s17  ;;  %v6989_v50 = vld [vmem:[#allocation3 + $0x39] sm:$0xff]  ;;  %v10504_v40 = vpack.c.bf16 %v7091_v23, %v7091_v23  ;;  %v7299_v34 = vmul.f32 %v14337_v45, %v14154_v44  ;;  %v7370_v56 = vmul.f32 %v14219_v27, %v14188_v52 }
 0x4d2   : > { %v10490_v57 = vpack.c.bf16 %v6941_v43, %v6941_v43  ;;  %v10503_v43 = vpack.c.bf16 %v7090_v37, %v7090_v37  ;;  %v14345_v48 = vpack.c.bf16 %v6989_v50, %v6989_v50  ;;  %v10764_v37 = vld [vmem:[%s10934_s20 + $0x30] sm:$0xff] }
 0x4d4   : > { %6981 = vst.msk [vmem:[#allocation4 + $0x1c] sm:$0xf] %vm1192_vm2, %v10490_v57  ;;  %7194 = vrot.lane.b32.xlu0 %v10509_v10, %s10806_s18  ;;  %v7499_v57 = vld [vmem:[#allocation3 + $0x3a] sm:$0xff]  ;;  %v10511_v10 = vpack.c.bf16 %v7162_v8, %v7162_v8  ;;  %vm15654_vm2 = vcmask 257248  }
 0x4d5   : > { %7192 = vrot.lane.b32.xlu1 %v10508_v19, %s10806_s18  ;;  %v7093_v59 = vmul.f32 %v7499_v57, %v14224_v18  ;;  %v7163_v19 = vmul.f32 %v14219_v27, %v14178_v32  ;;  %v7501_v27 = vld [vmem:[#allocation3 + $0x4a] sm:$0xff] }
 0x4d7   : > { %v10506_v47 = vpack.c.bf16 %v7093_v59, %v7093_v59  ;;  %v10512_v30 = vpack.c.bf16 %v7163_v19, %v7163_v19 }
 0x4d8   : > { %7254 = vrot.lane.b32.xlu0 %v10492_v16, %s10807_s19  ;;  %v7369_v16 = vmul.f32 %v14212_v53, %v14137_v25  ;;  %v10710_v25 = vld [vmem:[%s15319_s3 + $0x10] ss:$0 sps:$4 sm:$0x33]   ;;  %v10513_v53 = vpack.c.bf16 %v14263_v55, %v14263_v55  ;;  %v7300_v55 = vmul.f32 %v7499_v57, %v14204_v7 }
 0x4d9   : > { %7196 = vrot.lane.b32.xlu1 %v10510_v63, %s10806_s18  ;;  %10656 = vmatprep.subr.msk.bf16.mxu1 %vm3757_vm4, %v10710_v25  ;;  %v7634_v3 = vsel %vm3757_vm4, %v10710_v25, 0  ;;  %v7157_v63 = vld [vmem:[#allocation3 + $0x40] sm:$0xff]  ;;  %v7506_v25 = vmul.f32 %v14337_v45, %v14111_v14 }
 0x4da   : > { %v10534_v2 = vpack.c.bf16 %v7369_v16, %v7369_v16  ;;  %10625 = vmatpush3.bf16.msra.mxu1 %v7634_v3  ;;  %v7165_v5 = vmul.f32 %v7157_v63, %v14243_v6  ;;  %v7372_v51 = vmul.f32 %v7157_v63, %v14192_v13  ;;  %v7371_v16 = vmul.f32 %v14250_v62, %v14178_v32 }
 0x4db   : > { %10626 = vmatprep.subr.bf16.mxu1 %v10711_v36  ;;  %v14390_v13 = vmul.f32 %v7501_v27, %v14224_v18  ;;  %v14393_v32 = vmul.f32 %v7499_v57, %v14154_v44 }
 0x4dc   : > { %7258 = vrot.lane.b32.xlu0 %v14245_v39, %s10807_s19  ;;  %v10514_v31 = vpack.c.bf16 %v7165_v5, %v7165_v5  ;;  %v10537_v52 = vpack.c.bf16 %v7372_v51, %v7372_v51 }
 0x4dd   : > { %7256 = vrot.lane.b32.xlu1 %v14231_v26, %s10807_s19  ;;  %v10552_v44 = vpack.c.bf16 %v14393_v32, %v14393_v32 }
 0x4de   : > { %10627 = vmatpush3.bf16.msra.mxu1 %v10711_v36  ;;  %v15632_v36 = vld [vmem:[#allocation23_spill] sm:$0xff] }
 0x4df   : > { %10628 = vmatprep.subr.bf16.mxu1 %v10713_v54 }
 0x4e0   : > { %7326 = vrot.lane.b32.xlu0 %v10523_v15, %s10808_s23  ;;  %v7298_v15 = vmul.f32 %v7497_v58, %v14111_v14  ;;  %v9109_v14 = vld [vmem:[%s15323_s7] sm:$0x3] }
 0x4e1   : > { %7260 = vrot.lane.b32.xlu1 %v10518_v33, %s10807_s19 }
 0x4e2   : > { %10629 = vmatpush3.bf16.msra.mxu1 %v10713_v54  ;;  %v10527_v38 = vpack.c.bf16 %v7298_v15, %v7298_v15  ;;  %v10767_v15 = vld [vmem:[%s10934_s20 + $0x28] sm:$0xff] }
 0x4e3   : > { %10657 = vmatprep.subr.msk.bf16.mxu1 %vm3757_vm4, %v9109_v14 }
 0x4e4   : > { %7330 = vrot.lane.b32.xlu0 %v10525_v1, %s10808_s23  ;;  %v7500_v1 = vld [vmem:[#allocation3 + $0x42] sm:$0xff] }
 0x4e5   : > { %7328 = vrot.lane.b32.xlu1 %v10524_v0, %s10808_s23  ;;  %v10529_v0 = vpack.c.bf16 %v7300_v55, %v7300_v55  ;;  %v7301_v35 = vmul.f32 %v7500_v1, %v14224_v18  ;;  %v14396_v62 = vmul.f32 %v7500_v1, %v14204_v7  ;;  %v10554_v18 = vpack.c.bf16 %v14390_v13, %v14390_v13 }
 0x4e8   : > { %7398 = vrot.lane.b32.xlu0 %v10531_v46, %s10809_s24  ;;  %v10528_v46 = vpack.c.bf16 %v7299_v34, %v7299_v34 }
 0x4e9   : > { %7332 = vrot.lane.b32.xlu1 %v10526_v61, %s10808_s23  ;;  %v10535_v61 = vpack.c.bf16 %v7370_v56, %v7370_v56 }
 0x4ec   : > { %7402 = vrot.lane.b32.xlu0 %v10533_v20, %s10809_s24  ;;  %v10530_v20 = vpack.c.bf16 %v7301_v35, %v7301_v35 }
 0x4ed   : > { %7400 = vrot.lane.b32.xlu1 %v10532_v22, %s10809_s24  ;;  %v7365_v22 = vld [vmem:[#allocation3 + $0x48] sm:$0xff] }
 0x4ee   : > { %v7373_v29 = vmul.f32 %v7365_v22, %v14243_v6  ;;  %v7437_v6 = vld [vmem:[#allocation3 + $0x49] sm:$0xff] }
 0x4ef   : > { %v10546_v3 = vpack.c.bf16 %v7437_v6, %v7437_v6 }
 0x4f0   : > { %7462 = vrot.lane.b32.xlu0 %v14231_v26, %s10810_s25  ;;  %v10542_v26 = vpack.c.bf16 %v7433_v4, %v7433_v4  ;;  %v10538_v4 = vpack.c.bf16 %v7373_v29, %v7373_v29 }
 0x4f1   : > { %7404 = vrot.lane.b32.xlu1 %v10534_v2, %s10809_s24  ;;  %v10536_v2 = vpack.c.bf16 %v7371_v16, %v7371_v16  ;;  %v10768_v16 = vld [vmem:[%s10934_s20 + $0x38] sm:$0xff] }
 0x4f2   : > { %v7852_v22 = vcombine.high %v10768_v16, %v10768_v16 }
 0x4f4   : > { %7466 = vrot.lane.b32.xlu0 %v10518_v33, %s10810_s25 }
 0x4f5   : > { %7464 = vrot.lane.b32.xlu1 %v14245_v39, %s10810_s25  ;;  %v7505_v39 = vmul.f32 %v7497_v58, %v14122_v28  ;;  %v7092_v28 = vmul.f32 %v14337_v45, %v14204_v7  ;;  %v10553_v7 = vpack.c.bf16 %v14396_v62, %v14396_v62 }
 0x4f7   : > { %v10550_v17 = vpack.c.bf16 %v7505_v39, %v7505_v39  ;;  %v10505_v12 = vpack.c.bf16 %v7092_v28, %v7092_v28  ;;  %v10763_v39 = vld [vmem:[%s10934_s20 + $0x20] sm:$0xff] }
 0x4f8   : > { %7534 = vrot.lane.b32.xlu0 %v10547_v9, %s10811_s26  ;;  %v10551_v9 = vpack.c.bf16 %v7506_v25, %v7506_v25  ;;  %v7801_v24 = vcombine.high %v10763_v39, %v10763_v39  ;;  %v14542_v25 = vrot.slane %v7852_v22, %v15632_v36 }
 0x4f9   : > { %7468 = vrot.lane.b32.xlu1 %v10542_v26, %s10810_s25 }
 0x4fa   : > { %v14448_v57 = vrot.slane %v7801_v24, %v15632_v36  ;;  %15641 = vst [vmem:[#allocation14_spill] sm:$0xff] %v14542_v25 }
 0x4fc   : > { %7022 = vrot.lane.b32.xlu0 %v10518_v33, %s10803_s30  ;;  %v7229_v33 = vld [vmem:[#allocation3 + $0x41] sm:$0xff] }
 0x4fd   : > { %7536 = vrot.lane.b32.xlu1 %v10548_v11, %s10811_s26  ;;  %v10522_v42 = vpack.c.bf16 %v7229_v33, %v7229_v33  ;;  %v10762_v11 = vld [vmem:[%s10934_s20 + $0x10] sm:$0xff]  ;;  %v7818_v33 = vcombine.high %v10767_v15, %v10767_v15 }
 0x4fe   : > { %v7767_v58 = vcombine.high %v10762_v11, %v10762_v11  ;;  %v14419_v54 = vrot.slane %v10762_v11, %v15632_v36 }
 0x4ff   : > { %v14507_v35 = vrot.slane %v7818_v33, %v15632_v36 }
 0x500   : > { %7538 = vrot.lane.b32.xlu0 %v10549_v41, %s10811_s26  ;;  %v14425_v41 = vsel %vm3757_vm4, %v9109_v14, 0  ;;  %v14444_v23 = vcombine.high %v14419_v54, %v14419_v54  ;;  %v10067_v11 = vrot.slane %v14419_v54, 9  ;;  %vm15657_vm4 = vmmov %vm15654_vm2 }
 0x501   : > { %7024 = vrot.lane.b32.xlu1 %v10542_v26, %s10803_s30  ;;  %15633 = vst [vmem:[#allocation8_spill] sm:$0xff] %v14425_v41  ;;  %15636 = vst [vmem:[#allocation24_spill] sm:$0xff] %v14507_v35 }
 0x504   : > { %7026 = vrot.lane.b32.xlu0 %v14334_v60, %s10803_s30 }
 0x505   : > { %7540 = vrot.lane.b32.xlu1 %v10550_v17, %s10811_s26  ;;  %v7835_v17 = vcombine.high %v10764_v37, %v10764_v37 }
 0x508   : > { %7126 = vrot.lane.b32.xlu0 %v10503_v43, %s10805_s17  ;;  %v14440_v43 = vrot.slane %v7767_v58, %v15632_v36  ;;  %v10068_v58 = vrot.slane %v14444_v23, 9 }
 0x509   : > { %7028 = vrot.lane.b32.xlu1 %v14345_v48, %s10803_s30 }
 0x50a   : > { %v14472_v63 = vcombine.high %v14440_v43, %v14440_v43 }
 0x50c   : > { %7130 = vrot.lane.b32.xlu0 %v10505_v12, %s10805_s17  ;;  %v14455_v12 = vrot.slane %v10764_v37, %v15632_v36  ;;  %v10070_v24 = vrot.slane %v14472_v63, 9 }
 0x50d   : > { %7128 = vrot.lane.b32.xlu1 %v10504_v40, %s10805_s17  ;;  %v14458_v40 = vrot.slane %v7835_v17, %v15632_v36 }
 0x50e   : > { %15634 = vst [vmem:[#allocation7_spill] sm:$0xff] %v14455_v12  ;;  %v14496_v1 = vcombine.high %v14455_v12, %v14455_v12 }
 0x50f   : > { %15635 = vst [vmem:[#allocation9_spill] sm:$0xff] %v14458_v40 }
 0x510   : > { %7198 = vrot.lane.b32.xlu0 %v10511_v10, %s10806_s18  ;;  %v10765_v10 = vld [vmem:[%s10934_s20 + $0x8] sm:$0xff]  ;;  %v10084_v22 = vrot.slane %v14496_v1, 9 }
 0x511   : > { %7132 = vrot.lane.b32.xlu1 %v10506_v47, %s10805_s17  ;;  %v7750_v47 = vcombine.high %v10765_v10, %v10765_v10  ;;  %v14468_v19 = vrot.slane %v10765_v10, %v15632_v36 }
 0x513   : > { %v14489_v34 = vcombine.high %v14468_v19, %v14468_v19 }
 0x514   : > { %7202 = vrot.lane.b32.xlu0 %v10513_v53, %s10806_s18  ;;  %v10766_v53 = vld [vmem:[%s10934_s20 + $0x18] sm:$0xff] }
 0x515   : > { %7200 = vrot.lane.b32.xlu1 %v10512_v30, %s10806_s18  ;;  %v7784_v30 = vcombine.high %v10766_v53, %v10766_v53  ;;  %v14477_v5 = vrot.slane %v10766_v53, %v15632_v36 }
 0x517   : > { %v10071_v37 = vrot.slane %v14477_v5, 9 }
 0x518   : > { %7262 = vrot.lane.b32.xlu0 %v10542_v26, %s10807_s19  ;;  %v10761_v26 = vld [vmem:[%s10934_s20] sm:$0xff] }
 0x519   : > { %7204 = vrot.lane.b32.xlu1 %v10514_v31, %s10806_s18  ;;  %v7733_v49 = vcombine.high %v10761_v26, %v10761_v26  ;;  %v14415_v21 = vrot.slane %v10761_v26, %v15632_v36  ;;  %v14481_v31 = vcombine.high %v14448_v57, %v14448_v57 }
 0x51b   : > { %v14433_v50 = vrot.slane %v7733_v49, %v15632_v36  ;;  %v14437_v28 = vcombine.high %v14415_v21, %v14415_v21  ;;  %v10059_v29 = vrot.slane %v14415_v21, 9  ;;  %v14558_v49 = vcombine.high %v14542_v25, %v14542_v25 }
 0x51c   : > { %7266 = vrot.lane.b32.xlu0 %v14345_v48, %s10807_s19 }
 0x51d   : > { %7264 = vrot.lane.b32.xlu1 %v14334_v60, %s10807_s19  ;;  %v14464_v59 = vcombine.high %v14433_v50, %v14433_v50  ;;  %v10060_v62 = vrot.slane %v14437_v28, 9  ;;  %v10061_v6 = vrot.slane %v14433_v50, 9  ;;  %15643 = vst [vmem:[#allocation15_spill] sm:$0xff] %v14558_v49 }
 0x520   : > { %7334 = vrot.lane.b32.xlu0 %v10527_v38, %s10808_s23  ;;  %v14485_v38 = vrot.slane %v7750_v47, %v15632_v36 }
 0x521   : > { %7268 = vrot.lane.b32.xlu1 %v10522_v42, %s10807_s19  ;;  %s10194_s19 = sshll.u32 %s15745_s22, 6 }
 0x522   : > { %v14517_v51 = vcombine.high %v14485_v38, %v14485_v38  ;;  %v10065_v14 = vrot.slane %v14485_v38, 9 }
 0x524   : > { %7338 = vrot.lane.b32.xlu0 %v10529_v0, %s10808_s23  ;;  %v14500_v0 = vrot.slane %v7784_v30, %v15632_v36  ;;  %v10066_v26 = vrot.slane %v14517_v51, 9  ;;  %v10077_v30 = vrot.slane %v14448_v57, 9 }
 0x525   : > { %7336 = vrot.lane.b32.xlu1 %v10528_v46, %s10808_s23  ;;  %v14504_v46 = vcombine.high %v14477_v5, %v14477_v5 }
 0x526   : > { %v14533_v27 = vcombine.high %v14500_v0, %v14500_v0 }
 0x527   : > { %v10072_v17 = vrot.slane %v14504_v46, 9 }
 0x528   : > { %7406 = vrot.lane.b32.xlu0 %v10535_v61, %s10809_s24  ;;  %v14511_v61 = vcombine.high %v14458_v40, %v14458_v40  ;;  %v10074_v10 = vrot.slane %v14533_v27, 9 }
 0x529   : > { %7340 = vrot.lane.b32.xlu1 %v10530_v20, %s10808_s23 }
 0x52a   : > { %15637 = vst [vmem:[#allocation10_spill] sm:$0xff] %v14511_v61 }
 0x52c   : > { %7410 = vrot.lane.b32.xlu0 %v10537_v52, %s10809_s24  ;;  %v14525_v52 = vrot.slane %v10768_v16, %v15632_v36  ;;  %v10083_v16 = vrot.slane %v14455_v12, 9  ;;  %v8791_v12 = vadd.f32 %v10061_v6, %v14433_v50 }
 0x52d   : > { %7408 = vrot.lane.b32.xlu1 %v10536_v2, %s10809_s24  ;;  %v14537_v2 = vcombine.high %v14507_v35, %v14507_v35 }
 0x52e   : > { %15639 = vst [vmem:[#allocation11_spill] sm:$0xff] %v14525_v52  ;;  %v14546_v32 = vcombine.high %v14525_v52, %v14525_v52 }
 0x52f   : > { %15640 = vst [vmem:[#allocation12_spill] sm:$0xff] %v14537_v2 }
 0x530   : > { %7470 = vrot.lane.b32.xlu0 %v14334_v60, %s10810_s25  ;;  %v14429_v60 = vrot.slane %v10763_v39, %v15632_v36  ;;  %15642 = vst [vmem:[#allocation13_spill] sm:$0xff] %v14546_v32  ;;  %v10069_v39 = vrot.slane %v14440_v43, 9  ;;  %v10088_v41 = vrot.slane %v14546_v32, 9 }
 0x531   : > { %7412 = vrot.lane.b32.xlu1 %v10538_v4, %s10809_s24 }
 0x532   : > { %v14452_v8 = vcombine.high %v14429_v60, %v14429_v60  ;;  %v10075_v47 = vrot.slane %v14429_v60, 9  ;;  %v8799_v50 = vadd.f32 %v10069_v39, %v14440_v43 }
 0x534   : > { %7474 = vrot.lane.b32.xlu0 %v10522_v42, %s10810_s25  ;;  %v14492_v42 = vrot.slane %v10767_v15, %v15632_v36  ;;  %v10076_v53 = vrot.slane %v14452_v8, 9  ;;  %v10089_v36 = vrot.slane %v14542_v25, 9  ;;  %v8795_v25 = vadd.f32 %v10065_v14, %v14485_v38 }
 0x535   : > { %7472 = vrot.lane.b32.xlu1 %v14345_v48, %s10810_s25  ;;  %v8804_v38 = vadd.f32 %v10074_v10, %v14533_v27 }
 0x536   : > { %v7019_v45 = vpop.permute.xlu0 %7018  ;;  %v14521_v20 = vcombine.high %v14492_v42, %v14492_v42  ;;  %v10079_v15 = vrot.slane %v14492_v42, 9  ;;  %v15646_v27 = vld [vmem:[#allocation12_spill] sm:$0xff] }
 0x537   : > { %7040 = vst.msk [vmem:[#allocation4 + $0x8] sm:$0xf] %vm1449_vm3, %v7019_v45  ;;  %v7017_v48 = vpop.permute.xlu1 %7016  ;;  %v10073_v45 = vrot.slane %v14500_v0, 9 }
 0x538   : > { %7039 = vst.msk [vmem:[#allocation4 + $0x4] sm:$0xf] %vm1449_vm3, %v7017_v48  ;;  %7542 = vrot.lane.b32.xlu0 %v10551_v9, %s10811_s26  ;;  %15638 = vst [vmem:[#allocation25_spill] sm:$0xff] %v14521_v20  ;;  %v10063_v9 = vrot.slane %v14468_v19, 9  ;;  %v10080_v33 = vrot.slane %v14521_v20, 9 }
 0x539   : > { %7476 = vrot.lane.b32.xlu1 %v10546_v3, %s10810_s25  ;;  %v10064_v3 = vrot.slane %v14489_v34, 9  ;;  %s15295_s25 = scalar_lea.vmem %s15328_s12, %s10194_s19 }
 0x53a   : > { %v7119_v55 = vpop.permute.xlu0 %7118 }
 0x53b   : > { %7142 = vst.msk [vmem:[#allocation4] sm:$0xf] %vm1866_vm5, %v7119_v55  ;;  %v7021_v56 = vpop.permute.xlu1 %7020  ;;  %v10081_v55 = vrot.slane %v14507_v35, 9  ;;  %v10090_v35 = vrot.slane %v14558_v49, 9  ;;  %v8794_v32 = vadd.f32 %v10064_v3, %v14489_v34  ;;  %v8796_v49 = vadd.f32 %v10066_v26, %v14517_v51  ;;  %v15649_v3 = vld [vmem:[#allocation10_spill] sm:$0xff]  ;;  %v15650_v26 = vld [vmem:[#allocation11_spill] sm:$0xff] }
 0x53c   : > { %7041 = vst.msk [vmem:[#allocation4 + $0xc] sm:$0xf] %vm1449_vm3, %v7021_v56  ;;  %7546 = vrot.lane.b32.xlu0 %v10553_v7, %s10811_s26  ;;  %v10082_v56 = vrot.slane %v14537_v2, 9  ;;  %v8790_v2 = vadd.f32 %v10060_v62, %v14437_v28  ;;  %v8798_v28 = vadd.f32 %v10068_v58, %v14444_v23  ;;  %v8803_v34 = vadd.f32 %v10073_v45, %v14500_v0  ;;  %v15645_v62 = vld [vmem:[#allocation24_spill] sm:$0xff]  ;;  %v15652_v58 = vld [vmem:[#allocation14_spill] sm:$0xff] }
 0x53d   : > { %7544 = vrot.lane.b32.xlu1 %v10552_v44, %s10811_s26  ;;  %v10062_v44 = vrot.slane %v14464_v59, 9  ;;  %v8806_v51 = vadd.f32 %v10076_v53, %v14452_v8  ;;  %v8811_v0 = vadd.f32 %v10081_v55, %v15645_v62  ;;  %v8814_v8 = vadd.f32 %v10084_v22, %v14496_v1 }
 0x53e   : > { %v7123_v4 = vpop.permute.xlu0 %7122  ;;  %v8812_v6 = vadd.f32 %v10082_v56, %v15646_v27  ;;  %v8819_v39 = vadd.f32 %v10089_v36, %v15652_v58  ;;  %v8918_v10 = vadd.f32 %v8798_v28, %v8790_v2 }
 0x53f   : > { %7144 = vst.msk [vmem:[#allocation4 + $0x8] sm:$0xf] %vm1866_vm5, %v7123_v4  ;;  %v7121_v7 = vpop.permute.xlu1 %7120  ;;  %v10085_v4 = vrot.slane %v14458_v40, 9 }
 0x540   : > { %7143 = vst.msk [vmem:[#allocation4 + $0x4] sm:$0xf] %vm1866_vm5, %v7121_v7  ;;  %v10086_v7 = vrot.slane %v14511_v61, 9  ;;  %v8792_v61 = vadd.f32 %v10062_v44, %v14464_v59  ;;  %v8801_v59 = vadd.f32 %v10071_v37, %v14477_v5  ;;  %v15644_v5 = vld [vmem:[#allocation25_spill] sm:$0xff]  ;;  %v15653_v37 = vld [vmem:[#allocation15_spill] sm:$0xff] }
 0x541   : > { %7548 = vrot.lane.b32.xlu1 %v10554_v18, %s10811_s26  ;;  %v10078_v18 = vrot.slane %v14481_v31, 9 }
 0x542   : > { %v7191_v48 = vpop.permute.xlu0 %7190  ;;  %v8816_v14 = vadd.f32 %v10086_v7, %v15649_v3  ;;  %v8982_v7 = vmul.f32 0.25, %v8918_v10 }
 0x543   : > { %7214 = vst.msk [vmem:[#allocation4] sm:$0xf] %vm2155_vm6, %v7191_v48  ;;  %v7125_v13 = vpop.permute.xlu1 %7124  ;;  %v10087_v48 = vrot.slane %v14525_v52, 9  ;;  %v8793_v52 = vadd.f32 %v10063_v9, %v14468_v19  ;;  %v8802_v19 = vadd.f32 %v10072_v17, %v14504_v46  ;;  %v8808_v23 = vadd.f32 %v10078_v18, %v14481_v31 }
 0x544   : > { %7145 = vst.msk [vmem:[#allocation4 + $0xc] sm:$0xf] %vm1866_vm5, %v7125_v13  ;;  %v8789_v13 = vadd.f32 %v10059_v29, %v14415_v21  ;;  %v8797_v21 = vadd.f32 %v10067_v11, %v14419_v54  ;;  %v8807_v54 = vadd.f32 %v10077_v30, %v14448_v57  ;;  %v8810_v46 = vadd.f32 %v10080_v33, %v15644_v5  ;;  %v15648_v57 = vld [vmem:[#allocation9_spill] sm:$0xff] }
 0x545   : > { %v8815_v9 = vadd.f32 %v10085_v4, %v15648_v57  ;;  %v8817_v31 = vadd.f32 %v10087_v48, %v15650_v26  ;;  %v15651_v11 = vld [vmem:[#allocation13_spill] sm:$0xff]  ;;  %v8820_v17 = vadd.f32 %v10090_v35, %v15653_v37  ;;  %v8921_v30 = vadd.f32 %v8801_v59, %v8793_v52 }
 0x546   : > { %v7195_v20 = vpop.permute.xlu0 %7194  ;;  %v8917_v45 = vadd.f32 %v8797_v21, %v8789_v13  ;;  %v8922_v18 = vadd.f32 %v8802_v19, %v8794_v32  ;;  %v8924_v33 = vadd.f32 %v8804_v38, %v8796_v49  ;;  %v8928_v36 = vadd.f32 %v8816_v14, %v8808_v23 }
 0x547   : > { %7216 = vst.msk [vmem:[#allocation4 + $0x8] sm:$0xf] %vm2155_vm6, %v7195_v20  ;;  %v7193_v40 = vpop.permute.xlu1 %7192  ;;  %v8800_v20 = vadd.f32 %v10070_v24, %v14472_v63  ;;  %v8809_v63 = vadd.f32 %v10079_v15, %v14492_v42  ;;  %v8818_v42 = vadd.f32 %v10088_v41, %v15651_v11  ;;  %v8923_v15 = vadd.f32 %v8803_v34, %v8795_v25 }
 0x548   : > { %7215 = vst.msk [vmem:[#allocation4 + $0x4] sm:$0xf] %vm2155_vm6, %v7193_v40  ;;  %v8805_v40 = vadd.f32 %v10075_v47, %v14429_v60  ;;  %v15647_v60 = vld [vmem:[#allocation7_spill] sm:$0xff]  ;;  %v8919_v47 = vadd.f32 %v8799_v50, %v8791_v12  ;;  %v8926_v41 = vadd.f32 %v8814_v8, %v8806_v51  ;;  %v8927_v56 = vadd.f32 %v8815_v9, %v8807_v54 }
 0x549   : > { %v8813_v44 = vadd.f32 %v10083_v16, %v15647_v60  ;;  %v8920_v1 = vadd.f32 %v8800_v20, %v8792_v61  ;;  %v8929_v16 = vadd.f32 %v8817_v31, %v8809_v63  ;;  %v8930_v22 = vadd.f32 %v8818_v42, %v8810_v46 }
 0x54a   : > { %v7255_v29 = vpop.permute.xlu0 %7254  ;;  %v8931_v35 = vadd.f32 %v8819_v39, %v8811_v0  ;;  %v8932_v2 = vadd.f32 %v8820_v17, %v8812_v6  ;;  %v8981_v12 = vmul.f32 0.25, %v8917_v45  ;;  %v8983_v48 = vmul.f32 0.25, %v8919_v47 }
 0x54b   : > { %7278 = vst.msk [vmem:[#allocation4] sm:$0xf] %vm2412_vm7, %v7255_v29  ;;  %v7197_v43 = vpop.permute.xlu1 %7196  ;;  %v8925_v55 = vadd.f32 %v8813_v44, %v8805_v40  ;;  %v8984_v52 = vmul.f32 0.25, %v8920_v1  ;;  %v8985_v25 = vmul.f32 0.25, %v8921_v30  ;;  %v8986_v32 = vmul.f32 0.25, %v8922_v18 }
 0x54c   : > { %7217 = vst.msk [vmem:[#allocation4 + $0xc] sm:$0xf] %vm2155_vm6, %v7197_v43  ;;  %v8987_v13 = vmul.f32 0.25, %v8923_v15  ;;  %v8988_v49 = vmul.f32 0.25, %v8924_v33  ;;  %v8990_v28 = vmul.f32 0.25, %v8926_v41  ;;  %v8991_v50 = vmul.f32 0.25, %v8927_v56 }
 0x54d   : > { %v8989_v21 = vmul.f32 0.25, %v8925_v55  ;;  %v8992_v20 = vmul.f32 0.25, %v8928_v36  ;;  %v8993_v59 = vmul.f32 0.25, %v8929_v16  ;;  %v8994_v19 = vmul.f32 0.25, %v8930_v22 }
 0x54e   : > { %v7259_v24 = vpop.permute.xlu0 %7258  ;;  %v8995_v34 = vmul.f32 0.25, %v8931_v35  ;;  %v8996_v38 = vmul.f32 0.25, %v8932_v2  ;;  %v9045_v40 = vpack.c.bf16 %v8981_v12, %v8981_v12  ;;  %v9046_v51 = vpack.c.bf16 %v8982_v7, %v8982_v7 }
 0x54f   : > { %7280 = vst.msk [vmem:[#allocation4 + $0x8] sm:$0xf] %vm2412_vm7, %v7259_v24  ;;  %v7257_v53 = vpop.permute.xlu1 %7256  ;;  %v9047_v54 = vpack.c.bf16 %v8983_v48, %v8983_v48  ;;  %v9048_v23 = vpack.c.bf16 %v8984_v52, %v8984_v52  ;;  %v9049_v63 = vpack.c.bf16 %v8985_v25, %v8985_v25  ;;  %v9050_v5 = vpack.c.bf16 %v8986_v32, %v8986_v32 }
 0x550   : > { %7279 = vst.msk [vmem:[#allocation4 + $0x4] sm:$0xf] %vm2412_vm7, %v7257_v53  ;;  %v9051_v46 = vpack.c.bf16 %v8987_v13, %v8987_v13  ;;  %v9052_v62 = vpack.c.bf16 %v8988_v49, %v8988_v49  ;;  %v9053_v0 = vpack.c.bf16 %v8989_v21, %v8989_v21  ;;  %v9054_v27 = vpack.c.bf16 %v8990_v28, %v8990_v28  ;;  %v10769_v28 = vld [vmem:[%s10934_s20 + $0x40] sm:$0xff] }
 0x551   : > { %v9055_v6 = vpack.c.bf16 %v8991_v50, %v8991_v50  ;;  %v9056_v60 = vpack.c.bf16 %v8992_v20, %v8992_v20  ;;  %v9057_v44 = vpack.c.bf16 %v8993_v59, %v8993_v59  ;;  %v9058_v8 = vpack.c.bf16 %v8994_v19, %v8994_v19 }
 0x552   : > { %v7327_v4 = vpop.permute.xlu0 %7326  ;;  %v9059_v57 = vpack.c.bf16 %v8995_v34, %v8995_v34  ;;  %v9060_v3 = vpack.c.bf16 %v8996_v38, %v8996_v38  ;;  %v9174_v14 = vunpack.c.l.b16 %v9045_v40  ;;  %v9175_v26 = vunpack.c.l.b16 %v9046_v51  ;;  %v15655_v34 = vld [vmem:[#allocation23_spill] sm:$0xff]  ;;  %v10770_v38 = vld [vmem:[%s10934_s20 + $0x48] sm:$0xff] }
 0x553   : > { %7350 = vst.msk [vmem:[#allocation4] sm:$0xf] %vm2701_vm8, %v7327_v4  ;;  %v7261_v61 = vpop.permute.xlu1 %7260  ;;  %v9176_v31 = vunpack.c.l.b16 %v9047_v54  ;;  %v9177_v42 = vunpack.c.l.b16 %v9048_v23  ;;  %v9178_v58 = vunpack.c.l.b16 %v9049_v63  ;;  %v9179_v39 = vunpack.c.l.b16 %v9050_v5 }
 0x554   : > { %7281 = vst.msk [vmem:[#allocation4 + $0xc] sm:$0xf] %vm2412_vm7, %v7261_v61  ;;  %v9180_v24 = vunpack.c.l.b16 %v9051_v46  ;;  %v9181_v37 = vunpack.c.l.b16 %v9052_v62  ;;  %v9182_v17 = vunpack.c.l.b16 %v9053_v0  ;;  %v9183_v45 = vunpack.c.l.b16 %v9054_v27 }
 0x555   : > { %v9184_v10 = vunpack.c.l.b16 %v9055_v6  ;;  %v9185_v47 = vunpack.c.l.b16 %v9056_v60  ;;  %v9186_v53 = vunpack.c.l.b16 %v9057_v44  ;;  %v9187_v1 = vunpack.c.l.b16 %v9058_v8 }
 0x556   : > { %v7331_v29 = vpop.permute.xlu0 %7330  ;;  %v9188_v30 = vunpack.c.l.b16 %v9059_v57  ;;  %v9189_v15 = vunpack.c.l.b16 %v9060_v3  ;;  %v9238_v33 = vrot.slane %v9175_v26, 7  ;;  %v9240_v55 = vrot.slane %v9176_v31, 6  ;;  %v10771_v3 = vld [vmem:[%s10934_s20 + $0x50] sm:$0xff] }
 0x557   : > { %7352 = vst.msk [vmem:[#allocation4 + $0x8] sm:$0xf] %vm2701_vm8, %v7331_v29  ;;  %v7329_v43 = vpop.permute.xlu1 %7328  ;;  %v9242_v41 = vrot.slane %v9177_v42, 5  ;;  %v9244_v36 = vrot.slane %v9178_v58, 4  ;;  %v9246_v16 = vrot.slane %v9179_v39, 3  ;;  %v9248_v22 = vrot.slane %v9180_v24, 2 }
 0x558   : > { %7351 = vst.msk [vmem:[#allocation4 + $0x4] sm:$0xf] %vm2701_vm8, %v7329_v43  ;;  %v9250_v35 = vrot.slane %v9181_v37, 1  ;;  %v9239_v4 = vsel %vm5588_vm13, %v9238_v33, %v9174_v14  ;;  %v9252_v2 = vrot.slane %v9183_v45, 7  ;;  %v9254_v12 = vrot.slane %v9184_v10, 6  ;;  %v10773_v39 = vld [vmem:[%s10934_s20 + $0x60] sm:$0xff] }
 0x559   : > { %v9256_v7 = vrot.slane %v9185_v47, 5  ;;  %v9241_v48 = vsel %vm5590_vm14, %v9240_v55, %v9239_v4  ;;  %v9258_v61 = vrot.slane %v9186_v53, 4  ;;  %v9260_v52 = vrot.slane %v9187_v1, 3 }
 0x55a   : > { %v7399_v9 = vpop.permute.xlu0 %7398  ;;  %v9262_v25 = vrot.slane %v9188_v30, 2  ;;  %v9243_v13 = vsel %vm5592_vm15, %v9242_v41, %v9241_v48  ;;  %v9253_v49 = vsel %vm5588_vm13, %v9252_v2, %v9182_v17  ;;  %v9264_v21 = vrot.slane %v9189_v15, 1  ;;  %v10776_v48 = vld [vmem:[%s10934_s20 + $0x78] sm:$0xff] }
 0x55b   : > { %7422 = vst.msk [vmem:[#allocation4] sm:$0xf] %vm2990_vm9, %v7399_v9  ;;  %v7333_v11 = vpop.permute.xlu1 %7332  ;;  %v7869_v50 = vcombine.high %v10769_v28, %v10769_v28  ;;  %v9245_v59 = vsel %vm5594_vm1, %v9244_v36, %v9243_v13  ;;  %v9255_v19 = vsel %vm5590_vm14, %v9254_v12, %v9253_v49  ;;  %v14645_v29 = vrot.slane %v10769_v28, %v15655_v34  ;;  %v10775_v36 = vld [vmem:[%s10934_s20 + $0x70] sm:$0xff] }
 0x55c   : > { %7353 = vst.msk [vmem:[#allocation4 + $0xc] sm:$0xf] %vm2701_vm8, %v7333_v11  ;;  %v7886_v40 = vcombine.high %v10770_v38, %v10770_v38  ;;  %v9247_v51 = vsel %vm5596_vm12, %v9246_v16, %v9245_v59  ;;  %v9257_v54 = vsel %vm5592_vm15, %v9256_v7, %v9255_v19  ;;  %v14655_v23 = vrot.slane %v10770_v38, %v15655_v34  ;;  %v10772_v11 = vld [vmem:[%s10934_s20 + $0x58] sm:$0xff] }
 0x55d   : > { %v14652_v43 = vrot.slane %v7869_v50, %v15655_v34  ;;  %v9249_v63 = vsel %vm5598_vm11, %v9248_v22, %v9247_v51  ;;  %v9259_v5 = vsel %vm5594_vm1, %v9258_v61, %v9257_v54  ;;  %v14661_v46 = vcombine.high %v14645_v29, %v14645_v29 }
 0x55e   : > { %v7403_v18 = vpop.permute.xlu0 %7402  ;;  %v14664_v62 = vrot.slane %v7886_v40, %v15655_v34  ;;  %v14667_v27 = vsel %vm5600_vm10, %v9250_v35, %v9249_v63  ;;  %v9261_v6 = vsel %vm5596_vm12, %v9260_v52, %v9259_v5  ;;  %v14676_v44 = vcombine.high %v14655_v23, %v14655_v23 }
 0x55f   : > { %7424 = vst.msk [vmem:[#allocation4 + $0x8] sm:$0xf] %vm2990_vm9, %v7403_v18  ;;  %v7401_v56 = vpop.permute.xlu1 %7400  ;;  %15656 = vst [vmem:[#allocation16_spill] sm:$0xff] %v14667_v27  ;;  %v14672_v60 = vcombine.high %v14652_v43, %v14652_v43  ;;  %v9263_v57 = vsel %vm5598_vm11, %v9262_v25, %v9261_v6  ;;  %v7903_v14 = vcombine.high %v10771_v3, %v10771_v3  ;;  %v10774_v18 = vld [vmem:[%s10934_s20 + $0x68] sm:$0xff]  ;;  %v10091_v49 = vrot.slane %v14645_v29, 9 }
 0x560   : > { %7423 = vst.msk [vmem:[#allocation4 + $0x4] sm:$0xf] %vm2990_vm9, %v7401_v56  ;;  %v14682_v9 = vcombine.high %v14664_v62, %v14664_v62  ;;  %v14686_v26 = vrot.slane %v10771_v3, %v15655_v34  ;;  %v14690_v31 = vsel %vm5600_vm10, %v9264_v21, %v9263_v57  ;;  %v7920_v42 = vcombine.high %v10772_v11, %v10772_v11 }
 0x561   : > { %15658 = vst [vmem:[#allocation17_spill] sm:$0xff] %v14690_v31  ;;  %v14694_v58 = vrot.slane %v10772_v11, %v15655_v34  ;;  %v7937_v24 = vcombine.high %v10773_v39, %v10773_v39  ;;  %v14700_v17 = vrot.slane %v7903_v14, %v15655_v34  ;;  %v14707_v10 = vrot.slane %v10773_v39, %v15655_v34 }
 0x562   : > { %v7463_v32 = vpop.permute.xlu0 %7462  ;;  %v14704_v45 = vcombine.high %v14686_v26, %v14686_v26  ;;  %v14710_v53 = vrot.slane %v7920_v42, %v15655_v34  ;;  %v7954_v15 = vcombine.high %v10774_v18, %v10774_v18  ;;  %v14730_v56 = vrot.slane %v10774_v18, %v15655_v34 }
 0x563   : > { %7486 = vst.msk [vmem:[#allocation4] sm:$0xf] %vm15654_vm2, %v7463_v32  ;;  %v7405_v20 = vpop.permute.xlu1 %7404  ;;  %v14714_v1 = vcombine.high %v14694_v58, %v14694_v58  ;;  %v14717_v30 = vrot.slane %v7937_v24, %v15655_v34  ;;  %v14723_v55 = vcombine.high %v14700_v17, %v14700_v17  ;;  %v14727_v41 = vcombine.high %v14707_v10, %v14707_v10 }
 0x564   : > { %7425 = vst.msk [vmem:[#allocation4 + $0xc] sm:$0xf] %vm2990_vm9, %v7405_v20  ;;  %v7971_v16 = vcombine.high %v10775_v36, %v10775_v36  ;;  %v14736_v22 = vcombine.high %v14710_v53, %v14710_v53  ;;  %v14743_v4 = vrot.slane %v7954_v15, %v15655_v34  ;;  %v14746_v2 = vrot.slane %v10775_v36, %v15655_v34 }
 0x565   : > { %v14740_v35 = vcombine.high %v14717_v30, %v14717_v30  ;;  %v14750_v12 = vcombine.high %v14730_v56, %v14730_v56  ;;  %v7988_v61 = vcombine.high %v10776_v48, %v10776_v48  ;;  %v14757_v52 = vrot.slane %v10776_v48, %v15655_v34 }
 0x566   : > { %v7467_v0 = vpop.permute.xlu0 %7466  ;;  %15660 = vst [vmem:[#allocation19_spill] sm:$0xff] %v14743_v4  ;;  %15661 = vst [vmem:[#allocation18_spill] sm:$0xff] %v14746_v2  ;;  %v14753_v7 = vrot.slane %v7971_v16, %v15655_v34  ;;  %v14761_v32 = vcombine.high %v14743_v4, %v14743_v4  ;;  %v14765_v13 = vcombine.high %v14746_v2, %v14746_v2  ;;  %v10092_v21 = vrot.slane %v14661_v46, 9 }
 0x567   : > { %7488 = vst.msk [vmem:[#allocation4 + $0x8] sm:$0xf] %vm15657_vm4, %v7467_v0  ;;  %v7465_v8 = vpop.permute.xlu1 %7464  ;;  %vm15659_vm4 = vcmask 290048   ;;  %15662 = vst [vmem:[#allocation20_spill] sm:$0xff] %v14750_v12  ;;  %v14775_v20 = vrot.slane %v7988_v61, %v15655_v34  ;;  %v14779_v59 = vcombine.high %v14757_v52, %v14757_v52  ;;  %v10093_v19 = vrot.slane %v14652_v43, 9 }
 0x568   : > { %7487 = vst.msk [vmem:[#allocation4 + $0x4] sm:$0xf] %vm15654_vm2, %v7465_v8  ;;  %15663 = vst [vmem:[#allocation22_spill] sm:$0xff] %v14757_v52  ;;  %v14772_v50 = vcombine.high %v14753_v7, %v14753_v7  ;;  %v10094_v38 = vrot.slane %v14672_v60, 9  ;;  %v10095_v40 = vrot.slane %v14655_v23, 9  ;;  %v10096_v51 = vrot.slane %v14676_v44, 9 }
 0x569   : > { %15664 = vst [vmem:[#allocation21_spill] sm:$0xff] %v14761_v32  ;;  %15665 = vst [vmem:[#allocation5_spill] sm:$0xff] %v14765_v13  ;;  %v10097_v54 = vrot.slane %v14664_v62, 9  ;;  %v14789_v63 = vcombine.high %v14775_v20, %v14775_v20  ;;  %v10098_v5 = vrot.slane %v14682_v9, 9  ;;  %v10099_v0 = vrot.slane %v14686_v26, 9 }
 0x56a   : > { %v7535_v47 = vpop.permute.xlu0 %7534  ;;  %15666 = vst [vmem:[#allocation6_spill] sm:$0xff] %v14772_v50  ;;  %15667 = vst [vmem:[#allocation26_spill] sm:$0xff] %v14775_v20  ;;  %v10100_v6 = vrot.slane %v14704_v45, 9  ;;  %v10101_v57 = vrot.slane %v14700_v17, 9  ;;  %v10102_v3 = vrot.slane %v14723_v55, 9  ;;  %v10103_v14 = vrot.slane %v14694_v58, 9 }
 0x56b   : > { %7558 = vst.msk [vmem:[#allocation4] sm:$0xf] %vm15659_vm4, %v7535_v47  ;;  %v7469_v33 = vpop.permute.xlu1 %7468  ;;  %15668 = vst [vmem:[#allocation27_spill] sm:$0xff] %v14779_v59  ;;  %v10104_v11 = vrot.slane %v14714_v1, 9  ;;  %v10105_v39 = vrot.slane %v14710_v53, 9  ;;  %v10106_v24 = vrot.slane %v14736_v22, 9 }
 0x56c   : > { %7489 = vst.msk [vmem:[#allocation4 + $0xc] sm:$0xf] %vm15654_vm2, %v7469_v33  ;;  %15669 = vst [vmem:[#allocation28_spill] sm:$0xff] %v14789_v63  ;;  %v10107_v47 = vrot.slane %v14707_v10, 9  ;;  %v10108_v18 = vrot.slane %v14727_v41, 9  ;;  %v10109_v15 = vrot.slane %v14717_v30, 9 }
 0x56d   : > { %vm15670_vm2 = vmmov %vm15659_vm4  ;;  %v10110_v33 = vrot.slane %v14740_v35, 9  ;;  %v10111_v36 = vrot.slane %v14730_v56, 9  ;;  %v10112_v16 = vrot.slane %v14750_v12, 9  ;;  %v10113_v48 = vrot.slane %v14743_v4, 9 }
 0x56e   : > { %v7023_v25 = vpop.permute.xlu0 %7022  ;;  %v10114_v61 = vrot.slane %v14761_v32, 9  ;;  %v10117_v37 = vrot.slane %v14753_v7, 9  ;;  %v10119_v27 = vrot.slane %v14757_v52, 9  ;;  %v10120_v31 = vrot.slane %v14779_v59, 9 }
 0x56f   : > { %7042 = vst.msk [vmem:[#allocation4 + $0x10] sm:$0xf] %vm1449_vm3, %v7023_v25  ;;  %v7537_v28 = vpop.permute.xlu1 %7536  ;;  %v10115_v25 = vrot.slane %v14746_v2, 9  ;;  %v10121_v4 = vrot.slane %v14775_v20, 9  ;;  %v10122_v32 = vrot.slane %v14789_v63, 9  ;;  %v8821_v2 = vadd.f32 %v10091_v49, %v14645_v29 }
 0x570   : > { %7559 = vst.msk [vmem:[#allocation4 + $0x4] sm:$0xf] %vm15659_vm4, %v7537_v28  ;;  %v10116_v28 = vrot.slane %v14765_v13, 9  ;;  %v8822_v13 = vadd.f32 %v10092_v21, %v14661_v46  ;;  %vm15671_vm4 = vmmov %vm15670_vm2  ;;  %v8824_v52 = vadd.f32 %v10094_v38, %v14672_v60  ;;  %v8825_v59 = vadd.f32 %v10095_v40, %v14655_v23  ;;  %v15674_v21 = vld [vmem:[#allocation19_spill] sm:$0xff]  ;;  %v15675_v38 = vld [vmem:[#allocation21_spill] sm:$0xff] }
 0x571   : > { %v8827_v20 = vadd.f32 %v10097_v54, %v14664_v62  ;;  %v8828_v63 = vadd.f32 %v10098_v5, %v14682_v9  ;;  %v8829_v29 = vadd.f32 %v10099_v0, %v14686_v26  ;;  %v8830_v46 = vadd.f32 %v10100_v6, %v14704_v45  ;;  %v15676_v40 = vld [vmem:[#allocation18_spill] sm:$0xff] }
 0x572   : > { %v7539_v8 = vpop.permute.xlu0 %7538  ;;  %v8833_v60 = vadd.f32 %v10103_v14, %v14694_v58  ;;  %v8834_v23 = vadd.f32 %v10104_v11, %v14714_v1  ;;  %v8835_v62 = vadd.f32 %v10105_v39, %v14710_v53  ;;  %v8836_v9 = vadd.f32 %v10106_v24, %v14736_v22  ;;  %v15673_v1 = vld [vmem:[#allocation20_spill] sm:$0xff]  ;;  %v15678_v5 = vld [vmem:[#allocation6_spill] sm:$0xff] }
 0x573   : > { %7560 = vst.msk [vmem:[#allocation4 + $0x8] sm:$0xf] %vm15670_vm2, %v7539_v8  ;;  %v7025_v42 = vpop.permute.xlu1 %7024  ;;  %vm15672_vm2 = vcmask 293888   ;;  %v8837_v26 = vadd.f32 %v10107_v47, %v14707_v10  ;;  %v8838_v45 = vadd.f32 %v10108_v18, %v14727_v41  ;;  %v8841_v58 = vadd.f32 %v10111_v36, %v14730_v56  ;;  %v15681_v14 = vld [vmem:[#allocation26_spill] sm:$0xff]  ;;  %v15682_v39 = vld [vmem:[#allocation28_spill] sm:$0xff] }
 0x574   : > { %7043 = vst.msk [vmem:[#allocation4 + $0x14] sm:$0xf] %vm1449_vm3, %v7025_v42  ;;  %v10118_v42 = vrot.slane %v14772_v50, 9  ;;  %v8823_v50 = vadd.f32 %v10093_v19, %v14652_v43  ;;  %v8832_v43 = vadd.f32 %v10102_v3, %v14723_v55  ;;  %v8840_v55 = vadd.f32 %v10110_v33, %v14740_v35  ;;  %v15680_v35 = vld [vmem:[#allocation27_spill] sm:$0xff] }
 0x575   : > { %v8843_v19 = vadd.f32 %v10113_v48, %v15674_v21  ;;  %v8844_v53 = vadd.f32 %v10114_v61, %v15675_v38  ;;  %v8845_v22 = vadd.f32 %v10115_v25, %v15676_v40  ;;  %v8847_v41 = vadd.f32 %v10117_v37, %v14753_v7  ;;  %v15684_v61 = vld [vmem:[#allocation8_spill] sm:$0xff] }
 0x576   : > { %v7027_v8 = vpop.permute.xlu0 %7026  ;;  %v8848_v0 = vadd.f32 %v10118_v42, %v15678_v5  ;;  %v8851_v11 = vadd.f32 %v10121_v4, %v15681_v14  ;;  %v8852_v24 = vadd.f32 %v10122_v32, %v15682_v39  ;;  %v8933_v47 = vadd.f32 %v8829_v29, %v8821_v2 }
 0x577   : > { %7044 = vst.msk [vmem:[#allocation4 + $0x18] sm:$0xf] %vm1449_vm3, %v7027_v8  ;;  %v7541_v34 = vpop.permute.xlu1 %7540  ;;  %v10712_v12 = vld [vmem:[#allocation4] sm:$0xff]   ;;  %v8826_v8 = vadd.f32 %v10096_v51, %v14676_v44  ;;  %v8934_v18 = vadd.f32 %v8830_v46, %v8822_v13  ;;  %v8936_v37 = vadd.f32 %v8832_v43, %v8824_v52  ;;  %v8937_v7 = vadd.f32 %v8833_v60, %v8825_v59 }
 0x578   : > { %7561 = vst.msk [vmem:[#allocation4 + $0xc] sm:$0xf] %vm15671_vm4, %v7541_v34  ;;  %10630 = vmatprep.mubr.msk.bf16.mxu1 %vm15672_vm2, %v10712_v12  ;;  %v8831_v34 = vadd.f32 %v10101_v57, %v14700_v17  ;;  %v8839_v17 = vadd.f32 %v10109_v15, %v14717_v30  ;;  %v8842_v12 = vadd.f32 %v10112_v16, %v15673_v1  ;;  %v15677_v51 = vld [vmem:[#allocation5_spill] sm:$0xff]  ;;  %v15679_v30 = vld [vmem:[#allocation22_spill] sm:$0xff]  ;;  %v8997_v59 = vmul.f32 0.25, %v8933_v47 }
 0x579   : > { %v8846_v10 = vadd.f32 %v10116_v28, %v15677_v51  ;;  %v8849_v6 = vadd.f32 %v10119_v27, %v15679_v30  ;;  %v8850_v57 = vadd.f32 %v10120_v31, %v15680_v35  ;;  %v8938_v33 = vadd.f32 %v8834_v23, %v8826_v8 }
 0x57a   : > { %v7127_v49 = vpop.permute.xlu0 %7126  ;;  %v8935_v15 = vadd.f32 %v8831_v34, %v8823_v50  ;;  %v8939_v27 = vadd.f32 %v8835_v62, %v8827_v20  ;;  %v8940_v31 = vadd.f32 %v8836_v9, %v8828_v63  ;;  %v8941_v36 = vadd.f32 %v8845_v22, %v8837_v26 }
 0x57b   : > { %7146 = vst.msk [vmem:[#allocation4 + $0x10] sm:$0xf] %vm1866_vm5, %v7127_v49  ;;  %v7029_v44 = vpop.permute.xlu1 %7028  ;;  %v8942_v16 = vadd.f32 %v8846_v10, %v8838_v45  ;;  %v8943_v4 = vadd.f32 %v8847_v41, %v8839_v17  ;;  %v8944_v25 = vadd.f32 %v8848_v0, %v8840_v55  ;;  %v8945_v32 = vadd.f32 %v8849_v6, %v8841_v58 }
 0x57c   : > { %7045 = vst.msk [vmem:[#allocation4 + $0x1c] sm:$0xf] %vm1449_vm3, %v7029_v44  ;;  %vm15683_vm3 = vmmov %vm15672_vm2  ;;  %v8946_v2 = vadd.f32 %v8850_v57, %v8842_v12  ;;  %v8947_v50 = vadd.f32 %v8851_v11, %v8843_v19  ;;  %v8948_v52 = vadd.f32 %v8852_v24, %v8844_v53  ;;  %v8998_v28 = vmul.f32 0.25, %v8934_v18 }
 0x57d   : > { %v8999_v20 = vmul.f32 0.25, %v8935_v15  ;;  %v9000_v63 = vmul.f32 0.25, %v8936_v37  ;;  %v9001_v42 = vmul.f32 0.25, %v8937_v7  ;;  %v9002_v8 = vmul.f32 0.25, %v8938_v33  ;;  %vm15711_vm2 = vmmov %vm15671_vm4 }
 0x57e   : > { %v7131_v54 = vpop.permute.xlu0 %7130  ;;  %v9003_v29 = vmul.f32 0.25, %v8939_v27  ;;  %v9004_v46 = vmul.f32 0.25, %v8940_v31  ;;  %v9005_v49 = vmul.f32 0.25, %v8941_v36  ;;  %v9006_v34 = vmul.f32 0.25, %v8942_v16 }
 0x57f   : > { %7148 = vst.msk [vmem:[#allocation4 + $0x18] sm:$0xf] %vm1866_vm5, %v7131_v54  ;;  %v7129_v56 = vpop.permute.xlu1 %7128  ;;  %v10714_v3 = vld [vmem:[#allocation4 + $0x8] sm:$0xff]   ;;  %v9007_v60 = vmul.f32 0.25, %v8943_v4  ;;  %v9008_v23 = vmul.f32 0.25, %v8944_v25  ;;  %v9009_v44 = vmul.f32 0.25, %v8945_v32  ;;  %v9061_v17 = vpack.c.bf16 %v8997_v59, %v8997_v59 }
 0x580   : > { %7147 = vst.msk [vmem:[#allocation4 + $0x14] sm:$0xf] %vm1866_vm5, %v7129_v56  ;;  %10631 = vmatmul.mubr.msk.bf16.vlgmr.msra.gmra.mxu1 %vm15683_vm3, %v10714_v3  ;;  %v9010_v62 = vmul.f32 0.25, %v8946_v2  ;;  %v9011_v26 = vmul.f32 0.25, %v8947_v50  ;;  %v9012_v45 = vmul.f32 0.25, %v8948_v52  ;;  %v9062_v55 = vpack.c.bf16 %v8998_v28, %v8998_v28  ;;  %vm15714_vm3 = vmmov %vm15711_vm2 }
 0x581   : > { %10639 = vmatpush3.bf16.msra.mxu1 %v15684_v61  ;;  %v9063_v58 = vpack.c.bf16 %v8999_v20, %v8999_v20  ;;  %v9064_v1 = vpack.c.bf16 %v9000_v63, %v9000_v63  ;;  %v9065_v12 = vpack.c.bf16 %v9001_v42, %v9001_v42  ;;  %v9066_v21 = vpack.c.bf16 %v9002_v8, %v9002_v8 }
 0x582   : > { %v7199_v48 = vpop.permute.xlu0 %7198  ;;  %v9067_v19 = vpack.c.bf16 %v9003_v29, %v9003_v29  ;;  %v9068_v38 = vpack.c.bf16 %v9004_v46, %v9004_v46  ;;  %v9069_v53 = vpack.c.bf16 %v9005_v49, %v9005_v49  ;;  %v9070_v40 = vpack.c.bf16 %v9006_v34, %v9006_v34 }
 0x583   : > { %7218 = vst.msk [vmem:[#allocation4 + $0x10] sm:$0xf] %vm2155_vm6, %v7199_v48  ;;  %v7133_v13 = vpop.permute.xlu1 %7132  ;;  %v9071_v51 = vpack.c.bf16 %v9007_v60, %v9007_v60  ;;  %v9072_v10 = vpack.c.bf16 %v9008_v23, %v9008_v23  ;;  %v9073_v54 = vpack.c.bf16 %v9009_v44, %v9009_v44  ;;  %v9074_v41 = vpack.c.bf16 %v9010_v62, %v9010_v62  ;;  %v10777_v23 = vld [vmem:[%s10934_s20 + $0x80] sm:$0xff]  ;;  %v15685_v62 = vld [vmem:[#allocation23_spill] sm:$0xff] }
 0x584   : > { %7149 = vst.msk [vmem:[#allocation4 + $0x1c] sm:$0xf] %vm1866_vm5, %v7133_v13  ;;  %v9075_v0 = vpack.c.bf16 %v9011_v26, %v9011_v26  ;;  %v9076_v30 = vpack.c.bf16 %v9012_v45, %v9012_v45  ;;  %v9190_v6 = vunpack.c.l.b16 %v9061_v17  ;;  %v9191_v35 = vunpack.c.l.b16 %v9062_v55  ;;  %v10778_v17 = vld [vmem:[%s10934_s20 + $0x88] sm:$0xff] }
 0x585   : > { %v9192_v57 = vunpack.c.l.b16 %v9063_v58  ;;  %v9193_v56 = vunpack.c.l.b16 %v9064_v1  ;;  %v9194_v3 = vunpack.c.l.b16 %v9065_v12  ;;  %v9195_v14 = vunpack.c.l.b16 %v9066_v21 }
 0x586   : > { %v7203_v43 = vpop.permute.xlu0 %7202  ;;  %v9196_v11 = vunpack.c.l.b16 %v9067_v19  ;;  %v9197_v39 = vunpack.c.l.b16 %v9068_v38  ;;  %v9198_v24 = vunpack.c.l.b16 %v9069_v53  ;;  %v9199_v47 = vunpack.c.l.b16 %v9070_v40 }
 0x587   : > { %7220 = vst.msk [vmem:[#allocation4 + $0x18] sm:$0xf] %vm2155_vm6, %v7203_v43  ;;  %v7201_v9 = vpop.permute.xlu1 %7200  ;;  %v9200_v15 = vunpack.c.l.b16 %v9071_v51  ;;  %v9201_v37 = vunpack.c.l.b16 %v9072_v10  ;;  %v9202_v7 = vunpack.c.l.b16 %v9073_v54  ;;  %v9203_v33 = vunpack.c.l.b16 %v9074_v41 }
 0x588   : > { %7219 = vst.msk [vmem:[#allocation4 + $0x14] sm:$0xf] %vm2155_vm6, %v7201_v9  ;;  %v9204_v31 = vunpack.c.l.b16 %v9075_v0  ;;  %v9205_v36 = vunpack.c.l.b16 %v9076_v30  ;;  %v9266_v16 = vrot.slane %v9191_v35, 7  ;;  %v9268_v48 = vrot.slane %v9192_v57, 6  ;;  %v10780_v57 = vld [vmem:[%s10934_s20 + $0x98] sm:$0xff] }
 0x589   : > { %v9270_v61 = vrot.slane %v9193_v56, 5  ;;  %v9272_v4 = vrot.slane %v9194_v3, 4  ;;  %v9274_v25 = vrot.slane %v9195_v14, 3  ;;  %v9276_v32 = vrot.slane %v9196_v11, 2 }
 0x58a   : > { %v7263_v22 = vpop.permute.xlu0 %7262  ;;  %v9267_v2 = vsel %vm5588_vm13, %v9266_v16, %v9190_v6  ;;  %v9278_v13 = vrot.slane %v9197_v39, 1  ;;  %v9280_v50 = vrot.slane %v9199_v47, 7  ;;  %v9282_v52 = vrot.slane %v9200_v15, 6  ;;  %v10781_v47 = vld [vmem:[%s10934_s20 + $0xa0] sm:$0xff] }
 0x58b   : > { %7282 = vst.msk [vmem:[#allocation4 + $0x10] sm:$0xf] %vm2412_vm7, %v7263_v22  ;;  %v7205_v5 = vpop.permute.xlu1 %7204  ;;  %v9269_v28 = vsel %vm5590_vm14, %v9268_v48, %v9267_v2  ;;  %v9284_v20 = vrot.slane %v9201_v37, 5  ;;  %v9286_v63 = vrot.slane %v9202_v7, 4  ;;  %v9288_v42 = vrot.slane %v9203_v33, 3 }
 0x58c   : > { %7221 = vst.msk [vmem:[#allocation4 + $0x1c] sm:$0xf] %vm2155_vm6, %v7205_v5  ;;  %v9271_v29 = vsel %vm5592_vm15, %v9270_v61, %v9269_v28  ;;  %v9281_v46 = vsel %vm5588_vm13, %v9280_v50, %v9198_v24  ;;  %v9290_v49 = vrot.slane %v9204_v31, 2  ;;  %v9292_v34 = vrot.slane %v9205_v36, 1  ;;  %v10779_v5 = vld [vmem:[%s10934_s20 + $0x90] sm:$0xff] }
 0x58d   : > { %v9273_v43 = vsel %vm5594_vm1, %v9272_v4, %v9271_v29  ;;  %v9283_v60 = vsel %vm5590_vm14, %v9282_v52, %v9281_v46  ;;  %v8005_v44 = vcombine.high %v10777_v23, %v10777_v23  ;;  %v14877_v9 = vrot.slane %v10777_v23, %v15685_v62  ;;  %v10783_v61 = vld [vmem:[%s10934_s20 + $0xb0] sm:$0xff] }
 0x58e   : > { %v7267_v18 = vpop.permute.xlu0 %7266  ;;  %v9275_v26 = vsel %vm5596_vm12, %v9274_v25, %v9273_v43  ;;  %v9285_v45 = vsel %vm5592_vm15, %v9284_v20, %v9283_v60  ;;  %v8022_v55 = vcombine.high %v10778_v17, %v10778_v17  ;;  %v14883_v58 = vrot.slane %v10778_v17, %v15685_v62  ;;  %v10784_v20 = vld [vmem:[%s10934_s20 + $0xb8] sm:$0xff] }
 0x58f   : > { %7284 = vst.msk [vmem:[#allocation4 + $0x18] sm:$0xf] %vm2412_vm7, %v7267_v18  ;;  %v7265_v27 = vpop.permute.xlu1 %7264  ;;  %v9277_v12 = vsel %vm5598_vm11, %v9276_v32, %v9275_v26  ;;  %v9287_v21 = vsel %vm5594_vm1, %v9286_v63, %v9285_v45  ;;  %v14888_v19 = vrot.slane %v8005_v44, %v15685_v62  ;;  %v14892_v38 = vcombine.high %v14877_v9, %v14877_v9 }
 0x590   : > { %7283 = vst.msk [vmem:[#allocation4 + $0x14] sm:$0xf] %vm2412_vm7, %v7265_v27  ;;  %v14896_v40 = vsel %vm5600_vm10, %v9278_v13, %v9277_v12  ;;  %v9289_v22 = vsel %vm5596_vm12, %v9288_v42, %v9287_v21  ;;  %v14900_v51 = vrot.slane %v8022_v55, %v15685_v62  ;;  %v14904_v10 = vcombine.high %v14883_v58, %v14883_v58  ;;  %v10782_v27 = vld [vmem:[%s10934_s20 + $0xa8] sm:$0xff] }
 0x591   : > { %15686 = vst [vmem:[#allocation29_spill] sm:$0xff] %v14896_v40  ;;  %v9291_v54 = vsel %vm5598_vm11, %v9290_v49, %v9289_v22  ;;  %v14910_v41 = vcombine.high %v14888_v19, %v14888_v19  ;;  %v8039_v0 = vcombine.high %v10779_v5, %v10779_v5  ;;  %v14914_v30 = vrot.slane %v10779_v5, %v15685_v62 }
 0x592   : > { %v7335_v59 = vpop.permute.xlu0 %7334  ;;  %v14917_v6 = vsel %vm5600_vm10, %v9292_v34, %v9291_v54  ;;  %v14921_v35 = vcombine.high %v14900_v51, %v14900_v51  ;;  %v8056_v56 = vcombine.high %v10780_v57, %v10780_v57  ;;  %v14925_v3 = vrot.slane %v10780_v57, %v15685_v62 }
 0x593   : > { %7354 = vst.msk [vmem:[#allocation4 + $0x10] sm:$0xf] %vm2701_vm8, %v7335_v59  ;;  %v7269_v8 = vpop.permute.xlu1 %7268  ;;  %15687 = vst [vmem:[#allocation38_spill] sm:$0xff] %v14917_v6  ;;  %v14930_v39 = vrot.slane %v8039_v0, %v15685_v62  ;;  %v14934_v24 = vcombine.high %v14914_v30, %v14914_v30  ;;  %v8073_v18 = vcombine.high %v10781_v47, %v10781_v47  ;;  %v10123_v49 = vrot.slane %v14877_v9, 9 }
 0x594   : > { %7285 = vst.msk [vmem:[#allocation4 + $0x1c] sm:$0xf] %vm2412_vm7, %v7269_v8  ;;  %v14939_v37 = vrot.slane %v8056_v56, %v15685_v62  ;;  %v14943_v7 = vcombine.high %v14925_v3, %v14925_v3  ;;  %v14946_v33 = vrot.slane %v10781_v47, %v15685_v62  ;;  %v8090_v31 = vcombine.high %v10782_v27, %v10782_v27 }
 0x595   : > { %v14952_v36 = vcombine.high %v14930_v39, %v14930_v39  ;;  %v14955_v16 = vrot.slane %v8073_v18, %v15685_v62  ;;  %v14958_v48 = vrot.slane %v10782_v27, %v15685_v62  ;;  %v8107_v4 = vcombine.high %v10783_v61, %v10783_v61 }
 0x596   : > { %v7339_v1 = vpop.permute.xlu0 %7338  ;;  %v14963_v25 = vcombine.high %v14939_v37, %v14939_v37  ;;  %v14967_v32 = vcombine.high %v14946_v33, %v14946_v33  ;;  %v14970_v2 = vrot.slane %v8090_v31, %v15685_v62  ;;  %v14973_v13 = vrot.slane %v10783_v61, %v15685_v62 }
 0x597   : > { %7356 = vst.msk [vmem:[#allocation4 + $0x18] sm:$0xf] %vm2701_vm8, %v7339_v1  ;;  %v7337_v53 = vpop.permute.xlu1 %7336  ;;  %v14977_v52 = vcombine.high %v14955_v16, %v14955_v16  ;;  %v14981_v59 = vcombine.high %v14958_v48, %v14958_v48  ;;  %v14984_v28 = vrot.slane %v8107_v4, %v15685_v62  ;;  %v8124_v63 = vcombine.high %v10784_v20, %v10784_v20 }
 0x598   : > { %7355 = vst.msk [vmem:[#allocation4 + $0x14] sm:$0xf] %vm2701_vm8, %v7337_v53  ;;  %15688 = vst [vmem:[#allocation39_spill] sm:$0xff] %v14970_v2  ;;  %v14990_v8 = vcombine.high %v14970_v2, %v14970_v2  ;;  %v14994_v29 = vcombine.high %v14973_v13, %v14973_v13  ;;  %v14997_v46 = vrot.slane %v10784_v20, %v15685_v62  ;;  %v10124_v60 = vrot.slane %v14892_v38, 9 }
 0x599   : > { %15689 = vst [vmem:[#allocation40_spill] sm:$0xff] %v14973_v13  ;;  %15690 = vst [vmem:[#allocation41_spill] sm:$0xff] %v14981_v59  ;;  %v15003_v34 = vcombine.high %v14984_v28, %v14984_v28  ;;  %v15006_v43 = vrot.slane %v8124_v63, %v15685_v62  ;;  %v10125_v23 = vrot.slane %v14888_v19, 9  ;;  %v10126_v26 = vrot.slane %v14910_v41, 9 }
 0x59a   : > { %v7407_v14 = vpop.permute.xlu0 %7406  ;;  %15691 = vst [vmem:[#allocation44_spill] sm:$0xff] %v14984_v28  ;;  %15692 = vst [vmem:[#allocation45_spill] sm:$0xff] %v14990_v8  ;;  %v15012_v44 = vcombine.high %v14997_v46, %v14997_v46  ;;  %v10127_v45 = vrot.slane %v14883_v58, 9  ;;  %v10128_v17 = vrot.slane %v14904_v10, 9  ;;  %v10129_v12 = vrot.slane %v14900_v51, 9 }
 0x59b   : > { %7426 = vst.msk [vmem:[#allocation4 + $0x10] sm:$0xf] %vm2990_vm9, %v7407_v14  ;;  %v7341_v15 = vpop.permute.xlu1 %7340  ;;  %15693 = vst [vmem:[#allocation46_spill] sm:$0xff] %v14994_v29  ;;  %v15019_v1 = vcombine.high %v15006_v43, %v15006_v43  ;;  %v10130_v21 = vrot.slane %v14921_v35, 9  ;;  %v10131_v53 = vrot.slane %v14914_v30, 9  ;;  %vm15698_vm5 = vcmask 257248  }
 0x59c   : > { %7357 = vst.msk [vmem:[#allocation4 + $0x1c] sm:$0xf] %vm2701_vm8, %v7341_v15  ;;  %15694 = vst [vmem:[#allocation47_spill] sm:$0xff] %v14997_v46  ;;  %v10132_v54 = vrot.slane %v14934_v24, 9  ;;  %v10133_v5 = vrot.slane %v14930_v39, 9  ;;  %v10134_v0 = vrot.slane %v14952_v36, 9 }
 0x59d   : > { %15695 = vst [vmem:[#allocation51_spill] sm:$0xff] %v15003_v34  ;;  %15696 = vst [vmem:[#allocation49_spill] sm:$0xff] %v15006_v43  ;;  %v10135_v57 = vrot.slane %v14925_v3, 9  ;;  %v10136_v56 = vrot.slane %v14943_v7, 9  ;;  %v10137_v14 = vrot.slane %v14939_v37, 9  ;;  %v10138_v47 = vrot.slane %v14963_v25, 9 }
 0x59e   : > { %v7411_v50 = vpop.permute.xlu0 %7410  ;;  %15697 = vst [vmem:[#allocation52_spill] sm:$0xff] %v15012_v44  ;;  %v10139_v18 = vrot.slane %v14946_v33, 9  ;;  %v10140_v15 = vrot.slane %v14967_v32, 9  ;;  %v10141_v27 = vrot.slane %v14955_v16, 9  ;;  %v10142_v31 = vrot.slane %v14977_v52, 9  ;;  %vm15699_vm6 = vmmov %vm15698_vm5 }
 0x59f   : > { %7428 = vst.msk [vmem:[#allocation4 + $0x18] sm:$0xf] %vm2990_vm9, %v7411_v50  ;;  %v7409_v42 = vpop.permute.xlu1 %7408  ;;  %v10143_v61 = vrot.slane %v14958_v48, 9  ;;  %v10144_v50 = vrot.slane %v14981_v59, 9  ;;  %v10145_v20 = vrot.slane %v14970_v2, 9  ;;  %v10146_v63 = vrot.slane %v14990_v8, 9  ;;  %vm15700_vm7 = vmmov %vm15698_vm5 }
 0x5a0   : > { %7427 = vst.msk [vmem:[#allocation4 + $0x14] sm:$0xf] %vm2990_vm9, %v7409_v42  ;;  %v10147_v42 = vrot.slane %v14973_v13, 9  ;;  %v10149_v11 = vrot.slane %v14984_v28, 9  ;;  %v10150_v62 = vrot.slane %v15003_v34, 9  ;;  %v10151_v40 = vrot.slane %v14997_v46, 9  ;;  %vm15701_vm8 = vmmov %vm15671_vm4 }
 0x5a1   : > { %v10152_v6 = vrot.slane %v15012_v44, 9  ;;  %v10153_v2 = vrot.slane %v15006_v43, 9  ;;  %v10154_v8 = vrot.slane %v15019_v1, 9  ;;  %v8853_v13 = vadd.f32 %v10123_v49, %v14877_v9 }
 0x5a2   : > { %v7471_v55 = vpop.permute.xlu0 %7470  ;;  %v8856_v28 = vadd.f32 %v10126_v26, %v14910_v41  ;;  %v8857_v34 = vadd.f32 %v10127_v45, %v14883_v58  ;;  %v8858_v46 = vadd.f32 %v10128_v17, %v14904_v10  ;;  %v8860_v44 = vadd.f32 %v10130_v21, %v14921_v35 }
 0x5a3   : > { %7490 = vst.msk [vmem:[#allocation4 + $0x10] sm:$0xf] %vm15698_vm5, %v7471_v55  ;;  %v7413_v22 = vpop.permute.xlu1 %7412  ;;  %v8861_v43 = vadd.f32 %v10131_v53, %v14914_v30  ;;  %v8864_v41 = vadd.f32 %v10134_v0, %v14952_v36  ;;  %v8865_v58 = vadd.f32 %v10135_v57, %v14925_v3  ;;  %v8866_v10 = vadd.f32 %v10136_v56, %v14943_v7  ;;  %v15703_v3 = vld [vmem:[#allocation41_spill] sm:$0xff]  ;;  %v15710_v53 = vld [vmem:[#allocation47_spill] sm:$0xff] }
 0x5a4   : > { %7429 = vst.msk [vmem:[#allocation4 + $0x1c] sm:$0xf] %vm2990_vm9, %v7413_v22  ;;  %v10148_v22 = vrot.slane %v14994_v29, 9  ;;  %v8855_v29 = vadd.f32 %v10125_v23, %v14888_v19  ;;  %v8863_v19 = vadd.f32 %v10133_v5, %v14930_v39  ;;  %vm15702_vm9 = vmmov %vm15698_vm5  ;;  %v8868_v35 = vadd.f32 %v10138_v47, %v14963_v25  ;;  %v15704_v23 = vld [vmem:[#allocation39_spill] sm:$0xff]  ;;  %v15705_v7 = vld [vmem:[#allocation45_spill] sm:$0xff] }
 0x5a5   : > { %v8869_v30 = vadd.f32 %v10139_v18, %v14946_v33  ;;  %v8872_v39 = vadd.f32 %v10142_v31, %v14977_v52  ;;  %v8873_v36 = vadd.f32 %v10143_v61, %v14958_v48  ;;  %v8875_v26 = vadd.f32 %v10145_v20, %v15704_v23  ;;  %v15707_v25 = vld [vmem:[#allocation46_spill] sm:$0xff]  ;;  %v15709_v21 = vld [vmem:[#allocation51_spill] sm:$0xff]  ;;  %v15713_v0 = vld [vmem:[#allocation49_spill] sm:$0xff] }
 0x5a6   : > { %v7475_v4 = vpop.permute.xlu0 %7474  ;;  %v8876_v45 = vadd.f32 %v10146_v63, %v15705_v7  ;;  %v8880_v52 = vadd.f32 %v10150_v62, %v15709_v21  ;;  %v8881_v48 = vadd.f32 %v10151_v40, %v15710_v53  ;;  %v8883_v57 = vadd.f32 %v10153_v2, %v15713_v0  ;;  %v15718_v53 = vld [vmem:[#allocation16_spill] sm:$0xff] }
 0x5a7   : > { %7492 = vst.msk [vmem:[#allocation4 + $0x18] sm:$0xf] %vm15699_vm6, %v7475_v4  ;;  %v7473_v55 = vpop.permute.xlu1 %7472  ;;  %v8854_v4 = vadd.f32 %v10124_v60, %v14892_v38  ;;  %v8862_v38 = vadd.f32 %v10132_v54, %v14934_v24  ;;  %v8871_v24 = vadd.f32 %v10141_v27, %v14955_v16  ;;  %v8874_v60 = vadd.f32 %v10144_v50, %v15703_v3  ;;  %v15712_v54 = vld [vmem:[#allocation52_spill] sm:$0xff] }
 0x5a8   : > { %7491 = vst.msk [vmem:[#allocation4 + $0x14] sm:$0xf] %vm15700_vm7, %v7473_v55  ;;  %v8859_v55 = vadd.f32 %v10129_v12, %v14900_v51  ;;  %v8867_v51 = vadd.f32 %v10137_v14, %v14939_v37  ;;  %v15706_v37 = vld [vmem:[#allocation40_spill] sm:$0xff]  ;;  %v8882_v5 = vadd.f32 %v10152_v6, %v15712_v54  ;;  %v8884_v56 = vadd.f32 %v10154_v8, %v15019_v1 }
 0x5a9   : > { %v8877_v17 = vadd.f32 %v10147_v42, %v15706_v37  ;;  %v15708_v12 = vld [vmem:[#allocation44_spill] sm:$0xff]  ;;  %v8949_v14 = vadd.f32 %v8861_v43, %v8853_v13  ;;  %v8950_v47 = vadd.f32 %v8862_v38, %v8854_v4  ;;  %v8951_v18 = vadd.f32 %v8863_v19, %v8855_v29 }
 0x5aa   : > { %v7543_v59 = vpop.permute.xlu0 %7542  ;;  %v8879_v16 = vadd.f32 %v10149_v11, %v15708_v12  ;;  %v8953_v27 = vadd.f32 %v8865_v58, %v8857_v34  ;;  %v8954_v31 = vadd.f32 %v8866_v10, %v8858_v46  ;;  %v8955_v61 = vadd.f32 %v8867_v51, %v8859_v55 }
 0x5ab   : > { %7562 = vst.msk [vmem:[#allocation4 + $0x10] sm:$0xf] %vm15701_vm8, %v7543_v59  ;;  %v7477_v9 = vpop.permute.xlu1 %7476  ;;  %v8870_v59 = vadd.f32 %v10140_v15, %v14967_v32  ;;  %v8878_v32 = vadd.f32 %v10148_v22, %v15707_v25  ;;  %v8952_v15 = vadd.f32 %v8864_v41, %v8856_v28  ;;  %v8956_v11 = vadd.f32 %v8868_v35, %v8860_v44 }
 0x5ac   : > { %7493 = vst.msk [vmem:[#allocation4 + $0x1c] sm:$0xf] %vm15702_vm9, %v7477_v9  ;;  %v8957_v50 = vadd.f32 %v8877_v17, %v8869_v30  ;;  %v8959_v40 = vadd.f32 %v8879_v16, %v8871_v24  ;;  %v8960_v63 = vadd.f32 %v8880_v52, %v8872_v39  ;;  %v8961_v42 = vadd.f32 %v8881_v48, %v8873_v36  ;;  %v15717_v52 = vld [vmem:[#allocation17_spill] sm:$0xff] }
 0x5ad   : > { %v8958_v20 = vadd.f32 %v8878_v32, %v8870_v59  ;;  %v8962_v6 = vadd.f32 %v8882_v5, %v8874_v60  ;;  %v8963_v2 = vadd.f32 %v8883_v57, %v8875_v26  ;;  %v8964_v22 = vadd.f32 %v8884_v56, %v8876_v45 }
 0x5ae   : > { %v7547_v49 = vpop.permute.xlu0 %7546  ;;  %v9013_v8 = vmul.f32 0.25, %v8949_v14  ;;  %v9014_v13 = vmul.f32 0.25, %v8950_v47  ;;  %v9015_v43 = vmul.f32 0.25, %v8951_v18  ;;  %v9016_v29 = vmul.f32 0.25, %v8952_v15 }
 0x5af   : > { %7564 = vst.msk [vmem:[#allocation4 + $0x18] sm:$0xf] %vm15671_vm4, %v7547_v49  ;;  %v7545_v33 = vpop.permute.xlu1 %7544  ;;  %v9017_v28 = vmul.f32 0.25, %v8953_v27  ;;  %v9018_v34 = vmul.f32 0.25, %v8954_v31  ;;  %v9019_v46 = vmul.f32 0.25, %v8955_v61  ;;  %v9020_v1 = vmul.f32 0.25, %v8956_v11 }
 0x5b0   : > { %7563 = vst.msk [vmem:[#allocation4 + $0x14] sm:$0xf] %vm15711_vm2, %v7545_v33  ;;  %v9021_v44 = vmul.f32 0.25, %v8957_v50  ;;  %v9022_v55 = vmul.f32 0.25, %v8958_v20  ;;  %v9023_v9 = vmul.f32 0.25, %v8959_v40  ;;  %v9024_v38 = vmul.f32 0.25, %v8960_v63 }
 0x5b1   : > { %v9077_v19 = vpack.c.bf16 %v9013_v8, %v9013_v8  ;;  %v9025_v41 = vmul.f32 0.25, %v8961_v42  ;;  %v9026_v58 = vmul.f32 0.25, %v8962_v6  ;;  %v9027_v10 = vmul.f32 0.25, %v8963_v2 }
 0x5b2   : > { %v9028_v51 = vmul.f32 0.25, %v8964_v22  ;;  %vm15715_vm5 = vcmask 293888   ;;  %v9078_v35 = vpack.c.bf16 %v9014_v13, %v9014_v13  ;;  %v9079_v30 = vpack.c.bf16 %v9015_v43, %v9015_v43 }
 0x5b3   : > { %v7549_v62 = vpop.permute.xlu1 %7548  ;;  %v9080_v59 = vpack.c.bf16 %v9016_v29, %v9016_v29  ;;  %v9081_v24 = vpack.c.bf16 %v9017_v28, %v9017_v28  ;;  %v9082_v39 = vpack.c.bf16 %v9018_v34, %v9018_v34  ;;  %v9083_v36 = vpack.c.bf16 %v9019_v46, %v9019_v46  ;;  %vm15716_vm6 = vmmov %vm15715_vm5  ;;  %v15720_v46 = vld [vmem:[#allocation38_spill] sm:$0xff] }
 0x5b4   : > { %7565 = vst.msk [vmem:[#allocation4 + $0x1c] sm:$0xf] %vm15714_vm3, %v7549_v62  ;;  %v9084_v49 = vpack.c.bf16 %v9020_v1, %v9020_v1  ;;  %v9085_v3 = vpack.c.bf16 %v9021_v44, %v9021_v44  ;;  %v9086_v23 = vpack.c.bf16 %v9022_v55, %v9022_v55  ;;  %v9087_v26 = vpack.c.bf16 %v9023_v9, %v9023_v9  ;;  %v15721_v1 = vld [vmem:[#allocation29_spill] sm:$0xff] }
 0x5b5   : > { %v9088_v7 = vpack.c.bf16 %v9024_v38, %v9024_v38  ;;  %v9089_v45 = vpack.c.bf16 %v9025_v41, %v9025_v41  ;;  %v9090_v37 = vpack.c.bf16 %v9026_v58, %v9026_v58  ;;  %v9091_v17 = vpack.c.bf16 %v9027_v10, %v9027_v10  ;;  %v10785_v38 = vld [vmem:[%s10934_s20 + $0xc0] sm:$0xff]  ;;  %v15723_v10 = vld [vmem:[#allocation23_spill] sm:$0xff] }
 0x5b6   : > { %v9092_v33 = vpack.c.bf16 %v9028_v51, %v9028_v51  ;;  %v9206_v25 = vunpack.c.l.b16 %v9077_v19  ;;  %v9207_v32 = vunpack.c.l.b16 %v9078_v35  ;;  %v9208_v12 = vunpack.c.l.b16 %v9079_v30  ;;  %v10786_v35 = vld [vmem:[%s10934_s20 + $0xc8] sm:$0xff] }
 0x5b7   : > { %v10715_v4 = vld [vmem:[#allocation4 + $0x10] sm:$0xff]   ;;  %v9209_v16 = vunpack.c.l.b16 %v9080_v59  ;;  %v9210_v21 = vunpack.c.l.b16 %v9081_v24  ;;  %v15719_v48 = vpack.c.b16 %v15717_v52, %v15718_v53  ;;  %v9211_v54 = vunpack.c.l.b16 %v9082_v39  ;;  %v10789_v52 = vld [vmem:[%s10934_s20 + $0xe0] sm:$0xff] }
 0x5b8   : > { %10634 = vmatprep.mubr.msk.bf16.mxu1 %vm15715_vm5, %v10715_v4  ;;  %v9212_v5 = vunpack.c.l.b16 %v9083_v36  ;;  %v9213_v0 = vunpack.c.l.b16 %v9084_v49  ;;  %v9214_v57 = vunpack.c.l.b16 %v9085_v3  ;;  %v9215_v56 = vunpack.c.l.b16 %v9086_v23 }
 0x5b9   : > { %v9216_v14 = vunpack.c.l.b16 %v9087_v26  ;;  %v9217_v47 = vunpack.c.l.b16 %v9088_v7  ;;  %v9218_v18 = vunpack.c.l.b16 %v9089_v45  ;;  %v9219_v15 = vunpack.c.l.b16 %v9090_v37  ;;  %v10787_v7 = vld [vmem:[%s10934_s20 + $0xd0] sm:$0xff] }
 0x5ba   : > { %v9220_v27 = vunpack.c.l.b16 %v9091_v17  ;;  %v9221_v31 = vunpack.c.l.b16 %v9092_v33  ;;  %v9294_v61 = vrot.slane %v9207_v32, 7  ;;  %v9296_v11 = vrot.slane %v9208_v12, 6 }
 0x5bb   : > { %v10716_v60 = vld [vmem:[#allocation4 + $0x18] sm:$0xff]   ;;  %v9298_v50 = vrot.slane %v9209_v16, 5  ;;  %v9300_v62 = vrot.slane %v9210_v21, 4  ;;  %v9302_v20 = vrot.slane %v9211_v54, 3  ;;  %v9304_v63 = vrot.slane %v9212_v5, 2 }
 0x5bc   : > { %10635 = vmatmul.mubr.msk.bf16.gmra.mxu1 %vm15716_vm6, %v10716_v60  ;;  %v9295_v40 = vsel %vm5588_vm13, %v9294_v61, %v9206_v25  ;;  %v9306_v42 = vrot.slane %v9213_v0, 1  ;;  %v9308_v6 = vrot.slane %v9215_v56, 7  ;;  %v9310_v22 = vrot.slane %v9216_v14, 6  ;;  %v10788_v25 = vld [vmem:[%s10934_s20 + $0xd8] sm:$0xff]  ;;  %v10790_v0 = vld [vmem:[%s10934_s20 + $0xe8] sm:$0xff]  ;;  %v10791_v61 = vld [vmem:[%s10934_s20 + $0xf0] sm:$0xff] }
 0x5bd   : > { %10640 = vmatprep.mubr.msk.bf16.mxu1 %vm449_vm0, %v15719_v48  ;;  %v9297_v2 = vsel %vm5590_vm14, %v9296_v11, %v9295_v40  ;;  %v9312_v8 = vrot.slane %v9217_v47, 5  ;;  %v9314_v13 = vrot.slane %v9218_v18, 4  ;;  %v9316_v28 = vrot.slane %v9219_v15, 3  ;;  %v10792_v40 = vld [vmem:[%s10934_s20 + $0xf8] sm:$0xff] }
 0x5be   : > { %v9299_v43 = vsel %vm5592_vm15, %v9298_v50, %v9297_v2  ;;  %v9309_v29 = vsel %vm5588_vm13, %v9308_v6, %v9214_v57  ;;  %v9318_v34 = vrot.slane %v9220_v27, 2  ;;  %v15722_v44 = vpack.c.b16 %v15720_v46, %v15721_v1 }
 0x5bf   : > { %v9301_v4 = vsel %vm5594_vm1, %v9300_v62, %v9299_v43  ;;  %v9311_v55 = vsel %vm5590_vm14, %v9310_v22, %v9309_v29  ;;  %v9320_v9 = vrot.slane %v9221_v31, 1  ;;  %v8141_v19 = vcombine.high %v10785_v38, %v10785_v38 }
 0x5c0   : > { %v9303_v41 = vsel %vm5596_vm12, %v9302_v20, %v9301_v4  ;;  %v9313_v58 = vsel %vm5592_vm15, %v9312_v8, %v9311_v55  ;;  %v15108_v51 = vrot.slane %v10785_v38, %v15723_v10  ;;  %v8158_v30 = vcombine.high %v10786_v35, %v10786_v35 }
 0x5c1   : > { %v9305_v59 = vsel %vm5598_vm11, %v9304_v63, %v9303_v41  ;;  %v9315_v24 = vsel %vm5594_vm1, %v9314_v13, %v9313_v58  ;;  %v15114_v39 = vrot.slane %v8141_v19, %v15723_v10  ;;  %v15119_v3 = vrot.slane %v10786_v35, %v15723_v10 }
 0x5c2   : > { %v9307_v36 = vsel %vm5600_vm10, %v9306_v42, %v9305_v59  ;;  %v9317_v49 = vsel %vm5596_vm12, %v9316_v28, %v9315_v24  ;;  %v15124_v23 = vcombine.high %v15108_v51, %v15108_v51  ;;  %v15127_v26 = vrot.slane %v8158_v30, %v15723_v10 }
 0x5c3   : > { %v9319_v60 = vsel %vm5598_vm11, %v9318_v34, %v9317_v49  ;;  %v8175_v45 = vcombine.high %v10787_v7, %v10787_v7  ;;  %v15133_v17 = vcombine.high %v15114_v39, %v15114_v39  ;;  %v15136_v33 = vrot.slane %v10787_v7, %v15723_v10 }
 0x5c4   : > { %10641 = vmatmul.mubr.msk.bf16.vlgmr.msra.gmra.mxu1 %vm449_vm0, %v15722_v44  ;;  %v9321_v37 = vsel %vm5600_vm10, %v9320_v9, %v9319_v60  ;;  %v8192_v32 = vcombine.high %v10788_v25, %v10788_v25  ;;  %v15143_v21 = vrot.slane %v10788_v25, %v15723_v10  ;;  %v8209_v53 = vcombine.high %v10789_v52, %v10789_v52 }
 0x5c5   : > { %v9352_v12 = vpack.c.b16 %v9321_v37, %v9307_v36  ;;  %v15140_v16 = vrot.slane %v8175_v45, %v15723_v10  ;;  %v15148_v48 = vcombine.high %v15119_v3, %v15119_v3  ;;  %v15154_v5 = vrot.slane %v10789_v52, %v15723_v10 }
 0x5c6   : > { %v15151_v54 = vrot.slane %v8192_v32, %v15723_v10  ;;  %v8226_v57 = vcombine.high %v10790_v0, %v10790_v0  ;;  %v15160_v56 = vcombine.high %v15127_v26, %v15127_v26  ;;  %v15164_v14 = vcombine.high %v15136_v33, %v15136_v33 }
 0x5c7   : > { %10644 = vmatprep.mubr.msk.bf16.mxu1 %vm449_vm0, %v9352_v12  ;;  %v15167_v47 = vrot.slane %v8209_v53, %v15723_v10  ;;  %v15170_v18 = vrot.slane %v10790_v0, %v15723_v10  ;;  %v15174_v15 = vcombine.high %v15140_v16, %v15140_v16  ;;  %v15178_v27 = vcombine.high %v15143_v21, %v15143_v21 }
 0x5c8   : > { %v15181_v31 = vrot.slane %v8226_v57, %v15723_v10  ;;  %v8243_v11 = vcombine.high %v10791_v61, %v10791_v61  ;;  %v8208_v50 = vcombine.high %v15151_v54, %v15151_v54  ;;  %v15188_v62 = vcombine.high %v15154_v5, %v15154_v5 }
 0x5c9   : > { %15724 = vst [vmem:[#allocation50_spill] sm:$0xff] %v15167_v47  ;;  %15725 = vst [vmem:[#allocation53_spill] sm:$0xff] %v15170_v18  ;;  %v15191_v20 = vrot.slane %v10791_v61, %v15723_v10  ;;  %v8260_v63 = vcombine.high %v10792_v40, %v10792_v40  ;;  %v8225_v42 = vcombine.high %v15167_v47, %v15167_v47  ;;  %v10155_v29 = vrot.slane %v15108_v51, 9 }
 0x5ca   : > { %15726 = vst [vmem:[#allocation31_spill] sm:$0xff] %v15181_v31  ;;  %15727 = vst [vmem:[#allocation48_spill] sm:$0xff] %v15188_v62  ;;  %v8241_v6 = vcombine.high %v15170_v18, %v15170_v18  ;;  %v15199_v2 = vrot.slane %v8243_v11, %v15723_v10  ;;  %v15202_v22 = vrot.slane %v10792_v40, %v15723_v10  ;;  %v10156_v46 = vrot.slane %v15124_v23, 9 }
 0x5cb   : > { %15728 = vst [vmem:[#allocation30_spill] sm:$0xff] %v15191_v20  ;;  %v15206_v8 = vcombine.high %v15181_v31, %v15181_v31  ;;  %v8258_v13 = vcombine.high %v15191_v20, %v15191_v20  ;;  %v15211_v43 = vrot.slane %v8260_v63, %v15723_v10  ;;  %v10157_v1 = vrot.slane %v15114_v39, 9 }
 0x5cc   : > { %15729 = vst [vmem:[#allocation32_spill] sm:$0xff] %v15199_v2  ;;  %15730 = vst [vmem:[#allocation33_spill] sm:$0xff] %v15202_v22  ;;  %v8259_v28 = vcombine.high %v15199_v2, %v15199_v2  ;;  %v8275_v34 = vcombine.high %v15202_v22, %v15202_v22  ;;  %v10158_v4 = vrot.slane %v15133_v17, 9  ;;  %v10159_v55 = vrot.slane %v15119_v3, 9 }
 0x5cd   : > { %15731 = vst [vmem:[#allocation34_spill] sm:$0xff] %v15206_v8  ;;  %15732 = vst [vmem:[#allocation35_spill] sm:$0xff] %v15211_v43  ;;  %v15222_v44 = vcombine.high %v15211_v43, %v15211_v43  ;;  %v10160_v9 = vrot.slane %v15148_v48, 9  ;;  %v10161_v38 = vrot.slane %v15127_v26, 9  ;;  %v10162_v19 = vrot.slane %v15160_v56, 9 }
 0x5ce   : > { %v10163_v41 = vrot.slane %v15136_v33, 9  ;;  %v10164_v58 = vrot.slane %v15164_v14, 9  ;;  %v10165_v10 = vrot.slane %v15140_v16, 9  ;;  %v10166_v35 = vrot.slane %v15174_v15, 9 }
 0x5cf   : > { %15733 = vst [vmem:[#allocation36_spill] sm:$0xff] %v15222_v44  ;;  %v10167_v30 = vrot.slane %v15143_v21, 9  ;;  %v10168_v59 = vrot.slane %v15178_v27, 9  ;;  %v10169_v24 = vrot.slane %v15151_v54, 9  ;;  %v10170_v36 = vrot.slane %v8208_v50, 9 }
 0x5d0   : > { %v10171_v49 = vrot.slane %v15154_v5, 9  ;;  %v10172_v60 = vrot.slane %v15188_v62, 9  ;;  %v10173_v7 = vrot.slane %v15167_v47, 9  ;;  %v10174_v45 = vrot.slane %v8225_v42, 9 }
 0x5d1   : > { %v10175_v37 = vrot.slane %v15170_v18, 9  ;;  %v10176_v25 = vrot.slane %v8241_v6, 9  ;;  %v10177_v32 = vrot.slane %v15181_v31, 9  ;;  %v10178_v12 = vrot.slane %v15206_v8, 9 }
 0x5d2   : > { %v10179_v52 = vrot.slane %v15191_v20, 9  ;;  %v10180_v53 = vrot.slane %v8258_v13, 9  ;;  %v10181_v0 = vrot.slane %v15199_v2, 9  ;;  %v10182_v57 = vrot.slane %v8259_v28, 9 }
 0x5d3   : > { %v10183_v61 = vrot.slane %v15202_v22, 9  ;;  %v10184_v11 = vrot.slane %v8275_v34, 9  ;;  %v10185_v40 = vrot.slane %v15211_v43, 9  ;;  %v10186_v63 = vrot.slane %v15222_v44, 9 }
 0x5d4   : > { %v8885_v18 = vadd.f32 %v10155_v29, %v15108_v51  ;;  %v8886_v47 = vadd.f32 %v10156_v46, %v15124_v23  ;;  %v8887_v31 = vadd.f32 %v10157_v1, %v15114_v39  ;;  %v8888_v8 = vadd.f32 %v10158_v4, %v15133_v17  ;;  %v15736_v4 = vld [vmem:[#allocation53_spill] sm:$0xff] }
 0x5d5   : > { %v8889_v20 = vadd.f32 %v10159_v55, %v15119_v3  ;;  %v8890_v2 = vadd.f32 %v10160_v9, %v15148_v48  ;;  %v8891_v62 = vadd.f32 %v10161_v38, %v15127_v26  ;;  %v8892_v22 = vadd.f32 %v10162_v19, %v15160_v56  ;;  %v15734_v26 = vld [vmem:[#allocation48_spill] sm:$0xff]  ;;  %v15735_v56 = vld [vmem:[#allocation50_spill] sm:$0xff] }
 0x5d6   : > { %v8893_v43 = vadd.f32 %v10163_v41, %v15136_v33  ;;  %v8894_v44 = vadd.f32 %v10164_v58, %v15164_v14  ;;  %v8895_v51 = vadd.f32 %v10165_v10, %v15140_v16  ;;  %v8896_v23 = vadd.f32 %v10166_v35, %v15174_v15  ;;  %v15737_v16 = vld [vmem:[#allocation31_spill] sm:$0xff]  ;;  %v15738_v38 = vld [vmem:[#allocation32_spill] sm:$0xff]  ;;  %v15741_v58 = vld [vmem:[#allocation33_spill] sm:$0xff] }
 0x5d7   : > { %v8897_v39 = vadd.f32 %v10167_v30, %v15143_v21  ;;  %v8898_v17 = vadd.f32 %v10168_v59, %v15178_v27  ;;  %v8899_v3 = vadd.f32 %v10169_v24, %v15151_v54  ;;  %v8900_v29 = vadd.f32 %v10170_v36, %v8208_v50  ;;  %v15739_v27 = vld [vmem:[#allocation34_spill] sm:$0xff]  ;;  %v15742_v35 = vld [vmem:[#allocation35_spill] sm:$0xff]  ;;  %v15743_v36 = vld [vmem:[#allocation36_spill] sm:$0xff] }
 0x5d8   : > { %v8901_v48 = vadd.f32 %v10171_v49, %v15154_v5  ;;  %v8902_v46 = vadd.f32 %v10172_v60, %v15734_v26  ;;  %v8903_v1 = vadd.f32 %v10173_v7, %v15735_v56  ;;  %v8904_v33 = vadd.f32 %v10174_v45, %v8225_v42  ;;  %v15740_v54 = vld [vmem:[#allocation30_spill] sm:$0xff] }
 0x5d9   : > { %v8905_v14 = vadd.f32 %v10175_v37, %v15736_v4  ;;  %v8906_v55 = vadd.f32 %v10176_v25, %v8241_v6  ;;  %v8907_v9 = vadd.f32 %v10177_v32, %v15737_v16  ;;  %v8910_v15 = vadd.f32 %v10180_v53, %v8258_v13 }
 0x5da   : > { %v8911_v21 = vadd.f32 %v10181_v0, %v15738_v38  ;;  %v8912_v19 = vadd.f32 %v10182_v57, %v8259_v28  ;;  %v8908_v41 = vadd.f32 %v10178_v12, %v15739_v27  ;;  %v8909_v50 = vadd.f32 %v10179_v52, %v15740_v54 }
 0x5db   : > { %v8913_v5 = vadd.f32 %v10183_v61, %v15741_v58  ;;  %v8914_v10 = vadd.f32 %v10184_v11, %v8275_v34  ;;  %v8915_v30 = vadd.f32 %v10185_v40, %v15742_v35  ;;  %v8966_v59 = vadd.f32 %v8894_v44, %v8886_v47 }
 0x5dc   : > { %v8967_v42 = vadd.f32 %v8895_v51, %v8887_v31  ;;  %v8968_v24 = vadd.f32 %v8896_v23, %v8888_v8  ;;  %v8916_v6 = vadd.f32 %v10186_v63, %v15743_v36  ;;  %v8965_v49 = vadd.f32 %v8893_v43, %v8885_v18 }
 0x5dd   : > { %v8969_v60 = vadd.f32 %v8897_v39, %v8889_v20  ;;  %v8970_v13 = vadd.f32 %v8898_v17, %v8890_v2  ;;  %v8971_v7 = vadd.f32 %v8899_v3, %v8891_v62  ;;  %v8974_v45 = vadd.f32 %v8910_v15, %v8902_v46 }
 0x5de   : > { %v8975_v28 = vadd.f32 %v8911_v21, %v8903_v1  ;;  %v8976_v37 = vadd.f32 %v8912_v19, %v8904_v33  ;;  %v8972_v25 = vadd.f32 %v8900_v29, %v8892_v22  ;;  %v8973_v32 = vadd.f32 %v8909_v50, %v8901_v48 }
 0x5df   : > { %v8977_v12 = vadd.f32 %v8913_v5, %v8905_v14  ;;  %v8978_v52 = vadd.f32 %v8914_v10, %v8906_v55  ;;  %v8979_v53 = vadd.f32 %v8915_v30, %v8907_v9  ;;  %v9030_v34 = vmul.f32 0.25, %v8966_v59 }
 0x5e0   : > { %v9031_v0 = vmul.f32 0.25, %v8967_v42  ;;  %v9032_v57 = vmul.f32 0.25, %v8968_v24  ;;  %v8980_v47 = vadd.f32 %v8916_v6, %v8908_v41  ;;  %v9029_v31 = vmul.f32 0.25, %v8965_v49 }
 0x5e1   : > { %v9033_v8 = vmul.f32 0.25, %v8969_v60  ;;  %v9034_v44 = vmul.f32 0.25, %v8970_v13  ;;  %v9035_v61 = vmul.f32 0.25, %v8971_v7  ;;  %v9038_v18 = vmul.f32 0.25, %v8974_v45 }
 0x5e2   : > { %v9039_v20 = vmul.f32 0.25, %v8975_v28  ;;  %v9040_v2 = vmul.f32 0.25, %v8976_v37  ;;  %v9036_v62 = vmul.f32 0.25, %v8972_v25  ;;  %v9037_v43 = vmul.f32 0.25, %v8973_v32 }
 0x5e3   : > { %v9041_v11 = vmul.f32 0.25, %v8977_v12  ;;  %v9042_v40 = vmul.f32 0.25, %v8978_v52  ;;  %v9043_v22 = vmul.f32 0.25, %v8979_v53  ;;  %v9094_v63 = vpack.c.bf16 %v9030_v34, %v9030_v34 }
 0x5e4   : > { %v9095_v51 = vpack.c.bf16 %v9031_v0, %v9031_v0  ;;  %v9096_v23 = vpack.c.bf16 %v9032_v57, %v9032_v57  ;;  %v9044_v39 = vmul.f32 0.25, %v8980_v47  ;;  %v9093_v17 = vpack.c.bf16 %v9029_v31, %v9029_v31 }
 0x5e5   : > { %v9097_v3 = vpack.c.bf16 %v9033_v8, %v9033_v8  ;;  %v9098_v29 = vpack.c.bf16 %v9034_v44, %v9034_v44  ;;  %v9099_v48 = vpack.c.bf16 %v9035_v61, %v9035_v61  ;;  %v9102_v26 = vpack.c.bf16 %v9038_v18, %v9038_v18 }
 0x5e6   : > { %v9103_v46 = vpack.c.bf16 %v9039_v20, %v9039_v20  ;;  %v9104_v56 = vpack.c.bf16 %v9040_v2, %v9040_v2  ;;  %v9100_v1 = vpack.c.bf16 %v9036_v62, %v9036_v62  ;;  %v9101_v33 = vpack.c.bf16 %v9037_v43, %v9037_v43 }
 0x5e7   : > { %v9105_v4 = vpack.c.bf16 %v9041_v11, %v9041_v11  ;;  %v9106_v14 = vpack.c.bf16 %v9042_v40, %v9042_v40  ;;  %v9107_v55 = vpack.c.bf16 %v9043_v22, %v9043_v22  ;;  %v9223_v16 = vunpack.c.l.b16 %v9094_v63 }
 0x5e8   : > { %v9224_v9 = vunpack.c.l.b16 %v9095_v51  ;;  %v9225_v15 = vunpack.c.l.b16 %v9096_v23  ;;  %v9108_v38 = vpack.c.bf16 %v9044_v39, %v9044_v39  ;;  %v9222_v21 = vunpack.c.l.b16 %v9093_v17  ;;  %v10047_v17 = vld [vmem:[%s15320_s4] ss:$0 sm:$0xff] }
 0x5e9   : > { %v9226_v19 = vunpack.c.l.b16 %v9097_v3  ;;  %v9227_v27 = vunpack.c.l.b16 %v9098_v29  ;;  %v9228_v41 = vunpack.c.l.b16 %v9099_v48  ;;  %v9231_v54 = vunpack.c.l.b16 %v9102_v26 }
 0x5ea   : > { %v9232_v50 = vunpack.c.l.b16 %v9103_v46  ;;  %v9233_v58 = vunpack.c.l.b16 %v9104_v56  ;;  %v9229_v5 = vunpack.c.l.b16 %v9100_v1  ;;  %v9230_v10 = vunpack.c.l.b16 %v9101_v33 }
 0x5eb   : > { %v9234_v35 = vunpack.c.l.b16 %v9105_v4  ;;  %v9235_v30 = vunpack.c.l.b16 %v9106_v14  ;;  %v9236_v59 = vunpack.c.l.b16 %v9107_v55  ;;  %v9322_v42 = vrot.slane %v9223_v16, 7 }
 0x5ec   : > { %v9324_v24 = vrot.slane %v9224_v9, 6  ;;  %v9326_v36 = vrot.slane %v9225_v15, 5  ;;  %v9237_v6 = vunpack.c.l.b16 %v9108_v38  ;;  %v9328_v49 = vrot.slane %v9226_v19, 4 }
 0x5ed   : > { %v9330_v60 = vrot.slane %v9227_v27, 3  ;;  %v9336_v13 = vrot.slane %v9231_v54, 7  ;;  %v9323_v7 = vsel %vm5588_vm13, %v9322_v42, %v9222_v21  ;;  %v9338_v45 = vrot.slane %v9232_v50, 6 }
 0x5ee   : > { %v9340_v28 = vrot.slane %v9233_v58, 5  ;;  %v9342_v37 = vrot.slane %v9234_v35, 4  ;;  %v9325_v25 = vsel %vm5590_vm14, %v9324_v24, %v9323_v7  ;;  %v9332_v32 = vrot.slane %v9228_v41, 2 }
 0x5ef   : > { %v9337_v12 = vsel %vm5588_vm13, %v9336_v13, %v9230_v10  ;;  %v9344_v52 = vrot.slane %v9235_v30, 3  ;;  %v9327_v53 = vsel %vm5592_vm15, %v9326_v36, %v9325_v25  ;;  %v9334_v34 = vrot.slane %v9229_v5, 1 }
 0x5f0   : > { %v9339_v0 = vsel %vm5590_vm14, %v9338_v45, %v9337_v12  ;;  %v9346_v57 = vrot.slane %v9236_v59, 2  ;;  %v9329_v47 = vsel %vm5594_vm1, %v9328_v49, %v9327_v53  ;;  %v9348_v8 = vrot.slane %v9237_v6, 1 }
 0x5f1   : > { %v9341_v31 = vsel %vm5592_vm15, %v9340_v28, %v9339_v0  ;;  %v9331_v44 = vsel %vm5596_vm12, %v9330_v60, %v9329_v47 }
 0x5f2   : > { %v9343_v61 = vsel %vm5594_vm1, %v9342_v37, %v9341_v31  ;;  %v9333_v18 = vsel %vm5598_vm11, %v9332_v32, %v9331_v44 }
 0x5f3   : > { %v9345_v20 = vsel %vm5596_vm12, %v9344_v52, %v9343_v61  ;;  %v9335_v2 = vsel %vm5600_vm10, %v9334_v34, %v9333_v18 }
 0x5f4   : > { %v9347_v62 = vsel %vm5598_vm11, %v9346_v57, %v9345_v20 }
 0x5f5   : > { %v9349_v43 = vsel %vm5600_vm10, %v9348_v8, %v9347_v62 }
 0x5f6   : > { %v9353_v11 = vpack.c.b16 %v9349_v43, %v9335_v2 }
 0x5f8   : > { %10645 = vmatmul.mubr.msk.bf16.gmra.mxu1 %vm449_vm0, %v9353_v11  ;;  %vm9450_vm0 = vcmask 64512  }
 0x640   : > { %v10632_v40 = vpop.f32.mrf.mxu1 }
 0x641   : > { %v7679_v48 = vadd.f32 %v10632_v40, %v10047_v17 }
 0x642   : > { %v7670_v22 = vpop.f32.mrf.mxu1 }
 0x643   : > { %v7671_v46 = vadd.f32 %v10047_v17, %v7670_v22 }
 0x644   : > { %v10633_v63 = vpop.f32.mrf.mxu1 }
 0x645   : > { %v7682_v33 = vadd.f32 %v10633_v63, %v10047_v17 }
 0x646   : > { %v7673_v51 = vpop.f32.mrf.mxu1 }
 0x647   : > { %v7674_v16 = vadd.f32 %v10047_v17, %v7673_v51 }
 0x67c   : > { %v10636_v23 = vpop.f32.mrf.mxu1 }
 0x67d   : > { %v7695_v41 = vadd.f32 %v10636_v23, %v10047_v17 }
 0x67e   : > { %v7686_v39 = vpop.f32.mrf.mxu1 }
 0x67f   : > { %v7687_v50 = vadd.f32 %v10047_v17, %v7686_v39 }
 0x680   : > { %v10637_v3 = vpop.f32.mrf.mxu1 }
 0x681   : > { %v7698_v10 = vadd.f32 %v10637_v3, %v10047_v17 }
 0x682   : > { %v7689_v29 = vpop.f32.mrf.mxu1 }
 0x683   : > { %v7690_v42 = vadd.f32 %v10047_v17, %v7689_v29 }
 0x684   : > { %v10642_v26 = vpop.f32.mrf.mxu1 }
 0x685   : > { %v9436_v56 = vadd.f32 %v10642_v26, %v7679_v48 }
 0x686   : > { %v9403_v1 = vpop.f32.mrf.mxu1 }
 0x687   : > { %v9444_v4 = vmul.f32 0.70710677, %v9436_v56  ;;  %v9434_v14 = vadd.f32 %v9403_v1, %v7671_v46 }
 0x688   : > { %v10643_v55 = vpop.f32.mrf.mxu1 }
 0x689   : > { %9453 = vst.msk [vmem:[%s15295_s25 + $0x10] sm:$0xff] %vm9450_vm0, %v9444_v4  ;;  %v9442_v9 = vmul.f32 0.70710677, %v9434_v14  ;;  %v9437_v15 = vadd.f32 %v10643_v55, %v7682_v33 }
 0x68a   : > { %v9406_v38 = vpop.f32.mrf.mxu1 }
 0x68b   : > { %9451 = vst.msk [vmem:[%s15295_s25] sm:$0xff] %vm9450_vm0, %v9442_v9  ;;  %v9445_v21 = vmul.f32 0.70710677, %v9437_v15  ;;  %v9435_v19 = vadd.f32 %v9406_v38, %v7674_v16 }
 0x68d   : > { %9454 = vst.msk [vmem:[%s15295_s25 + $0x18] sm:$0xff] %vm9450_vm0, %v9445_v21  ;;  %v9443_v27 = vmul.f32 0.70710677, %v9435_v19 }
 0x68f   : > { %9452 = vst.msk [vmem:[%s15295_s25 + $0x8] sm:$0xff] %vm9450_vm0, %v9443_v27 }
 0x6b8   : > { %v10646_v54 = vpop.f32.mrf.mxu1 }
 0x6b9   : > { %v9440_v58 = vadd.f32 %v10646_v54, %v7695_v41 }
 0x6ba   : > { %v9419_v5 = vpop.f32.mrf.mxu1 }
 0x6bb   : > { %v9448_v35 = vmul.f32 0.70710677, %v9440_v58  ;;  %v9438_v30 = vadd.f32 %v9419_v5, %v7687_v50 }
 0x6bc   : > { %v10647_v59 = vpop.f32.mrf.mxu1 }
 0x6bd   : > { %9457 = vst.msk [vmem:[%s15295_s25 + $0x30] sm:$0xff] %vm9450_vm0, %v9448_v35  ;;  %v9446_v24 = vmul.f32 0.70710677, %v9438_v30  ;;  %v9441_v36 = vadd.f32 %v10647_v59, %v7698_v10 }
 0x6be   : > { %v9422_v6 = vpop.f32.mrf.mxu1 }
 0x6bf   : > { %9455 = vst.msk [vmem:[%s15295_s25 + $0x20] sm:$0xff] %vm9450_vm0, %v9446_v24  ;;  %v9449_v49 = vmul.f32 0.70710677, %v9441_v36  ;;  %v9439_v60 = vadd.f32 %v9422_v6, %v7690_v42 }
 0x6c1   : > { %9458 = vst.msk [vmem:[%s15295_s25 + $0x38] sm:$0xff] %vm9450_vm0, %v9449_v49  ;;  %v9447_v13 = vmul.f32 0.70710677, %v9439_v60 }
 0x6c3   : > { %9456 = vst.msk [vmem:[%s15295_s25 + $0x28] sm:$0xff] %vm9450_vm0, %v9447_v13 }
 0x6c4 PF: > { %s22_s21 = sadd.s32 1, %s10799_s21  }
 0x6c5   : > { %p19_p4 = scmp.ge.s32.totalorder %s22_s21, 4  }
 0x6c7   :  { %21 = sbr.rel (!%p19_p4) target bundleno = 1 (0x1), region = 98 }

</bundles_post_ra>
